<compile_context>
chip_gen: v7x
topology: tpu7x:2x2x1
jax: 0.10.0
libtpu: 0.0.40
codegen_flags: <defaults>
</compile_context>

<pallas_src>
import jax
import jax.numpy as jnp
from jax import lax
from jax.experimental import pallas as pl
from jax.experimental.pallas import tpu as pltpu  # noqa: F401

# ---------------- config (matches the nn.Module constructor args) ----------------
NUM_EMBEDDINGS = 50
EMBEDDING_DIM = 16
HID_DIM = 32
NUM_LAYERS = 2
BIDIRECTIONAL = True
NUM_CLASS = 5
PAD_IDX = 0
FC_DIM = HID_DIM * 2 if BIDIRECTIONAL else HID_DIM  # fc_in_dim


# ---------------- fused forward kernel -------------------------------------------
def _fused_forward_kernel(emb_ref, len_ref,
                          wih0_ref, whh0_ref, bih0_ref, bhh0_ref,
                          wih1_ref, whh1_ref, bih1_ref, bhh1_ref,
                          wihu_ref, whhu_ref, bihu_ref, bhhu_ref,
                          w1_ref, b1_ref, w2_ref, b2_ref,
                          w3_ref, b3_ref, wo_ref, bo_ref,
                          emis_ref):
    S, B, _ = emb_ref.shape
    H = whh0_ref.shape[2] // 3              # hid_dim
    D = w1_ref.shape[0]                     # fc_in_dim (= 2H)
    C = wo_ref.shape[1]                     # num_class
    lens = len_ref[...]                     # [B, 1] int32 (packed-sequence lengths)

    def gru_pass(xs, wih, whh, bih, bhh, hid, reverse, masked):
        """Fused-gate GRU over a list of [B, Din] inputs. Returns (outs, final h)."""
        th = 3 * hid
        bih_b = jnp.broadcast_to(bih, (B, th)).astype(jnp.float32)
        bhh_b = jnp.broadcast_to(bhh, (B, th)).astype(jnp.float32)
        # Hoisted input projection + b_ih: off the serial critical path.
        gx = [jnp.dot(x.astype(jnp.bfloat16), wih,
                      preferred_element_type=jnp.float32) + bih_b for x in xs]
        n_t = len(xs)
        h = jnp.zeros((B, hid), jnp.float32)
        outs = [None] * n_t
        order = range(n_t - 1, -1, -1) if reverse else range(n_t)
        for t in order:                      # fully unrolled serial recurrence
            gh = jnp.dot(h.astype(jnp.bfloat16), whh,
                         preferred_element_type=jnp.float32) + bhh_b
            gxt = gx[t]
            r = jax.nn.sigmoid(gxt[:, 0:hid] + gh[:, 0:hid])
            z = jax.nn.sigmoid(gxt[:, hid:2 * hid] + gh[:, hid:2 * hid])
            n = jnp.tanh(gxt[:, 2 * hid:th] + r * gh[:, 2 * hid:th])
            h_new = (1.0 - z) * n + z * h
            if masked:
                valid = lens > t             # [B, 1] pack_padded_sequence mask
                h = jnp.where(valid, h_new, h)
                outs[t] = jnp.where(valid, h_new, 0.0)
            else:
                h = h_new
                outs[t] = h_new
        return outs, h

    xs0 = [emb_ref[t] for t in range(S)]     # [B, E] per step (time-major input)

    # ---- BiGRU layer 0 (dir 0 = fwd, dir 1 = bwd) ----
    f0, _ = gru_pass(xs0, wih0_ref[0], whh0_ref[0], bih0_ref[0], bhh0_ref[0],
                     H, reverse=False, masked=True)
    b0, _ = gru_pass(xs0, wih0_ref[1], whh0_ref[1], bih0_ref[1], bhh0_ref[1],
                     H, reverse=True, masked=True)
    xs1 = [jnp.concatenate([f0[t], b0[t]], axis=-1) for t in range(S)]    # [B, 2H]

    # ---- BiGRU layer 1 ----
    f1, h_f = gru_pass(xs1, wih1_ref[0], whh1_ref[0], bih1_ref[0], bhh1_ref[0],
                       H, reverse=False, masked=True)
    r1, h_b = gru_pass(xs1, wih1_ref[1], whh1_ref[1], bih1_ref[1], bhh1_ref[1],
                       H, reverse=True, masked=True)
    bigru = [jnp.concatenate([f1[t], r1[t]], axis=-1) for t in range(S)]  # [B, 2H]
    # torch: cat([h_n[-1] (last layer bwd), h_n[-2] (last layer fwd)], dim=1)
    hidden_cat = jnp.concatenate([h_b, h_f], axis=-1)                     # [B, 2H]

    # ---- uni-GRU over the padded bigru output (not packed); outputs 0..S-2
    #      are the only ones consumed (as queries for positions 1..S-1).
    if S > 1:
        uni, _ = gru_pass(bigru[:S - 1], wihu_ref[...], whhu_ref[...],
                          bihu_ref[...], bhhu_ref[...], D,
                          reverse=False, masked=False)
    else:
        uni = []
    queries = [hidden_cat] + uni                                          # S x [B, 2H]

    # ---- self-attention + gated output head, per query position ----
    w1 = w1_ref[...]
    w2 = w2_ref[...]
    w3 = w3_ref[...]
    wo = wo_ref[...]
    b1 = jnp.broadcast_to(b1_ref[...], (B, D))
    b2 = jnp.broadcast_to(b2_ref[...], (B, D))
    b3 = jnp.broadcast_to(b3_ref[...], (B, D))
    bo = jnp.broadcast_to(bo_ref[...], (B, C))
    for i in range(S):
        q = queries[i]                                                    # [B, 2H]
        # attn_energies[b, j] = sum_d q[b, d] * bigru_output[b, j, d]
        e = [jnp.sum(q * bigru[j], axis=-1, keepdims=True) for j in range(S)]
        m = e[0]
        for j in range(1, S):
            m = jnp.maximum(m, e[j])
        p = [jnp.exp(e[j] - m) for j in range(S)]
        denom = p[0]
        for j in range(1, S):
            denom = denom + p[j]
        inv = pl.reciprocal(denom, approx=True)                           # [B, 1]
        ctx = (p[0] * inv) * bigru[0]
        for j in range(1, S):
            ctx = ctx + (p[j] * inv) * bigru[j]                           # [B, 2H]
        c1 = jnp.dot(ctx.astype(jnp.bfloat16), w1,
                     preferred_element_type=jnp.float32) + b1             # fc_attn
        c2 = jnp.dot(c1.astype(jnp.bfloat16), w2,
                     preferred_element_type=jnp.float32) + b2             # fc_attn_fc
        h1 = jnp.dot(bigru[i].astype(jnp.bfloat16), w3,
                     preferred_element_type=jnp.float32) + b3             # fc_ht
        ft = c1 * jax.nn.sigmoid(c2 + h1) + bigru[i]
        out = jnp.dot(ft.astype(jnp.bfloat16), wo,
                      preferred_element_type=jnp.float32) + bo            # fc_out
        emis_ref[i] = out.astype(emis_ref.dtype)                          # [B, C]


def _fused_forward(params, emb_tm, lens):
    """emb_tm: [S, B, E] f32; lens: [B, 1] int32 -> emissions [S, B, C] f32."""
    S, B, _ = emb_tm.shape
    bf = jnp.bfloat16
    l0, l1 = params["bigru"]
    uni = params["unigru"]
    args = (
        emb_tm, lens,
        l0["wih"].astype(bf), l0["whh"].astype(bf), l0["bih"], l0["bhh"],
        l1["wih"].astype(bf), l1["whh"].astype(bf), l1["bih"], l1["bhh"],
        uni["wih"].astype(bf), uni["whh"].astype(bf), uni["bih"], uni["bhh"],
        params["fc_attn_w"].astype(bf), params["fc_attn_b"],
        params["fc_attn_fc_w"].astype(bf), params["fc_attn_fc_b"],
        params["fc_ht_w"].astype(bf), params["fc_ht_b"],
        params["fc_out_w"].astype(bf), params["fc_out_b"],
    )
    return pl.pallas_call(
        _fused_forward_kernel,
        out_shape=jax.ShapeDtypeStruct((S, B, NUM_CLASS), jnp.float32),
    )(*args)


# ---------------- CRF Viterbi decode (plain JAX glue, matches torchcrf.decode) ---
def crf_decode(emissions, start_trans, end_trans, trans):
    # emissions: [B, S, C]; mask is all-ones (crf.decode called without mask)
    B, S, C = emissions.shape
    score0 = start_trans[None, :] + emissions[:, 0]                # [B, C]

    def fwd_step(score, em_t):
        ns = score[:, :, None] + trans[None, :, :] + em_t[:, None, :]  # [B, C, C]
        return jnp.max(ns, axis=1), jnp.argmax(ns, axis=1)

    em_rest = jnp.transpose(emissions[:, 1:], (1, 0, 2))           # [S-1, B, C]
    final_score, history = lax.scan(fwd_step, score0, em_rest)
    final_score = final_score + end_trans[None, :]
    last_tag = jnp.argmax(final_score, axis=-1)                    # [B]

    def back_step(next_tag, idx_t):
        prev = jnp.take_along_axis(idx_t, next_tag[:, None], axis=1)[:, 0]
        return prev, prev

    _, tags_prefix = lax.scan(back_step, last_tag, history, reverse=True)  # [S-1, B]
    tags = jnp.concatenate([tags_prefix, last_tag[None, :]], axis=0)       # [S, B]
    return tags.T                                                          # [B, S]


# ---------------- parameter init (deterministic, synthetic) ----------------------
def init_params(key):
    keys = iter(jax.random.split(key, 64))

    def unif(shape, k):
        return jax.random.uniform(next(keys), shape, jnp.float32, -k, k)

    params = {}
    emb = jax.random.normal(next(keys), (NUM_EMBEDDINGS, EMBEDDING_DIM), jnp.float32)
    params["embedding"] = emb.at[PAD_IDX].set(0.0)

    k_h = 1.0 / (HID_DIM ** 0.5)
    bigru = []
    for layer in range(NUM_LAYERS):
        din = EMBEDDING_DIM if layer == 0 else FC_DIM
        bigru.append({
            # dir 0 = fwd, dir 1 = bwd; gates packed [r | z | n] on the last axis
            "wih": unif((2, din, 3 * HID_DIM), k_h),
            "whh": unif((2, HID_DIM, 3 * HID_DIM), k_h),
            "bih": unif((2, 1, 3 * HID_DIM), k_h),
            "bhh": unif((2, 1, 3 * HID_DIM), k_h),
        })
    params["bigru"] = bigru

    k_u = 1.0 / (FC_DIM ** 0.5)
    params["unigru"] = {
        "wih": unif((FC_DIM, 3 * FC_DIM), k_u),
        "whh": unif((FC_DIM, 3 * FC_DIM), k_u),
        "bih": unif((1, 3 * FC_DIM), k_u),
        "bhh": unif((1, 3 * FC_DIM), k_u),
    }

    k_f = 1.0 / (FC_DIM ** 0.5)
    params["fc_attn_w"] = unif((FC_DIM, FC_DIM), k_f)
    params["fc_attn_b"] = unif((1, FC_DIM), k_f)
    params["fc_attn_fc_w"] = unif((FC_DIM, FC_DIM), k_f)
    params["fc_attn_fc_b"] = unif((1, FC_DIM), k_f)
    params["fc_ht_w"] = unif((FC_DIM, FC_DIM), k_f)
    params["fc_ht_b"] = unif((1, FC_DIM), k_f)
    params["fc_out_w"] = unif((FC_DIM, NUM_CLASS), k_f)
    params["fc_out_b"] = unif((1, NUM_CLASS), k_f)

    params["crf_start"] = unif((NUM_CLASS,), 0.1)
    params["crf_end"] = unif((NUM_CLASS,), 0.1)
    params["crf_trans"] = unif((NUM_CLASS, NUM_CLASS), 0.1)
    return params


# ---------------- full forward ----------------------------------------------------
def grusaie_forward(params, padded_input, input_lengths):
    B, S = padded_input.shape
    # TODO(synk): embedding gather stays as an XLA jnp.take (data-dependent gather).
    emb = jnp.take(params["embedding"], padded_input, axis=0)      # [B, S, E]
    emb_tm = jnp.transpose(emb, (1, 0, 2)).astype(jnp.float32)     # [S, B, E]
    lens = input_lengths.astype(jnp.int32).reshape(B, 1)

    emis_tm = _fused_forward(params, emb_tm, lens)                 # [S, B, C]
    emissions = jnp.transpose(emis_tm, (1, 0, 2))                  # [B, S, C]

    tags = crf_decode(emissions, params["crf_start"], params["crf_end"],
                      params["crf_trans"])                         # [B, S] int
    return tags, emissions


if __name__ == "__main__":
    key = jax.random.PRNGKey(0)
    params = init_params(key)

    B, S = 2, 8
    input_lengths = jnp.array([8, 5], dtype=jnp.int32)   # sorted descending (pack semantics)
    tok_key = jax.random.fold_in(key, 999)
    tokens = jax.random.randint(tok_key, (B, S), 1, NUM_EMBEDDINGS, dtype=jnp.int32)
    pos = jnp.arange(S)[None, :]
    tokens = jnp.where(pos < input_lengths[:, None], tokens, PAD_IDX)

    fwd = jax.jit(grusaie_forward)
    tags, emissions = fwd(params, tokens, input_lengths)
    jax.block_until_ready((tags, emissions))
    assert tags.shape == (B, S)
    assert emissions.shape == (B, S, NUM_CLASS)
    print("KERNEL_OK")
</pallas_src>

<mosaic_0001>
module attributes {stable_mosaic.version = 11 : i64} {
  func.func @_fused_forward_kernel(%arg0: memref<8x2x16xf32, #tpu.memory_space<vmem>>, %arg1: memref<2x1xi32, #tpu.memory_space<vmem>>, %arg2: memref<2x16x96xbf16, #tpu.memory_space<vmem>>, %arg3: memref<2x32x96xbf16, #tpu.memory_space<vmem>>, %arg4: memref<2x1x96xf32, #tpu.memory_space<vmem>>, %arg5: memref<2x1x96xf32, #tpu.memory_space<vmem>>, %arg6: memref<2x64x96xbf16, #tpu.memory_space<vmem>>, %arg7: memref<2x32x96xbf16, #tpu.memory_space<vmem>>, %arg8: memref<2x1x96xf32, #tpu.memory_space<vmem>>, %arg9: memref<2x1x96xf32, #tpu.memory_space<vmem>>, %arg10: memref<64x192xbf16, #tpu.memory_space<vmem>>, %arg11: memref<64x192xbf16, #tpu.memory_space<vmem>>, %arg12: memref<1x192xf32, #tpu.memory_space<vmem>>, %arg13: memref<1x192xf32, #tpu.memory_space<vmem>>, %arg14: memref<64x64xbf16, #tpu.memory_space<vmem>>, %arg15: memref<1x64xf32, #tpu.memory_space<vmem>>, %arg16: memref<64x64xbf16, #tpu.memory_space<vmem>>, %arg17: memref<1x64xf32, #tpu.memory_space<vmem>>, %arg18: memref<64x64xbf16, #tpu.memory_space<vmem>>, %arg19: memref<1x64xf32, #tpu.memory_space<vmem>>, %arg20: memref<64x5xbf16, #tpu.memory_space<vmem>>, %arg21: memref<1x5xf32, #tpu.memory_space<vmem>>, %arg22: memref<8x2x5xf32, #tpu.memory_space<vmem>>) attributes {dimension_semantics = [], scalar_prefetch = 0 : i64, scratch_operands = 0 : i64, tpu.core_type = #tpu.core_type<tc>} {
    %c0 = arith.constant 0 : index
    %c0_0 = arith.constant 0 : index
    %0 = vector.load %arg1[%c0, %c0_0] : memref<2x1xi32, #tpu.memory_space<vmem>>, vector<2x1xi32>
    %c0_1 = arith.constant 0 : index
    %c0_2 = arith.constant 0 : index
    %c0_3 = arith.constant 0 : index
    %1 = vector.load %arg0[%c0_1, %c0_2, %c0_3] : memref<8x2x16xf32, #tpu.memory_space<vmem>>, vector<1x2x16xf32>
    %2 = vector.shape_cast %1 : vector<1x2x16xf32> to vector<2x16xf32>
    %c1 = arith.constant 1 : index
    %c0_4 = arith.constant 0 : index
    %c0_5 = arith.constant 0 : index
    %3 = vector.load %arg0[%c1, %c0_4, %c0_5] : memref<8x2x16xf32, #tpu.memory_space<vmem>>, vector<1x2x16xf32>
    %4 = vector.shape_cast %3 : vector<1x2x16xf32> to vector<2x16xf32>
    %c2 = arith.constant 2 : index
    %c0_6 = arith.constant 0 : index
    %c0_7 = arith.constant 0 : index
    %5 = vector.load %arg0[%c2, %c0_6, %c0_7] : memref<8x2x16xf32, #tpu.memory_space<vmem>>, vector<1x2x16xf32>
    %6 = vector.shape_cast %5 : vector<1x2x16xf32> to vector<2x16xf32>
    %c3 = arith.constant 3 : index
    %c0_8 = arith.constant 0 : index
    %c0_9 = arith.constant 0 : index
    %7 = vector.load %arg0[%c3, %c0_8, %c0_9] : memref<8x2x16xf32, #tpu.memory_space<vmem>>, vector<1x2x16xf32>
    %8 = vector.shape_cast %7 : vector<1x2x16xf32> to vector<2x16xf32>
    %c4 = arith.constant 4 : index
    %c0_10 = arith.constant 0 : index
    %c0_11 = arith.constant 0 : index
    %9 = vector.load %arg0[%c4, %c0_10, %c0_11] : memref<8x2x16xf32, #tpu.memory_space<vmem>>, vector<1x2x16xf32>
    %10 = vector.shape_cast %9 : vector<1x2x16xf32> to vector<2x16xf32>
    %c5 = arith.constant 5 : index
    %c0_12 = arith.constant 0 : index
    %c0_13 = arith.constant 0 : index
    %11 = vector.load %arg0[%c5, %c0_12, %c0_13] : memref<8x2x16xf32, #tpu.memory_space<vmem>>, vector<1x2x16xf32>
    %12 = vector.shape_cast %11 : vector<1x2x16xf32> to vector<2x16xf32>
    %c6 = arith.constant 6 : index
    %c0_14 = arith.constant 0 : index
    %c0_15 = arith.constant 0 : index
    %13 = vector.load %arg0[%c6, %c0_14, %c0_15] : memref<8x2x16xf32, #tpu.memory_space<vmem>>, vector<1x2x16xf32>
    %14 = vector.shape_cast %13 : vector<1x2x16xf32> to vector<2x16xf32>
    %c7 = arith.constant 7 : index
    %c0_16 = arith.constant 0 : index
    %c0_17 = arith.constant 0 : index
    %15 = vector.load %arg0[%c7, %c0_16, %c0_17] : memref<8x2x16xf32, #tpu.memory_space<vmem>>, vector<1x2x16xf32>
    %16 = vector.shape_cast %15 : vector<1x2x16xf32> to vector<2x16xf32>
    %c0_18 = arith.constant 0 : index
    %c0_19 = arith.constant 0 : index
    %c0_20 = arith.constant 0 : index
    %17 = vector.load %arg2[%c0_18, %c0_19, %c0_20] : memref<2x16x96xbf16, #tpu.memory_space<vmem>>, vector<1x16x96xbf16>
    %18 = vector.shape_cast %17 : vector<1x16x96xbf16> to vector<16x96xbf16>
    %c0_21 = arith.constant 0 : index
    %c0_22 = arith.constant 0 : index
    %c0_23 = arith.constant 0 : index
    %19 = vector.load %arg3[%c0_21, %c0_22, %c0_23] : memref<2x32x96xbf16, #tpu.memory_space<vmem>>, vector<1x32x96xbf16>
    %20 = vector.shape_cast %19 : vector<1x32x96xbf16> to vector<32x96xbf16>
    %c0_24 = arith.constant 0 : index
    %c0_25 = arith.constant 0 : index
    %c0_26 = arith.constant 0 : index
    %21 = vector.load %arg4[%c0_24, %c0_25, %c0_26] : memref<2x1x96xf32, #tpu.memory_space<vmem>>, vector<1x1x96xf32>
    %22 = vector.shape_cast %21 : vector<1x1x96xf32> to vector<1x96xf32>
    %c0_27 = arith.constant 0 : index
    %c0_28 = arith.constant 0 : index
    %c0_29 = arith.constant 0 : index
    %23 = vector.load %arg5[%c0_27, %c0_28, %c0_29] : memref<2x1x96xf32, #tpu.memory_space<vmem>>, vector<1x1x96xf32>
    %24 = vector.shape_cast %23 : vector<1x1x96xf32> to vector<1x96xf32>
    %25 = vector.shape_cast %22 : vector<1x96xf32> to vector<1x96xf32>
    %26 = vector.broadcast %25 : vector<1x96xf32> to vector<2x96xf32>
    %27 = vector.shape_cast %24 : vector<1x96xf32> to vector<1x96xf32>
    %28 = vector.broadcast %27 : vector<1x96xf32> to vector<2x96xf32>
    %29 = arith.truncf %2 : vector<2x16xf32> to vector<2x16xbf16>
    %cst = arith.constant dense<0.000000e+00> : vector<2x96xf32>
    %30 = tpu.matmul %29, %18, %cst {dimension_numbers = #tpu.dot_dimension_numbers<[1], [0], [0], [1], [0, 0, 1, 1], [], []>} : vector<2x16xbf16>, vector<16x96xbf16>, vector<2x96xf32> -> vector<2x96xf32>
    %31 = arith.addf %30, %26 : vector<2x96xf32>
    %32 = arith.truncf %4 : vector<2x16xf32> to vector<2x16xbf16>
    %cst_30 = arith.constant dense<0.000000e+00> : vector<2x96xf32>
    %33 = tpu.matmul %32, %18, %cst_30 {dimension_numbers = #tpu.dot_dimension_numbers<[1], [0], [0], [1], [0, 0, 1, 1], [], []>} : vector<2x16xbf16>, vector<16x96xbf16>, vector<2x96xf32> -> vector<2x96xf32>
    %34 = arith.addf %33, %26 : vector<2x96xf32>
    %35 = arith.truncf %6 : vector<2x16xf32> to vector<2x16xbf16>
    %cst_31 = arith.constant dense<0.000000e+00> : vector<2x96xf32>
    %36 = tpu.matmul %35, %18, %cst_31 {dimension_numbers = #tpu.dot_dimension_numbers<[1], [0], [0], [1], [0, 0, 1, 1], [], []>} : vector<2x16xbf16>, vector<16x96xbf16>, vector<2x96xf32> -> vector<2x96xf32>
    %37 = arith.addf %36, %26 : vector<2x96xf32>
    %38 = arith.truncf %8 : vector<2x16xf32> to vector<2x16xbf16>
    %cst_32 = arith.constant dense<0.000000e+00> : vector<2x96xf32>
    %39 = tpu.matmul %38, %18, %cst_32 {dimension_numbers = #tpu.dot_dimension_numbers<[1], [0], [0], [1], [0, 0, 1, 1], [], []>} : vector<2x16xbf16>, vector<16x96xbf16>, vector<2x96xf32> -> vector<2x96xf32>
    %40 = arith.addf %39, %26 : vector<2x96xf32>
    %41 = arith.truncf %10 : vector<2x16xf32> to vector<2x16xbf16>
    %cst_33 = arith.constant dense<0.000000e+00> : vector<2x96xf32>
    %42 = tpu.matmul %41, %18, %cst_33 {dimension_numbers = #tpu.dot_dimension_numbers<[1], [0], [0], [1], [0, 0, 1, 1], [], []>} : vector<2x16xbf16>, vector<16x96xbf16>, vector<2x96xf32> -> vector<2x96xf32>
    %43 = arith.addf %42, %26 : vector<2x96xf32>
    %44 = arith.truncf %12 : vector<2x16xf32> to vector<2x16xbf16>
    %cst_34 = arith.constant dense<0.000000e+00> : vector<2x96xf32>
    %45 = tpu.matmul %44, %18, %cst_34 {dimension_numbers = #tpu.dot_dimension_numbers<[1], [0], [0], [1], [0, 0, 1, 1], [], []>} : vector<2x16xbf16>, vector<16x96xbf16>, vector<2x96xf32> -> vector<2x96xf32>
    %46 = arith.addf %45, %26 : vector<2x96xf32>
    %47 = arith.truncf %14 : vector<2x16xf32> to vector<2x16xbf16>
    %cst_35 = arith.constant dense<0.000000e+00> : vector<2x96xf32>
    %48 = tpu.matmul %47, %18, %cst_35 {dimension_numbers = #tpu.dot_dimension_numbers<[1], [0], [0], [1], [0, 0, 1, 1], [], []>} : vector<2x16xbf16>, vector<16x96xbf16>, vector<2x96xf32> -> vector<2x96xf32>
    %49 = arith.addf %48, %26 : vector<2x96xf32>
    %50 = arith.truncf %16 : vector<2x16xf32> to vector<2x16xbf16>
    %cst_36 = arith.constant dense<0.000000e+00> : vector<2x96xf32>
    %51 = tpu.matmul %50, %18, %cst_36 {dimension_numbers = #tpu.dot_dimension_numbers<[1], [0], [0], [1], [0, 0, 1, 1], [], []>} : vector<2x16xbf16>, vector<16x96xbf16>, vector<2x96xf32> -> vector<2x96xf32>
    %52 = arith.addf %51, %26 : vector<2x96xf32>
    %cst_37 = arith.constant 0.000000e+00 : f32
    %53 = vector.broadcast %cst_37 : f32 to vector<2x32xf32>
    %54 = arith.truncf %53 : vector<2x32xf32> to vector<2x32xbf16>
    %cst_38 = arith.constant dense<0.000000e+00> : vector<2x96xf32>
    %55 = tpu.matmul %54, %20, %cst_38 {dimension_numbers = #tpu.dot_dimension_numbers<[1], [0], [0], [1], [0, 0, 1, 1], [], []>} : vector<2x32xbf16>, vector<32x96xbf16>, vector<2x96xf32> -> vector<2x96xf32>
    %56 = arith.addf %55, %28 : vector<2x96xf32>
    %57 = vector.extract_strided_slice %31 {offsets = [0, 0], sizes = [2, 32], strides = [1, 1]} : vector<2x96xf32> to vector<2x32xf32>
    %58 = vector.extract_strided_slice %56 {offsets = [0, 0], sizes = [2, 32], strides = [1, 1]} : vector<2x96xf32> to vector<2x32xf32>
    %59 = arith.addf %57, %58 : vector<2x32xf32>
    %60 = arith.negf %59 : vector<2x32xf32>
    %61 = math.exp %60 : vector<2x32xf32>
    %cst_39 = arith.constant 1.000000e+00 : f32
    %62 = vector.broadcast %cst_39 : f32 to vector<2x32xf32>
    %63 = arith.addf %62, %61 : vector<2x32xf32>
    %64 = arith.divf %62, %63 : vector<2x32xf32>
    %65 = vector.extract_strided_slice %31 {offsets = [0, 32], sizes = [2, 32], strides = [1, 1]} : vector<2x96xf32> to vector<2x32xf32>
    %66 = vector.extract_strided_slice %56 {offsets = [0, 32], sizes = [2, 32], strides = [1, 1]} : vector<2x96xf32> to vector<2x32xf32>
    %67 = arith.addf %65, %66 : vector<2x32xf32>
    %68 = arith.negf %67 : vector<2x32xf32>
    %69 = math.exp %68 : vector<2x32xf32>
    %cst_40 = arith.constant 1.000000e+00 : f32
    %70 = vector.broadcast %cst_40 : f32 to vector<2x32xf32>
    %71 = arith.addf %70, %69 : vector<2x32xf32>
    %72 = arith.divf %70, %71 : vector<2x32xf32>
    %73 = vector.extract_strided_slice %31 {offsets = [0, 64], sizes = [2, 32], strides = [1, 1]} : vector<2x96xf32> to vector<2x32xf32>
    %74 = vector.extract_strided_slice %56 {offsets = [0, 64], sizes = [2, 32], strides = [1, 1]} : vector<2x96xf32> to vector<2x32xf32>
    %75 = arith.mulf %64, %74 : vector<2x32xf32>
    %76 = arith.addf %73, %75 : vector<2x32xf32>
    %77 = math.tanh %76 : vector<2x32xf32>
    %cst_41 = arith.constant 1.000000e+00 : f32
    %78 = vector.broadcast %cst_41 : f32 to vector<2x32xf32>
    %79 = arith.subf %78, %72 : vector<2x32xf32>
    %80 = arith.mulf %79, %77 : vector<2x32xf32>
    %81 = arith.mulf %72, %53 : vector<2x32xf32>
    %82 = arith.addf %80, %81 : vector<2x32xf32>
    %c0_i32 = arith.constant 0 : i32
    %83 = vector.broadcast %c0_i32 : i32 to vector<2x1xi32>
    %84 = arith.cmpi sgt, %0, %83 : vector<2x1xi32>
    %85 = vector.shape_cast %84 : vector<2x1xi1> to vector<2x1xi1>
    %86 = vector.broadcast %85 : vector<2x1xi1> to vector<2x32xi1>
    %87 = arith.select %86, %82, %53 : vector<2x32xi1>, vector<2x32xf32>
    %cst_42 = arith.constant 0.000000e+00 : f32
    %88 = vector.shape_cast %84 : vector<2x1xi1> to vector<2x1xi1>
    %89 = vector.broadcast %88 : vector<2x1xi1> to vector<2x32xi1>
    %90 = vector.broadcast %cst_42 : f32 to vector<2x32xf32>
    %91 = arith.select %89, %82, %90 : vector<2x32xi1>, vector<2x32xf32>
    %92 = arith.truncf %87 : vector<2x32xf32> to vector<2x32xbf16>
    %cst_43 = arith.constant dense<0.000000e+00> : vector<2x96xf32>
    %93 = tpu.matmul %92, %20, %cst_43 {dimension_numbers = #tpu.dot_dimension_numbers<[1], [0], [0], [1], [0, 0, 1, 1], [], []>} : vector<2x32xbf16>, vector<32x96xbf16>, vector<2x96xf32> -> vector<2x96xf32>
    %94 = arith.addf %93, %28 : vector<2x96xf32>
    %95 = vector.extract_strided_slice %34 {offsets = [0, 0], sizes = [2, 32], strides = [1, 1]} : vector<2x96xf32> to vector<2x32xf32>
    %96 = vector.extract_strided_slice %94 {offsets = [0, 0], sizes = [2, 32], strides = [1, 1]} : vector<2x96xf32> to vector<2x32xf32>
    %97 = arith.addf %95, %96 : vector<2x32xf32>
    %98 = arith.negf %97 : vector<2x32xf32>
    %99 = math.exp %98 : vector<2x32xf32>
    %cst_44 = arith.constant 1.000000e+00 : f32
    %100 = vector.broadcast %cst_44 : f32 to vector<2x32xf32>
    %101 = arith.addf %100, %99 : vector<2x32xf32>
    %102 = arith.divf %100, %101 : vector<2x32xf32>
    %103 = vector.extract_strided_slice %34 {offsets = [0, 32], sizes = [2, 32], strides = [1, 1]} : vector<2x96xf32> to vector<2x32xf32>
    %104 = vector.extract_strided_slice %94 {offsets = [0, 32], sizes = [2, 32], strides = [1, 1]} : vector<2x96xf32> to vector<2x32xf32>
    %105 = arith.addf %103, %104 : vector<2x32xf32>
    %106 = arith.negf %105 : vector<2x32xf32>
    %107 = math.exp %106 : vector<2x32xf32>
    %cst_45 = arith.constant 1.000000e+00 : f32
    %108 = vector.broadcast %cst_45 : f32 to vector<2x32xf32>
    %109 = arith.addf %108, %107 : vector<2x32xf32>
    %110 = arith.divf %108, %109 : vector<2x32xf32>
    %111 = vector.extract_strided_slice %34 {offsets = [0, 64], sizes = [2, 32], strides = [1, 1]} : vector<2x96xf32> to vector<2x32xf32>
    %112 = vector.extract_strided_slice %94 {offsets = [0, 64], sizes = [2, 32], strides = [1, 1]} : vector<2x96xf32> to vector<2x32xf32>
    %113 = arith.mulf %102, %112 : vector<2x32xf32>
    %114 = arith.addf %111, %113 : vector<2x32xf32>
    %115 = math.tanh %114 : vector<2x32xf32>
    %cst_46 = arith.constant 1.000000e+00 : f32
    %116 = vector.broadcast %cst_46 : f32 to vector<2x32xf32>
    %117 = arith.subf %116, %110 : vector<2x32xf32>
    %118 = arith.mulf %117, %115 : vector<2x32xf32>
    %119 = arith.mulf %110, %87 : vector<2x32xf32>
    %120 = arith.addf %118, %119 : vector<2x32xf32>
    %c1_i32 = arith.constant 1 : i32
    %121 = vector.broadcast %c1_i32 : i32 to vector<2x1xi32>
    %122 = arith.cmpi sgt, %0, %121 : vector<2x1xi32>
    %123 = vector.shape_cast %122 : vector<2x1xi1> to vector<2x1xi1>
    %124 = vector.broadcast %123 : vector<2x1xi1> to vector<2x32xi1>
    %125 = arith.select %124, %120, %87 : vector<2x32xi1>, vector<2x32xf32>
    %cst_47 = arith.constant 0.000000e+00 : f32
    %126 = vector.shape_cast %122 : vector<2x1xi1> to vector<2x1xi1>
    %127 = vector.broadcast %126 : vector<2x1xi1> to vector<2x32xi1>
    %128 = vector.broadcast %cst_47 : f32 to vector<2x32xf32>
    %129 = arith.select %127, %120, %128 : vector<2x32xi1>, vector<2x32xf32>
    %130 = arith.truncf %125 : vector<2x32xf32> to vector<2x32xbf16>
    %cst_48 = arith.constant dense<0.000000e+00> : vector<2x96xf32>
    %131 = tpu.matmul %130, %20, %cst_48 {dimension_numbers = #tpu.dot_dimension_numbers<[1], [0], [0], [1], [0, 0, 1, 1], [], []>} : vector<2x32xbf16>, vector<32x96xbf16>, vector<2x96xf32> -> vector<2x96xf32>
    %132 = arith.addf %131, %28 : vector<2x96xf32>
    %133 = vector.extract_strided_slice %37 {offsets = [0, 0], sizes = [2, 32], strides = [1, 1]} : vector<2x96xf32> to vector<2x32xf32>
    %134 = vector.extract_strided_slice %132 {offsets = [0, 0], sizes = [2, 32], strides = [1, 1]} : vector<2x96xf32> to vector<2x32xf32>
    %135 = arith.addf %133, %134 : vector<2x32xf32>
    %136 = arith.negf %135 : vector<2x32xf32>
    %137 = math.exp %136 : vector<2x32xf32>
    %cst_49 = arith.constant 1.000000e+00 : f32
    %138 = vector.broadcast %cst_49 : f32 to vector<2x32xf32>
    %139 = arith.addf %138, %137 : vector<2x32xf32>
    %140 = arith.divf %138, %139 : vector<2x32xf32>
    %141 = vector.extract_strided_slice %37 {offsets = [0, 32], sizes = [2, 32], strides = [1, 1]} : vector<2x96xf32> to vector<2x32xf32>
    %142 = vector.extract_strided_slice %132 {offsets = [0, 32], sizes = [2, 32], strides = [1, 1]} : vector<2x96xf32> to vector<2x32xf32>
    %143 = arith.addf %141, %142 : vector<2x32xf32>
    %144 = arith.negf %143 : vector<2x32xf32>
    %145 = math.exp %144 : vector<2x32xf32>
    %cst_50 = arith.constant 1.000000e+00 : f32
    %146 = vector.broadcast %cst_50 : f32 to vector<2x32xf32>
    %147 = arith.addf %146, %145 : vector<2x32xf32>
    %148 = arith.divf %146, %147 : vector<2x32xf32>
    %149 = vector.extract_strided_slice %37 {offsets = [0, 64], sizes = [2, 32], strides = [1, 1]} : vector<2x96xf32> to vector<2x32xf32>
    %150 = vector.extract_strided_slice %132 {offsets = [0, 64], sizes = [2, 32], strides = [1, 1]} : vector<2x96xf32> to vector<2x32xf32>
    %151 = arith.mulf %140, %150 : vector<2x32xf32>
    %152 = arith.addf %149, %151 : vector<2x32xf32>
    %153 = math.tanh %152 : vector<2x32xf32>
    %cst_51 = arith.constant 1.000000e+00 : f32
    %154 = vector.broadcast %cst_51 : f32 to vector<2x32xf32>
    %155 = arith.subf %154, %148 : vector<2x32xf32>
    %156 = arith.mulf %155, %153 : vector<2x32xf32>
    %157 = arith.mulf %148, %125 : vector<2x32xf32>
    %158 = arith.addf %156, %157 : vector<2x32xf32>
    %c2_i32 = arith.constant 2 : i32
    %159 = vector.broadcast %c2_i32 : i32 to vector<2x1xi32>
    %160 = arith.cmpi sgt, %0, %159 : vector<2x1xi32>
    %161 = vector.shape_cast %160 : vector<2x1xi1> to vector<2x1xi1>
    %162 = vector.broadcast %161 : vector<2x1xi1> to vector<2x32xi1>
    %163 = arith.select %162, %158, %125 : vector<2x32xi1>, vector<2x32xf32>
    %cst_52 = arith.constant 0.000000e+00 : f32
    %164 = vector.shape_cast %160 : vector<2x1xi1> to vector<2x1xi1>
    %165 = vector.broadcast %164 : vector<2x1xi1> to vector<2x32xi1>
    %166 = vector.broadcast %cst_52 : f32 to vector<2x32xf32>
    %167 = arith.select %165, %158, %166 : vector<2x32xi1>, vector<2x32xf32>
    %168 = arith.truncf %163 : vector<2x32xf32> to vector<2x32xbf16>
    %cst_53 = arith.constant dense<0.000000e+00> : vector<2x96xf32>
    %169 = tpu.matmul %168, %20, %cst_53 {dimension_numbers = #tpu.dot_dimension_numbers<[1], [0], [0], [1], [0, 0, 1, 1], [], []>} : vector<2x32xbf16>, vector<32x96xbf16>, vector<2x96xf32> -> vector<2x96xf32>
    %170 = arith.addf %169, %28 : vector<2x96xf32>
    %171 = vector.extract_strided_slice %40 {offsets = [0, 0], sizes = [2, 32], strides = [1, 1]} : vector<2x96xf32> to vector<2x32xf32>
    %172 = vector.extract_strided_slice %170 {offsets = [0, 0], sizes = [2, 32], strides = [1, 1]} : vector<2x96xf32> to vector<2x32xf32>
    %173 = arith.addf %171, %172 : vector<2x32xf32>
    %174 = arith.negf %173 : vector<2x32xf32>
    %175 = math.exp %174 : vector<2x32xf32>
    %cst_54 = arith.constant 1.000000e+00 : f32
    %176 = vector.broadcast %cst_54 : f32 to vector<2x32xf32>
    %177 = arith.addf %176, %175 : vector<2x32xf32>
    %178 = arith.divf %176, %177 : vector<2x32xf32>
    %179 = vector.extract_strided_slice %40 {offsets = [0, 32], sizes = [2, 32], strides = [1, 1]} : vector<2x96xf32> to vector<2x32xf32>
    %180 = vector.extract_strided_slice %170 {offsets = [0, 32], sizes = [2, 32], strides = [1, 1]} : vector<2x96xf32> to vector<2x32xf32>
    %181 = arith.addf %179, %180 : vector<2x32xf32>
    %182 = arith.negf %181 : vector<2x32xf32>
    %183 = math.exp %182 : vector<2x32xf32>
    %cst_55 = arith.constant 1.000000e+00 : f32
    %184 = vector.broadcast %cst_55 : f32 to vector<2x32xf32>
    %185 = arith.addf %184, %183 : vector<2x32xf32>
    %186 = arith.divf %184, %185 : vector<2x32xf32>
    %187 = vector.extract_strided_slice %40 {offsets = [0, 64], sizes = [2, 32], strides = [1, 1]} : vector<2x96xf32> to vector<2x32xf32>
    %188 = vector.extract_strided_slice %170 {offsets = [0, 64], sizes = [2, 32], strides = [1, 1]} : vector<2x96xf32> to vector<2x32xf32>
    %189 = arith.mulf %178, %188 : vector<2x32xf32>
    %190 = arith.addf %187, %189 : vector<2x32xf32>
    %191 = math.tanh %190 : vector<2x32xf32>
    %cst_56 = arith.constant 1.000000e+00 : f32
    %192 = vector.broadcast %cst_56 : f32 to vector<2x32xf32>
    %193 = arith.subf %192, %186 : vector<2x32xf32>
    %194 = arith.mulf %193, %191 : vector<2x32xf32>
    %195 = arith.mulf %186, %163 : vector<2x32xf32>
    %196 = arith.addf %194, %195 : vector<2x32xf32>
    %c3_i32 = arith.constant 3 : i32
    %197 = vector.broadcast %c3_i32 : i32 to vector<2x1xi32>
    %198 = arith.cmpi sgt, %0, %197 : vector<2x1xi32>
    %199 = vector.shape_cast %198 : vector<2x1xi1> to vector<2x1xi1>
    %200 = vector.broadcast %199 : vector<2x1xi1> to vector<2x32xi1>
    %201 = arith.select %200, %196, %163 : vector<2x32xi1>, vector<2x32xf32>
    %cst_57 = arith.constant 0.000000e+00 : f32
    %202 = vector.shape_cast %198 : vector<2x1xi1> to vector<2x1xi1>
    %203 = vector.broadcast %202 : vector<2x1xi1> to vector<2x32xi1>
    %204 = vector.broadcast %cst_57 : f32 to vector<2x32xf32>
    %205 = arith.select %203, %196, %204 : vector<2x32xi1>, vector<2x32xf32>
    %206 = arith.truncf %201 : vector<2x32xf32> to vector<2x32xbf16>
    %cst_58 = arith.constant dense<0.000000e+00> : vector<2x96xf32>
    %207 = tpu.matmul %206, %20, %cst_58 {dimension_numbers = #tpu.dot_dimension_numbers<[1], [0], [0], [1], [0, 0, 1, 1], [], []>} : vector<2x32xbf16>, vector<32x96xbf16>, vector<2x96xf32> -> vector<2x96xf32>
    %208 = arith.addf %207, %28 : vector<2x96xf32>
    %209 = vector.extract_strided_slice %43 {offsets = [0, 0], sizes = [2, 32], strides = [1, 1]} : vector<2x96xf32> to vector<2x32xf32>
    %210 = vector.extract_strided_slice %208 {offsets = [0, 0], sizes = [2, 32], strides = [1, 1]} : vector<2x96xf32> to vector<2x32xf32>
    %211 = arith.addf %209, %210 : vector<2x32xf32>
    %212 = arith.negf %211 : vector<2x32xf32>
    %213 = math.exp %212 : vector<2x32xf32>
    %cst_59 = arith.constant 1.000000e+00 : f32
    %214 = vector.broadcast %cst_59 : f32 to vector<2x32xf32>
    %215 = arith.addf %214, %213 : vector<2x32xf32>
    %216 = arith.divf %214, %215 : vector<2x32xf32>
    %217 = vector.extract_strided_slice %43 {offsets = [0, 32], sizes = [2, 32], strides = [1, 1]} : vector<2x96xf32> to vector<2x32xf32>
    %218 = vector.extract_strided_slice %208 {offsets = [0, 32], sizes = [2, 32], strides = [1, 1]} : vector<2x96xf32> to vector<2x32xf32>
    %219 = arith.addf %217, %218 : vector<2x32xf32>
    %220 = arith.negf %219 : vector<2x32xf32>
    %221 = math.exp %220 : vector<2x32xf32>
    %cst_60 = arith.constant 1.000000e+00 : f32
    %222 = vector.broadcast %cst_60 : f32 to vector<2x32xf32>
    %223 = arith.addf %222, %221 : vector<2x32xf32>
    %224 = arith.divf %222, %223 : vector<2x32xf32>
    %225 = vector.extract_strided_slice %43 {offsets = [0, 64], sizes = [2, 32], strides = [1, 1]} : vector<2x96xf32> to vector<2x32xf32>
    %226 = vector.extract_strided_slice %208 {offsets = [0, 64], sizes = [2, 32], strides = [1, 1]} : vector<2x96xf32> to vector<2x32xf32>
    %227 = arith.mulf %216, %226 : vector<2x32xf32>
    %228 = arith.addf %225, %227 : vector<2x32xf32>
    %229 = math.tanh %228 : vector<2x32xf32>
    %cst_61 = arith.constant 1.000000e+00 : f32
    %230 = vector.broadcast %cst_61 : f32 to vector<2x32xf32>
    %231 = arith.subf %230, %224 : vector<2x32xf32>
    %232 = arith.mulf %231, %229 : vector<2x32xf32>
    %233 = arith.mulf %224, %201 : vector<2x32xf32>
    %234 = arith.addf %232, %233 : vector<2x32xf32>
    %c4_i32 = arith.constant 4 : i32
    %235 = vector.broadcast %c4_i32 : i32 to vector<2x1xi32>
    %236 = arith.cmpi sgt, %0, %235 : vector<2x1xi32>
    %237 = vector.shape_cast %236 : vector<2x1xi1> to vector<2x1xi1>
    %238 = vector.broadcast %237 : vector<2x1xi1> to vector<2x32xi1>
    %239 = arith.select %238, %234, %201 : vector<2x32xi1>, vector<2x32xf32>
    %cst_62 = arith.constant 0.000000e+00 : f32
    %240 = vector.shape_cast %236 : vector<2x1xi1> to vector<2x1xi1>
    %241 = vector.broadcast %240 : vector<2x1xi1> to vector<2x32xi1>
    %242 = vector.broadcast %cst_62 : f32 to vector<2x32xf32>
    %243 = arith.select %241, %234, %242 : vector<2x32xi1>, vector<2x32xf32>
    %244 = arith.truncf %239 : vector<2x32xf32> to vector<2x32xbf16>
    %cst_63 = arith.constant dense<0.000000e+00> : vector<2x96xf32>
    %245 = tpu.matmul %244, %20, %cst_63 {dimension_numbers = #tpu.dot_dimension_numbers<[1], [0], [0], [1], [0, 0, 1, 1], [], []>} : vector<2x32xbf16>, vector<32x96xbf16>, vector<2x96xf32> -> vector<2x96xf32>
    %246 = arith.addf %245, %28 : vector<2x96xf32>
    %247 = vector.extract_strided_slice %46 {offsets = [0, 0], sizes = [2, 32], strides = [1, 1]} : vector<2x96xf32> to vector<2x32xf32>
    %248 = vector.extract_strided_slice %246 {offsets = [0, 0], sizes = [2, 32], strides = [1, 1]} : vector<2x96xf32> to vector<2x32xf32>
    %249 = arith.addf %247, %248 : vector<2x32xf32>
    %250 = arith.negf %249 : vector<2x32xf32>
    %251 = math.exp %250 : vector<2x32xf32>
    %cst_64 = arith.constant 1.000000e+00 : f32
    %252 = vector.broadcast %cst_64 : f32 to vector<2x32xf32>
    %253 = arith.addf %252, %251 : vector<2x32xf32>
    %254 = arith.divf %252, %253 : vector<2x32xf32>
    %255 = vector.extract_strided_slice %46 {offsets = [0, 32], sizes = [2, 32], strides = [1, 1]} : vector<2x96xf32> to vector<2x32xf32>
    %256 = vector.extract_strided_slice %246 {offsets = [0, 32], sizes = [2, 32], strides = [1, 1]} : vector<2x96xf32> to vector<2x32xf32>
    %257 = arith.addf %255, %256 : vector<2x32xf32>
    %258 = arith.negf %257 : vector<2x32xf32>
    %259 = math.exp %258 : vector<2x32xf32>
    %cst_65 = arith.constant 1.000000e+00 : f32
    %260 = vector.broadcast %cst_65 : f32 to vector<2x32xf32>
    %261 = arith.addf %260, %259 : vector<2x32xf32>
    %262 = arith.divf %260, %261 : vector<2x32xf32>
    %263 = vector.extract_strided_slice %46 {offsets = [0, 64], sizes = [2, 32], strides = [1, 1]} : vector<2x96xf32> to vector<2x32xf32>
    %264 = vector.extract_strided_slice %246 {offsets = [0, 64], sizes = [2, 32], strides = [1, 1]} : vector<2x96xf32> to vector<2x32xf32>
    %265 = arith.mulf %254, %264 : vector<2x32xf32>
    %266 = arith.addf %263, %265 : vector<2x32xf32>
    %267 = math.tanh %266 : vector<2x32xf32>
    %cst_66 = arith.constant 1.000000e+00 : f32
    %268 = vector.broadcast %cst_66 : f32 to vector<2x32xf32>
    %269 = arith.subf %268, %262 : vector<2x32xf32>
    %270 = arith.mulf %269, %267 : vector<2x32xf32>
    %271 = arith.mulf %262, %239 : vector<2x32xf32>
    %272 = arith.addf %270, %271 : vector<2x32xf32>
    %c5_i32 = arith.constant 5 : i32
    %273 = vector.broadcast %c5_i32 : i32 to vector<2x1xi32>
    %274 = arith.cmpi sgt, %0, %273 : vector<2x1xi32>
    %275 = vector.shape_cast %274 : vector<2x1xi1> to vector<2x1xi1>
    %276 = vector.broadcast %275 : vector<2x1xi1> to vector<2x32xi1>
    %277 = arith.select %276, %272, %239 : vector<2x32xi1>, vector<2x32xf32>
    %cst_67 = arith.constant 0.000000e+00 : f32
    %278 = vector.shape_cast %274 : vector<2x1xi1> to vector<2x1xi1>
    %279 = vector.broadcast %278 : vector<2x1xi1> to vector<2x32xi1>
    %280 = vector.broadcast %cst_67 : f32 to vector<2x32xf32>
    %281 = arith.select %279, %272, %280 : vector<2x32xi1>, vector<2x32xf32>
    %282 = arith.truncf %277 : vector<2x32xf32> to vector<2x32xbf16>
    %cst_68 = arith.constant dense<0.000000e+00> : vector<2x96xf32>
    %283 = tpu.matmul %282, %20, %cst_68 {dimension_numbers = #tpu.dot_dimension_numbers<[1], [0], [0], [1], [0, 0, 1, 1], [], []>} : vector<2x32xbf16>, vector<32x96xbf16>, vector<2x96xf32> -> vector<2x96xf32>
    %284 = arith.addf %283, %28 : vector<2x96xf32>
    %285 = vector.extract_strided_slice %49 {offsets = [0, 0], sizes = [2, 32], strides = [1, 1]} : vector<2x96xf32> to vector<2x32xf32>
    %286 = vector.extract_strided_slice %284 {offsets = [0, 0], sizes = [2, 32], strides = [1, 1]} : vector<2x96xf32> to vector<2x32xf32>
    %287 = arith.addf %285, %286 : vector<2x32xf32>
    %288 = arith.negf %287 : vector<2x32xf32>
    %289 = math.exp %288 : vector<2x32xf32>
    %cst_69 = arith.constant 1.000000e+00 : f32
    %290 = vector.broadcast %cst_69 : f32 to vector<2x32xf32>
    %291 = arith.addf %290, %289 : vector<2x32xf32>
    %292 = arith.divf %290, %291 : vector<2x32xf32>
    %293 = vector.extract_strided_slice %49 {offsets = [0, 32], sizes = [2, 32], strides = [1, 1]} : vector<2x96xf32> to vector<2x32xf32>
    %294 = vector.extract_strided_slice %284 {offsets = [0, 32], sizes = [2, 32], strides = [1, 1]} : vector<2x96xf32> to vector<2x32xf32>
    %295 = arith.addf %293, %294 : vector<2x32xf32>
    %296 = arith.negf %295 : vector<2x32xf32>
    %297 = math.exp %296 : vector<2x32xf32>
    %cst_70 = arith.constant 1.000000e+00 : f32
    %298 = vector.broadcast %cst_70 : f32 to vector<2x32xf32>
    %299 = arith.addf %298, %297 : vector<2x32xf32>
    %300 = arith.divf %298, %299 : vector<2x32xf32>
    %301 = vector.extract_strided_slice %49 {offsets = [0, 64], sizes = [2, 32], strides = [1, 1]} : vector<2x96xf32> to vector<2x32xf32>
    %302 = vector.extract_strided_slice %284 {offsets = [0, 64], sizes = [2, 32], strides = [1, 1]} : vector<2x96xf32> to vector<2x32xf32>
    %303 = arith.mulf %292, %302 : vector<2x32xf32>
    %304 = arith.addf %301, %303 : vector<2x32xf32>
    %305 = math.tanh %304 : vector<2x32xf32>
    %cst_71 = arith.constant 1.000000e+00 : f32
    %306 = vector.broadcast %cst_71 : f32 to vector<2x32xf32>
    %307 = arith.subf %306, %300 : vector<2x32xf32>
    %308 = arith.mulf %307, %305 : vector<2x32xf32>
    %309 = arith.mulf %300, %277 : vector<2x32xf32>
    %310 = arith.addf %308, %309 : vector<2x32xf32>
    %c6_i32 = arith.constant 6 : i32
    %311 = vector.broadcast %c6_i32 : i32 to vector<2x1xi32>
    %312 = arith.cmpi sgt, %0, %311 : vector<2x1xi32>
    %313 = vector.shape_cast %312 : vector<2x1xi1> to vector<2x1xi1>
    %314 = vector.broadcast %313 : vector<2x1xi1> to vector<2x32xi1>
    %315 = arith.select %314, %310, %277 : vector<2x32xi1>, vector<2x32xf32>
    %cst_72 = arith.constant 0.000000e+00 : f32
    %316 = vector.shape_cast %312 : vector<2x1xi1> to vector<2x1xi1>
    %317 = vector.broadcast %316 : vector<2x1xi1> to vector<2x32xi1>
    %318 = vector.broadcast %cst_72 : f32 to vector<2x32xf32>
    %319 = arith.select %317, %310, %318 : vector<2x32xi1>, vector<2x32xf32>
    %320 = arith.truncf %315 : vector<2x32xf32> to vector<2x32xbf16>
    %cst_73 = arith.constant dense<0.000000e+00> : vector<2x96xf32>
    %321 = tpu.matmul %320, %20, %cst_73 {dimension_numbers = #tpu.dot_dimension_numbers<[1], [0], [0], [1], [0, 0, 1, 1], [], []>} : vector<2x32xbf16>, vector<32x96xbf16>, vector<2x96xf32> -> vector<2x96xf32>
    %322 = arith.addf %321, %28 : vector<2x96xf32>
    %323 = vector.extract_strided_slice %52 {offsets = [0, 0], sizes = [2, 32], strides = [1, 1]} : vector<2x96xf32> to vector<2x32xf32>
    %324 = vector.extract_strided_slice %322 {offsets = [0, 0], sizes = [2, 32], strides = [1, 1]} : vector<2x96xf32> to vector<2x32xf32>
    %325 = arith.addf %323, %324 : vector<2x32xf32>
    %326 = arith.negf %325 : vector<2x32xf32>
    %327 = math.exp %326 : vector<2x32xf32>
    %cst_74 = arith.constant 1.000000e+00 : f32
    %328 = vector.broadcast %cst_74 : f32 to vector<2x32xf32>
    %329 = arith.addf %328, %327 : vector<2x32xf32>
    %330 = arith.divf %328, %329 : vector<2x32xf32>
    %331 = vector.extract_strided_slice %52 {offsets = [0, 32], sizes = [2, 32], strides = [1, 1]} : vector<2x96xf32> to vector<2x32xf32>
    %332 = vector.extract_strided_slice %322 {offsets = [0, 32], sizes = [2, 32], strides = [1, 1]} : vector<2x96xf32> to vector<2x32xf32>
    %333 = arith.addf %331, %332 : vector<2x32xf32>
    %334 = arith.negf %333 : vector<2x32xf32>
    %335 = math.exp %334 : vector<2x32xf32>
    %cst_75 = arith.constant 1.000000e+00 : f32
    %336 = vector.broadcast %cst_75 : f32 to vector<2x32xf32>
    %337 = arith.addf %336, %335 : vector<2x32xf32>
    %338 = arith.divf %336, %337 : vector<2x32xf32>
    %339 = vector.extract_strided_slice %52 {offsets = [0, 64], sizes = [2, 32], strides = [1, 1]} : vector<2x96xf32> to vector<2x32xf32>
    %340 = vector.extract_strided_slice %322 {offsets = [0, 64], sizes = [2, 32], strides = [1, 1]} : vector<2x96xf32> to vector<2x32xf32>
    %341 = arith.mulf %330, %340 : vector<2x32xf32>
    %342 = arith.addf %339, %341 : vector<2x32xf32>
    %343 = math.tanh %342 : vector<2x32xf32>
    %cst_76 = arith.constant 1.000000e+00 : f32
    %344 = vector.broadcast %cst_76 : f32 to vector<2x32xf32>
    %345 = arith.subf %344, %338 : vector<2x32xf32>
    %346 = arith.mulf %345, %343 : vector<2x32xf32>
    %347 = arith.mulf %338, %315 : vector<2x32xf32>
    %348 = arith.addf %346, %347 : vector<2x32xf32>
    %c7_i32 = arith.constant 7 : i32
    %349 = vector.broadcast %c7_i32 : i32 to vector<2x1xi32>
    %350 = arith.cmpi sgt, %0, %349 : vector<2x1xi32>
    %cst_77 = arith.constant 0.000000e+00 : f32
    %351 = vector.shape_cast %350 : vector<2x1xi1> to vector<2x1xi1>
    %352 = vector.broadcast %351 : vector<2x1xi1> to vector<2x32xi1>
    %353 = vector.broadcast %cst_77 : f32 to vector<2x32xf32>
    %354 = arith.select %352, %348, %353 : vector<2x32xi1>, vector<2x32xf32>
    %c1_78 = arith.constant 1 : index
    %c0_79 = arith.constant 0 : index
    %c0_80 = arith.constant 0 : index
    %355 = vector.load %arg2[%c1_78, %c0_79, %c0_80] : memref<2x16x96xbf16, #tpu.memory_space<vmem>>, vector<1x16x96xbf16>
    %356 = vector.shape_cast %355 : vector<1x16x96xbf16> to vector<16x96xbf16>
    %c1_81 = arith.constant 1 : index
    %c0_82 = arith.constant 0 : index
    %c0_83 = arith.constant 0 : index
    %357 = vector.load %arg3[%c1_81, %c0_82, %c0_83] : memref<2x32x96xbf16, #tpu.memory_space<vmem>>, vector<1x32x96xbf16>
    %358 = vector.shape_cast %357 : vector<1x32x96xbf16> to vector<32x96xbf16>
    %c1_84 = arith.constant 1 : index
    %c0_85 = arith.constant 0 : index
    %c0_86 = arith.constant 0 : index
    %359 = vector.load %arg4[%c1_84, %c0_85, %c0_86] : memref<2x1x96xf32, #tpu.memory_space<vmem>>, vector<1x1x96xf32>
    %360 = vector.shape_cast %359 : vector<1x1x96xf32> to vector<1x96xf32>
    %c1_87 = arith.constant 1 : index
    %c0_88 = arith.constant 0 : index
    %c0_89 = arith.constant 0 : index
    %361 = vector.load %arg5[%c1_87, %c0_88, %c0_89] : memref<2x1x96xf32, #tpu.memory_space<vmem>>, vector<1x1x96xf32>
    %362 = vector.shape_cast %361 : vector<1x1x96xf32> to vector<1x96xf32>
    %363 = vector.shape_cast %360 : vector<1x96xf32> to vector<1x96xf32>
    %364 = vector.broadcast %363 : vector<1x96xf32> to vector<2x96xf32>
    %365 = vector.shape_cast %362 : vector<1x96xf32> to vector<1x96xf32>
    %366 = vector.broadcast %365 : vector<1x96xf32> to vector<2x96xf32>
    %367 = arith.truncf %2 : vector<2x16xf32> to vector<2x16xbf16>
    %cst_90 = arith.constant dense<0.000000e+00> : vector<2x96xf32>
    %368 = tpu.matmul %367, %356, %cst_90 {dimension_numbers = #tpu.dot_dimension_numbers<[1], [0], [0], [1], [0, 0, 1, 1], [], []>} : vector<2x16xbf16>, vector<16x96xbf16>, vector<2x96xf32> -> vector<2x96xf32>
    %369 = arith.addf %368, %364 : vector<2x96xf32>
    %370 = arith.truncf %4 : vector<2x16xf32> to vector<2x16xbf16>
    %cst_91 = arith.constant dense<0.000000e+00> : vector<2x96xf32>
    %371 = tpu.matmul %370, %356, %cst_91 {dimension_numbers = #tpu.dot_dimension_numbers<[1], [0], [0], [1], [0, 0, 1, 1], [], []>} : vector<2x16xbf16>, vector<16x96xbf16>, vector<2x96xf32> -> vector<2x96xf32>
    %372 = arith.addf %371, %364 : vector<2x96xf32>
    %373 = arith.truncf %6 : vector<2x16xf32> to vector<2x16xbf16>
    %cst_92 = arith.constant dense<0.000000e+00> : vector<2x96xf32>
    %374 = tpu.matmul %373, %356, %cst_92 {dimension_numbers = #tpu.dot_dimension_numbers<[1], [0], [0], [1], [0, 0, 1, 1], [], []>} : vector<2x16xbf16>, vector<16x96xbf16>, vector<2x96xf32> -> vector<2x96xf32>
    %375 = arith.addf %374, %364 : vector<2x96xf32>
    %376 = arith.truncf %8 : vector<2x16xf32> to vector<2x16xbf16>
    %cst_93 = arith.constant dense<0.000000e+00> : vector<2x96xf32>
    %377 = tpu.matmul %376, %356, %cst_93 {dimension_numbers = #tpu.dot_dimension_numbers<[1], [0], [0], [1], [0, 0, 1, 1], [], []>} : vector<2x16xbf16>, vector<16x96xbf16>, vector<2x96xf32> -> vector<2x96xf32>
    %378 = arith.addf %377, %364 : vector<2x96xf32>
    %379 = arith.truncf %10 : vector<2x16xf32> to vector<2x16xbf16>
    %cst_94 = arith.constant dense<0.000000e+00> : vector<2x96xf32>
    %380 = tpu.matmul %379, %356, %cst_94 {dimension_numbers = #tpu.dot_dimension_numbers<[1], [0], [0], [1], [0, 0, 1, 1], [], []>} : vector<2x16xbf16>, vector<16x96xbf16>, vector<2x96xf32> -> vector<2x96xf32>
    %381 = arith.addf %380, %364 : vector<2x96xf32>
    %382 = arith.truncf %12 : vector<2x16xf32> to vector<2x16xbf16>
    %cst_95 = arith.constant dense<0.000000e+00> : vector<2x96xf32>
    %383 = tpu.matmul %382, %356, %cst_95 {dimension_numbers = #tpu.dot_dimension_numbers<[1], [0], [0], [1], [0, 0, 1, 1], [], []>} : vector<2x16xbf16>, vector<16x96xbf16>, vector<2x96xf32> -> vector<2x96xf32>
    %384 = arith.addf %383, %364 : vector<2x96xf32>
    %385 = arith.truncf %14 : vector<2x16xf32> to vector<2x16xbf16>
    %cst_96 = arith.constant dense<0.000000e+00> : vector<2x96xf32>
    %386 = tpu.matmul %385, %356, %cst_96 {dimension_numbers = #tpu.dot_dimension_numbers<[1], [0], [0], [1], [0, 0, 1, 1], [], []>} : vector<2x16xbf16>, vector<16x96xbf16>, vector<2x96xf32> -> vector<2x96xf32>
    %387 = arith.addf %386, %364 : vector<2x96xf32>
    %388 = arith.truncf %16 : vector<2x16xf32> to vector<2x16xbf16>
    %cst_97 = arith.constant dense<0.000000e+00> : vector<2x96xf32>
    %389 = tpu.matmul %388, %356, %cst_97 {dimension_numbers = #tpu.dot_dimension_numbers<[1], [0], [0], [1], [0, 0, 1, 1], [], []>} : vector<2x16xbf16>, vector<16x96xbf16>, vector<2x96xf32> -> vector<2x96xf32>
    %390 = arith.addf %389, %364 : vector<2x96xf32>
    %cst_98 = arith.constant 0.000000e+00 : f32
    %391 = vector.broadcast %cst_98 : f32 to vector<2x32xf32>
    %392 = arith.truncf %391 : vector<2x32xf32> to vector<2x32xbf16>
    %cst_99 = arith.constant dense<0.000000e+00> : vector<2x96xf32>
    %393 = tpu.matmul %392, %358, %cst_99 {dimension_numbers = #tpu.dot_dimension_numbers<[1], [0], [0], [1], [0, 0, 1, 1], [], []>} : vector<2x32xbf16>, vector<32x96xbf16>, vector<2x96xf32> -> vector<2x96xf32>
    %394 = arith.addf %393, %366 : vector<2x96xf32>
    %395 = vector.extract_strided_slice %390 {offsets = [0, 0], sizes = [2, 32], strides = [1, 1]} : vector<2x96xf32> to vector<2x32xf32>
    %396 = vector.extract_strided_slice %394 {offsets = [0, 0], sizes = [2, 32], strides = [1, 1]} : vector<2x96xf32> to vector<2x32xf32>
    %397 = arith.addf %395, %396 : vector<2x32xf32>
    %398 = arith.negf %397 : vector<2x32xf32>
    %399 = math.exp %398 : vector<2x32xf32>
    %cst_100 = arith.constant 1.000000e+00 : f32
    %400 = vector.broadcast %cst_100 : f32 to vector<2x32xf32>
    %401 = arith.addf %400, %399 : vector<2x32xf32>
    %402 = arith.divf %400, %401 : vector<2x32xf32>
    %403 = vector.extract_strided_slice %390 {offsets = [0, 32], sizes = [2, 32], strides = [1, 1]} : vector<2x96xf32> to vector<2x32xf32>
    %404 = vector.extract_strided_slice %394 {offsets = [0, 32], sizes = [2, 32], strides = [1, 1]} : vector<2x96xf32> to vector<2x32xf32>
    %405 = arith.addf %403, %404 : vector<2x32xf32>
    %406 = arith.negf %405 : vector<2x32xf32>
    %407 = math.exp %406 : vector<2x32xf32>
    %cst_101 = arith.constant 1.000000e+00 : f32
    %408 = vector.broadcast %cst_101 : f32 to vector<2x32xf32>
    %409 = arith.addf %408, %407 : vector<2x32xf32>
    %410 = arith.divf %408, %409 : vector<2x32xf32>
    %411 = vector.extract_strided_slice %390 {offsets = [0, 64], sizes = [2, 32], strides = [1, 1]} : vector<2x96xf32> to vector<2x32xf32>
    %412 = vector.extract_strided_slice %394 {offsets = [0, 64], sizes = [2, 32], strides = [1, 1]} : vector<2x96xf32> to vector<2x32xf32>
    %413 = arith.mulf %402, %412 : vector<2x32xf32>
    %414 = arith.addf %411, %413 : vector<2x32xf32>
    %415 = math.tanh %414 : vector<2x32xf32>
    %cst_102 = arith.constant 1.000000e+00 : f32
    %416 = vector.broadcast %cst_102 : f32 to vector<2x32xf32>
    %417 = arith.subf %416, %410 : vector<2x32xf32>
    %418 = arith.mulf %417, %415 : vector<2x32xf32>
    %419 = arith.mulf %410, %391 : vector<2x32xf32>
    %420 = arith.addf %418, %419 : vector<2x32xf32>
    %c7_i32_103 = arith.constant 7 : i32
    %421 = vector.broadcast %c7_i32_103 : i32 to vector<2x1xi32>
    %422 = arith.cmpi sgt, %0, %421 : vector<2x1xi32>
    %423 = vector.shape_cast %422 : vector<2x1xi1> to vector<2x1xi1>
    %424 = vector.broadcast %423 : vector<2x1xi1> to vector<2x32xi1>
    %425 = arith.select %424, %420, %391 : vector<2x32xi1>, vector<2x32xf32>
    %cst_104 = arith.constant 0.000000e+00 : f32
    %426 = vector.shape_cast %422 : vector<2x1xi1> to vector<2x1xi1>
    %427 = vector.broadcast %426 : vector<2x1xi1> to vector<2x32xi1>
    %428 = vector.broadcast %cst_104 : f32 to vector<2x32xf32>
    %429 = arith.select %427, %420, %428 : vector<2x32xi1>, vector<2x32xf32>
    %430 = arith.truncf %425 : vector<2x32xf32> to vector<2x32xbf16>
    %cst_105 = arith.constant dense<0.000000e+00> : vector<2x96xf32>
    %431 = tpu.matmul %430, %358, %cst_105 {dimension_numbers = #tpu.dot_dimension_numbers<[1], [0], [0], [1], [0, 0, 1, 1], [], []>} : vector<2x32xbf16>, vector<32x96xbf16>, vector<2x96xf32> -> vector<2x96xf32>
    %432 = arith.addf %431, %366 : vector<2x96xf32>
    %433 = vector.extract_strided_slice %387 {offsets = [0, 0], sizes = [2, 32], strides = [1, 1]} : vector<2x96xf32> to vector<2x32xf32>
    %434 = vector.extract_strided_slice %432 {offsets = [0, 0], sizes = [2, 32], strides = [1, 1]} : vector<2x96xf32> to vector<2x32xf32>
    %435 = arith.addf %433, %434 : vector<2x32xf32>
    %436 = arith.negf %435 : vector<2x32xf32>
    %437 = math.exp %436 : vector<2x32xf32>
    %cst_106 = arith.constant 1.000000e+00 : f32
    %438 = vector.broadcast %cst_106 : f32 to vector<2x32xf32>
    %439 = arith.addf %438, %437 : vector<2x32xf32>
    %440 = arith.divf %438, %439 : vector<2x32xf32>
    %441 = vector.extract_strided_slice %387 {offsets = [0, 32], sizes = [2, 32], strides = [1, 1]} : vector<2x96xf32> to vector<2x32xf32>
    %442 = vector.extract_strided_slice %432 {offsets = [0, 32], sizes = [2, 32], strides = [1, 1]} : vector<2x96xf32> to vector<2x32xf32>
    %443 = arith.addf %441, %442 : vector<2x32xf32>
    %444 = arith.negf %443 : vector<2x32xf32>
    %445 = math.exp %444 : vector<2x32xf32>
    %cst_107 = arith.constant 1.000000e+00 : f32
    %446 = vector.broadcast %cst_107 : f32 to vector<2x32xf32>
    %447 = arith.addf %446, %445 : vector<2x32xf32>
    %448 = arith.divf %446, %447 : vector<2x32xf32>
    %449 = vector.extract_strided_slice %387 {offsets = [0, 64], sizes = [2, 32], strides = [1, 1]} : vector<2x96xf32> to vector<2x32xf32>
    %450 = vector.extract_strided_slice %432 {offsets = [0, 64], sizes = [2, 32], strides = [1, 1]} : vector<2x96xf32> to vector<2x32xf32>
    %451 = arith.mulf %440, %450 : vector<2x32xf32>
    %452 = arith.addf %449, %451 : vector<2x32xf32>
    %453 = math.tanh %452 : vector<2x32xf32>
    %cst_108 = arith.constant 1.000000e+00 : f32
    %454 = vector.broadcast %cst_108 : f32 to vector<2x32xf32>
    %455 = arith.subf %454, %448 : vector<2x32xf32>
    %456 = arith.mulf %455, %453 : vector<2x32xf32>
    %457 = arith.mulf %448, %425 : vector<2x32xf32>
    %458 = arith.addf %456, %457 : vector<2x32xf32>
    %c6_i32_109 = arith.constant 6 : i32
    %459 = vector.broadcast %c6_i32_109 : i32 to vector<2x1xi32>
    %460 = arith.cmpi sgt, %0, %459 : vector<2x1xi32>
    %461 = vector.shape_cast %460 : vector<2x1xi1> to vector<2x1xi1>
    %462 = vector.broadcast %461 : vector<2x1xi1> to vector<2x32xi1>
    %463 = arith.select %462, %458, %425 : vector<2x32xi1>, vector<2x32xf32>
    %cst_110 = arith.constant 0.000000e+00 : f32
    %464 = vector.shape_cast %460 : vector<2x1xi1> to vector<2x1xi1>
    %465 = vector.broadcast %464 : vector<2x1xi1> to vector<2x32xi1>
    %466 = vector.broadcast %cst_110 : f32 to vector<2x32xf32>
    %467 = arith.select %465, %458, %466 : vector<2x32xi1>, vector<2x32xf32>
    %468 = arith.truncf %463 : vector<2x32xf32> to vector<2x32xbf16>
    %cst_111 = arith.constant dense<0.000000e+00> : vector<2x96xf32>
    %469 = tpu.matmul %468, %358, %cst_111 {dimension_numbers = #tpu.dot_dimension_numbers<[1], [0], [0], [1], [0, 0, 1, 1], [], []>} : vector<2x32xbf16>, vector<32x96xbf16>, vector<2x96xf32> -> vector<2x96xf32>
    %470 = arith.addf %469, %366 : vector<2x96xf32>
    %471 = vector.extract_strided_slice %384 {offsets = [0, 0], sizes = [2, 32], strides = [1, 1]} : vector<2x96xf32> to vector<2x32xf32>
    %472 = vector.extract_strided_slice %470 {offsets = [0, 0], sizes = [2, 32], strides = [1, 1]} : vector<2x96xf32> to vector<2x32xf32>
    %473 = arith.addf %471, %472 : vector<2x32xf32>
    %474 = arith.negf %473 : vector<2x32xf32>
    %475 = math.exp %474 : vector<2x32xf32>
    %cst_112 = arith.constant 1.000000e+00 : f32
    %476 = vector.broadcast %cst_112 : f32 to vector<2x32xf32>
    %477 = arith.addf %476, %475 : vector<2x32xf32>
    %478 = arith.divf %476, %477 : vector<2x32xf32>
    %479 = vector.extract_strided_slice %384 {offsets = [0, 32], sizes = [2, 32], strides = [1, 1]} : vector<2x96xf32> to vector<2x32xf32>
    %480 = vector.extract_strided_slice %470 {offsets = [0, 32], sizes = [2, 32], strides = [1, 1]} : vector<2x96xf32> to vector<2x32xf32>
    %481 = arith.addf %479, %480 : vector<2x32xf32>
    %482 = arith.negf %481 : vector<2x32xf32>
    %483 = math.exp %482 : vector<2x32xf32>
    %cst_113 = arith.constant 1.000000e+00 : f32
    %484 = vector.broadcast %cst_113 : f32 to vector<2x32xf32>
    %485 = arith.addf %484, %483 : vector<2x32xf32>
    %486 = arith.divf %484, %485 : vector<2x32xf32>
    %487 = vector.extract_strided_slice %384 {offsets = [0, 64], sizes = [2, 32], strides = [1, 1]} : vector<2x96xf32> to vector<2x32xf32>
    %488 = vector.extract_strided_slice %470 {offsets = [0, 64], sizes = [2, 32], strides = [1, 1]} : vector<2x96xf32> to vector<2x32xf32>
    %489 = arith.mulf %478, %488 : vector<2x32xf32>
    %490 = arith.addf %487, %489 : vector<2x32xf32>
    %491 = math.tanh %490 : vector<2x32xf32>
    %cst_114 = arith.constant 1.000000e+00 : f32
    %492 = vector.broadcast %cst_114 : f32 to vector<2x32xf32>
    %493 = arith.subf %492, %486 : vector<2x32xf32>
    %494 = arith.mulf %493, %491 : vector<2x32xf32>
    %495 = arith.mulf %486, %463 : vector<2x32xf32>
    %496 = arith.addf %494, %495 : vector<2x32xf32>
    %c5_i32_115 = arith.constant 5 : i32
    %497 = vector.broadcast %c5_i32_115 : i32 to vector<2x1xi32>
    %498 = arith.cmpi sgt, %0, %497 : vector<2x1xi32>
    %499 = vector.shape_cast %498 : vector<2x1xi1> to vector<2x1xi1>
    %500 = vector.broadcast %499 : vector<2x1xi1> to vector<2x32xi1>
    %501 = arith.select %500, %496, %463 : vector<2x32xi1>, vector<2x32xf32>
    %cst_116 = arith.constant 0.000000e+00 : f32
    %502 = vector.shape_cast %498 : vector<2x1xi1> to vector<2x1xi1>
    %503 = vector.broadcast %502 : vector<2x1xi1> to vector<2x32xi1>
    %504 = vector.broadcast %cst_116 : f32 to vector<2x32xf32>
    %505 = arith.select %503, %496, %504 : vector<2x32xi1>, vector<2x32xf32>
    %506 = arith.truncf %501 : vector<2x32xf32> to vector<2x32xbf16>
    %cst_117 = arith.constant dense<0.000000e+00> : vector<2x96xf32>
    %507 = tpu.matmul %506, %358, %cst_117 {dimension_numbers = #tpu.dot_dimension_numbers<[1], [0], [0], [1], [0, 0, 1, 1], [], []>} : vector<2x32xbf16>, vector<32x96xbf16>, vector<2x96xf32> -> vector<2x96xf32>
    %508 = arith.addf %507, %366 : vector<2x96xf32>
    %509 = vector.extract_strided_slice %381 {offsets = [0, 0], sizes = [2, 32], strides = [1, 1]} : vector<2x96xf32> to vector<2x32xf32>
    %510 = vector.extract_strided_slice %508 {offsets = [0, 0], sizes = [2, 32], strides = [1, 1]} : vector<2x96xf32> to vector<2x32xf32>
    %511 = arith.addf %509, %510 : vector<2x32xf32>
    %512 = arith.negf %511 : vector<2x32xf32>
    %513 = math.exp %512 : vector<2x32xf32>
    %cst_118 = arith.constant 1.000000e+00 : f32
    %514 = vector.broadcast %cst_118 : f32 to vector<2x32xf32>
    %515 = arith.addf %514, %513 : vector<2x32xf32>
    %516 = arith.divf %514, %515 : vector<2x32xf32>
    %517 = vector.extract_strided_slice %381 {offsets = [0, 32], sizes = [2, 32], strides = [1, 1]} : vector<2x96xf32> to vector<2x32xf32>
    %518 = vector.extract_strided_slice %508 {offsets = [0, 32], sizes = [2, 32], strides = [1, 1]} : vector<2x96xf32> to vector<2x32xf32>
    %519 = arith.addf %517, %518 : vector<2x32xf32>
    %520 = arith.negf %519 : vector<2x32xf32>
    %521 = math.exp %520 : vector<2x32xf32>
    %cst_119 = arith.constant 1.000000e+00 : f32
    %522 = vector.broadcast %cst_119 : f32 to vector<2x32xf32>
    %523 = arith.addf %522, %521 : vector<2x32xf32>
    %524 = arith.divf %522, %523 : vector<2x32xf32>
    %525 = vector.extract_strided_slice %381 {offsets = [0, 64], sizes = [2, 32], strides = [1, 1]} : vector<2x96xf32> to vector<2x32xf32>
    %526 = vector.extract_strided_slice %508 {offsets = [0, 64], sizes = [2, 32], strides = [1, 1]} : vector<2x96xf32> to vector<2x32xf32>
    %527 = arith.mulf %516, %526 : vector<2x32xf32>
    %528 = arith.addf %525, %527 : vector<2x32xf32>
    %529 = math.tanh %528 : vector<2x32xf32>
    %cst_120 = arith.constant 1.000000e+00 : f32
    %530 = vector.broadcast %cst_120 : f32 to vector<2x32xf32>
    %531 = arith.subf %530, %524 : vector<2x32xf32>
    %532 = arith.mulf %531, %529 : vector<2x32xf32>
    %533 = arith.mulf %524, %501 : vector<2x32xf32>
    %534 = arith.addf %532, %533 : vector<2x32xf32>
    %c4_i32_121 = arith.constant 4 : i32
    %535 = vector.broadcast %c4_i32_121 : i32 to vector<2x1xi32>
    %536 = arith.cmpi sgt, %0, %535 : vector<2x1xi32>
    %537 = vector.shape_cast %536 : vector<2x1xi1> to vector<2x1xi1>
    %538 = vector.broadcast %537 : vector<2x1xi1> to vector<2x32xi1>
    %539 = arith.select %538, %534, %501 : vector<2x32xi1>, vector<2x32xf32>
    %cst_122 = arith.constant 0.000000e+00 : f32
    %540 = vector.shape_cast %536 : vector<2x1xi1> to vector<2x1xi1>
    %541 = vector.broadcast %540 : vector<2x1xi1> to vector<2x32xi1>
    %542 = vector.broadcast %cst_122 : f32 to vector<2x32xf32>
    %543 = arith.select %541, %534, %542 : vector<2x32xi1>, vector<2x32xf32>
    %544 = arith.truncf %539 : vector<2x32xf32> to vector<2x32xbf16>
    %cst_123 = arith.constant dense<0.000000e+00> : vector<2x96xf32>
    %545 = tpu.matmul %544, %358, %cst_123 {dimension_numbers = #tpu.dot_dimension_numbers<[1], [0], [0], [1], [0, 0, 1, 1], [], []>} : vector<2x32xbf16>, vector<32x96xbf16>, vector<2x96xf32> -> vector<2x96xf32>
    %546 = arith.addf %545, %366 : vector<2x96xf32>
    %547 = vector.extract_strided_slice %378 {offsets = [0, 0], sizes = [2, 32], strides = [1, 1]} : vector<2x96xf32> to vector<2x32xf32>
    %548 = vector.extract_strided_slice %546 {offsets = [0, 0], sizes = [2, 32], strides = [1, 1]} : vector<2x96xf32> to vector<2x32xf32>
    %549 = arith.addf %547, %548 : vector<2x32xf32>
    %550 = arith.negf %549 : vector<2x32xf32>
    %551 = math.exp %550 : vector<2x32xf32>
    %cst_124 = arith.constant 1.000000e+00 : f32
    %552 = vector.broadcast %cst_124 : f32 to vector<2x32xf32>
    %553 = arith.addf %552, %551 : vector<2x32xf32>
    %554 = arith.divf %552, %553 : vector<2x32xf32>
    %555 = vector.extract_strided_slice %378 {offsets = [0, 32], sizes = [2, 32], strides = [1, 1]} : vector<2x96xf32> to vector<2x32xf32>
    %556 = vector.extract_strided_slice %546 {offsets = [0, 32], sizes = [2, 32], strides = [1, 1]} : vector<2x96xf32> to vector<2x32xf32>
    %557 = arith.addf %555, %556 : vector<2x32xf32>
    %558 = arith.negf %557 : vector<2x32xf32>
    %559 = math.exp %558 : vector<2x32xf32>
    %cst_125 = arith.constant 1.000000e+00 : f32
    %560 = vector.broadcast %cst_125 : f32 to vector<2x32xf32>
    %561 = arith.addf %560, %559 : vector<2x32xf32>
    %562 = arith.divf %560, %561 : vector<2x32xf32>
    %563 = vector.extract_strided_slice %378 {offsets = [0, 64], sizes = [2, 32], strides = [1, 1]} : vector<2x96xf32> to vector<2x32xf32>
    %564 = vector.extract_strided_slice %546 {offsets = [0, 64], sizes = [2, 32], strides = [1, 1]} : vector<2x96xf32> to vector<2x32xf32>
    %565 = arith.mulf %554, %564 : vector<2x32xf32>
    %566 = arith.addf %563, %565 : vector<2x32xf32>
    %567 = math.tanh %566 : vector<2x32xf32>
    %cst_126 = arith.constant 1.000000e+00 : f32
    %568 = vector.broadcast %cst_126 : f32 to vector<2x32xf32>
    %569 = arith.subf %568, %562 : vector<2x32xf32>
    %570 = arith.mulf %569, %567 : vector<2x32xf32>
    %571 = arith.mulf %562, %539 : vector<2x32xf32>
    %572 = arith.addf %570, %571 : vector<2x32xf32>
    %c3_i32_127 = arith.constant 3 : i32
    %573 = vector.broadcast %c3_i32_127 : i32 to vector<2x1xi32>
    %574 = arith.cmpi sgt, %0, %573 : vector<2x1xi32>
    %575 = vector.shape_cast %574 : vector<2x1xi1> to vector<2x1xi1>
    %576 = vector.broadcast %575 : vector<2x1xi1> to vector<2x32xi1>
    %577 = arith.select %576, %572, %539 : vector<2x32xi1>, vector<2x32xf32>
    %cst_128 = arith.constant 0.000000e+00 : f32
    %578 = vector.shape_cast %574 : vector<2x1xi1> to vector<2x1xi1>
    %579 = vector.broadcast %578 : vector<2x1xi1> to vector<2x32xi1>
    %580 = vector.broadcast %cst_128 : f32 to vector<2x32xf32>
    %581 = arith.select %579, %572, %580 : vector<2x32xi1>, vector<2x32xf32>
    %582 = arith.truncf %577 : vector<2x32xf32> to vector<2x32xbf16>
    %cst_129 = arith.constant dense<0.000000e+00> : vector<2x96xf32>
    %583 = tpu.matmul %582, %358, %cst_129 {dimension_numbers = #tpu.dot_dimension_numbers<[1], [0], [0], [1], [0, 0, 1, 1], [], []>} : vector<2x32xbf16>, vector<32x96xbf16>, vector<2x96xf32> -> vector<2x96xf32>
    %584 = arith.addf %583, %366 : vector<2x96xf32>
    %585 = vector.extract_strided_slice %375 {offsets = [0, 0], sizes = [2, 32], strides = [1, 1]} : vector<2x96xf32> to vector<2x32xf32>
    %586 = vector.extract_strided_slice %584 {offsets = [0, 0], sizes = [2, 32], strides = [1, 1]} : vector<2x96xf32> to vector<2x32xf32>
    %587 = arith.addf %585, %586 : vector<2x32xf32>
    %588 = arith.negf %587 : vector<2x32xf32>
    %589 = math.exp %588 : vector<2x32xf32>
    %cst_130 = arith.constant 1.000000e+00 : f32
    %590 = vector.broadcast %cst_130 : f32 to vector<2x32xf32>
    %591 = arith.addf %590, %589 : vector<2x32xf32>
    %592 = arith.divf %590, %591 : vector<2x32xf32>
    %593 = vector.extract_strided_slice %375 {offsets = [0, 32], sizes = [2, 32], strides = [1, 1]} : vector<2x96xf32> to vector<2x32xf32>
    %594 = vector.extract_strided_slice %584 {offsets = [0, 32], sizes = [2, 32], strides = [1, 1]} : vector<2x96xf32> to vector<2x32xf32>
    %595 = arith.addf %593, %594 : vector<2x32xf32>
    %596 = arith.negf %595 : vector<2x32xf32>
    %597 = math.exp %596 : vector<2x32xf32>
    %cst_131 = arith.constant 1.000000e+00 : f32
    %598 = vector.broadcast %cst_131 : f32 to vector<2x32xf32>
    %599 = arith.addf %598, %597 : vector<2x32xf32>
    %600 = arith.divf %598, %599 : vector<2x32xf32>
    %601 = vector.extract_strided_slice %375 {offsets = [0, 64], sizes = [2, 32], strides = [1, 1]} : vector<2x96xf32> to vector<2x32xf32>
    %602 = vector.extract_strided_slice %584 {offsets = [0, 64], sizes = [2, 32], strides = [1, 1]} : vector<2x96xf32> to vector<2x32xf32>
    %603 = arith.mulf %592, %602 : vector<2x32xf32>
    %604 = arith.addf %601, %603 : vector<2x32xf32>
    %605 = math.tanh %604 : vector<2x32xf32>
    %cst_132 = arith.constant 1.000000e+00 : f32
    %606 = vector.broadcast %cst_132 : f32 to vector<2x32xf32>
    %607 = arith.subf %606, %600 : vector<2x32xf32>
    %608 = arith.mulf %607, %605 : vector<2x32xf32>
    %609 = arith.mulf %600, %577 : vector<2x32xf32>
    %610 = arith.addf %608, %609 : vector<2x32xf32>
    %c2_i32_133 = arith.constant 2 : i32
    %611 = vector.broadcast %c2_i32_133 : i32 to vector<2x1xi32>
    %612 = arith.cmpi sgt, %0, %611 : vector<2x1xi32>
    %613 = vector.shape_cast %612 : vector<2x1xi1> to vector<2x1xi1>
    %614 = vector.broadcast %613 : vector<2x1xi1> to vector<2x32xi1>
    %615 = arith.select %614, %610, %577 : vector<2x32xi1>, vector<2x32xf32>
    %cst_134 = arith.constant 0.000000e+00 : f32
    %616 = vector.shape_cast %612 : vector<2x1xi1> to vector<2x1xi1>
    %617 = vector.broadcast %616 : vector<2x1xi1> to vector<2x32xi1>
    %618 = vector.broadcast %cst_134 : f32 to vector<2x32xf32>
    %619 = arith.select %617, %610, %618 : vector<2x32xi1>, vector<2x32xf32>
    %620 = arith.truncf %615 : vector<2x32xf32> to vector<2x32xbf16>
    %cst_135 = arith.constant dense<0.000000e+00> : vector<2x96xf32>
    %621 = tpu.matmul %620, %358, %cst_135 {dimension_numbers = #tpu.dot_dimension_numbers<[1], [0], [0], [1], [0, 0, 1, 1], [], []>} : vector<2x32xbf16>, vector<32x96xbf16>, vector<2x96xf32> -> vector<2x96xf32>
    %622 = arith.addf %621, %366 : vector<2x96xf32>
    %623 = vector.extract_strided_slice %372 {offsets = [0, 0], sizes = [2, 32], strides = [1, 1]} : vector<2x96xf32> to vector<2x32xf32>
    %624 = vector.extract_strided_slice %622 {offsets = [0, 0], sizes = [2, 32], strides = [1, 1]} : vector<2x96xf32> to vector<2x32xf32>
    %625 = arith.addf %623, %624 : vector<2x32xf32>
    %626 = arith.negf %625 : vector<2x32xf32>
    %627 = math.exp %626 : vector<2x32xf32>
    %cst_136 = arith.constant 1.000000e+00 : f32
    %628 = vector.broadcast %cst_136 : f32 to vector<2x32xf32>
    %629 = arith.addf %628, %627 : vector<2x32xf32>
    %630 = arith.divf %628, %629 : vector<2x32xf32>
    %631 = vector.extract_strided_slice %372 {offsets = [0, 32], sizes = [2, 32], strides = [1, 1]} : vector<2x96xf32> to vector<2x32xf32>
    %632 = vector.extract_strided_slice %622 {offsets = [0, 32], sizes = [2, 32], strides = [1, 1]} : vector<2x96xf32> to vector<2x32xf32>
    %633 = arith.addf %631, %632 : vector<2x32xf32>
    %634 = arith.negf %633 : vector<2x32xf32>
    %635 = math.exp %634 : vector<2x32xf32>
    %cst_137 = arith.constant 1.000000e+00 : f32
    %636 = vector.broadcast %cst_137 : f32 to vector<2x32xf32>
    %637 = arith.addf %636, %635 : vector<2x32xf32>
    %638 = arith.divf %636, %637 : vector<2x32xf32>
    %639 = vector.extract_strided_slice %372 {offsets = [0, 64], sizes = [2, 32], strides = [1, 1]} : vector<2x96xf32> to vector<2x32xf32>
    %640 = vector.extract_strided_slice %622 {offsets = [0, 64], sizes = [2, 32], strides = [1, 1]} : vector<2x96xf32> to vector<2x32xf32>
    %641 = arith.mulf %630, %640 : vector<2x32xf32>
    %642 = arith.addf %639, %641 : vector<2x32xf32>
    %643 = math.tanh %642 : vector<2x32xf32>
    %cst_138 = arith.constant 1.000000e+00 : f32
    %644 = vector.broadcast %cst_138 : f32 to vector<2x32xf32>
    %645 = arith.subf %644, %638 : vector<2x32xf32>
    %646 = arith.mulf %645, %643 : vector<2x32xf32>
    %647 = arith.mulf %638, %615 : vector<2x32xf32>
    %648 = arith.addf %646, %647 : vector<2x32xf32>
    %c1_i32_139 = arith.constant 1 : i32
    %649 = vector.broadcast %c1_i32_139 : i32 to vector<2x1xi32>
    %650 = arith.cmpi sgt, %0, %649 : vector<2x1xi32>
    %651 = vector.shape_cast %650 : vector<2x1xi1> to vector<2x1xi1>
    %652 = vector.broadcast %651 : vector<2x1xi1> to vector<2x32xi1>
    %653 = arith.select %652, %648, %615 : vector<2x32xi1>, vector<2x32xf32>
    %cst_140 = arith.constant 0.000000e+00 : f32
    %654 = vector.shape_cast %650 : vector<2x1xi1> to vector<2x1xi1>
    %655 = vector.broadcast %654 : vector<2x1xi1> to vector<2x32xi1>
    %656 = vector.broadcast %cst_140 : f32 to vector<2x32xf32>
    %657 = arith.select %655, %648, %656 : vector<2x32xi1>, vector<2x32xf32>
    %658 = arith.truncf %653 : vector<2x32xf32> to vector<2x32xbf16>
    %cst_141 = arith.constant dense<0.000000e+00> : vector<2x96xf32>
    %659 = tpu.matmul %658, %358, %cst_141 {dimension_numbers = #tpu.dot_dimension_numbers<[1], [0], [0], [1], [0, 0, 1, 1], [], []>} : vector<2x32xbf16>, vector<32x96xbf16>, vector<2x96xf32> -> vector<2x96xf32>
    %660 = arith.addf %659, %366 : vector<2x96xf32>
    %661 = vector.extract_strided_slice %369 {offsets = [0, 0], sizes = [2, 32], strides = [1, 1]} : vector<2x96xf32> to vector<2x32xf32>
    %662 = vector.extract_strided_slice %660 {offsets = [0, 0], sizes = [2, 32], strides = [1, 1]} : vector<2x96xf32> to vector<2x32xf32>
    %663 = arith.addf %661, %662 : vector<2x32xf32>
    %664 = arith.negf %663 : vector<2x32xf32>
    %665 = math.exp %664 : vector<2x32xf32>
    %cst_142 = arith.constant 1.000000e+00 : f32
    %666 = vector.broadcast %cst_142 : f32 to vector<2x32xf32>
    %667 = arith.addf %666, %665 : vector<2x32xf32>
    %668 = arith.divf %666, %667 : vector<2x32xf32>
    %669 = vector.extract_strided_slice %369 {offsets = [0, 32], sizes = [2, 32], strides = [1, 1]} : vector<2x96xf32> to vector<2x32xf32>
    %670 = vector.extract_strided_slice %660 {offsets = [0, 32], sizes = [2, 32], strides = [1, 1]} : vector<2x96xf32> to vector<2x32xf32>
    %671 = arith.addf %669, %670 : vector<2x32xf32>
    %672 = arith.negf %671 : vector<2x32xf32>
    %673 = math.exp %672 : vector<2x32xf32>
    %cst_143 = arith.constant 1.000000e+00 : f32
    %674 = vector.broadcast %cst_143 : f32 to vector<2x32xf32>
    %675 = arith.addf %674, %673 : vector<2x32xf32>
    %676 = arith.divf %674, %675 : vector<2x32xf32>
    %677 = vector.extract_strided_slice %369 {offsets = [0, 64], sizes = [2, 32], strides = [1, 1]} : vector<2x96xf32> to vector<2x32xf32>
    %678 = vector.extract_strided_slice %660 {offsets = [0, 64], sizes = [2, 32], strides = [1, 1]} : vector<2x96xf32> to vector<2x32xf32>
    %679 = arith.mulf %668, %678 : vector<2x32xf32>
    %680 = arith.addf %677, %679 : vector<2x32xf32>
    %681 = math.tanh %680 : vector<2x32xf32>
    %cst_144 = arith.constant 1.000000e+00 : f32
    %682 = vector.broadcast %cst_144 : f32 to vector<2x32xf32>
    %683 = arith.subf %682, %676 : vector<2x32xf32>
    %684 = arith.mulf %683, %681 : vector<2x32xf32>
    %685 = arith.mulf %676, %653 : vector<2x32xf32>
    %686 = arith.addf %684, %685 : vector<2x32xf32>
    %c0_i32_145 = arith.constant 0 : i32
    %687 = vector.broadcast %c0_i32_145 : i32 to vector<2x1xi32>
    %688 = arith.cmpi sgt, %0, %687 : vector<2x1xi32>
    %cst_146 = arith.constant 0.000000e+00 : f32
    %689 = vector.shape_cast %688 : vector<2x1xi1> to vector<2x1xi1>
    %690 = vector.broadcast %689 : vector<2x1xi1> to vector<2x32xi1>
    %691 = vector.broadcast %cst_146 : f32 to vector<2x32xf32>
    %692 = arith.select %690, %686, %691 : vector<2x32xi1>, vector<2x32xf32>
    %693 = tpu.concatenate %91, %692 in 1 : vector<2x32xf32>, vector<2x32xf32> -> vector<2x64xf32>
    %694 = tpu.concatenate %129, %657 in 1 : vector<2x32xf32>, vector<2x32xf32> -> vector<2x64xf32>
    %695 = tpu.concatenate %167, %619 in 1 : vector<2x32xf32>, vector<2x32xf32> -> vector<2x64xf32>
    %696 = tpu.concatenate %205, %581 in 1 : vector<2x32xf32>, vector<2x32xf32> -> vector<2x64xf32>
    %697 = tpu.concatenate %243, %543 in 1 : vector<2x32xf32>, vector<2x32xf32> -> vector<2x64xf32>
    %698 = tpu.concatenate %281, %505 in 1 : vector<2x32xf32>, vector<2x32xf32> -> vector<2x64xf32>
    %699 = tpu.concatenate %319, %467 in 1 : vector<2x32xf32>, vector<2x32xf32> -> vector<2x64xf32>
    %700 = tpu.concatenate %354, %429 in 1 : vector<2x32xf32>, vector<2x32xf32> -> vector<2x64xf32>
    %c0_147 = arith.constant 0 : index
    %c0_148 = arith.constant 0 : index
    %c0_149 = arith.constant 0 : index
    %701 = vector.load %arg6[%c0_147, %c0_148, %c0_149] : memref<2x64x96xbf16, #tpu.memory_space<vmem>>, vector<1x64x96xbf16>
    %702 = vector.shape_cast %701 : vector<1x64x96xbf16> to vector<64x96xbf16>
    %c0_150 = arith.constant 0 : index
    %c0_151 = arith.constant 0 : index
    %c0_152 = arith.constant 0 : index
    %703 = vector.load %arg7[%c0_150, %c0_151, %c0_152] : memref<2x32x96xbf16, #tpu.memory_space<vmem>>, vector<1x32x96xbf16>
    %704 = vector.shape_cast %703 : vector<1x32x96xbf16> to vector<32x96xbf16>
    %c0_153 = arith.constant 0 : index
    %c0_154 = arith.constant 0 : index
    %c0_155 = arith.constant 0 : index
    %705 = vector.load %arg8[%c0_153, %c0_154, %c0_155] : memref<2x1x96xf32, #tpu.memory_space<vmem>>, vector<1x1x96xf32>
    %706 = vector.shape_cast %705 : vector<1x1x96xf32> to vector<1x96xf32>
    %c0_156 = arith.constant 0 : index
    %c0_157 = arith.constant 0 : index
    %c0_158 = arith.constant 0 : index
    %707 = vector.load %arg9[%c0_156, %c0_157, %c0_158] : memref<2x1x96xf32, #tpu.memory_space<vmem>>, vector<1x1x96xf32>
    %708 = vector.shape_cast %707 : vector<1x1x96xf32> to vector<1x96xf32>
    %709 = vector.shape_cast %706 : vector<1x96xf32> to vector<1x96xf32>
    %710 = vector.broadcast %709 : vector<1x96xf32> to vector<2x96xf32>
    %711 = vector.shape_cast %708 : vector<1x96xf32> to vector<1x96xf32>
    %712 = vector.broadcast %711 : vector<1x96xf32> to vector<2x96xf32>
    %713 = arith.truncf %693 : vector<2x64xf32> to vector<2x64xbf16>
    %cst_159 = arith.constant dense<0.000000e+00> : vector<2x96xf32>
    %714 = tpu.matmul %713, %702, %cst_159 {dimension_numbers = #tpu.dot_dimension_numbers<[1], [0], [0], [1], [0, 0, 1, 1], [], []>} : vector<2x64xbf16>, vector<64x96xbf16>, vector<2x96xf32> -> vector<2x96xf32>
    %715 = arith.addf %714, %710 : vector<2x96xf32>
    %716 = arith.truncf %694 : vector<2x64xf32> to vector<2x64xbf16>
    %cst_160 = arith.constant dense<0.000000e+00> : vector<2x96xf32>
    %717 = tpu.matmul %716, %702, %cst_160 {dimension_numbers = #tpu.dot_dimension_numbers<[1], [0], [0], [1], [0, 0, 1, 1], [], []>} : vector<2x64xbf16>, vector<64x96xbf16>, vector<2x96xf32> -> vector<2x96xf32>
    %718 = arith.addf %717, %710 : vector<2x96xf32>
    %719 = arith.truncf %695 : vector<2x64xf32> to vector<2x64xbf16>
    %cst_161 = arith.constant dense<0.000000e+00> : vector<2x96xf32>
    %720 = tpu.matmul %719, %702, %cst_161 {dimension_numbers = #tpu.dot_dimension_numbers<[1], [0], [0], [1], [0, 0, 1, 1], [], []>} : vector<2x64xbf16>, vector<64x96xbf16>, vector<2x96xf32> -> vector<2x96xf32>
    %721 = arith.addf %720, %710 : vector<2x96xf32>
    %722 = arith.truncf %696 : vector<2x64xf32> to vector<2x64xbf16>
    %cst_162 = arith.constant dense<0.000000e+00> : vector<2x96xf32>
    %723 = tpu.matmul %722, %702, %cst_162 {dimension_numbers = #tpu.dot_dimension_numbers<[1], [0], [0], [1], [0, 0, 1, 1], [], []>} : vector<2x64xbf16>, vector<64x96xbf16>, vector<2x96xf32> -> vector<2x96xf32>
    %724 = arith.addf %723, %710 : vector<2x96xf32>
    %725 = arith.truncf %697 : vector<2x64xf32> to vector<2x64xbf16>
    %cst_163 = arith.constant dense<0.000000e+00> : vector<2x96xf32>
    %726 = tpu.matmul %725, %702, %cst_163 {dimension_numbers = #tpu.dot_dimension_numbers<[1], [0], [0], [1], [0, 0, 1, 1], [], []>} : vector<2x64xbf16>, vector<64x96xbf16>, vector<2x96xf32> -> vector<2x96xf32>
    %727 = arith.addf %726, %710 : vector<2x96xf32>
    %728 = arith.truncf %698 : vector<2x64xf32> to vector<2x64xbf16>
    %cst_164 = arith.constant dense<0.000000e+00> : vector<2x96xf32>
    %729 = tpu.matmul %728, %702, %cst_164 {dimension_numbers = #tpu.dot_dimension_numbers<[1], [0], [0], [1], [0, 0, 1, 1], [], []>} : vector<2x64xbf16>, vector<64x96xbf16>, vector<2x96xf32> -> vector<2x96xf32>
    %730 = arith.addf %729, %710 : vector<2x96xf32>
    %731 = arith.truncf %699 : vector<2x64xf32> to vector<2x64xbf16>
    %cst_165 = arith.constant dense<0.000000e+00> : vector<2x96xf32>
    %732 = tpu.matmul %731, %702, %cst_165 {dimension_numbers = #tpu.dot_dimension_numbers<[1], [0], [0], [1], [0, 0, 1, 1], [], []>} : vector<2x64xbf16>, vector<64x96xbf16>, vector<2x96xf32> -> vector<2x96xf32>
    %733 = arith.addf %732, %710 : vector<2x96xf32>
    %734 = arith.truncf %700 : vector<2x64xf32> to vector<2x64xbf16>
    %cst_166 = arith.constant dense<0.000000e+00> : vector<2x96xf32>
    %735 = tpu.matmul %734, %702, %cst_166 {dimension_numbers = #tpu.dot_dimension_numbers<[1], [0], [0], [1], [0, 0, 1, 1], [], []>} : vector<2x64xbf16>, vector<64x96xbf16>, vector<2x96xf32> -> vector<2x96xf32>
    %736 = arith.addf %735, %710 : vector<2x96xf32>
    %cst_167 = arith.constant 0.000000e+00 : f32
    %737 = vector.broadcast %cst_167 : f32 to vector<2x32xf32>
    %738 = arith.truncf %737 : vector<2x32xf32> to vector<2x32xbf16>
    %cst_168 = arith.constant dense<0.000000e+00> : vector<2x96xf32>
    %739 = tpu.matmul %738, %704, %cst_168 {dimension_numbers = #tpu.dot_dimension_numbers<[1], [0], [0], [1], [0, 0, 1, 1], [], []>} : vector<2x32xbf16>, vector<32x96xbf16>, vector<2x96xf32> -> vector<2x96xf32>
    %740 = arith.addf %739, %712 : vector<2x96xf32>
    %741 = vector.extract_strided_slice %715 {offsets = [0, 0], sizes = [2, 32], strides = [1, 1]} : vector<2x96xf32> to vector<2x32xf32>
    %742 = vector.extract_strided_slice %740 {offsets = [0, 0], sizes = [2, 32], strides = [1, 1]} : vector<2x96xf32> to vector<2x32xf32>
    %743 = arith.addf %741, %742 : vector<2x32xf32>
    %744 = arith.negf %743 : vector<2x32xf32>
    %745 = math.exp %744 : vector<2x32xf32>
    %cst_169 = arith.constant 1.000000e+00 : f32
    %746 = vector.broadcast %cst_169 : f32 to vector<2x32xf32>
    %747 = arith.addf %746, %745 : vector<2x32xf32>
    %748 = arith.divf %746, %747 : vector<2x32xf32>
    %749 = vector.extract_strided_slice %715 {offsets = [0, 32], sizes = [2, 32], strides = [1, 1]} : vector<2x96xf32> to vector<2x32xf32>
    %750 = vector.extract_strided_slice %740 {offsets = [0, 32], sizes = [2, 32], strides = [1, 1]} : vector<2x96xf32> to vector<2x32xf32>
    %751 = arith.addf %749, %750 : vector<2x32xf32>
    %752 = arith.negf %751 : vector<2x32xf32>
    %753 = math.exp %752 : vector<2x32xf32>
    %cst_170 = arith.constant 1.000000e+00 : f32
    %754 = vector.broadcast %cst_170 : f32 to vector<2x32xf32>
    %755 = arith.addf %754, %753 : vector<2x32xf32>
    %756 = arith.divf %754, %755 : vector<2x32xf32>
    %757 = vector.extract_strided_slice %715 {offsets = [0, 64], sizes = [2, 32], strides = [1, 1]} : vector<2x96xf32> to vector<2x32xf32>
    %758 = vector.extract_strided_slice %740 {offsets = [0, 64], sizes = [2, 32], strides = [1, 1]} : vector<2x96xf32> to vector<2x32xf32>
    %759 = arith.mulf %748, %758 : vector<2x32xf32>
    %760 = arith.addf %757, %759 : vector<2x32xf32>
    %761 = math.tanh %760 : vector<2x32xf32>
    %cst_171 = arith.constant 1.000000e+00 : f32
    %762 = vector.broadcast %cst_171 : f32 to vector<2x32xf32>
    %763 = arith.subf %762, %756 : vector<2x32xf32>
    %764 = arith.mulf %763, %761 : vector<2x32xf32>
    %765 = arith.mulf %756, %737 : vector<2x32xf32>
    %766 = arith.addf %764, %765 : vector<2x32xf32>
    %c0_i32_172 = arith.constant 0 : i32
    %767 = vector.broadcast %c0_i32_172 : i32 to vector<2x1xi32>
    %768 = arith.cmpi sgt, %0, %767 : vector<2x1xi32>
    %769 = vector.shape_cast %768 : vector<2x1xi1> to vector<2x1xi1>
    %770 = vector.broadcast %769 : vector<2x1xi1> to vector<2x32xi1>
    %771 = arith.select %770, %766, %737 : vector<2x32xi1>, vector<2x32xf32>
    %cst_173 = arith.constant 0.000000e+00 : f32
    %772 = vector.shape_cast %768 : vector<2x1xi1> to vector<2x1xi1>
    %773 = vector.broadcast %772 : vector<2x1xi1> to vector<2x32xi1>
    %774 = vector.broadcast %cst_173 : f32 to vector<2x32xf32>
    %775 = arith.select %773, %766, %774 : vector<2x32xi1>, vector<2x32xf32>
    %776 = arith.truncf %771 : vector<2x32xf32> to vector<2x32xbf16>
    %cst_174 = arith.constant dense<0.000000e+00> : vector<2x96xf32>
    %777 = tpu.matmul %776, %704, %cst_174 {dimension_numbers = #tpu.dot_dimension_numbers<[1], [0], [0], [1], [0, 0, 1, 1], [], []>} : vector<2x32xbf16>, vector<32x96xbf16>, vector<2x96xf32> -> vector<2x96xf32>
    %778 = arith.addf %777, %712 : vector<2x96xf32>
    %779 = vector.extract_strided_slice %718 {offsets = [0, 0], sizes = [2, 32], strides = [1, 1]} : vector<2x96xf32> to vector<2x32xf32>
    %780 = vector.extract_strided_slice %778 {offsets = [0, 0], sizes = [2, 32], strides = [1, 1]} : vector<2x96xf32> to vector<2x32xf32>
    %781 = arith.addf %779, %780 : vector<2x32xf32>
    %782 = arith.negf %781 : vector<2x32xf32>
    %783 = math.exp %782 : vector<2x32xf32>
    %cst_175 = arith.constant 1.000000e+00 : f32
    %784 = vector.broadcast %cst_175 : f32 to vector<2x32xf32>
    %785 = arith.addf %784, %783 : vector<2x32xf32>
    %786 = arith.divf %784, %785 : vector<2x32xf32>
    %787 = vector.extract_strided_slice %718 {offsets = [0, 32], sizes = [2, 32], strides = [1, 1]} : vector<2x96xf32> to vector<2x32xf32>
    %788 = vector.extract_strided_slice %778 {offsets = [0, 32], sizes = [2, 32], strides = [1, 1]} : vector<2x96xf32> to vector<2x32xf32>
    %789 = arith.addf %787, %788 : vector<2x32xf32>
    %790 = arith.negf %789 : vector<2x32xf32>
    %791 = math.exp %790 : vector<2x32xf32>
    %cst_176 = arith.constant 1.000000e+00 : f32
    %792 = vector.broadcast %cst_176 : f32 to vector<2x32xf32>
    %793 = arith.addf %792, %791 : vector<2x32xf32>
    %794 = arith.divf %792, %793 : vector<2x32xf32>
    %795 = vector.extract_strided_slice %718 {offsets = [0, 64], sizes = [2, 32], strides = [1, 1]} : vector<2x96xf32> to vector<2x32xf32>
    %796 = vector.extract_strided_slice %778 {offsets = [0, 64], sizes = [2, 32], strides = [1, 1]} : vector<2x96xf32> to vector<2x32xf32>
    %797 = arith.mulf %786, %796 : vector<2x32xf32>
    %798 = arith.addf %795, %797 : vector<2x32xf32>
    %799 = math.tanh %798 : vector<2x32xf32>
    %cst_177 = arith.constant 1.000000e+00 : f32
    %800 = vector.broadcast %cst_177 : f32 to vector<2x32xf32>
    %801 = arith.subf %800, %794 : vector<2x32xf32>
    %802 = arith.mulf %801, %799 : vector<2x32xf32>
    %803 = arith.mulf %794, %771 : vector<2x32xf32>
    %804 = arith.addf %802, %803 : vector<2x32xf32>
    %c1_i32_178 = arith.constant 1 : i32
    %805 = vector.broadcast %c1_i32_178 : i32 to vector<2x1xi32>
    %806 = arith.cmpi sgt, %0, %805 : vector<2x1xi32>
    %807 = vector.shape_cast %806 : vector<2x1xi1> to vector<2x1xi1>
    %808 = vector.broadcast %807 : vector<2x1xi1> to vector<2x32xi1>
    %809 = arith.select %808, %804, %771 : vector<2x32xi1>, vector<2x32xf32>
    %cst_179 = arith.constant 0.000000e+00 : f32
    %810 = vector.shape_cast %806 : vector<2x1xi1> to vector<2x1xi1>
    %811 = vector.broadcast %810 : vector<2x1xi1> to vector<2x32xi1>
    %812 = vector.broadcast %cst_179 : f32 to vector<2x32xf32>
    %813 = arith.select %811, %804, %812 : vector<2x32xi1>, vector<2x32xf32>
    %814 = arith.truncf %809 : vector<2x32xf32> to vector<2x32xbf16>
    %cst_180 = arith.constant dense<0.000000e+00> : vector<2x96xf32>
    %815 = tpu.matmul %814, %704, %cst_180 {dimension_numbers = #tpu.dot_dimension_numbers<[1], [0], [0], [1], [0, 0, 1, 1], [], []>} : vector<2x32xbf16>, vector<32x96xbf16>, vector<2x96xf32> -> vector<2x96xf32>
    %816 = arith.addf %815, %712 : vector<2x96xf32>
    %817 = vector.extract_strided_slice %721 {offsets = [0, 0], sizes = [2, 32], strides = [1, 1]} : vector<2x96xf32> to vector<2x32xf32>
    %818 = vector.extract_strided_slice %816 {offsets = [0, 0], sizes = [2, 32], strides = [1, 1]} : vector<2x96xf32> to vector<2x32xf32>
    %819 = arith.addf %817, %818 : vector<2x32xf32>
    %820 = arith.negf %819 : vector<2x32xf32>
    %821 = math.exp %820 : vector<2x32xf32>
    %cst_181 = arith.constant 1.000000e+00 : f32
    %822 = vector.broadcast %cst_181 : f32 to vector<2x32xf32>
    %823 = arith.addf %822, %821 : vector<2x32xf32>
    %824 = arith.divf %822, %823 : vector<2x32xf32>
    %825 = vector.extract_strided_slice %721 {offsets = [0, 32], sizes = [2, 32], strides = [1, 1]} : vector<2x96xf32> to vector<2x32xf32>
    %826 = vector.extract_strided_slice %816 {offsets = [0, 32], sizes = [2, 32], strides = [1, 1]} : vector<2x96xf32> to vector<2x32xf32>
    %827 = arith.addf %825, %826 : vector<2x32xf32>
    %828 = arith.negf %827 : vector<2x32xf32>
    %829 = math.exp %828 : vector<2x32xf32>
    %cst_182 = arith.constant 1.000000e+00 : f32
    %830 = vector.broadcast %cst_182 : f32 to vector<2x32xf32>
    %831 = arith.addf %830, %829 : vector<2x32xf32>
    %832 = arith.divf %830, %831 : vector<2x32xf32>
    %833 = vector.extract_strided_slice %721 {offsets = [0, 64], sizes = [2, 32], strides = [1, 1]} : vector<2x96xf32> to vector<2x32xf32>
    %834 = vector.extract_strided_slice %816 {offsets = [0, 64], sizes = [2, 32], strides = [1, 1]} : vector<2x96xf32> to vector<2x32xf32>
    %835 = arith.mulf %824, %834 : vector<2x32xf32>
    %836 = arith.addf %833, %835 : vector<2x32xf32>
    %837 = math.tanh %836 : vector<2x32xf32>
    %cst_183 = arith.constant 1.000000e+00 : f32
    %838 = vector.broadcast %cst_183 : f32 to vector<2x32xf32>
    %839 = arith.subf %838, %832 : vector<2x32xf32>
    %840 = arith.mulf %839, %837 : vector<2x32xf32>
    %841 = arith.mulf %832, %809 : vector<2x32xf32>
    %842 = arith.addf %840, %841 : vector<2x32xf32>
    %c2_i32_184 = arith.constant 2 : i32
    %843 = vector.broadcast %c2_i32_184 : i32 to vector<2x1xi32>
    %844 = arith.cmpi sgt, %0, %843 : vector<2x1xi32>
    %845 = vector.shape_cast %844 : vector<2x1xi1> to vector<2x1xi1>
    %846 = vector.broadcast %845 : vector<2x1xi1> to vector<2x32xi1>
    %847 = arith.select %846, %842, %809 : vector<2x32xi1>, vector<2x32xf32>
    %cst_185 = arith.constant 0.000000e+00 : f32
    %848 = vector.shape_cast %844 : vector<2x1xi1> to vector<2x1xi1>
    %849 = vector.broadcast %848 : vector<2x1xi1> to vector<2x32xi1>
    %850 = vector.broadcast %cst_185 : f32 to vector<2x32xf32>
    %851 = arith.select %849, %842, %850 : vector<2x32xi1>, vector<2x32xf32>
    %852 = arith.truncf %847 : vector<2x32xf32> to vector<2x32xbf16>
    %cst_186 = arith.constant dense<0.000000e+00> : vector<2x96xf32>
    %853 = tpu.matmul %852, %704, %cst_186 {dimension_numbers = #tpu.dot_dimension_numbers<[1], [0], [0], [1], [0, 0, 1, 1], [], []>} : vector<2x32xbf16>, vector<32x96xbf16>, vector<2x96xf32> -> vector<2x96xf32>
    %854 = arith.addf %853, %712 : vector<2x96xf32>
    %855 = vector.extract_strided_slice %724 {offsets = [0, 0], sizes = [2, 32], strides = [1, 1]} : vector<2x96xf32> to vector<2x32xf32>
    %856 = vector.extract_strided_slice %854 {offsets = [0, 0], sizes = [2, 32], strides = [1, 1]} : vector<2x96xf32> to vector<2x32xf32>
    %857 = arith.addf %855, %856 : vector<2x32xf32>
    %858 = arith.negf %857 : vector<2x32xf32>
    %859 = math.exp %858 : vector<2x32xf32>
    %cst_187 = arith.constant 1.000000e+00 : f32
    %860 = vector.broadcast %cst_187 : f32 to vector<2x32xf32>
    %861 = arith.addf %860, %859 : vector<2x32xf32>
    %862 = arith.divf %860, %861 : vector<2x32xf32>
    %863 = vector.extract_strided_slice %724 {offsets = [0, 32], sizes = [2, 32], strides = [1, 1]} : vector<2x96xf32> to vector<2x32xf32>
    %864 = vector.extract_strided_slice %854 {offsets = [0, 32], sizes = [2, 32], strides = [1, 1]} : vector<2x96xf32> to vector<2x32xf32>
    %865 = arith.addf %863, %864 : vector<2x32xf32>
    %866 = arith.negf %865 : vector<2x32xf32>
    %867 = math.exp %866 : vector<2x32xf32>
    %cst_188 = arith.constant 1.000000e+00 : f32
    %868 = vector.broadcast %cst_188 : f32 to vector<2x32xf32>
    %869 = arith.addf %868, %867 : vector<2x32xf32>
    %870 = arith.divf %868, %869 : vector<2x32xf32>
    %871 = vector.extract_strided_slice %724 {offsets = [0, 64], sizes = [2, 32], strides = [1, 1]} : vector<2x96xf32> to vector<2x32xf32>
    %872 = vector.extract_strided_slice %854 {offsets = [0, 64], sizes = [2, 32], strides = [1, 1]} : vector<2x96xf32> to vector<2x32xf32>
    %873 = arith.mulf %862, %872 : vector<2x32xf32>
    %874 = arith.addf %871, %873 : vector<2x32xf32>
    %875 = math.tanh %874 : vector<2x32xf32>
    %cst_189 = arith.constant 1.000000e+00 : f32
    %876 = vector.broadcast %cst_189 : f32 to vector<2x32xf32>
    %877 = arith.subf %876, %870 : vector<2x32xf32>
    %878 = arith.mulf %877, %875 : vector<2x32xf32>
    %879 = arith.mulf %870, %847 : vector<2x32xf32>
    %880 = arith.addf %878, %879 : vector<2x32xf32>
    %c3_i32_190 = arith.constant 3 : i32
    %881 = vector.broadcast %c3_i32_190 : i32 to vector<2x1xi32>
    %882 = arith.cmpi sgt, %0, %881 : vector<2x1xi32>
    %883 = vector.shape_cast %882 : vector<2x1xi1> to vector<2x1xi1>
    %884 = vector.broadcast %883 : vector<2x1xi1> to vector<2x32xi1>
    %885 = arith.select %884, %880, %847 : vector<2x32xi1>, vector<2x32xf32>
    %cst_191 = arith.constant 0.000000e+00 : f32
    %886 = vector.shape_cast %882 : vector<2x1xi1> to vector<2x1xi1>
    %887 = vector.broadcast %886 : vector<2x1xi1> to vector<2x32xi1>
    %888 = vector.broadcast %cst_191 : f32 to vector<2x32xf32>
    %889 = arith.select %887, %880, %888 : vector<2x32xi1>, vector<2x32xf32>
    %890 = arith.truncf %885 : vector<2x32xf32> to vector<2x32xbf16>
    %cst_192 = arith.constant dense<0.000000e+00> : vector<2x96xf32>
    %891 = tpu.matmul %890, %704, %cst_192 {dimension_numbers = #tpu.dot_dimension_numbers<[1], [0], [0], [1], [0, 0, 1, 1], [], []>} : vector<2x32xbf16>, vector<32x96xbf16>, vector<2x96xf32> -> vector<2x96xf32>
    %892 = arith.addf %891, %712 : vector<2x96xf32>
    %893 = vector.extract_strided_slice %727 {offsets = [0, 0], sizes = [2, 32], strides = [1, 1]} : vector<2x96xf32> to vector<2x32xf32>
    %894 = vector.extract_strided_slice %892 {offsets = [0, 0], sizes = [2, 32], strides = [1, 1]} : vector<2x96xf32> to vector<2x32xf32>
    %895 = arith.addf %893, %894 : vector<2x32xf32>
    %896 = arith.negf %895 : vector<2x32xf32>
    %897 = math.exp %896 : vector<2x32xf32>
    %cst_193 = arith.constant 1.000000e+00 : f32
    %898 = vector.broadcast %cst_193 : f32 to vector<2x32xf32>
    %899 = arith.addf %898, %897 : vector<2x32xf32>
    %900 = arith.divf %898, %899 : vector<2x32xf32>
    %901 = vector.extract_strided_slice %727 {offsets = [0, 32], sizes = [2, 32], strides = [1, 1]} : vector<2x96xf32> to vector<2x32xf32>
    %902 = vector.extract_strided_slice %892 {offsets = [0, 32], sizes = [2, 32], strides = [1, 1]} : vector<2x96xf32> to vector<2x32xf32>
    %903 = arith.addf %901, %902 : vector<2x32xf32>
    %904 = arith.negf %903 : vector<2x32xf32>
    %905 = math.exp %904 : vector<2x32xf32>
    %cst_194 = arith.constant 1.000000e+00 : f32
    %906 = vector.broadcast %cst_194 : f32 to vector<2x32xf32>
    %907 = arith.addf %906, %905 : vector<2x32xf32>
    %908 = arith.divf %906, %907 : vector<2x32xf32>
    %909 = vector.extract_strided_slice %727 {offsets = [0, 64], sizes = [2, 32], strides = [1, 1]} : vector<2x96xf32> to vector<2x32xf32>
    %910 = vector.extract_strided_slice %892 {offsets = [0, 64], sizes = [2, 32], strides = [1, 1]} : vector<2x96xf32> to vector<2x32xf32>
    %911 = arith.mulf %900, %910 : vector<2x32xf32>
    %912 = arith.addf %909, %911 : vector<2x32xf32>
    %913 = math.tanh %912 : vector<2x32xf32>
    %cst_195 = arith.constant 1.000000e+00 : f32
    %914 = vector.broadcast %cst_195 : f32 to vector<2x32xf32>
    %915 = arith.subf %914, %908 : vector<2x32xf32>
    %916 = arith.mulf %915, %913 : vector<2x32xf32>
    %917 = arith.mulf %908, %885 : vector<2x32xf32>
    %918 = arith.addf %916, %917 : vector<2x32xf32>
    %c4_i32_196 = arith.constant 4 : i32
    %919 = vector.broadcast %c4_i32_196 : i32 to vector<2x1xi32>
    %920 = arith.cmpi sgt, %0, %919 : vector<2x1xi32>
    %921 = vector.shape_cast %920 : vector<2x1xi1> to vector<2x1xi1>
    %922 = vector.broadcast %921 : vector<2x1xi1> to vector<2x32xi1>
    %923 = arith.select %922, %918, %885 : vector<2x32xi1>, vector<2x32xf32>
    %cst_197 = arith.constant 0.000000e+00 : f32
    %924 = vector.shape_cast %920 : vector<2x1xi1> to vector<2x1xi1>
    %925 = vector.broadcast %924 : vector<2x1xi1> to vector<2x32xi1>
    %926 = vector.broadcast %cst_197 : f32 to vector<2x32xf32>
    %927 = arith.select %925, %918, %926 : vector<2x32xi1>, vector<2x32xf32>
    %928 = arith.truncf %923 : vector<2x32xf32> to vector<2x32xbf16>
    %cst_198 = arith.constant dense<0.000000e+00> : vector<2x96xf32>
    %929 = tpu.matmul %928, %704, %cst_198 {dimension_numbers = #tpu.dot_dimension_numbers<[1], [0], [0], [1], [0, 0, 1, 1], [], []>} : vector<2x32xbf16>, vector<32x96xbf16>, vector<2x96xf32> -> vector<2x96xf32>
    %930 = arith.addf %929, %712 : vector<2x96xf32>
    %931 = vector.extract_strided_slice %730 {offsets = [0, 0], sizes = [2, 32], strides = [1, 1]} : vector<2x96xf32> to vector<2x32xf32>
    %932 = vector.extract_strided_slice %930 {offsets = [0, 0], sizes = [2, 32], strides = [1, 1]} : vector<2x96xf32> to vector<2x32xf32>
    %933 = arith.addf %931, %932 : vector<2x32xf32>
    %934 = arith.negf %933 : vector<2x32xf32>
    %935 = math.exp %934 : vector<2x32xf32>
    %cst_199 = arith.constant 1.000000e+00 : f32
    %936 = vector.broadcast %cst_199 : f32 to vector<2x32xf32>
    %937 = arith.addf %936, %935 : vector<2x32xf32>
    %938 = arith.divf %936, %937 : vector<2x32xf32>
    %939 = vector.extract_strided_slice %730 {offsets = [0, 32], sizes = [2, 32], strides = [1, 1]} : vector<2x96xf32> to vector<2x32xf32>
    %940 = vector.extract_strided_slice %930 {offsets = [0, 32], sizes = [2, 32], strides = [1, 1]} : vector<2x96xf32> to vector<2x32xf32>
    %941 = arith.addf %939, %940 : vector<2x32xf32>
    %942 = arith.negf %941 : vector<2x32xf32>
    %943 = math.exp %942 : vector<2x32xf32>
    %cst_200 = arith.constant 1.000000e+00 : f32
    %944 = vector.broadcast %cst_200 : f32 to vector<2x32xf32>
    %945 = arith.addf %944, %943 : vector<2x32xf32>
    %946 = arith.divf %944, %945 : vector<2x32xf32>
    %947 = vector.extract_strided_slice %730 {offsets = [0, 64], sizes = [2, 32], strides = [1, 1]} : vector<2x96xf32> to vector<2x32xf32>
    %948 = vector.extract_strided_slice %930 {offsets = [0, 64], sizes = [2, 32], strides = [1, 1]} : vector<2x96xf32> to vector<2x32xf32>
    %949 = arith.mulf %938, %948 : vector<2x32xf32>
    %950 = arith.addf %947, %949 : vector<2x32xf32>
    %951 = math.tanh %950 : vector<2x32xf32>
    %cst_201 = arith.constant 1.000000e+00 : f32
    %952 = vector.broadcast %cst_201 : f32 to vector<2x32xf32>
    %953 = arith.subf %952, %946 : vector<2x32xf32>
    %954 = arith.mulf %953, %951 : vector<2x32xf32>
    %955 = arith.mulf %946, %923 : vector<2x32xf32>
    %956 = arith.addf %954, %955 : vector<2x32xf32>
    %c5_i32_202 = arith.constant 5 : i32
    %957 = vector.broadcast %c5_i32_202 : i32 to vector<2x1xi32>
    %958 = arith.cmpi sgt, %0, %957 : vector<2x1xi32>
    %959 = vector.shape_cast %958 : vector<2x1xi1> to vector<2x1xi1>
    %960 = vector.broadcast %959 : vector<2x1xi1> to vector<2x32xi1>
    %961 = arith.select %960, %956, %923 : vector<2x32xi1>, vector<2x32xf32>
    %cst_203 = arith.constant 0.000000e+00 : f32
    %962 = vector.shape_cast %958 : vector<2x1xi1> to vector<2x1xi1>
    %963 = vector.broadcast %962 : vector<2x1xi1> to vector<2x32xi1>
    %964 = vector.broadcast %cst_203 : f32 to vector<2x32xf32>
    %965 = arith.select %963, %956, %964 : vector<2x32xi1>, vector<2x32xf32>
    %966 = arith.truncf %961 : vector<2x32xf32> to vector<2x32xbf16>
    %cst_204 = arith.constant dense<0.000000e+00> : vector<2x96xf32>
    %967 = tpu.matmul %966, %704, %cst_204 {dimension_numbers = #tpu.dot_dimension_numbers<[1], [0], [0], [1], [0, 0, 1, 1], [], []>} : vector<2x32xbf16>, vector<32x96xbf16>, vector<2x96xf32> -> vector<2x96xf32>
    %968 = arith.addf %967, %712 : vector<2x96xf32>
    %969 = vector.extract_strided_slice %733 {offsets = [0, 0], sizes = [2, 32], strides = [1, 1]} : vector<2x96xf32> to vector<2x32xf32>
    %970 = vector.extract_strided_slice %968 {offsets = [0, 0], sizes = [2, 32], strides = [1, 1]} : vector<2x96xf32> to vector<2x32xf32>
    %971 = arith.addf %969, %970 : vector<2x32xf32>
    %972 = arith.negf %971 : vector<2x32xf32>
    %973 = math.exp %972 : vector<2x32xf32>
    %cst_205 = arith.constant 1.000000e+00 : f32
    %974 = vector.broadcast %cst_205 : f32 to vector<2x32xf32>
    %975 = arith.addf %974, %973 : vector<2x32xf32>
    %976 = arith.divf %974, %975 : vector<2x32xf32>
    %977 = vector.extract_strided_slice %733 {offsets = [0, 32], sizes = [2, 32], strides = [1, 1]} : vector<2x96xf32> to vector<2x32xf32>
    %978 = vector.extract_strided_slice %968 {offsets = [0, 32], sizes = [2, 32], strides = [1, 1]} : vector<2x96xf32> to vector<2x32xf32>
    %979 = arith.addf %977, %978 : vector<2x32xf32>
    %980 = arith.negf %979 : vector<2x32xf32>
    %981 = math.exp %980 : vector<2x32xf32>
    %cst_206 = arith.constant 1.000000e+00 : f32
    %982 = vector.broadcast %cst_206 : f32 to vector<2x32xf32>
    %983 = arith.addf %982, %981 : vector<2x32xf32>
    %984 = arith.divf %982, %983 : vector<2x32xf32>
    %985 = vector.extract_strided_slice %733 {offsets = [0, 64], sizes = [2, 32], strides = [1, 1]} : vector<2x96xf32> to vector<2x32xf32>
    %986 = vector.extract_strided_slice %968 {offsets = [0, 64], sizes = [2, 32], strides = [1, 1]} : vector<2x96xf32> to vector<2x32xf32>
    %987 = arith.mulf %976, %986 : vector<2x32xf32>
    %988 = arith.addf %985, %987 : vector<2x32xf32>
    %989 = math.tanh %988 : vector<2x32xf32>
    %cst_207 = arith.constant 1.000000e+00 : f32
    %990 = vector.broadcast %cst_207 : f32 to vector<2x32xf32>
    %991 = arith.subf %990, %984 : vector<2x32xf32>
    %992 = arith.mulf %991, %989 : vector<2x32xf32>
    %993 = arith.mulf %984, %961 : vector<2x32xf32>
    %994 = arith.addf %992, %993 : vector<2x32xf32>
    %c6_i32_208 = arith.constant 6 : i32
    %995 = vector.broadcast %c6_i32_208 : i32 to vector<2x1xi32>
    %996 = arith.cmpi sgt, %0, %995 : vector<2x1xi32>
    %997 = vector.shape_cast %996 : vector<2x1xi1> to vector<2x1xi1>
    %998 = vector.broadcast %997 : vector<2x1xi1> to vector<2x32xi1>
    %999 = arith.select %998, %994, %961 : vector<2x32xi1>, vector<2x32xf32>
    %cst_209 = arith.constant 0.000000e+00 : f32
    %1000 = vector.shape_cast %996 : vector<2x1xi1> to vector<2x1xi1>
    %1001 = vector.broadcast %1000 : vector<2x1xi1> to vector<2x32xi1>
    %1002 = vector.broadcast %cst_209 : f32 to vector<2x32xf32>
    %1003 = arith.select %1001, %994, %1002 : vector<2x32xi1>, vector<2x32xf32>
    %1004 = arith.truncf %999 : vector<2x32xf32> to vector<2x32xbf16>
    %cst_210 = arith.constant dense<0.000000e+00> : vector<2x96xf32>
    %1005 = tpu.matmul %1004, %704, %cst_210 {dimension_numbers = #tpu.dot_dimension_numbers<[1], [0], [0], [1], [0, 0, 1, 1], [], []>} : vector<2x32xbf16>, vector<32x96xbf16>, vector<2x96xf32> -> vector<2x96xf32>
    %1006 = arith.addf %1005, %712 : vector<2x96xf32>
    %1007 = vector.extract_strided_slice %736 {offsets = [0, 0], sizes = [2, 32], strides = [1, 1]} : vector<2x96xf32> to vector<2x32xf32>
    %1008 = vector.extract_strided_slice %1006 {offsets = [0, 0], sizes = [2, 32], strides = [1, 1]} : vector<2x96xf32> to vector<2x32xf32>
    %1009 = arith.addf %1007, %1008 : vector<2x32xf32>
    %1010 = arith.negf %1009 : vector<2x32xf32>
    %1011 = math.exp %1010 : vector<2x32xf32>
    %cst_211 = arith.constant 1.000000e+00 : f32
    %1012 = vector.broadcast %cst_211 : f32 to vector<2x32xf32>
    %1013 = arith.addf %1012, %1011 : vector<2x32xf32>
    %1014 = arith.divf %1012, %1013 : vector<2x32xf32>
    %1015 = vector.extract_strided_slice %736 {offsets = [0, 32], sizes = [2, 32], strides = [1, 1]} : vector<2x96xf32> to vector<2x32xf32>
    %1016 = vector.extract_strided_slice %1006 {offsets = [0, 32], sizes = [2, 32], strides = [1, 1]} : vector<2x96xf32> to vector<2x32xf32>
    %1017 = arith.addf %1015, %1016 : vector<2x32xf32>
    %1018 = arith.negf %1017 : vector<2x32xf32>
    %1019 = math.exp %1018 : vector<2x32xf32>
    %cst_212 = arith.constant 1.000000e+00 : f32
    %1020 = vector.broadcast %cst_212 : f32 to vector<2x32xf32>
    %1021 = arith.addf %1020, %1019 : vector<2x32xf32>
    %1022 = arith.divf %1020, %1021 : vector<2x32xf32>
    %1023 = vector.extract_strided_slice %736 {offsets = [0, 64], sizes = [2, 32], strides = [1, 1]} : vector<2x96xf32> to vector<2x32xf32>
    %1024 = vector.extract_strided_slice %1006 {offsets = [0, 64], sizes = [2, 32], strides = [1, 1]} : vector<2x96xf32> to vector<2x32xf32>
    %1025 = arith.mulf %1014, %1024 : vector<2x32xf32>
    %1026 = arith.addf %1023, %1025 : vector<2x32xf32>
    %1027 = math.tanh %1026 : vector<2x32xf32>
    %cst_213 = arith.constant 1.000000e+00 : f32
    %1028 = vector.broadcast %cst_213 : f32 to vector<2x32xf32>
    %1029 = arith.subf %1028, %1022 : vector<2x32xf32>
    %1030 = arith.mulf %1029, %1027 : vector<2x32xf32>
    %1031 = arith.mulf %1022, %999 : vector<2x32xf32>
    %1032 = arith.addf %1030, %1031 : vector<2x32xf32>
    %c7_i32_214 = arith.constant 7 : i32
    %1033 = vector.broadcast %c7_i32_214 : i32 to vector<2x1xi32>
    %1034 = arith.cmpi sgt, %0, %1033 : vector<2x1xi32>
    %1035 = vector.shape_cast %1034 : vector<2x1xi1> to vector<2x1xi1>
    %1036 = vector.broadcast %1035 : vector<2x1xi1> to vector<2x32xi1>
    %1037 = arith.select %1036, %1032, %999 : vector<2x32xi1>, vector<2x32xf32>
    %cst_215 = arith.constant 0.000000e+00 : f32
    %1038 = vector.shape_cast %1034 : vector<2x1xi1> to vector<2x1xi1>
    %1039 = vector.broadcast %1038 : vector<2x1xi1> to vector<2x32xi1>
    %1040 = vector.broadcast %cst_215 : f32 to vector<2x32xf32>
    %1041 = arith.select %1039, %1032, %1040 : vector<2x32xi1>, vector<2x32xf32>
    %c1_216 = arith.constant 1 : index
    %c0_217 = arith.constant 0 : index
    %c0_218 = arith.constant 0 : index
    %1042 = vector.load %arg6[%c1_216, %c0_217, %c0_218] : memref<2x64x96xbf16, #tpu.memory_space<vmem>>, vector<1x64x96xbf16>
    %1043 = vector.shape_cast %1042 : vector<1x64x96xbf16> to vector<64x96xbf16>
    %c1_219 = arith.constant 1 : index
    %c0_220 = arith.constant 0 : index
    %c0_221 = arith.constant 0 : index
    %1044 = vector.load %arg7[%c1_219, %c0_220, %c0_221] : memref<2x32x96xbf16, #tpu.memory_space<vmem>>, vector<1x32x96xbf16>
    %1045 = vector.shape_cast %1044 : vector<1x32x96xbf16> to vector<32x96xbf16>
    %c1_222 = arith.constant 1 : index
    %c0_223 = arith.constant 0 : index
    %c0_224 = arith.constant 0 : index
    %1046 = vector.load %arg8[%c1_222, %c0_223, %c0_224] : memref<2x1x96xf32, #tpu.memory_space<vmem>>, vector<1x1x96xf32>
    %1047 = vector.shape_cast %1046 : vector<1x1x96xf32> to vector<1x96xf32>
    %c1_225 = arith.constant 1 : index
    %c0_226 = arith.constant 0 : index
    %c0_227 = arith.constant 0 : index
    %1048 = vector.load %arg9[%c1_225, %c0_226, %c0_227] : memref<2x1x96xf32, #tpu.memory_space<vmem>>, vector<1x1x96xf32>
    %1049 = vector.shape_cast %1048 : vector<1x1x96xf32> to vector<1x96xf32>
    %1050 = vector.shape_cast %1047 : vector<1x96xf32> to vector<1x96xf32>
    %1051 = vector.broadcast %1050 : vector<1x96xf32> to vector<2x96xf32>
    %1052 = vector.shape_cast %1049 : vector<1x96xf32> to vector<1x96xf32>
    %1053 = vector.broadcast %1052 : vector<1x96xf32> to vector<2x96xf32>
    %1054 = arith.truncf %693 : vector<2x64xf32> to vector<2x64xbf16>
    %cst_228 = arith.constant dense<0.000000e+00> : vector<2x96xf32>
    %1055 = tpu.matmul %1054, %1043, %cst_228 {dimension_numbers = #tpu.dot_dimension_numbers<[1], [0], [0], [1], [0, 0, 1, 1], [], []>} : vector<2x64xbf16>, vector<64x96xbf16>, vector<2x96xf32> -> vector<2x96xf32>
    %1056 = arith.addf %1055, %1051 : vector<2x96xf32>
    %1057 = arith.truncf %694 : vector<2x64xf32> to vector<2x64xbf16>
    %cst_229 = arith.constant dense<0.000000e+00> : vector<2x96xf32>
    %1058 = tpu.matmul %1057, %1043, %cst_229 {dimension_numbers = #tpu.dot_dimension_numbers<[1], [0], [0], [1], [0, 0, 1, 1], [], []>} : vector<2x64xbf16>, vector<64x96xbf16>, vector<2x96xf32> -> vector<2x96xf32>
    %1059 = arith.addf %1058, %1051 : vector<2x96xf32>
    %1060 = arith.truncf %695 : vector<2x64xf32> to vector<2x64xbf16>
    %cst_230 = arith.constant dense<0.000000e+00> : vector<2x96xf32>
    %1061 = tpu.matmul %1060, %1043, %cst_230 {dimension_numbers = #tpu.dot_dimension_numbers<[1], [0], [0], [1], [0, 0, 1, 1], [], []>} : vector<2x64xbf16>, vector<64x96xbf16>, vector<2x96xf32> -> vector<2x96xf32>
    %1062 = arith.addf %1061, %1051 : vector<2x96xf32>
    %1063 = arith.truncf %696 : vector<2x64xf32> to vector<2x64xbf16>
    %cst_231 = arith.constant dense<0.000000e+00> : vector<2x96xf32>
    %1064 = tpu.matmul %1063, %1043, %cst_231 {dimension_numbers = #tpu.dot_dimension_numbers<[1], [0], [0], [1], [0, 0, 1, 1], [], []>} : vector<2x64xbf16>, vector<64x96xbf16>, vector<2x96xf32> -> vector<2x96xf32>
    %1065 = arith.addf %1064, %1051 : vector<2x96xf32>
    %1066 = arith.truncf %697 : vector<2x64xf32> to vector<2x64xbf16>
    %cst_232 = arith.constant dense<0.000000e+00> : vector<2x96xf32>
    %1067 = tpu.matmul %1066, %1043, %cst_232 {dimension_numbers = #tpu.dot_dimension_numbers<[1], [0], [0], [1], [0, 0, 1, 1], [], []>} : vector<2x64xbf16>, vector<64x96xbf16>, vector<2x96xf32> -> vector<2x96xf32>
    %1068 = arith.addf %1067, %1051 : vector<2x96xf32>
    %1069 = arith.truncf %698 : vector<2x64xf32> to vector<2x64xbf16>
    %cst_233 = arith.constant dense<0.000000e+00> : vector<2x96xf32>
    %1070 = tpu.matmul %1069, %1043, %cst_233 {dimension_numbers = #tpu.dot_dimension_numbers<[1], [0], [0], [1], [0, 0, 1, 1], [], []>} : vector<2x64xbf16>, vector<64x96xbf16>, vector<2x96xf32> -> vector<2x96xf32>
    %1071 = arith.addf %1070, %1051 : vector<2x96xf32>
    %1072 = arith.truncf %699 : vector<2x64xf32> to vector<2x64xbf16>
    %cst_234 = arith.constant dense<0.000000e+00> : vector<2x96xf32>
    %1073 = tpu.matmul %1072, %1043, %cst_234 {dimension_numbers = #tpu.dot_dimension_numbers<[1], [0], [0], [1], [0, 0, 1, 1], [], []>} : vector<2x64xbf16>, vector<64x96xbf16>, vector<2x96xf32> -> vector<2x96xf32>
    %1074 = arith.addf %1073, %1051 : vector<2x96xf32>
    %1075 = arith.truncf %700 : vector<2x64xf32> to vector<2x64xbf16>
    %cst_235 = arith.constant dense<0.000000e+00> : vector<2x96xf32>
    %1076 = tpu.matmul %1075, %1043, %cst_235 {dimension_numbers = #tpu.dot_dimension_numbers<[1], [0], [0], [1], [0, 0, 1, 1], [], []>} : vector<2x64xbf16>, vector<64x96xbf16>, vector<2x96xf32> -> vector<2x96xf32>
    %1077 = arith.addf %1076, %1051 : vector<2x96xf32>
    %cst_236 = arith.constant 0.000000e+00 : f32
    %1078 = vector.broadcast %cst_236 : f32 to vector<2x32xf32>
    %1079 = arith.truncf %1078 : vector<2x32xf32> to vector<2x32xbf16>
    %cst_237 = arith.constant dense<0.000000e+00> : vector<2x96xf32>
    %1080 = tpu.matmul %1079, %1045, %cst_237 {dimension_numbers = #tpu.dot_dimension_numbers<[1], [0], [0], [1], [0, 0, 1, 1], [], []>} : vector<2x32xbf16>, vector<32x96xbf16>, vector<2x96xf32> -> vector<2x96xf32>
    %1081 = arith.addf %1080, %1053 : vector<2x96xf32>
    %1082 = vector.extract_strided_slice %1077 {offsets = [0, 0], sizes = [2, 32], strides = [1, 1]} : vector<2x96xf32> to vector<2x32xf32>
    %1083 = vector.extract_strided_slice %1081 {offsets = [0, 0], sizes = [2, 32], strides = [1, 1]} : vector<2x96xf32> to vector<2x32xf32>
    %1084 = arith.addf %1082, %1083 : vector<2x32xf32>
    %1085 = arith.negf %1084 : vector<2x32xf32>
    %1086 = math.exp %1085 : vector<2x32xf32>
    %cst_238 = arith.constant 1.000000e+00 : f32
    %1087 = vector.broadcast %cst_238 : f32 to vector<2x32xf32>
    %1088 = arith.addf %1087, %1086 : vector<2x32xf32>
    %1089 = arith.divf %1087, %1088 : vector<2x32xf32>
    %1090 = vector.extract_strided_slice %1077 {offsets = [0, 32], sizes = [2, 32], strides = [1, 1]} : vector<2x96xf32> to vector<2x32xf32>
    %1091 = vector.extract_strided_slice %1081 {offsets = [0, 32], sizes = [2, 32], strides = [1, 1]} : vector<2x96xf32> to vector<2x32xf32>
    %1092 = arith.addf %1090, %1091 : vector<2x32xf32>
    %1093 = arith.negf %1092 : vector<2x32xf32>
    %1094 = math.exp %1093 : vector<2x32xf32>
    %cst_239 = arith.constant 1.000000e+00 : f32
    %1095 = vector.broadcast %cst_239 : f32 to vector<2x32xf32>
    %1096 = arith.addf %1095, %1094 : vector<2x32xf32>
    %1097 = arith.divf %1095, %1096 : vector<2x32xf32>
    %1098 = vector.extract_strided_slice %1077 {offsets = [0, 64], sizes = [2, 32], strides = [1, 1]} : vector<2x96xf32> to vector<2x32xf32>
    %1099 = vector.extract_strided_slice %1081 {offsets = [0, 64], sizes = [2, 32], strides = [1, 1]} : vector<2x96xf32> to vector<2x32xf32>
    %1100 = arith.mulf %1089, %1099 : vector<2x32xf32>
    %1101 = arith.addf %1098, %1100 : vector<2x32xf32>
    %1102 = math.tanh %1101 : vector<2x32xf32>
    %cst_240 = arith.constant 1.000000e+00 : f32
    %1103 = vector.broadcast %cst_240 : f32 to vector<2x32xf32>
    %1104 = arith.subf %1103, %1097 : vector<2x32xf32>
    %1105 = arith.mulf %1104, %1102 : vector<2x32xf32>
    %1106 = arith.mulf %1097, %1078 : vector<2x32xf32>
    %1107 = arith.addf %1105, %1106 : vector<2x32xf32>
    %c7_i32_241 = arith.constant 7 : i32
    %1108 = vector.broadcast %c7_i32_241 : i32 to vector<2x1xi32>
    %1109 = arith.cmpi sgt, %0, %1108 : vector<2x1xi32>
    %1110 = vector.shape_cast %1109 : vector<2x1xi1> to vector<2x1xi1>
    %1111 = vector.broadcast %1110 : vector<2x1xi1> to vector<2x32xi1>
    %1112 = arith.select %1111, %1107, %1078 : vector<2x32xi1>, vector<2x32xf32>
    %cst_242 = arith.constant 0.000000e+00 : f32
    %1113 = vector.shape_cast %1109 : vector<2x1xi1> to vector<2x1xi1>
    %1114 = vector.broadcast %1113 : vector<2x1xi1> to vector<2x32xi1>
    %1115 = vector.broadcast %cst_242 : f32 to vector<2x32xf32>
    %1116 = arith.select %1114, %1107, %1115 : vector<2x32xi1>, vector<2x32xf32>
    %1117 = arith.truncf %1112 : vector<2x32xf32> to vector<2x32xbf16>
    %cst_243 = arith.constant dense<0.000000e+00> : vector<2x96xf32>
    %1118 = tpu.matmul %1117, %1045, %cst_243 {dimension_numbers = #tpu.dot_dimension_numbers<[1], [0], [0], [1], [0, 0, 1, 1], [], []>} : vector<2x32xbf16>, vector<32x96xbf16>, vector<2x96xf32> -> vector<2x96xf32>
    %1119 = arith.addf %1118, %1053 : vector<2x96xf32>
    %1120 = vector.extract_strided_slice %1074 {offsets = [0, 0], sizes = [2, 32], strides = [1, 1]} : vector<2x96xf32> to vector<2x32xf32>
    %1121 = vector.extract_strided_slice %1119 {offsets = [0, 0], sizes = [2, 32], strides = [1, 1]} : vector<2x96xf32> to vector<2x32xf32>
    %1122 = arith.addf %1120, %1121 : vector<2x32xf32>
    %1123 = arith.negf %1122 : vector<2x32xf32>
    %1124 = math.exp %1123 : vector<2x32xf32>
    %cst_244 = arith.constant 1.000000e+00 : f32
    %1125 = vector.broadcast %cst_244 : f32 to vector<2x32xf32>
    %1126 = arith.addf %1125, %1124 : vector<2x32xf32>
    %1127 = arith.divf %1125, %1126 : vector<2x32xf32>
    %1128 = vector.extract_strided_slice %1074 {offsets = [0, 32], sizes = [2, 32], strides = [1, 1]} : vector<2x96xf32> to vector<2x32xf32>
    %1129 = vector.extract_strided_slice %1119 {offsets = [0, 32], sizes = [2, 32], strides = [1, 1]} : vector<2x96xf32> to vector<2x32xf32>
    %1130 = arith.addf %1128, %1129 : vector<2x32xf32>
    %1131 = arith.negf %1130 : vector<2x32xf32>
    %1132 = math.exp %1131 : vector<2x32xf32>
    %cst_245 = arith.constant 1.000000e+00 : f32
    %1133 = vector.broadcast %cst_245 : f32 to vector<2x32xf32>
    %1134 = arith.addf %1133, %1132 : vector<2x32xf32>
    %1135 = arith.divf %1133, %1134 : vector<2x32xf32>
    %1136 = vector.extract_strided_slice %1074 {offsets = [0, 64], sizes = [2, 32], strides = [1, 1]} : vector<2x96xf32> to vector<2x32xf32>
    %1137 = vector.extract_strided_slice %1119 {offsets = [0, 64], sizes = [2, 32], strides = [1, 1]} : vector<2x96xf32> to vector<2x32xf32>
    %1138 = arith.mulf %1127, %1137 : vector<2x32xf32>
    %1139 = arith.addf %1136, %1138 : vector<2x32xf32>
    %1140 = math.tanh %1139 : vector<2x32xf32>
    %cst_246 = arith.constant 1.000000e+00 : f32
    %1141 = vector.broadcast %cst_246 : f32 to vector<2x32xf32>
    %1142 = arith.subf %1141, %1135 : vector<2x32xf32>
    %1143 = arith.mulf %1142, %1140 : vector<2x32xf32>
    %1144 = arith.mulf %1135, %1112 : vector<2x32xf32>
    %1145 = arith.addf %1143, %1144 : vector<2x32xf32>
    %c6_i32_247 = arith.constant 6 : i32
    %1146 = vector.broadcast %c6_i32_247 : i32 to vector<2x1xi32>
    %1147 = arith.cmpi sgt, %0, %1146 : vector<2x1xi32>
    %1148 = vector.shape_cast %1147 : vector<2x1xi1> to vector<2x1xi1>
    %1149 = vector.broadcast %1148 : vector<2x1xi1> to vector<2x32xi1>
    %1150 = arith.select %1149, %1145, %1112 : vector<2x32xi1>, vector<2x32xf32>
    %cst_248 = arith.constant 0.000000e+00 : f32
    %1151 = vector.shape_cast %1147 : vector<2x1xi1> to vector<2x1xi1>
    %1152 = vector.broadcast %1151 : vector<2x1xi1> to vector<2x32xi1>
    %1153 = vector.broadcast %cst_248 : f32 to vector<2x32xf32>
    %1154 = arith.select %1152, %1145, %1153 : vector<2x32xi1>, vector<2x32xf32>
    %1155 = arith.truncf %1150 : vector<2x32xf32> to vector<2x32xbf16>
    %cst_249 = arith.constant dense<0.000000e+00> : vector<2x96xf32>
    %1156 = tpu.matmul %1155, %1045, %cst_249 {dimension_numbers = #tpu.dot_dimension_numbers<[1], [0], [0], [1], [0, 0, 1, 1], [], []>} : vector<2x32xbf16>, vector<32x96xbf16>, vector<2x96xf32> -> vector<2x96xf32>
    %1157 = arith.addf %1156, %1053 : vector<2x96xf32>
    %1158 = vector.extract_strided_slice %1071 {offsets = [0, 0], sizes = [2, 32], strides = [1, 1]} : vector<2x96xf32> to vector<2x32xf32>
    %1159 = vector.extract_strided_slice %1157 {offsets = [0, 0], sizes = [2, 32], strides = [1, 1]} : vector<2x96xf32> to vector<2x32xf32>
    %1160 = arith.addf %1158, %1159 : vector<2x32xf32>
    %1161 = arith.negf %1160 : vector<2x32xf32>
    %1162 = math.exp %1161 : vector<2x32xf32>
    %cst_250 = arith.constant 1.000000e+00 : f32
    %1163 = vector.broadcast %cst_250 : f32 to vector<2x32xf32>
    %1164 = arith.addf %1163, %1162 : vector<2x32xf32>
    %1165 = arith.divf %1163, %1164 : vector<2x32xf32>
    %1166 = vector.extract_strided_slice %1071 {offsets = [0, 32], sizes = [2, 32], strides = [1, 1]} : vector<2x96xf32> to vector<2x32xf32>
    %1167 = vector.extract_strided_slice %1157 {offsets = [0, 32], sizes = [2, 32], strides = [1, 1]} : vector<2x96xf32> to vector<2x32xf32>
    %1168 = arith.addf %1166, %1167 : vector<2x32xf32>
    %1169 = arith.negf %1168 : vector<2x32xf32>
    %1170 = math.exp %1169 : vector<2x32xf32>
    %cst_251 = arith.constant 1.000000e+00 : f32
    %1171 = vector.broadcast %cst_251 : f32 to vector<2x32xf32>
    %1172 = arith.addf %1171, %1170 : vector<2x32xf32>
    %1173 = arith.divf %1171, %1172 : vector<2x32xf32>
    %1174 = vector.extract_strided_slice %1071 {offsets = [0, 64], sizes = [2, 32], strides = [1, 1]} : vector<2x96xf32> to vector<2x32xf32>
    %1175 = vector.extract_strided_slice %1157 {offsets = [0, 64], sizes = [2, 32], strides = [1, 1]} : vector<2x96xf32> to vector<2x32xf32>
    %1176 = arith.mulf %1165, %1175 : vector<2x32xf32>
    %1177 = arith.addf %1174, %1176 : vector<2x32xf32>
    %1178 = math.tanh %1177 : vector<2x32xf32>
    %cst_252 = arith.constant 1.000000e+00 : f32
    %1179 = vector.broadcast %cst_252 : f32 to vector<2x32xf32>
    %1180 = arith.subf %1179, %1173 : vector<2x32xf32>
    %1181 = arith.mulf %1180, %1178 : vector<2x32xf32>
    %1182 = arith.mulf %1173, %1150 : vector<2x32xf32>
    %1183 = arith.addf %1181, %1182 : vector<2x32xf32>
    %c5_i32_253 = arith.constant 5 : i32
    %1184 = vector.broadcast %c5_i32_253 : i32 to vector<2x1xi32>
    %1185 = arith.cmpi sgt, %0, %1184 : vector<2x1xi32>
    %1186 = vector.shape_cast %1185 : vector<2x1xi1> to vector<2x1xi1>
    %1187 = vector.broadcast %1186 : vector<2x1xi1> to vector<2x32xi1>
    %1188 = arith.select %1187, %1183, %1150 : vector<2x32xi1>, vector<2x32xf32>
    %cst_254 = arith.constant 0.000000e+00 : f32
    %1189 = vector.shape_cast %1185 : vector<2x1xi1> to vector<2x1xi1>
    %1190 = vector.broadcast %1189 : vector<2x1xi1> to vector<2x32xi1>
    %1191 = vector.broadcast %cst_254 : f32 to vector<2x32xf32>
    %1192 = arith.select %1190, %1183, %1191 : vector<2x32xi1>, vector<2x32xf32>
    %1193 = arith.truncf %1188 : vector<2x32xf32> to vector<2x32xbf16>
    %cst_255 = arith.constant dense<0.000000e+00> : vector<2x96xf32>
    %1194 = tpu.matmul %1193, %1045, %cst_255 {dimension_numbers = #tpu.dot_dimension_numbers<[1], [0], [0], [1], [0, 0, 1, 1], [], []>} : vector<2x32xbf16>, vector<32x96xbf16>, vector<2x96xf32> -> vector<2x96xf32>
    %1195 = arith.addf %1194, %1053 : vector<2x96xf32>
    %1196 = vector.extract_strided_slice %1068 {offsets = [0, 0], sizes = [2, 32], strides = [1, 1]} : vector<2x96xf32> to vector<2x32xf32>
    %1197 = vector.extract_strided_slice %1195 {offsets = [0, 0], sizes = [2, 32], strides = [1, 1]} : vector<2x96xf32> to vector<2x32xf32>
    %1198 = arith.addf %1196, %1197 : vector<2x32xf32>
    %1199 = arith.negf %1198 : vector<2x32xf32>
    %1200 = math.exp %1199 : vector<2x32xf32>
    %cst_256 = arith.constant 1.000000e+00 : f32
    %1201 = vector.broadcast %cst_256 : f32 to vector<2x32xf32>
    %1202 = arith.addf %1201, %1200 : vector<2x32xf32>
    %1203 = arith.divf %1201, %1202 : vector<2x32xf32>
    %1204 = vector.extract_strided_slice %1068 {offsets = [0, 32], sizes = [2, 32], strides = [1, 1]} : vector<2x96xf32> to vector<2x32xf32>
    %1205 = vector.extract_strided_slice %1195 {offsets = [0, 32], sizes = [2, 32], strides = [1, 1]} : vector<2x96xf32> to vector<2x32xf32>
    %1206 = arith.addf %1204, %1205 : vector<2x32xf32>
    %1207 = arith.negf %1206 : vector<2x32xf32>
    %1208 = math.exp %1207 : vector<2x32xf32>
    %cst_257 = arith.constant 1.000000e+00 : f32
    %1209 = vector.broadcast %cst_257 : f32 to vector<2x32xf32>
    %1210 = arith.addf %1209, %1208 : vector<2x32xf32>
    %1211 = arith.divf %1209, %1210 : vector<2x32xf32>
    %1212 = vector.extract_strided_slice %1068 {offsets = [0, 64], sizes = [2, 32], strides = [1, 1]} : vector<2x96xf32> to vector<2x32xf32>
    %1213 = vector.extract_strided_slice %1195 {offsets = [0, 64], sizes = [2, 32], strides = [1, 1]} : vector<2x96xf32> to vector<2x32xf32>
    %1214 = arith.mulf %1203, %1213 : vector<2x32xf32>
    %1215 = arith.addf %1212, %1214 : vector<2x32xf32>
    %1216 = math.tanh %1215 : vector<2x32xf32>
    %cst_258 = arith.constant 1.000000e+00 : f32
    %1217 = vector.broadcast %cst_258 : f32 to vector<2x32xf32>
    %1218 = arith.subf %1217, %1211 : vector<2x32xf32>
    %1219 = arith.mulf %1218, %1216 : vector<2x32xf32>
    %1220 = arith.mulf %1211, %1188 : vector<2x32xf32>
    %1221 = arith.addf %1219, %1220 : vector<2x32xf32>
    %c4_i32_259 = arith.constant 4 : i32
    %1222 = vector.broadcast %c4_i32_259 : i32 to vector<2x1xi32>
    %1223 = arith.cmpi sgt, %0, %1222 : vector<2x1xi32>
    %1224 = vector.shape_cast %1223 : vector<2x1xi1> to vector<2x1xi1>
    %1225 = vector.broadcast %1224 : vector<2x1xi1> to vector<2x32xi1>
    %1226 = arith.select %1225, %1221, %1188 : vector<2x32xi1>, vector<2x32xf32>
    %cst_260 = arith.constant 0.000000e+00 : f32
    %1227 = vector.shape_cast %1223 : vector<2x1xi1> to vector<2x1xi1>
    %1228 = vector.broadcast %1227 : vector<2x1xi1> to vector<2x32xi1>
    %1229 = vector.broadcast %cst_260 : f32 to vector<2x32xf32>
    %1230 = arith.select %1228, %1221, %1229 : vector<2x32xi1>, vector<2x32xf32>
    %1231 = arith.truncf %1226 : vector<2x32xf32> to vector<2x32xbf16>
    %cst_261 = arith.constant dense<0.000000e+00> : vector<2x96xf32>
    %1232 = tpu.matmul %1231, %1045, %cst_261 {dimension_numbers = #tpu.dot_dimension_numbers<[1], [0], [0], [1], [0, 0, 1, 1], [], []>} : vector<2x32xbf16>, vector<32x96xbf16>, vector<2x96xf32> -> vector<2x96xf32>
    %1233 = arith.addf %1232, %1053 : vector<2x96xf32>
    %1234 = vector.extract_strided_slice %1065 {offsets = [0, 0], sizes = [2, 32], strides = [1, 1]} : vector<2x96xf32> to vector<2x32xf32>
    %1235 = vector.extract_strided_slice %1233 {offsets = [0, 0], sizes = [2, 32], strides = [1, 1]} : vector<2x96xf32> to vector<2x32xf32>
    %1236 = arith.addf %1234, %1235 : vector<2x32xf32>
    %1237 = arith.negf %1236 : vector<2x32xf32>
    %1238 = math.exp %1237 : vector<2x32xf32>
    %cst_262 = arith.constant 1.000000e+00 : f32
    %1239 = vector.broadcast %cst_262 : f32 to vector<2x32xf32>
    %1240 = arith.addf %1239, %1238 : vector<2x32xf32>
    %1241 = arith.divf %1239, %1240 : vector<2x32xf32>
    %1242 = vector.extract_strided_slice %1065 {offsets = [0, 32], sizes = [2, 32], strides = [1, 1]} : vector<2x96xf32> to vector<2x32xf32>
    %1243 = vector.extract_strided_slice %1233 {offsets = [0, 32], sizes = [2, 32], strides = [1, 1]} : vector<2x96xf32> to vector<2x32xf32>
    %1244 = arith.addf %1242, %1243 : vector<2x32xf32>
    %1245 = arith.negf %1244 : vector<2x32xf32>
    %1246 = math.exp %1245 : vector<2x32xf32>
    %cst_263 = arith.constant 1.000000e+00 : f32
    %1247 = vector.broadcast %cst_263 : f32 to vector<2x32xf32>
    %1248 = arith.addf %1247, %1246 : vector<2x32xf32>
    %1249 = arith.divf %1247, %1248 : vector<2x32xf32>
    %1250 = vector.extract_strided_slice %1065 {offsets = [0, 64], sizes = [2, 32], strides = [1, 1]} : vector<2x96xf32> to vector<2x32xf32>
    %1251 = vector.extract_strided_slice %1233 {offsets = [0, 64], sizes = [2, 32], strides = [1, 1]} : vector<2x96xf32> to vector<2x32xf32>
    %1252 = arith.mulf %1241, %1251 : vector<2x32xf32>
    %1253 = arith.addf %1250, %1252 : vector<2x32xf32>
    %1254 = math.tanh %1253 : vector<2x32xf32>
    %cst_264 = arith.constant 1.000000e+00 : f32
    %1255 = vector.broadcast %cst_264 : f32 to vector<2x32xf32>
    %1256 = arith.subf %1255, %1249 : vector<2x32xf32>
    %1257 = arith.mulf %1256, %1254 : vector<2x32xf32>
    %1258 = arith.mulf %1249, %1226 : vector<2x32xf32>
    %1259 = arith.addf %1257, %1258 : vector<2x32xf32>
    %c3_i32_265 = arith.constant 3 : i32
    %1260 = vector.broadcast %c3_i32_265 : i32 to vector<2x1xi32>
    %1261 = arith.cmpi sgt, %0, %1260 : vector<2x1xi32>
    %1262 = vector.shape_cast %1261 : vector<2x1xi1> to vector<2x1xi1>
    %1263 = vector.broadcast %1262 : vector<2x1xi1> to vector<2x32xi1>
    %1264 = arith.select %1263, %1259, %1226 : vector<2x32xi1>, vector<2x32xf32>
    %cst_266 = arith.constant 0.000000e+00 : f32
    %1265 = vector.shape_cast %1261 : vector<2x1xi1> to vector<2x1xi1>
    %1266 = vector.broadcast %1265 : vector<2x1xi1> to vector<2x32xi1>
    %1267 = vector.broadcast %cst_266 : f32 to vector<2x32xf32>
    %1268 = arith.select %1266, %1259, %1267 : vector<2x32xi1>, vector<2x32xf32>
    %1269 = arith.truncf %1264 : vector<2x32xf32> to vector<2x32xbf16>
    %cst_267 = arith.constant dense<0.000000e+00> : vector<2x96xf32>
    %1270 = tpu.matmul %1269, %1045, %cst_267 {dimension_numbers = #tpu.dot_dimension_numbers<[1], [0], [0], [1], [0, 0, 1, 1], [], []>} : vector<2x32xbf16>, vector<32x96xbf16>, vector<2x96xf32> -> vector<2x96xf32>
    %1271 = arith.addf %1270, %1053 : vector<2x96xf32>
    %1272 = vector.extract_strided_slice %1062 {offsets = [0, 0], sizes = [2, 32], strides = [1, 1]} : vector<2x96xf32> to vector<2x32xf32>
    %1273 = vector.extract_strided_slice %1271 {offsets = [0, 0], sizes = [2, 32], strides = [1, 1]} : vector<2x96xf32> to vector<2x32xf32>
    %1274 = arith.addf %1272, %1273 : vector<2x32xf32>
    %1275 = arith.negf %1274 : vector<2x32xf32>
    %1276 = math.exp %1275 : vector<2x32xf32>
    %cst_268 = arith.constant 1.000000e+00 : f32
    %1277 = vector.broadcast %cst_268 : f32 to vector<2x32xf32>
    %1278 = arith.addf %1277, %1276 : vector<2x32xf32>
    %1279 = arith.divf %1277, %1278 : vector<2x32xf32>
    %1280 = vector.extract_strided_slice %1062 {offsets = [0, 32], sizes = [2, 32], strides = [1, 1]} : vector<2x96xf32> to vector<2x32xf32>
    %1281 = vector.extract_strided_slice %1271 {offsets = [0, 32], sizes = [2, 32], strides = [1, 1]} : vector<2x96xf32> to vector<2x32xf32>
    %1282 = arith.addf %1280, %1281 : vector<2x32xf32>
    %1283 = arith.negf %1282 : vector<2x32xf32>
    %1284 = math.exp %1283 : vector<2x32xf32>
    %cst_269 = arith.constant 1.000000e+00 : f32
    %1285 = vector.broadcast %cst_269 : f32 to vector<2x32xf32>
    %1286 = arith.addf %1285, %1284 : vector<2x32xf32>
    %1287 = arith.divf %1285, %1286 : vector<2x32xf32>
    %1288 = vector.extract_strided_slice %1062 {offsets = [0, 64], sizes = [2, 32], strides = [1, 1]} : vector<2x96xf32> to vector<2x32xf32>
    %1289 = vector.extract_strided_slice %1271 {offsets = [0, 64], sizes = [2, 32], strides = [1, 1]} : vector<2x96xf32> to vector<2x32xf32>
    %1290 = arith.mulf %1279, %1289 : vector<2x32xf32>
    %1291 = arith.addf %1288, %1290 : vector<2x32xf32>
    %1292 = math.tanh %1291 : vector<2x32xf32>
    %cst_270 = arith.constant 1.000000e+00 : f32
    %1293 = vector.broadcast %cst_270 : f32 to vector<2x32xf32>
    %1294 = arith.subf %1293, %1287 : vector<2x32xf32>
    %1295 = arith.mulf %1294, %1292 : vector<2x32xf32>
    %1296 = arith.mulf %1287, %1264 : vector<2x32xf32>
    %1297 = arith.addf %1295, %1296 : vector<2x32xf32>
    %c2_i32_271 = arith.constant 2 : i32
    %1298 = vector.broadcast %c2_i32_271 : i32 to vector<2x1xi32>
    %1299 = arith.cmpi sgt, %0, %1298 : vector<2x1xi32>
    %1300 = vector.shape_cast %1299 : vector<2x1xi1> to vector<2x1xi1>
    %1301 = vector.broadcast %1300 : vector<2x1xi1> to vector<2x32xi1>
    %1302 = arith.select %1301, %1297, %1264 : vector<2x32xi1>, vector<2x32xf32>
    %cst_272 = arith.constant 0.000000e+00 : f32
    %1303 = vector.shape_cast %1299 : vector<2x1xi1> to vector<2x1xi1>
    %1304 = vector.broadcast %1303 : vector<2x1xi1> to vector<2x32xi1>
    %1305 = vector.broadcast %cst_272 : f32 to vector<2x32xf32>
    %1306 = arith.select %1304, %1297, %1305 : vector<2x32xi1>, vector<2x32xf32>
    %1307 = arith.truncf %1302 : vector<2x32xf32> to vector<2x32xbf16>
    %cst_273 = arith.constant dense<0.000000e+00> : vector<2x96xf32>
    %1308 = tpu.matmul %1307, %1045, %cst_273 {dimension_numbers = #tpu.dot_dimension_numbers<[1], [0], [0], [1], [0, 0, 1, 1], [], []>} : vector<2x32xbf16>, vector<32x96xbf16>, vector<2x96xf32> -> vector<2x96xf32>
    %1309 = arith.addf %1308, %1053 : vector<2x96xf32>
    %1310 = vector.extract_strided_slice %1059 {offsets = [0, 0], sizes = [2, 32], strides = [1, 1]} : vector<2x96xf32> to vector<2x32xf32>
    %1311 = vector.extract_strided_slice %1309 {offsets = [0, 0], sizes = [2, 32], strides = [1, 1]} : vector<2x96xf32> to vector<2x32xf32>
    %1312 = arith.addf %1310, %1311 : vector<2x32xf32>
    %1313 = arith.negf %1312 : vector<2x32xf32>
    %1314 = math.exp %1313 : vector<2x32xf32>
    %cst_274 = arith.constant 1.000000e+00 : f32
    %1315 = vector.broadcast %cst_274 : f32 to vector<2x32xf32>
    %1316 = arith.addf %1315, %1314 : vector<2x32xf32>
    %1317 = arith.divf %1315, %1316 : vector<2x32xf32>
    %1318 = vector.extract_strided_slice %1059 {offsets = [0, 32], sizes = [2, 32], strides = [1, 1]} : vector<2x96xf32> to vector<2x32xf32>
    %1319 = vector.extract_strided_slice %1309 {offsets = [0, 32], sizes = [2, 32], strides = [1, 1]} : vector<2x96xf32> to vector<2x32xf32>
    %1320 = arith.addf %1318, %1319 : vector<2x32xf32>
    %1321 = arith.negf %1320 : vector<2x32xf32>
    %1322 = math.exp %1321 : vector<2x32xf32>
    %cst_275 = arith.constant 1.000000e+00 : f32
    %1323 = vector.broadcast %cst_275 : f32 to vector<2x32xf32>
    %1324 = arith.addf %1323, %1322 : vector<2x32xf32>
    %1325 = arith.divf %1323, %1324 : vector<2x32xf32>
    %1326 = vector.extract_strided_slice %1059 {offsets = [0, 64], sizes = [2, 32], strides = [1, 1]} : vector<2x96xf32> to vector<2x32xf32>
    %1327 = vector.extract_strided_slice %1309 {offsets = [0, 64], sizes = [2, 32], strides = [1, 1]} : vector<2x96xf32> to vector<2x32xf32>
    %1328 = arith.mulf %1317, %1327 : vector<2x32xf32>
    %1329 = arith.addf %1326, %1328 : vector<2x32xf32>
    %1330 = math.tanh %1329 : vector<2x32xf32>
    %cst_276 = arith.constant 1.000000e+00 : f32
    %1331 = vector.broadcast %cst_276 : f32 to vector<2x32xf32>
    %1332 = arith.subf %1331, %1325 : vector<2x32xf32>
    %1333 = arith.mulf %1332, %1330 : vector<2x32xf32>
    %1334 = arith.mulf %1325, %1302 : vector<2x32xf32>
    %1335 = arith.addf %1333, %1334 : vector<2x32xf32>
    %c1_i32_277 = arith.constant 1 : i32
    %1336 = vector.broadcast %c1_i32_277 : i32 to vector<2x1xi32>
    %1337 = arith.cmpi sgt, %0, %1336 : vector<2x1xi32>
    %1338 = vector.shape_cast %1337 : vector<2x1xi1> to vector<2x1xi1>
    %1339 = vector.broadcast %1338 : vector<2x1xi1> to vector<2x32xi1>
    %1340 = arith.select %1339, %1335, %1302 : vector<2x32xi1>, vector<2x32xf32>
    %cst_278 = arith.constant 0.000000e+00 : f32
    %1341 = vector.shape_cast %1337 : vector<2x1xi1> to vector<2x1xi1>
    %1342 = vector.broadcast %1341 : vector<2x1xi1> to vector<2x32xi1>
    %1343 = vector.broadcast %cst_278 : f32 to vector<2x32xf32>
    %1344 = arith.select %1342, %1335, %1343 : vector<2x32xi1>, vector<2x32xf32>
    %1345 = arith.truncf %1340 : vector<2x32xf32> to vector<2x32xbf16>
    %cst_279 = arith.constant dense<0.000000e+00> : vector<2x96xf32>
    %1346 = tpu.matmul %1345, %1045, %cst_279 {dimension_numbers = #tpu.dot_dimension_numbers<[1], [0], [0], [1], [0, 0, 1, 1], [], []>} : vector<2x32xbf16>, vector<32x96xbf16>, vector<2x96xf32> -> vector<2x96xf32>
    %1347 = arith.addf %1346, %1053 : vector<2x96xf32>
    %1348 = vector.extract_strided_slice %1056 {offsets = [0, 0], sizes = [2, 32], strides = [1, 1]} : vector<2x96xf32> to vector<2x32xf32>
    %1349 = vector.extract_strided_slice %1347 {offsets = [0, 0], sizes = [2, 32], strides = [1, 1]} : vector<2x96xf32> to vector<2x32xf32>
    %1350 = arith.addf %1348, %1349 : vector<2x32xf32>
    %1351 = arith.negf %1350 : vector<2x32xf32>
    %1352 = math.exp %1351 : vector<2x32xf32>
    %cst_280 = arith.constant 1.000000e+00 : f32
    %1353 = vector.broadcast %cst_280 : f32 to vector<2x32xf32>
    %1354 = arith.addf %1353, %1352 : vector<2x32xf32>
    %1355 = arith.divf %1353, %1354 : vector<2x32xf32>
    %1356 = vector.extract_strided_slice %1056 {offsets = [0, 32], sizes = [2, 32], strides = [1, 1]} : vector<2x96xf32> to vector<2x32xf32>
    %1357 = vector.extract_strided_slice %1347 {offsets = [0, 32], sizes = [2, 32], strides = [1, 1]} : vector<2x96xf32> to vector<2x32xf32>
    %1358 = arith.addf %1356, %1357 : vector<2x32xf32>
    %1359 = arith.negf %1358 : vector<2x32xf32>
    %1360 = math.exp %1359 : vector<2x32xf32>
    %cst_281 = arith.constant 1.000000e+00 : f32
    %1361 = vector.broadcast %cst_281 : f32 to vector<2x32xf32>
    %1362 = arith.addf %1361, %1360 : vector<2x32xf32>
    %1363 = arith.divf %1361, %1362 : vector<2x32xf32>
    %1364 = vector.extract_strided_slice %1056 {offsets = [0, 64], sizes = [2, 32], strides = [1, 1]} : vector<2x96xf32> to vector<2x32xf32>
    %1365 = vector.extract_strided_slice %1347 {offsets = [0, 64], sizes = [2, 32], strides = [1, 1]} : vector<2x96xf32> to vector<2x32xf32>
    %1366 = arith.mulf %1355, %1365 : vector<2x32xf32>
    %1367 = arith.addf %1364, %1366 : vector<2x32xf32>
    %1368 = math.tanh %1367 : vector<2x32xf32>
    %cst_282 = arith.constant 1.000000e+00 : f32
    %1369 = vector.broadcast %cst_282 : f32 to vector<2x32xf32>
    %1370 = arith.subf %1369, %1363 : vector<2x32xf32>
    %1371 = arith.mulf %1370, %1368 : vector<2x32xf32>
    %1372 = arith.mulf %1363, %1340 : vector<2x32xf32>
    %1373 = arith.addf %1371, %1372 : vector<2x32xf32>
    %c0_i32_283 = arith.constant 0 : i32
    %1374 = vector.broadcast %c0_i32_283 : i32 to vector<2x1xi32>
    %1375 = arith.cmpi sgt, %0, %1374 : vector<2x1xi32>
    %1376 = vector.shape_cast %1375 : vector<2x1xi1> to vector<2x1xi1>
    %1377 = vector.broadcast %1376 : vector<2x1xi1> to vector<2x32xi1>
    %1378 = arith.select %1377, %1373, %1340 : vector<2x32xi1>, vector<2x32xf32>
    %cst_284 = arith.constant 0.000000e+00 : f32
    %1379 = vector.shape_cast %1375 : vector<2x1xi1> to vector<2x1xi1>
    %1380 = vector.broadcast %1379 : vector<2x1xi1> to vector<2x32xi1>
    %1381 = vector.broadcast %cst_284 : f32 to vector<2x32xf32>
    %1382 = arith.select %1380, %1373, %1381 : vector<2x32xi1>, vector<2x32xf32>
    %1383 = tpu.concatenate %775, %1382 in 1 : vector<2x32xf32>, vector<2x32xf32> -> vector<2x64xf32>
    %1384 = tpu.concatenate %813, %1344 in 1 : vector<2x32xf32>, vector<2x32xf32> -> vector<2x64xf32>
    %1385 = tpu.concatenate %851, %1306 in 1 : vector<2x32xf32>, vector<2x32xf32> -> vector<2x64xf32>
    %1386 = tpu.concatenate %889, %1268 in 1 : vector<2x32xf32>, vector<2x32xf32> -> vector<2x64xf32>
    %1387 = tpu.concatenate %927, %1230 in 1 : vector<2x32xf32>, vector<2x32xf32> -> vector<2x64xf32>
    %1388 = tpu.concatenate %965, %1192 in 1 : vector<2x32xf32>, vector<2x32xf32> -> vector<2x64xf32>
    %1389 = tpu.concatenate %1003, %1154 in 1 : vector<2x32xf32>, vector<2x32xf32> -> vector<2x64xf32>
    %1390 = tpu.concatenate %1041, %1116 in 1 : vector<2x32xf32>, vector<2x32xf32> -> vector<2x64xf32>
    %1391 = tpu.concatenate %1378, %1037 in 1 : vector<2x32xf32>, vector<2x32xf32> -> vector<2x64xf32>
    %c0_285 = arith.constant 0 : index
    %c0_286 = arith.constant 0 : index
    %1392 = vector.load %arg10[%c0_285, %c0_286] : memref<64x192xbf16, #tpu.memory_space<vmem>>, vector<64x192xbf16>
    %c0_287 = arith.constant 0 : index
    %c0_288 = arith.constant 0 : index
    %1393 = vector.load %arg11[%c0_287, %c0_288] : memref<64x192xbf16, #tpu.memory_space<vmem>>, vector<64x192xbf16>
    %c0_289 = arith.constant 0 : index
    %c0_290 = arith.constant 0 : index
    %1394 = vector.load %arg12[%c0_289, %c0_290] : memref<1x192xf32, #tpu.memory_space<vmem>>, vector<1x192xf32>
    %c0_291 = arith.constant 0 : index
    %c0_292 = arith.constant 0 : index
    %1395 = vector.load %arg13[%c0_291, %c0_292] : memref<1x192xf32, #tpu.memory_space<vmem>>, vector<1x192xf32>
    %1396 = vector.shape_cast %1394 : vector<1x192xf32> to vector<1x192xf32>
    %1397 = vector.broadcast %1396 : vector<1x192xf32> to vector<2x192xf32>
    %1398 = vector.shape_cast %1395 : vector<1x192xf32> to vector<1x192xf32>
    %1399 = vector.broadcast %1398 : vector<1x192xf32> to vector<2x192xf32>
    %1400 = arith.truncf %1383 : vector<2x64xf32> to vector<2x64xbf16>
    %cst_293 = arith.constant dense<0.000000e+00> : vector<2x192xf32>
    %1401 = tpu.matmul %1400, %1392, %cst_293 {dimension_numbers = #tpu.dot_dimension_numbers<[1], [0], [0], [1], [0, 0, 1, 1], [], []>} : vector<2x64xbf16>, vector<64x192xbf16>, vector<2x192xf32> -> vector<2x192xf32>
    %1402 = arith.addf %1401, %1397 : vector<2x192xf32>
    %1403 = arith.truncf %1384 : vector<2x64xf32> to vector<2x64xbf16>
    %cst_294 = arith.constant dense<0.000000e+00> : vector<2x192xf32>
    %1404 = tpu.matmul %1403, %1392, %cst_294 {dimension_numbers = #tpu.dot_dimension_numbers<[1], [0], [0], [1], [0, 0, 1, 1], [], []>} : vector<2x64xbf16>, vector<64x192xbf16>, vector<2x192xf32> -> vector<2x192xf32>
    %1405 = arith.addf %1404, %1397 : vector<2x192xf32>
    %1406 = arith.truncf %1385 : vector<2x64xf32> to vector<2x64xbf16>
    %cst_295 = arith.constant dense<0.000000e+00> : vector<2x192xf32>
    %1407 = tpu.matmul %1406, %1392, %cst_295 {dimension_numbers = #tpu.dot_dimension_numbers<[1], [0], [0], [1], [0, 0, 1, 1], [], []>} : vector<2x64xbf16>, vector<64x192xbf16>, vector<2x192xf32> -> vector<2x192xf32>
    %1408 = arith.addf %1407, %1397 : vector<2x192xf32>
    %1409 = arith.truncf %1386 : vector<2x64xf32> to vector<2x64xbf16>
    %cst_296 = arith.constant dense<0.000000e+00> : vector<2x192xf32>
    %1410 = tpu.matmul %1409, %1392, %cst_296 {dimension_numbers = #tpu.dot_dimension_numbers<[1], [0], [0], [1], [0, 0, 1, 1], [], []>} : vector<2x64xbf16>, vector<64x192xbf16>, vector<2x192xf32> -> vector<2x192xf32>
    %1411 = arith.addf %1410, %1397 : vector<2x192xf32>
    %1412 = arith.truncf %1387 : vector<2x64xf32> to vector<2x64xbf16>
    %cst_297 = arith.constant dense<0.000000e+00> : vector<2x192xf32>
    %1413 = tpu.matmul %1412, %1392, %cst_297 {dimension_numbers = #tpu.dot_dimension_numbers<[1], [0], [0], [1], [0, 0, 1, 1], [], []>} : vector<2x64xbf16>, vector<64x192xbf16>, vector<2x192xf32> -> vector<2x192xf32>
    %1414 = arith.addf %1413, %1397 : vector<2x192xf32>
    %1415 = arith.truncf %1388 : vector<2x64xf32> to vector<2x64xbf16>
    %cst_298 = arith.constant dense<0.000000e+00> : vector<2x192xf32>
    %1416 = tpu.matmul %1415, %1392, %cst_298 {dimension_numbers = #tpu.dot_dimension_numbers<[1], [0], [0], [1], [0, 0, 1, 1], [], []>} : vector<2x64xbf16>, vector<64x192xbf16>, vector<2x192xf32> -> vector<2x192xf32>
    %1417 = arith.addf %1416, %1397 : vector<2x192xf32>
    %1418 = arith.truncf %1389 : vector<2x64xf32> to vector<2x64xbf16>
    %cst_299 = arith.constant dense<0.000000e+00> : vector<2x192xf32>
    %1419 = tpu.matmul %1418, %1392, %cst_299 {dimension_numbers = #tpu.dot_dimension_numbers<[1], [0], [0], [1], [0, 0, 1, 1], [], []>} : vector<2x64xbf16>, vector<64x192xbf16>, vector<2x192xf32> -> vector<2x192xf32>
    %1420 = arith.addf %1419, %1397 : vector<2x192xf32>
    %cst_300 = arith.constant 0.000000e+00 : f32
    %1421 = vector.broadcast %cst_300 : f32 to vector<2x64xf32>
    %1422 = arith.truncf %1421 : vector<2x64xf32> to vector<2x64xbf16>
    %cst_301 = arith.constant dense<0.000000e+00> : vector<2x192xf32>
    %1423 = tpu.matmul %1422, %1393, %cst_301 {dimension_numbers = #tpu.dot_dimension_numbers<[1], [0], [0], [1], [0, 0, 1, 1], [], []>} : vector<2x64xbf16>, vector<64x192xbf16>, vector<2x192xf32> -> vector<2x192xf32>
    %1424 = arith.addf %1423, %1399 : vector<2x192xf32>
    %1425 = vector.extract_strided_slice %1402 {offsets = [0, 0], sizes = [2, 64], strides = [1, 1]} : vector<2x192xf32> to vector<2x64xf32>
    %1426 = vector.extract_strided_slice %1424 {offsets = [0, 0], sizes = [2, 64], strides = [1, 1]} : vector<2x192xf32> to vector<2x64xf32>
    %1427 = arith.addf %1425, %1426 : vector<2x64xf32>
    %1428 = arith.negf %1427 : vector<2x64xf32>
    %1429 = math.exp %1428 : vector<2x64xf32>
    %cst_302 = arith.constant 1.000000e+00 : f32
    %1430 = vector.broadcast %cst_302 : f32 to vector<2x64xf32>
    %1431 = arith.addf %1430, %1429 : vector<2x64xf32>
    %1432 = arith.divf %1430, %1431 : vector<2x64xf32>
    %1433 = vector.extract_strided_slice %1402 {offsets = [0, 64], sizes = [2, 64], strides = [1, 1]} : vector<2x192xf32> to vector<2x64xf32>
    %1434 = vector.extract_strided_slice %1424 {offsets = [0, 64], sizes = [2, 64], strides = [1, 1]} : vector<2x192xf32> to vector<2x64xf32>
    %1435 = arith.addf %1433, %1434 : vector<2x64xf32>
    %1436 = arith.negf %1435 : vector<2x64xf32>
    %1437 = math.exp %1436 : vector<2x64xf32>
    %cst_303 = arith.constant 1.000000e+00 : f32
    %1438 = vector.broadcast %cst_303 : f32 to vector<2x64xf32>
    %1439 = arith.addf %1438, %1437 : vector<2x64xf32>
    %1440 = arith.divf %1438, %1439 : vector<2x64xf32>
    %1441 = vector.extract_strided_slice %1402 {offsets = [0, 128], sizes = [2, 64], strides = [1, 1]} : vector<2x192xf32> to vector<2x64xf32>
    %1442 = vector.extract_strided_slice %1424 {offsets = [0, 128], sizes = [2, 64], strides = [1, 1]} : vector<2x192xf32> to vector<2x64xf32>
    %1443 = arith.mulf %1432, %1442 : vector<2x64xf32>
    %1444 = arith.addf %1441, %1443 : vector<2x64xf32>
    %1445 = math.tanh %1444 : vector<2x64xf32>
    %cst_304 = arith.constant 1.000000e+00 : f32
    %1446 = vector.broadcast %cst_304 : f32 to vector<2x64xf32>
    %1447 = arith.subf %1446, %1440 : vector<2x64xf32>
    %1448 = arith.mulf %1447, %1445 : vector<2x64xf32>
    %1449 = arith.mulf %1440, %1421 : vector<2x64xf32>
    %1450 = arith.addf %1448, %1449 : vector<2x64xf32>
    %1451 = arith.truncf %1450 : vector<2x64xf32> to vector<2x64xbf16>
    %cst_305 = arith.constant dense<0.000000e+00> : vector<2x192xf32>
    %1452 = tpu.matmul %1451, %1393, %cst_305 {dimension_numbers = #tpu.dot_dimension_numbers<[1], [0], [0], [1], [0, 0, 1, 1], [], []>} : vector<2x64xbf16>, vector<64x192xbf16>, vector<2x192xf32> -> vector<2x192xf32>
    %1453 = arith.addf %1452, %1399 : vector<2x192xf32>
    %1454 = vector.extract_strided_slice %1405 {offsets = [0, 0], sizes = [2, 64], strides = [1, 1]} : vector<2x192xf32> to vector<2x64xf32>
    %1455 = vector.extract_strided_slice %1453 {offsets = [0, 0], sizes = [2, 64], strides = [1, 1]} : vector<2x192xf32> to vector<2x64xf32>
    %1456 = arith.addf %1454, %1455 : vector<2x64xf32>
    %1457 = arith.negf %1456 : vector<2x64xf32>
    %1458 = math.exp %1457 : vector<2x64xf32>
    %cst_306 = arith.constant 1.000000e+00 : f32
    %1459 = vector.broadcast %cst_306 : f32 to vector<2x64xf32>
    %1460 = arith.addf %1459, %1458 : vector<2x64xf32>
    %1461 = arith.divf %1459, %1460 : vector<2x64xf32>
    %1462 = vector.extract_strided_slice %1405 {offsets = [0, 64], sizes = [2, 64], strides = [1, 1]} : vector<2x192xf32> to vector<2x64xf32>
    %1463 = vector.extract_strided_slice %1453 {offsets = [0, 64], sizes = [2, 64], strides = [1, 1]} : vector<2x192xf32> to vector<2x64xf32>
    %1464 = arith.addf %1462, %1463 : vector<2x64xf32>
    %1465 = arith.negf %1464 : vector<2x64xf32>
    %1466 = math.exp %1465 : vector<2x64xf32>
    %cst_307 = arith.constant 1.000000e+00 : f32
    %1467 = vector.broadcast %cst_307 : f32 to vector<2x64xf32>
    %1468 = arith.addf %1467, %1466 : vector<2x64xf32>
    %1469 = arith.divf %1467, %1468 : vector<2x64xf32>
    %1470 = vector.extract_strided_slice %1405 {offsets = [0, 128], sizes = [2, 64], strides = [1, 1]} : vector<2x192xf32> to vector<2x64xf32>
    %1471 = vector.extract_strided_slice %1453 {offsets = [0, 128], sizes = [2, 64], strides = [1, 1]} : vector<2x192xf32> to vector<2x64xf32>
    %1472 = arith.mulf %1461, %1471 : vector<2x64xf32>
    %1473 = arith.addf %1470, %1472 : vector<2x64xf32>
    %1474 = math.tanh %1473 : vector<2x64xf32>
    %cst_308 = arith.constant 1.000000e+00 : f32
    %1475 = vector.broadcast %cst_308 : f32 to vector<2x64xf32>
    %1476 = arith.subf %1475, %1469 : vector<2x64xf32>
    %1477 = arith.mulf %1476, %1474 : vector<2x64xf32>
    %1478 = arith.mulf %1469, %1450 : vector<2x64xf32>
    %1479 = arith.addf %1477, %1478 : vector<2x64xf32>
    %1480 = arith.truncf %1479 : vector<2x64xf32> to vector<2x64xbf16>
    %cst_309 = arith.constant dense<0.000000e+00> : vector<2x192xf32>
    %1481 = tpu.matmul %1480, %1393, %cst_309 {dimension_numbers = #tpu.dot_dimension_numbers<[1], [0], [0], [1], [0, 0, 1, 1], [], []>} : vector<2x64xbf16>, vector<64x192xbf16>, vector<2x192xf32> -> vector<2x192xf32>
    %1482 = arith.addf %1481, %1399 : vector<2x192xf32>
    %1483 = vector.extract_strided_slice %1408 {offsets = [0, 0], sizes = [2, 64], strides = [1, 1]} : vector<2x192xf32> to vector<2x64xf32>
    %1484 = vector.extract_strided_slice %1482 {offsets = [0, 0], sizes = [2, 64], strides = [1, 1]} : vector<2x192xf32> to vector<2x64xf32>
    %1485 = arith.addf %1483, %1484 : vector<2x64xf32>
    %1486 = arith.negf %1485 : vector<2x64xf32>
    %1487 = math.exp %1486 : vector<2x64xf32>
    %cst_310 = arith.constant 1.000000e+00 : f32
    %1488 = vector.broadcast %cst_310 : f32 to vector<2x64xf32>
    %1489 = arith.addf %1488, %1487 : vector<2x64xf32>
    %1490 = arith.divf %1488, %1489 : vector<2x64xf32>
    %1491 = vector.extract_strided_slice %1408 {offsets = [0, 64], sizes = [2, 64], strides = [1, 1]} : vector<2x192xf32> to vector<2x64xf32>
    %1492 = vector.extract_strided_slice %1482 {offsets = [0, 64], sizes = [2, 64], strides = [1, 1]} : vector<2x192xf32> to vector<2x64xf32>
    %1493 = arith.addf %1491, %1492 : vector<2x64xf32>
    %1494 = arith.negf %1493 : vector<2x64xf32>
    %1495 = math.exp %1494 : vector<2x64xf32>
    %cst_311 = arith.constant 1.000000e+00 : f32
    %1496 = vector.broadcast %cst_311 : f32 to vector<2x64xf32>
    %1497 = arith.addf %1496, %1495 : vector<2x64xf32>
    %1498 = arith.divf %1496, %1497 : vector<2x64xf32>
    %1499 = vector.extract_strided_slice %1408 {offsets = [0, 128], sizes = [2, 64], strides = [1, 1]} : vector<2x192xf32> to vector<2x64xf32>
    %1500 = vector.extract_strided_slice %1482 {offsets = [0, 128], sizes = [2, 64], strides = [1, 1]} : vector<2x192xf32> to vector<2x64xf32>
    %1501 = arith.mulf %1490, %1500 : vector<2x64xf32>
    %1502 = arith.addf %1499, %1501 : vector<2x64xf32>
    %1503 = math.tanh %1502 : vector<2x64xf32>
    %cst_312 = arith.constant 1.000000e+00 : f32
    %1504 = vector.broadcast %cst_312 : f32 to vector<2x64xf32>
    %1505 = arith.subf %1504, %1498 : vector<2x64xf32>
    %1506 = arith.mulf %1505, %1503 : vector<2x64xf32>
    %1507 = arith.mulf %1498, %1479 : vector<2x64xf32>
    %1508 = arith.addf %1506, %1507 : vector<2x64xf32>
    %1509 = arith.truncf %1508 : vector<2x64xf32> to vector<2x64xbf16>
    %cst_313 = arith.constant dense<0.000000e+00> : vector<2x192xf32>
    %1510 = tpu.matmul %1509, %1393, %cst_313 {dimension_numbers = #tpu.dot_dimension_numbers<[1], [0], [0], [1], [0, 0, 1, 1], [], []>} : vector<2x64xbf16>, vector<64x192xbf16>, vector<2x192xf32> -> vector<2x192xf32>
    %1511 = arith.addf %1510, %1399 : vector<2x192xf32>
    %1512 = vector.extract_strided_slice %1411 {offsets = [0, 0], sizes = [2, 64], strides = [1, 1]} : vector<2x192xf32> to vector<2x64xf32>
    %1513 = vector.extract_strided_slice %1511 {offsets = [0, 0], sizes = [2, 64], strides = [1, 1]} : vector<2x192xf32> to vector<2x64xf32>
    %1514 = arith.addf %1512, %1513 : vector<2x64xf32>
    %1515 = arith.negf %1514 : vector<2x64xf32>
    %1516 = math.exp %1515 : vector<2x64xf32>
    %cst_314 = arith.constant 1.000000e+00 : f32
    %1517 = vector.broadcast %cst_314 : f32 to vector<2x64xf32>
    %1518 = arith.addf %1517, %1516 : vector<2x64xf32>
    %1519 = arith.divf %1517, %1518 : vector<2x64xf32>
    %1520 = vector.extract_strided_slice %1411 {offsets = [0, 64], sizes = [2, 64], strides = [1, 1]} : vector<2x192xf32> to vector<2x64xf32>
    %1521 = vector.extract_strided_slice %1511 {offsets = [0, 64], sizes = [2, 64], strides = [1, 1]} : vector<2x192xf32> to vector<2x64xf32>
    %1522 = arith.addf %1520, %1521 : vector<2x64xf32>
    %1523 = arith.negf %1522 : vector<2x64xf32>
    %1524 = math.exp %1523 : vector<2x64xf32>
    %cst_315 = arith.constant 1.000000e+00 : f32
    %1525 = vector.broadcast %cst_315 : f32 to vector<2x64xf32>
    %1526 = arith.addf %1525, %1524 : vector<2x64xf32>
    %1527 = arith.divf %1525, %1526 : vector<2x64xf32>
    %1528 = vector.extract_strided_slice %1411 {offsets = [0, 128], sizes = [2, 64], strides = [1, 1]} : vector<2x192xf32> to vector<2x64xf32>
    %1529 = vector.extract_strided_slice %1511 {offsets = [0, 128], sizes = [2, 64], strides = [1, 1]} : vector<2x192xf32> to vector<2x64xf32>
    %1530 = arith.mulf %1519, %1529 : vector<2x64xf32>
    %1531 = arith.addf %1528, %1530 : vector<2x64xf32>
    %1532 = math.tanh %1531 : vector<2x64xf32>
    %cst_316 = arith.constant 1.000000e+00 : f32
    %1533 = vector.broadcast %cst_316 : f32 to vector<2x64xf32>
    %1534 = arith.subf %1533, %1527 : vector<2x64xf32>
    %1535 = arith.mulf %1534, %1532 : vector<2x64xf32>
    %1536 = arith.mulf %1527, %1508 : vector<2x64xf32>
    %1537 = arith.addf %1535, %1536 : vector<2x64xf32>
    %1538 = arith.truncf %1537 : vector<2x64xf32> to vector<2x64xbf16>
    %cst_317 = arith.constant dense<0.000000e+00> : vector<2x192xf32>
    %1539 = tpu.matmul %1538, %1393, %cst_317 {dimension_numbers = #tpu.dot_dimension_numbers<[1], [0], [0], [1], [0, 0, 1, 1], [], []>} : vector<2x64xbf16>, vector<64x192xbf16>, vector<2x192xf32> -> vector<2x192xf32>
    %1540 = arith.addf %1539, %1399 : vector<2x192xf32>
    %1541 = vector.extract_strided_slice %1414 {offsets = [0, 0], sizes = [2, 64], strides = [1, 1]} : vector<2x192xf32> to vector<2x64xf32>
    %1542 = vector.extract_strided_slice %1540 {offsets = [0, 0], sizes = [2, 64], strides = [1, 1]} : vector<2x192xf32> to vector<2x64xf32>
    %1543 = arith.addf %1541, %1542 : vector<2x64xf32>
    %1544 = arith.negf %1543 : vector<2x64xf32>
    %1545 = math.exp %1544 : vector<2x64xf32>
    %cst_318 = arith.constant 1.000000e+00 : f32
    %1546 = vector.broadcast %cst_318 : f32 to vector<2x64xf32>
    %1547 = arith.addf %1546, %1545 : vector<2x64xf32>
    %1548 = arith.divf %1546, %1547 : vector<2x64xf32>
    %1549 = vector.extract_strided_slice %1414 {offsets = [0, 64], sizes = [2, 64], strides = [1, 1]} : vector<2x192xf32> to vector<2x64xf32>
    %1550 = vector.extract_strided_slice %1540 {offsets = [0, 64], sizes = [2, 64], strides = [1, 1]} : vector<2x192xf32> to vector<2x64xf32>
    %1551 = arith.addf %1549, %1550 : vector<2x64xf32>
    %1552 = arith.negf %1551 : vector<2x64xf32>
    %1553 = math.exp %1552 : vector<2x64xf32>
    %cst_319 = arith.constant 1.000000e+00 : f32
    %1554 = vector.broadcast %cst_319 : f32 to vector<2x64xf32>
    %1555 = arith.addf %1554, %1553 : vector<2x64xf32>
    %1556 = arith.divf %1554, %1555 : vector<2x64xf32>
    %1557 = vector.extract_strided_slice %1414 {offsets = [0, 128], sizes = [2, 64], strides = [1, 1]} : vector<2x192xf32> to vector<2x64xf32>
    %1558 = vector.extract_strided_slice %1540 {offsets = [0, 128], sizes = [2, 64], strides = [1, 1]} : vector<2x192xf32> to vector<2x64xf32>
    %1559 = arith.mulf %1548, %1558 : vector<2x64xf32>
    %1560 = arith.addf %1557, %1559 : vector<2x64xf32>
    %1561 = math.tanh %1560 : vector<2x64xf32>
    %cst_320 = arith.constant 1.000000e+00 : f32
    %1562 = vector.broadcast %cst_320 : f32 to vector<2x64xf32>
    %1563 = arith.subf %1562, %1556 : vector<2x64xf32>
    %1564 = arith.mulf %1563, %1561 : vector<2x64xf32>
    %1565 = arith.mulf %1556, %1537 : vector<2x64xf32>
    %1566 = arith.addf %1564, %1565 : vector<2x64xf32>
    %1567 = arith.truncf %1566 : vector<2x64xf32> to vector<2x64xbf16>
    %cst_321 = arith.constant dense<0.000000e+00> : vector<2x192xf32>
    %1568 = tpu.matmul %1567, %1393, %cst_321 {dimension_numbers = #tpu.dot_dimension_numbers<[1], [0], [0], [1], [0, 0, 1, 1], [], []>} : vector<2x64xbf16>, vector<64x192xbf16>, vector<2x192xf32> -> vector<2x192xf32>
    %1569 = arith.addf %1568, %1399 : vector<2x192xf32>
    %1570 = vector.extract_strided_slice %1417 {offsets = [0, 0], sizes = [2, 64], strides = [1, 1]} : vector<2x192xf32> to vector<2x64xf32>
    %1571 = vector.extract_strided_slice %1569 {offsets = [0, 0], sizes = [2, 64], strides = [1, 1]} : vector<2x192xf32> to vector<2x64xf32>
    %1572 = arith.addf %1570, %1571 : vector<2x64xf32>
    %1573 = arith.negf %1572 : vector<2x64xf32>
    %1574 = math.exp %1573 : vector<2x64xf32>
    %cst_322 = arith.constant 1.000000e+00 : f32
    %1575 = vector.broadcast %cst_322 : f32 to vector<2x64xf32>
    %1576 = arith.addf %1575, %1574 : vector<2x64xf32>
    %1577 = arith.divf %1575, %1576 : vector<2x64xf32>
    %1578 = vector.extract_strided_slice %1417 {offsets = [0, 64], sizes = [2, 64], strides = [1, 1]} : vector<2x192xf32> to vector<2x64xf32>
    %1579 = vector.extract_strided_slice %1569 {offsets = [0, 64], sizes = [2, 64], strides = [1, 1]} : vector<2x192xf32> to vector<2x64xf32>
    %1580 = arith.addf %1578, %1579 : vector<2x64xf32>
    %1581 = arith.negf %1580 : vector<2x64xf32>
    %1582 = math.exp %1581 : vector<2x64xf32>
    %cst_323 = arith.constant 1.000000e+00 : f32
    %1583 = vector.broadcast %cst_323 : f32 to vector<2x64xf32>
    %1584 = arith.addf %1583, %1582 : vector<2x64xf32>
    %1585 = arith.divf %1583, %1584 : vector<2x64xf32>
    %1586 = vector.extract_strided_slice %1417 {offsets = [0, 128], sizes = [2, 64], strides = [1, 1]} : vector<2x192xf32> to vector<2x64xf32>
    %1587 = vector.extract_strided_slice %1569 {offsets = [0, 128], sizes = [2, 64], strides = [1, 1]} : vector<2x192xf32> to vector<2x64xf32>
    %1588 = arith.mulf %1577, %1587 : vector<2x64xf32>
    %1589 = arith.addf %1586, %1588 : vector<2x64xf32>
    %1590 = math.tanh %1589 : vector<2x64xf32>
    %cst_324 = arith.constant 1.000000e+00 : f32
    %1591 = vector.broadcast %cst_324 : f32 to vector<2x64xf32>
    %1592 = arith.subf %1591, %1585 : vector<2x64xf32>
    %1593 = arith.mulf %1592, %1590 : vector<2x64xf32>
    %1594 = arith.mulf %1585, %1566 : vector<2x64xf32>
    %1595 = arith.addf %1593, %1594 : vector<2x64xf32>
    %1596 = arith.truncf %1595 : vector<2x64xf32> to vector<2x64xbf16>
    %cst_325 = arith.constant dense<0.000000e+00> : vector<2x192xf32>
    %1597 = tpu.matmul %1596, %1393, %cst_325 {dimension_numbers = #tpu.dot_dimension_numbers<[1], [0], [0], [1], [0, 0, 1, 1], [], []>} : vector<2x64xbf16>, vector<64x192xbf16>, vector<2x192xf32> -> vector<2x192xf32>
    %1598 = arith.addf %1597, %1399 : vector<2x192xf32>
    %1599 = vector.extract_strided_slice %1420 {offsets = [0, 0], sizes = [2, 64], strides = [1, 1]} : vector<2x192xf32> to vector<2x64xf32>
    %1600 = vector.extract_strided_slice %1598 {offsets = [0, 0], sizes = [2, 64], strides = [1, 1]} : vector<2x192xf32> to vector<2x64xf32>
    %1601 = arith.addf %1599, %1600 : vector<2x64xf32>
    %1602 = arith.negf %1601 : vector<2x64xf32>
    %1603 = math.exp %1602 : vector<2x64xf32>
    %cst_326 = arith.constant 1.000000e+00 : f32
    %1604 = vector.broadcast %cst_326 : f32 to vector<2x64xf32>
    %1605 = arith.addf %1604, %1603 : vector<2x64xf32>
    %1606 = arith.divf %1604, %1605 : vector<2x64xf32>
    %1607 = vector.extract_strided_slice %1420 {offsets = [0, 64], sizes = [2, 64], strides = [1, 1]} : vector<2x192xf32> to vector<2x64xf32>
    %1608 = vector.extract_strided_slice %1598 {offsets = [0, 64], sizes = [2, 64], strides = [1, 1]} : vector<2x192xf32> to vector<2x64xf32>
    %1609 = arith.addf %1607, %1608 : vector<2x64xf32>
    %1610 = arith.negf %1609 : vector<2x64xf32>
    %1611 = math.exp %1610 : vector<2x64xf32>
    %cst_327 = arith.constant 1.000000e+00 : f32
    %1612 = vector.broadcast %cst_327 : f32 to vector<2x64xf32>
    %1613 = arith.addf %1612, %1611 : vector<2x64xf32>
    %1614 = arith.divf %1612, %1613 : vector<2x64xf32>
    %1615 = vector.extract_strided_slice %1420 {offsets = [0, 128], sizes = [2, 64], strides = [1, 1]} : vector<2x192xf32> to vector<2x64xf32>
    %1616 = vector.extract_strided_slice %1598 {offsets = [0, 128], sizes = [2, 64], strides = [1, 1]} : vector<2x192xf32> to vector<2x64xf32>
    %1617 = arith.mulf %1606, %1616 : vector<2x64xf32>
    %1618 = arith.addf %1615, %1617 : vector<2x64xf32>
    %1619 = math.tanh %1618 : vector<2x64xf32>
    %cst_328 = arith.constant 1.000000e+00 : f32
    %1620 = vector.broadcast %cst_328 : f32 to vector<2x64xf32>
    %1621 = arith.subf %1620, %1614 : vector<2x64xf32>
    %1622 = arith.mulf %1621, %1619 : vector<2x64xf32>
    %1623 = arith.mulf %1614, %1595 : vector<2x64xf32>
    %1624 = arith.addf %1622, %1623 : vector<2x64xf32>
    %c0_329 = arith.constant 0 : index
    %c0_330 = arith.constant 0 : index
    %1625 = vector.load %arg14[%c0_329, %c0_330] : memref<64x64xbf16, #tpu.memory_space<vmem>>, vector<64x64xbf16>
    %c0_331 = arith.constant 0 : index
    %c0_332 = arith.constant 0 : index
    %1626 = vector.load %arg16[%c0_331, %c0_332] : memref<64x64xbf16, #tpu.memory_space<vmem>>, vector<64x64xbf16>
    %c0_333 = arith.constant 0 : index
    %c0_334 = arith.constant 0 : index
    %1627 = vector.load %arg18[%c0_333, %c0_334] : memref<64x64xbf16, #tpu.memory_space<vmem>>, vector<64x64xbf16>
    %c0_335 = arith.constant 0 : index
    %c0_336 = arith.constant 0 : index
    %1628 = vector.load %arg20[%c0_335, %c0_336] : memref<64x5xbf16, #tpu.memory_space<vmem>>, vector<64x5xbf16>
    %c0_337 = arith.constant 0 : index
    %c0_338 = arith.constant 0 : index
    %1629 = vector.load %arg15[%c0_337, %c0_338] : memref<1x64xf32, #tpu.memory_space<vmem>>, vector<1x64xf32>
    %1630 = vector.shape_cast %1629 : vector<1x64xf32> to vector<1x64xf32>
    %1631 = vector.broadcast %1630 : vector<1x64xf32> to vector<2x64xf32>
    %c0_339 = arith.constant 0 : index
    %c0_340 = arith.constant 0 : index
    %1632 = vector.load %arg17[%c0_339, %c0_340] : memref<1x64xf32, #tpu.memory_space<vmem>>, vector<1x64xf32>
    %1633 = vector.shape_cast %1632 : vector<1x64xf32> to vector<1x64xf32>
    %1634 = vector.broadcast %1633 : vector<1x64xf32> to vector<2x64xf32>
    %c0_341 = arith.constant 0 : index
    %c0_342 = arith.constant 0 : index
    %1635 = vector.load %arg19[%c0_341, %c0_342] : memref<1x64xf32, #tpu.memory_space<vmem>>, vector<1x64xf32>
    %1636 = vector.shape_cast %1635 : vector<1x64xf32> to vector<1x64xf32>
    %1637 = vector.broadcast %1636 : vector<1x64xf32> to vector<2x64xf32>
    %c0_343 = arith.constant 0 : index
    %c0_344 = arith.constant 0 : index
    %1638 = vector.load %arg21[%c0_343, %c0_344] : memref<1x5xf32, #tpu.memory_space<vmem>>, vector<1x5xf32>
    %1639 = vector.shape_cast %1638 : vector<1x5xf32> to vector<1x5xf32>
    %1640 = vector.broadcast %1639 : vector<1x5xf32> to vector<2x5xf32>
    %1641 = arith.mulf %1391, %1383 : vector<2x64xf32>
    %cst_345 = arith.constant dense<0.000000e+00> : vector<2xf32>
    %1642 = vector.multi_reduction <add>, %1641, %cst_345 [1] : vector<2x64xf32> to vector<2xf32>
    %1643 = vector.shape_cast %1642 : vector<2xf32> to vector<2x1xf32>
    %1644 = arith.mulf %1391, %1384 : vector<2x64xf32>
    %cst_346 = arith.constant dense<0.000000e+00> : vector<2xf32>
    %1645 = vector.multi_reduction <add>, %1644, %cst_346 [1] : vector<2x64xf32> to vector<2xf32>
    %1646 = vector.shape_cast %1645 : vector<2xf32> to vector<2x1xf32>
    %1647 = arith.mulf %1391, %1385 : vector<2x64xf32>
    %cst_347 = arith.constant dense<0.000000e+00> : vector<2xf32>
    %1648 = vector.multi_reduction <add>, %1647, %cst_347 [1] : vector<2x64xf32> to vector<2xf32>
    %1649 = vector.shape_cast %1648 : vector<2xf32> to vector<2x1xf32>
    %1650 = arith.mulf %1391, %1386 : vector<2x64xf32>
    %cst_348 = arith.constant dense<0.000000e+00> : vector<2xf32>
    %1651 = vector.multi_reduction <add>, %1650, %cst_348 [1] : vector<2x64xf32> to vector<2xf32>
    %1652 = vector.shape_cast %1651 : vector<2xf32> to vector<2x1xf32>
    %1653 = arith.mulf %1391, %1387 : vector<2x64xf32>
    %cst_349 = arith.constant dense<0.000000e+00> : vector<2xf32>
    %1654 = vector.multi_reduction <add>, %1653, %cst_349 [1] : vector<2x64xf32> to vector<2xf32>
    %1655 = vector.shape_cast %1654 : vector<2xf32> to vector<2x1xf32>
    %1656 = arith.mulf %1391, %1388 : vector<2x64xf32>
    %cst_350 = arith.constant dense<0.000000e+00> : vector<2xf32>
    %1657 = vector.multi_reduction <add>, %1656, %cst_350 [1] : vector<2x64xf32> to vector<2xf32>
    %1658 = vector.shape_cast %1657 : vector<2xf32> to vector<2x1xf32>
    %1659 = arith.mulf %1391, %1389 : vector<2x64xf32>
    %cst_351 = arith.constant dense<0.000000e+00> : vector<2xf32>
    %1660 = vector.multi_reduction <add>, %1659, %cst_351 [1] : vector<2x64xf32> to vector<2xf32>
    %1661 = vector.shape_cast %1660 : vector<2xf32> to vector<2x1xf32>
    %1662 = arith.mulf %1391, %1390 : vector<2x64xf32>
    %cst_352 = arith.constant dense<0.000000e+00> : vector<2xf32>
    %1663 = vector.multi_reduction <add>, %1662, %cst_352 [1] : vector<2x64xf32> to vector<2xf32>
    %1664 = vector.shape_cast %1663 : vector<2xf32> to vector<2x1xf32>
    %1665 = arith.maximumf %1643, %1646 : vector<2x1xf32>
    %1666 = arith.maximumf %1665, %1649 : vector<2x1xf32>
    %1667 = arith.maximumf %1666, %1652 : vector<2x1xf32>
    %1668 = arith.maximumf %1667, %1655 : vector<2x1xf32>
    %1669 = arith.maximumf %1668, %1658 : vector<2x1xf32>
    %1670 = arith.maximumf %1669, %1661 : vector<2x1xf32>
    %1671 = arith.maximumf %1670, %1664 : vector<2x1xf32>
    %1672 = arith.subf %1643, %1671 : vector<2x1xf32>
    %1673 = math.exp %1672 : vector<2x1xf32>
    %1674 = arith.subf %1646, %1671 : vector<2x1xf32>
    %1675 = math.exp %1674 : vector<2x1xf32>
    %1676 = arith.subf %1649, %1671 : vector<2x1xf32>
    %1677 = math.exp %1676 : vector<2x1xf32>
    %1678 = arith.subf %1652, %1671 : vector<2x1xf32>
    %1679 = math.exp %1678 : vector<2x1xf32>
    %1680 = arith.subf %1655, %1671 : vector<2x1xf32>
    %1681 = math.exp %1680 : vector<2x1xf32>
    %1682 = arith.subf %1658, %1671 : vector<2x1xf32>
    %1683 = math.exp %1682 : vector<2x1xf32>
    %1684 = arith.subf %1661, %1671 : vector<2x1xf32>
    %1685 = math.exp %1684 : vector<2x1xf32>
    %1686 = arith.subf %1664, %1671 : vector<2x1xf32>
    %1687 = math.exp %1686 : vector<2x1xf32>
    %1688 = arith.addf %1673, %1675 : vector<2x1xf32>
    %1689 = arith.addf %1688, %1677 : vector<2x1xf32>
    %1690 = arith.addf %1689, %1679 : vector<2x1xf32>
    %1691 = arith.addf %1690, %1681 : vector<2x1xf32>
    %1692 = arith.addf %1691, %1683 : vector<2x1xf32>
    %1693 = arith.addf %1692, %1685 : vector<2x1xf32>
    %1694 = arith.addf %1693, %1687 : vector<2x1xf32>
    %1695 = tpu.reciprocal %1694 {approx = true} : vector<2x1xf32> -> vector<2x1xf32>
    %1696 = arith.mulf %1673, %1695 : vector<2x1xf32>
    %1697 = vector.broadcast %1696 : vector<2x1xf32> to vector<2x64xf32>
    %1698 = arith.mulf %1697, %1383 : vector<2x64xf32>
    %1699 = arith.mulf %1675, %1695 : vector<2x1xf32>
    %1700 = vector.broadcast %1699 : vector<2x1xf32> to vector<2x64xf32>
    %1701 = arith.mulf %1700, %1384 : vector<2x64xf32>
    %1702 = arith.addf %1698, %1701 : vector<2x64xf32>
    %1703 = arith.mulf %1677, %1695 : vector<2x1xf32>
    %1704 = vector.broadcast %1703 : vector<2x1xf32> to vector<2x64xf32>
    %1705 = arith.mulf %1704, %1385 : vector<2x64xf32>
    %1706 = arith.addf %1702, %1705 : vector<2x64xf32>
    %1707 = arith.mulf %1679, %1695 : vector<2x1xf32>
    %1708 = vector.broadcast %1707 : vector<2x1xf32> to vector<2x64xf32>
    %1709 = arith.mulf %1708, %1386 : vector<2x64xf32>
    %1710 = arith.addf %1706, %1709 : vector<2x64xf32>
    %1711 = arith.mulf %1681, %1695 : vector<2x1xf32>
    %1712 = vector.broadcast %1711 : vector<2x1xf32> to vector<2x64xf32>
    %1713 = arith.mulf %1712, %1387 : vector<2x64xf32>
    %1714 = arith.addf %1710, %1713 : vector<2x64xf32>
    %1715 = arith.mulf %1683, %1695 : vector<2x1xf32>
    %1716 = vector.broadcast %1715 : vector<2x1xf32> to vector<2x64xf32>
    %1717 = arith.mulf %1716, %1388 : vector<2x64xf32>
    %1718 = arith.addf %1714, %1717 : vector<2x64xf32>
    %1719 = arith.mulf %1685, %1695 : vector<2x1xf32>
    %1720 = vector.broadcast %1719 : vector<2x1xf32> to vector<2x64xf32>
    %1721 = arith.mulf %1720, %1389 : vector<2x64xf32>
    %1722 = arith.addf %1718, %1721 : vector<2x64xf32>
    %1723 = arith.mulf %1687, %1695 : vector<2x1xf32>
    %1724 = vector.broadcast %1723 : vector<2x1xf32> to vector<2x64xf32>
    %1725 = arith.mulf %1724, %1390 : vector<2x64xf32>
    %1726 = arith.addf %1722, %1725 : vector<2x64xf32>
    %1727 = arith.truncf %1726 : vector<2x64xf32> to vector<2x64xbf16>
    %cst_353 = arith.constant dense<0.000000e+00> : vector<2x64xf32>
    %1728 = tpu.matmul %1727, %1625, %cst_353 {dimension_numbers = #tpu.dot_dimension_numbers<[1], [0], [0], [1], [0, 0, 1, 1], [], []>} : vector<2x64xbf16>, vector<64x64xbf16>, vector<2x64xf32> -> vector<2x64xf32>
    %1729 = arith.addf %1728, %1631 : vector<2x64xf32>
    %1730 = arith.truncf %1729 : vector<2x64xf32> to vector<2x64xbf16>
    %cst_354 = arith.constant dense<0.000000e+00> : vector<2x64xf32>
    %1731 = tpu.matmul %1730, %1626, %cst_354 {dimension_numbers = #tpu.dot_dimension_numbers<[1], [0], [0], [1], [0, 0, 1, 1], [], []>} : vector<2x64xbf16>, vector<64x64xbf16>, vector<2x64xf32> -> vector<2x64xf32>
    %1732 = arith.addf %1731, %1634 : vector<2x64xf32>
    %1733 = arith.truncf %1383 : vector<2x64xf32> to vector<2x64xbf16>
    %cst_355 = arith.constant dense<0.000000e+00> : vector<2x64xf32>
    %1734 = tpu.matmul %1733, %1627, %cst_355 {dimension_numbers = #tpu.dot_dimension_numbers<[1], [0], [0], [1], [0, 0, 1, 1], [], []>} : vector<2x64xbf16>, vector<64x64xbf16>, vector<2x64xf32> -> vector<2x64xf32>
    %1735 = arith.addf %1734, %1637 : vector<2x64xf32>
    %1736 = arith.addf %1732, %1735 : vector<2x64xf32>
    %1737 = arith.negf %1736 : vector<2x64xf32>
    %1738 = math.exp %1737 : vector<2x64xf32>
    %cst_356 = arith.constant 1.000000e+00 : f32
    %1739 = vector.broadcast %cst_356 : f32 to vector<2x64xf32>
    %1740 = arith.addf %1739, %1738 : vector<2x64xf32>
    %1741 = arith.divf %1739, %1740 : vector<2x64xf32>
    %1742 = arith.mulf %1729, %1741 : vector<2x64xf32>
    %1743 = arith.addf %1742, %1383 : vector<2x64xf32>
    %1744 = arith.truncf %1743 : vector<2x64xf32> to vector<2x64xbf16>
    %cst_357 = arith.constant dense<0.000000e+00> : vector<2x5xf32>
    %1745 = tpu.matmul %1744, %1628, %cst_357 {dimension_numbers = #tpu.dot_dimension_numbers<[1], [0], [0], [1], [0, 0, 1, 1], [], []>} : vector<2x64xbf16>, vector<64x5xbf16>, vector<2x5xf32> -> vector<2x5xf32>
    %1746 = arith.addf %1745, %1640 : vector<2x5xf32>
    %c0_358 = arith.constant 0 : index
    %c0_359 = arith.constant 0 : index
    %c0_360 = arith.constant 0 : index
    %1747 = vector.load %arg22[%c0_358, %c0_359, %c0_360] : memref<8x2x5xf32, #tpu.memory_space<vmem>>, vector<1x2x5xf32>
    %1748 = vector.shape_cast %1747 : vector<1x2x5xf32> to vector<2x5xf32>
    %1749 = vector.shape_cast %1746 : vector<2x5xf32> to vector<1x2x5xf32>
    tpu.vector_store %arg22[%c0_358, %c0_359, %c0_360], %1749 {strides = array<i32>} : memref<8x2x5xf32, #tpu.memory_space<vmem>>, vector<1x2x5xf32>,
    %1750 = arith.mulf %1450, %1383 : vector<2x64xf32>
    %cst_361 = arith.constant dense<0.000000e+00> : vector<2xf32>
    %1751 = vector.multi_reduction <add>, %1750, %cst_361 [1] : vector<2x64xf32> to vector<2xf32>
    %1752 = vector.shape_cast %1751 : vector<2xf32> to vector<2x1xf32>
    %1753 = arith.mulf %1450, %1384 : vector<2x64xf32>
    %cst_362 = arith.constant dense<0.000000e+00> : vector<2xf32>
    %1754 = vector.multi_reduction <add>, %1753, %cst_362 [1] : vector<2x64xf32> to vector<2xf32>
    %1755 = vector.shape_cast %1754 : vector<2xf32> to vector<2x1xf32>
    %1756 = arith.mulf %1450, %1385 : vector<2x64xf32>
    %cst_363 = arith.constant dense<0.000000e+00> : vector<2xf32>
    %1757 = vector.multi_reduction <add>, %1756, %cst_363 [1] : vector<2x64xf32> to vector<2xf32>
    %1758 = vector.shape_cast %1757 : vector<2xf32> to vector<2x1xf32>
    %1759 = arith.mulf %1450, %1386 : vector<2x64xf32>
    %cst_364 = arith.constant dense<0.000000e+00> : vector<2xf32>
    %1760 = vector.multi_reduction <add>, %1759, %cst_364 [1] : vector<2x64xf32> to vector<2xf32>
    %1761 = vector.shape_cast %1760 : vector<2xf32> to vector<2x1xf32>
    %1762 = arith.mulf %1450, %1387 : vector<2x64xf32>
    %cst_365 = arith.constant dense<0.000000e+00> : vector<2xf32>
    %1763 = vector.multi_reduction <add>, %1762, %cst_365 [1] : vector<2x64xf32> to vector<2xf32>
    %1764 = vector.shape_cast %1763 : vector<2xf32> to vector<2x1xf32>
    %1765 = arith.mulf %1450, %1388 : vector<2x64xf32>
    %cst_366 = arith.constant dense<0.000000e+00> : vector<2xf32>
    %1766 = vector.multi_reduction <add>, %1765, %cst_366 [1] : vector<2x64xf32> to vector<2xf32>
    %1767 = vector.shape_cast %1766 : vector<2xf32> to vector<2x1xf32>
    %1768 = arith.mulf %1450, %1389 : vector<2x64xf32>
    %cst_367 = arith.constant dense<0.000000e+00> : vector<2xf32>
    %1769 = vector.multi_reduction <add>, %1768, %cst_367 [1] : vector<2x64xf32> to vector<2xf32>
    %1770 = vector.shape_cast %1769 : vector<2xf32> to vector<2x1xf32>
    %1771 = arith.mulf %1450, %1390 : vector<2x64xf32>
    %cst_368 = arith.constant dense<0.000000e+00> : vector<2xf32>
    %1772 = vector.multi_reduction <add>, %1771, %cst_368 [1] : vector<2x64xf32> to vector<2xf32>
    %1773 = vector.shape_cast %1772 : vector<2xf32> to vector<2x1xf32>
    %1774 = arith.maximumf %1752, %1755 : vector<2x1xf32>
    %1775 = arith.maximumf %1774, %1758 : vector<2x1xf32>
    %1776 = arith.maximumf %1775, %1761 : vector<2x1xf32>
    %1777 = arith.maximumf %1776, %1764 : vector<2x1xf32>
    %1778 = arith.maximumf %1777, %1767 : vector<2x1xf32>
    %1779 = arith.maximumf %1778, %1770 : vector<2x1xf32>
    %1780 = arith.maximumf %1779, %1773 : vector<2x1xf32>
    %1781 = arith.subf %1752, %1780 : vector<2x1xf32>
    %1782 = math.exp %1781 : vector<2x1xf32>
    %1783 = arith.subf %1755, %1780 : vector<2x1xf32>
    %1784 = math.exp %1783 : vector<2x1xf32>
    %1785 = arith.subf %1758, %1780 : vector<2x1xf32>
    %1786 = math.exp %1785 : vector<2x1xf32>
    %1787 = arith.subf %1761, %1780 : vector<2x1xf32>
    %1788 = math.exp %1787 : vector<2x1xf32>
    %1789 = arith.subf %1764, %1780 : vector<2x1xf32>
    %1790 = math.exp %1789 : vector<2x1xf32>
    %1791 = arith.subf %1767, %1780 : vector<2x1xf32>
    %1792 = math.exp %1791 : vector<2x1xf32>
    %1793 = arith.subf %1770, %1780 : vector<2x1xf32>
    %1794 = math.exp %1793 : vector<2x1xf32>
    %1795 = arith.subf %1773, %1780 : vector<2x1xf32>
    %1796 = math.exp %1795 : vector<2x1xf32>
    %1797 = arith.addf %1782, %1784 : vector<2x1xf32>
    %1798 = arith.addf %1797, %1786 : vector<2x1xf32>
    %1799 = arith.addf %1798, %1788 : vector<2x1xf32>
    %1800 = arith.addf %1799, %1790 : vector<2x1xf32>
    %1801 = arith.addf %1800, %1792 : vector<2x1xf32>
    %1802 = arith.addf %1801, %1794 : vector<2x1xf32>
    %1803 = arith.addf %1802, %1796 : vector<2x1xf32>
    %1804 = tpu.reciprocal %1803 {approx = true} : vector<2x1xf32> -> vector<2x1xf32>
    %1805 = arith.mulf %1782, %1804 : vector<2x1xf32>
    %1806 = vector.broadcast %1805 : vector<2x1xf32> to vector<2x64xf32>
    %1807 = arith.mulf %1806, %1383 : vector<2x64xf32>
    %1808 = arith.mulf %1784, %1804 : vector<2x1xf32>
    %1809 = vector.broadcast %1808 : vector<2x1xf32> to vector<2x64xf32>
    %1810 = arith.mulf %1809, %1384 : vector<2x64xf32>
    %1811 = arith.addf %1807, %1810 : vector<2x64xf32>
    %1812 = arith.mulf %1786, %1804 : vector<2x1xf32>
    %1813 = vector.broadcast %1812 : vector<2x1xf32> to vector<2x64xf32>
    %1814 = arith.mulf %1813, %1385 : vector<2x64xf32>
    %1815 = arith.addf %1811, %1814 : vector<2x64xf32>
    %1816 = arith.mulf %1788, %1804 : vector<2x1xf32>
    %1817 = vector.broadcast %1816 : vector<2x1xf32> to vector<2x64xf32>
    %1818 = arith.mulf %1817, %1386 : vector<2x64xf32>
    %1819 = arith.addf %1815, %1818 : vector<2x64xf32>
    %1820 = arith.mulf %1790, %1804 : vector<2x1xf32>
    %1821 = vector.broadcast %1820 : vector<2x1xf32> to vector<2x64xf32>
    %1822 = arith.mulf %1821, %1387 : vector<2x64xf32>
    %1823 = arith.addf %1819, %1822 : vector<2x64xf32>
    %1824 = arith.mulf %1792, %1804 : vector<2x1xf32>
    %1825 = vector.broadcast %1824 : vector<2x1xf32> to vector<2x64xf32>
    %1826 = arith.mulf %1825, %1388 : vector<2x64xf32>
    %1827 = arith.addf %1823, %1826 : vector<2x64xf32>
    %1828 = arith.mulf %1794, %1804 : vector<2x1xf32>
    %1829 = vector.broadcast %1828 : vector<2x1xf32> to vector<2x64xf32>
    %1830 = arith.mulf %1829, %1389 : vector<2x64xf32>
    %1831 = arith.addf %1827, %1830 : vector<2x64xf32>
    %1832 = arith.mulf %1796, %1804 : vector<2x1xf32>
    %1833 = vector.broadcast %1832 : vector<2x1xf32> to vector<2x64xf32>
    %1834 = arith.mulf %1833, %1390 : vector<2x64xf32>
    %1835 = arith.addf %1831, %1834 : vector<2x64xf32>
    %1836 = arith.truncf %1835 : vector<2x64xf32> to vector<2x64xbf16>
    %cst_369 = arith.constant dense<0.000000e+00> : vector<2x64xf32>
    %1837 = tpu.matmul %1836, %1625, %cst_369 {dimension_numbers = #tpu.dot_dimension_numbers<[1], [0], [0], [1], [0, 0, 1, 1], [], []>} : vector<2x64xbf16>, vector<64x64xbf16>, vector<2x64xf32> -> vector<2x64xf32>
    %1838 = arith.addf %1837, %1631 : vector<2x64xf32>
    %1839 = arith.truncf %1838 : vector<2x64xf32> to vector<2x64xbf16>
    %cst_370 = arith.constant dense<0.000000e+00> : vector<2x64xf32>
    %1840 = tpu.matmul %1839, %1626, %cst_370 {dimension_numbers = #tpu.dot_dimension_numbers<[1], [0], [0], [1], [0, 0, 1, 1], [], []>} : vector<2x64xbf16>, vector<64x64xbf16>, vector<2x64xf32> -> vector<2x64xf32>
    %1841 = arith.addf %1840, %1634 : vector<2x64xf32>
    %1842 = arith.truncf %1384 : vector<2x64xf32> to vector<2x64xbf16>
    %cst_371 = arith.constant dense<0.000000e+00> : vector<2x64xf32>
    %1843 = tpu.matmul %1842, %1627, %cst_371 {dimension_numbers = #tpu.dot_dimension_numbers<[1], [0], [0], [1], [0, 0, 1, 1], [], []>} : vector<2x64xbf16>, vector<64x64xbf16>, vector<2x64xf32> -> vector<2x64xf32>
    %1844 = arith.addf %1843, %1637 : vector<2x64xf32>
    %1845 = arith.addf %1841, %1844 : vector<2x64xf32>
    %1846 = arith.negf %1845 : vector<2x64xf32>
    %1847 = math.exp %1846 : vector<2x64xf32>
    %cst_372 = arith.constant 1.000000e+00 : f32
    %1848 = vector.broadcast %cst_372 : f32 to vector<2x64xf32>
    %1849 = arith.addf %1848, %1847 : vector<2x64xf32>
    %1850 = arith.divf %1848, %1849 : vector<2x64xf32>
    %1851 = arith.mulf %1838, %1850 : vector<2x64xf32>
    %1852 = arith.addf %1851, %1384 : vector<2x64xf32>
    %1853 = arith.truncf %1852 : vector<2x64xf32> to vector<2x64xbf16>
    %cst_373 = arith.constant dense<0.000000e+00> : vector<2x5xf32>
    %1854 = tpu.matmul %1853, %1628, %cst_373 {dimension_numbers = #tpu.dot_dimension_numbers<[1], [0], [0], [1], [0, 0, 1, 1], [], []>} : vector<2x64xbf16>, vector<64x5xbf16>, vector<2x5xf32> -> vector<2x5xf32>
    %1855 = arith.addf %1854, %1640 : vector<2x5xf32>
    %c1_374 = arith.constant 1 : index
    %c0_375 = arith.constant 0 : index
    %c0_376 = arith.constant 0 : index
    %1856 = vector.load %arg22[%c1_374, %c0_375, %c0_376] : memref<8x2x5xf32, #tpu.memory_space<vmem>>, vector<1x2x5xf32>
    %1857 = vector.shape_cast %1856 : vector<1x2x5xf32> to vector<2x5xf32>
    %1858 = vector.shape_cast %1855 : vector<2x5xf32> to vector<1x2x5xf32>
    tpu.vector_store %arg22[%c1_374, %c0_375, %c0_376], %1858 {strides = array<i32>} : memref<8x2x5xf32, #tpu.memory_space<vmem>>, vector<1x2x5xf32>,
    %1859 = arith.mulf %1479, %1383 : vector<2x64xf32>
    %cst_377 = arith.constant dense<0.000000e+00> : vector<2xf32>
    %1860 = vector.multi_reduction <add>, %1859, %cst_377 [1] : vector<2x64xf32> to vector<2xf32>
    %1861 = vector.shape_cast %1860 : vector<2xf32> to vector<2x1xf32>
    %1862 = arith.mulf %1479, %1384 : vector<2x64xf32>
    %cst_378 = arith.constant dense<0.000000e+00> : vector<2xf32>
    %1863 = vector.multi_reduction <add>, %1862, %cst_378 [1] : vector<2x64xf32> to vector<2xf32>
    %1864 = vector.shape_cast %1863 : vector<2xf32> to vector<2x1xf32>
    %1865 = arith.mulf %1479, %1385 : vector<2x64xf32>
    %cst_379 = arith.constant dense<0.000000e+00> : vector<2xf32>
    %1866 = vector.multi_reduction <add>, %1865, %cst_379 [1] : vector<2x64xf32> to vector<2xf32>
    %1867 = vector.shape_cast %1866 : vector<2xf32> to vector<2x1xf32>
    %1868 = arith.mulf %1479, %1386 : vector<2x64xf32>
    %cst_380 = arith.constant dense<0.000000e+00> : vector<2xf32>
    %1869 = vector.multi_reduction <add>, %1868, %cst_380 [1] : vector<2x64xf32> to vector<2xf32>
    %1870 = vector.shape_cast %1869 : vector<2xf32> to vector<2x1xf32>
    %1871 = arith.mulf %1479, %1387 : vector<2x64xf32>
    %cst_381 = arith.constant dense<0.000000e+00> : vector<2xf32>
    %1872 = vector.multi_reduction <add>, %1871, %cst_381 [1] : vector<2x64xf32> to vector<2xf32>
    %1873 = vector.shape_cast %1872 : vector<2xf32> to vector<2x1xf32>
    %1874 = arith.mulf %1479, %1388 : vector<2x64xf32>
    %cst_382 = arith.constant dense<0.000000e+00> : vector<2xf32>
    %1875 = vector.multi_reduction <add>, %1874, %cst_382 [1] : vector<2x64xf32> to vector<2xf32>
    %1876 = vector.shape_cast %1875 : vector<2xf32> to vector<2x1xf32>
    %1877 = arith.mulf %1479, %1389 : vector<2x64xf32>
    %cst_383 = arith.constant dense<0.000000e+00> : vector<2xf32>
    %1878 = vector.multi_reduction <add>, %1877, %cst_383 [1] : vector<2x64xf32> to vector<2xf32>
    %1879 = vector.shape_cast %1878 : vector<2xf32> to vector<2x1xf32>
    %1880 = arith.mulf %1479, %1390 : vector<2x64xf32>
    %cst_384 = arith.constant dense<0.000000e+00> : vector<2xf32>
    %1881 = vector.multi_reduction <add>, %1880, %cst_384 [1] : vector<2x64xf32> to vector<2xf32>
    %1882 = vector.shape_cast %1881 : vector<2xf32> to vector<2x1xf32>
    %1883 = arith.maximumf %1861, %1864 : vector<2x1xf32>
    %1884 = arith.maximumf %1883, %1867 : vector<2x1xf32>
    %1885 = arith.maximumf %1884, %1870 : vector<2x1xf32>
    %1886 = arith.maximumf %1885, %1873 : vector<2x1xf32>
    %1887 = arith.maximumf %1886, %1876 : vector<2x1xf32>
    %1888 = arith.maximumf %1887, %1879 : vector<2x1xf32>
    %1889 = arith.maximumf %1888, %1882 : vector<2x1xf32>
    %1890 = arith.subf %1861, %1889 : vector<2x1xf32>
    %1891 = math.exp %1890 : vector<2x1xf32>
    %1892 = arith.subf %1864, %1889 : vector<2x1xf32>
    %1893 = math.exp %1892 : vector<2x1xf32>
    %1894 = arith.subf %1867, %1889 : vector<2x1xf32>
    %1895 = math.exp %1894 : vector<2x1xf32>
    %1896 = arith.subf %1870, %1889 : vector<2x1xf32>
    %1897 = math.exp %1896 : vector<2x1xf32>
    %1898 = arith.subf %1873, %1889 : vector<2x1xf32>
    %1899 = math.exp %1898 : vector<2x1xf32>
    %1900 = arith.subf %1876, %1889 : vector<2x1xf32>
    %1901 = math.exp %1900 : vector<2x1xf32>
    %1902 = arith.subf %1879, %1889 : vector<2x1xf32>
    %1903 = math.exp %1902 : vector<2x1xf32>
    %1904 = arith.subf %1882, %1889 : vector<2x1xf32>
    %1905 = math.exp %1904 : vector<2x1xf32>
    %1906 = arith.addf %1891, %1893 : vector<2x1xf32>
    %1907 = arith.addf %1906, %1895 : vector<2x1xf32>
    %1908 = arith.addf %1907, %1897 : vector<2x1xf32>
    %1909 = arith.addf %1908, %1899 : vector<2x1xf32>
    %1910 = arith.addf %1909, %1901 : vector<2x1xf32>
    %1911 = arith.addf %1910, %1903 : vector<2x1xf32>
    %1912 = arith.addf %1911, %1905 : vector<2x1xf32>
    %1913 = tpu.reciprocal %1912 {approx = true} : vector<2x1xf32> -> vector<2x1xf32>
    %1914 = arith.mulf %1891, %1913 : vector<2x1xf32>
    %1915 = vector.broadcast %1914 : vector<2x1xf32> to vector<2x64xf32>
    %1916 = arith.mulf %1915, %1383 : vector<2x64xf32>
    %1917 = arith.mulf %1893, %1913 : vector<2x1xf32>
    %1918 = vector.broadcast %1917 : vector<2x1xf32> to vector<2x64xf32>
    %1919 = arith.mulf %1918, %1384 : vector<2x64xf32>
    %1920 = arith.addf %1916, %1919 : vector<2x64xf32>
    %1921 = arith.mulf %1895, %1913 : vector<2x1xf32>
    %1922 = vector.broadcast %1921 : vector<2x1xf32> to vector<2x64xf32>
    %1923 = arith.mulf %1922, %1385 : vector<2x64xf32>
    %1924 = arith.addf %1920, %1923 : vector<2x64xf32>
    %1925 = arith.mulf %1897, %1913 : vector<2x1xf32>
    %1926 = vector.broadcast %1925 : vector<2x1xf32> to vector<2x64xf32>
    %1927 = arith.mulf %1926, %1386 : vector<2x64xf32>
    %1928 = arith.addf %1924, %1927 : vector<2x64xf32>
    %1929 = arith.mulf %1899, %1913 : vector<2x1xf32>
    %1930 = vector.broadcast %1929 : vector<2x1xf32> to vector<2x64xf32>
    %1931 = arith.mulf %1930, %1387 : vector<2x64xf32>
    %1932 = arith.addf %1928, %1931 : vector<2x64xf32>
    %1933 = arith.mulf %1901, %1913 : vector<2x1xf32>
    %1934 = vector.broadcast %1933 : vector<2x1xf32> to vector<2x64xf32>
    %1935 = arith.mulf %1934, %1388 : vector<2x64xf32>
    %1936 = arith.addf %1932, %1935 : vector<2x64xf32>
    %1937 = arith.mulf %1903, %1913 : vector<2x1xf32>
    %1938 = vector.broadcast %1937 : vector<2x1xf32> to vector<2x64xf32>
    %1939 = arith.mulf %1938, %1389 : vector<2x64xf32>
    %1940 = arith.addf %1936, %1939 : vector<2x64xf32>
    %1941 = arith.mulf %1905, %1913 : vector<2x1xf32>
    %1942 = vector.broadcast %1941 : vector<2x1xf32> to vector<2x64xf32>
    %1943 = arith.mulf %1942, %1390 : vector<2x64xf32>
    %1944 = arith.addf %1940, %1943 : vector<2x64xf32>
    %1945 = arith.truncf %1944 : vector<2x64xf32> to vector<2x64xbf16>
    %cst_385 = arith.constant dense<0.000000e+00> : vector<2x64xf32>
    %1946 = tpu.matmul %1945, %1625, %cst_385 {dimension_numbers = #tpu.dot_dimension_numbers<[1], [0], [0], [1], [0, 0, 1, 1], [], []>} : vector<2x64xbf16>, vector<64x64xbf16>, vector<2x64xf32> -> vector<2x64xf32>
    %1947 = arith.addf %1946, %1631 : vector<2x64xf32>
    %1948 = arith.truncf %1947 : vector<2x64xf32> to vector<2x64xbf16>
    %cst_386 = arith.constant dense<0.000000e+00> : vector<2x64xf32>
    %1949 = tpu.matmul %1948, %1626, %cst_386 {dimension_numbers = #tpu.dot_dimension_numbers<[1], [0], [0], [1], [0, 0, 1, 1], [], []>} : vector<2x64xbf16>, vector<64x64xbf16>, vector<2x64xf32> -> vector<2x64xf32>
    %1950 = arith.addf %1949, %1634 : vector<2x64xf32>
    %1951 = arith.truncf %1385 : vector<2x64xf32> to vector<2x64xbf16>
    %cst_387 = arith.constant dense<0.000000e+00> : vector<2x64xf32>
    %1952 = tpu.matmul %1951, %1627, %cst_387 {dimension_numbers = #tpu.dot_dimension_numbers<[1], [0], [0], [1], [0, 0, 1, 1], [], []>} : vector<2x64xbf16>, vector<64x64xbf16>, vector<2x64xf32> -> vector<2x64xf32>
    %1953 = arith.addf %1952, %1637 : vector<2x64xf32>
    %1954 = arith.addf %1950, %1953 : vector<2x64xf32>
    %1955 = arith.negf %1954 : vector<2x64xf32>
    %1956 = math.exp %1955 : vector<2x64xf32>
    %cst_388 = arith.constant 1.000000e+00 : f32
    %1957 = vector.broadcast %cst_388 : f32 to vector<2x64xf32>
    %1958 = arith.addf %1957, %1956 : vector<2x64xf32>
    %1959 = arith.divf %1957, %1958 : vector<2x64xf32>
    %1960 = arith.mulf %1947, %1959 : vector<2x64xf32>
    %1961 = arith.addf %1960, %1385 : vector<2x64xf32>
    %1962 = arith.truncf %1961 : vector<2x64xf32> to vector<2x64xbf16>
    %cst_389 = arith.constant dense<0.000000e+00> : vector<2x5xf32>
    %1963 = tpu.matmul %1962, %1628, %cst_389 {dimension_numbers = #tpu.dot_dimension_numbers<[1], [0], [0], [1], [0, 0, 1, 1], [], []>} : vector<2x64xbf16>, vector<64x5xbf16>, vector<2x5xf32> -> vector<2x5xf32>
    %1964 = arith.addf %1963, %1640 : vector<2x5xf32>
    %c2_390 = arith.constant 2 : index
    %c0_391 = arith.constant 0 : index
    %c0_392 = arith.constant 0 : index
    %1965 = vector.load %arg22[%c2_390, %c0_391, %c0_392] : memref<8x2x5xf32, #tpu.memory_space<vmem>>, vector<1x2x5xf32>
    %1966 = vector.shape_cast %1965 : vector<1x2x5xf32> to vector<2x5xf32>
    %1967 = vector.shape_cast %1964 : vector<2x5xf32> to vector<1x2x5xf32>
    tpu.vector_store %arg22[%c2_390, %c0_391, %c0_392], %1967 {strides = array<i32>} : memref<8x2x5xf32, #tpu.memory_space<vmem>>, vector<1x2x5xf32>,
    %1968 = arith.mulf %1508, %1383 : vector<2x64xf32>
    %cst_393 = arith.constant dense<0.000000e+00> : vector<2xf32>
    %1969 = vector.multi_reduction <add>, %1968, %cst_393 [1] : vector<2x64xf32> to vector<2xf32>
    %1970 = vector.shape_cast %1969 : vector<2xf32> to vector<2x1xf32>
    %1971 = arith.mulf %1508, %1384 : vector<2x64xf32>
    %cst_394 = arith.constant dense<0.000000e+00> : vector<2xf32>
    %1972 = vector.multi_reduction <add>, %1971, %cst_394 [1] : vector<2x64xf32> to vector<2xf32>
    %1973 = vector.shape_cast %1972 : vector<2xf32> to vector<2x1xf32>
    %1974 = arith.mulf %1508, %1385 : vector<2x64xf32>
    %cst_395 = arith.constant dense<0.000000e+00> : vector<2xf32>
    %1975 = vector.multi_reduction <add>, %1974, %cst_395 [1] : vector<2x64xf32> to vector<2xf32>
    %1976 = vector.shape_cast %1975 : vector<2xf32> to vector<2x1xf32>
    %1977 = arith.mulf %1508, %1386 : vector<2x64xf32>
    %cst_396 = arith.constant dense<0.000000e+00> : vector<2xf32>
    %1978 = vector.multi_reduction <add>, %1977, %cst_396 [1] : vector<2x64xf32> to vector<2xf32>
    %1979 = vector.shape_cast %1978 : vector<2xf32> to vector<2x1xf32>
    %1980 = arith.mulf %1508, %1387 : vector<2x64xf32>
    %cst_397 = arith.constant dense<0.000000e+00> : vector<2xf32>
    %1981 = vector.multi_reduction <add>, %1980, %cst_397 [1] : vector<2x64xf32> to vector<2xf32>
    %1982 = vector.shape_cast %1981 : vector<2xf32> to vector<2x1xf32>
    %1983 = arith.mulf %1508, %1388 : vector<2x64xf32>
    %cst_398 = arith.constant dense<0.000000e+00> : vector<2xf32>
    %1984 = vector.multi_reduction <add>, %1983, %cst_398 [1] : vector<2x64xf32> to vector<2xf32>
    %1985 = vector.shape_cast %1984 : vector<2xf32> to vector<2x1xf32>
    %1986 = arith.mulf %1508, %1389 : vector<2x64xf32>
    %cst_399 = arith.constant dense<0.000000e+00> : vector<2xf32>
    %1987 = vector.multi_reduction <add>, %1986, %cst_399 [1] : vector<2x64xf32> to vector<2xf32>
    %1988 = vector.shape_cast %1987 : vector<2xf32> to vector<2x1xf32>
    %1989 = arith.mulf %1508, %1390 : vector<2x64xf32>
    %cst_400 = arith.constant dense<0.000000e+00> : vector<2xf32>
    %1990 = vector.multi_reduction <add>, %1989, %cst_400 [1] : vector<2x64xf32> to vector<2xf32>
    %1991 = vector.shape_cast %1990 : vector<2xf32> to vector<2x1xf32>
    %1992 = arith.maximumf %1970, %1973 : vector<2x1xf32>
    %1993 = arith.maximumf %1992, %1976 : vector<2x1xf32>
    %1994 = arith.maximumf %1993, %1979 : vector<2x1xf32>
    %1995 = arith.maximumf %1994, %1982 : vector<2x1xf32>
    %1996 = arith.maximumf %1995, %1985 : vector<2x1xf32>
    %1997 = arith.maximumf %1996, %1988 : vector<2x1xf32>
    %1998 = arith.maximumf %1997, %1991 : vector<2x1xf32>
    %1999 = arith.subf %1970, %1998 : vector<2x1xf32>
    %2000 = math.exp %1999 : vector<2x1xf32>
    %2001 = arith.subf %1973, %1998 : vector<2x1xf32>
    %2002 = math.exp %2001 : vector<2x1xf32>
    %2003 = arith.subf %1976, %1998 : vector<2x1xf32>
    %2004 = math.exp %2003 : vector<2x1xf32>
    %2005 = arith.subf %1979, %1998 : vector<2x1xf32>
    %2006 = math.exp %2005 : vector<2x1xf32>
    %2007 = arith.subf %1982, %1998 : vector<2x1xf32>
    %2008 = math.exp %2007 : vector<2x1xf32>
    %2009 = arith.subf %1985, %1998 : vector<2x1xf32>
    %2010 = math.exp %2009 : vector<2x1xf32>
    %2011 = arith.subf %1988, %1998 : vector<2x1xf32>
    %2012 = math.exp %2011 : vector<2x1xf32>
    %2013 = arith.subf %1991, %1998 : vector<2x1xf32>
    %2014 = math.exp %2013 : vector<2x1xf32>
    %2015 = arith.addf %2000, %2002 : vector<2x1xf32>
    %2016 = arith.addf %2015, %2004 : vector<2x1xf32>
    %2017 = arith.addf %2016, %2006 : vector<2x1xf32>
    %2018 = arith.addf %2017, %2008 : vector<2x1xf32>
    %2019 = arith.addf %2018, %2010 : vector<2x1xf32>
    %2020 = arith.addf %2019, %2012 : vector<2x1xf32>
    %2021 = arith.addf %2020, %2014 : vector<2x1xf32>
    %2022 = tpu.reciprocal %2021 {approx = true} : vector<2x1xf32> -> vector<2x1xf32>
    %2023 = arith.mulf %2000, %2022 : vector<2x1xf32>
    %2024 = vector.broadcast %2023 : vector<2x1xf32> to vector<2x64xf32>
    %2025 = arith.mulf %2024, %1383 : vector<2x64xf32>
    %2026 = arith.mulf %2002, %2022 : vector<2x1xf32>
    %2027 = vector.broadcast %2026 : vector<2x1xf32> to vector<2x64xf32>
    %2028 = arith.mulf %2027, %1384 : vector<2x64xf32>
    %2029 = arith.addf %2025, %2028 : vector<2x64xf32>
    %2030 = arith.mulf %2004, %2022 : vector<2x1xf32>
    %2031 = vector.broadcast %2030 : vector<2x1xf32> to vector<2x64xf32>
    %2032 = arith.mulf %2031, %1385 : vector<2x64xf32>
    %2033 = arith.addf %2029, %2032 : vector<2x64xf32>
    %2034 = arith.mulf %2006, %2022 : vector<2x1xf32>
    %2035 = vector.broadcast %2034 : vector<2x1xf32> to vector<2x64xf32>
    %2036 = arith.mulf %2035, %1386 : vector<2x64xf32>
    %2037 = arith.addf %2033, %2036 : vector<2x64xf32>
    %2038 = arith.mulf %2008, %2022 : vector<2x1xf32>
    %2039 = vector.broadcast %2038 : vector<2x1xf32> to vector<2x64xf32>
    %2040 = arith.mulf %2039, %1387 : vector<2x64xf32>
    %2041 = arith.addf %2037, %2040 : vector<2x64xf32>
    %2042 = arith.mulf %2010, %2022 : vector<2x1xf32>
    %2043 = vector.broadcast %2042 : vector<2x1xf32> to vector<2x64xf32>
    %2044 = arith.mulf %2043, %1388 : vector<2x64xf32>
    %2045 = arith.addf %2041, %2044 : vector<2x64xf32>
    %2046 = arith.mulf %2012, %2022 : vector<2x1xf32>
    %2047 = vector.broadcast %2046 : vector<2x1xf32> to vector<2x64xf32>
    %2048 = arith.mulf %2047, %1389 : vector<2x64xf32>
    %2049 = arith.addf %2045, %2048 : vector<2x64xf32>
    %2050 = arith.mulf %2014, %2022 : vector<2x1xf32>
    %2051 = vector.broadcast %2050 : vector<2x1xf32> to vector<2x64xf32>
    %2052 = arith.mulf %2051, %1390 : vector<2x64xf32>
    %2053 = arith.addf %2049, %2052 : vector<2x64xf32>
    %2054 = arith.truncf %2053 : vector<2x64xf32> to vector<2x64xbf16>
    %cst_401 = arith.constant dense<0.000000e+00> : vector<2x64xf32>
    %2055 = tpu.matmul %2054, %1625, %cst_401 {dimension_numbers = #tpu.dot_dimension_numbers<[1], [0], [0], [1], [0, 0, 1, 1], [], []>} : vector<2x64xbf16>, vector<64x64xbf16>, vector<2x64xf32> -> vector<2x64xf32>
    %2056 = arith.addf %2055, %1631 : vector<2x64xf32>
    %2057 = arith.truncf %2056 : vector<2x64xf32> to vector<2x64xbf16>
    %cst_402 = arith.constant dense<0.000000e+00> : vector<2x64xf32>
    %2058 = tpu.matmul %2057, %1626, %cst_402 {dimension_numbers = #tpu.dot_dimension_numbers<[1], [0], [0], [1], [0, 0, 1, 1], [], []>} : vector<2x64xbf16>, vector<64x64xbf16>, vector<2x64xf32> -> vector<2x64xf32>
    %2059 = arith.addf %2058, %1634 : vector<2x64xf32>
    %2060 = arith.truncf %1386 : vector<2x64xf32> to vector<2x64xbf16>
    %cst_403 = arith.constant dense<0.000000e+00> : vector<2x64xf32>
    %2061 = tpu.matmul %2060, %1627, %cst_403 {dimension_numbers = #tpu.dot_dimension_numbers<[1], [0], [0], [1], [0, 0, 1, 1], [], []>} : vector<2x64xbf16>, vector<64x64xbf16>, vector<2x64xf32> -> vector<2x64xf32>
    %2062 = arith.addf %2061, %1637 : vector<2x64xf32>
    %2063 = arith.addf %2059, %2062 : vector<2x64xf32>
    %2064 = arith.negf %2063 : vector<2x64xf32>
    %2065 = math.exp %2064 : vector<2x64xf32>
    %cst_404 = arith.constant 1.000000e+00 : f32
    %2066 = vector.broadcast %cst_404 : f32 to vector<2x64xf32>
    %2067 = arith.addf %2066, %2065 : vector<2x64xf32>
    %2068 = arith.divf %2066, %2067 : vector<2x64xf32>
    %2069 = arith.mulf %2056, %2068 : vector<2x64xf32>
    %2070 = arith.addf %2069, %1386 : vector<2x64xf32>
    %2071 = arith.truncf %2070 : vector<2x64xf32> to vector<2x64xbf16>
    %cst_405 = arith.constant dense<0.000000e+00> : vector<2x5xf32>
    %2072 = tpu.matmul %2071, %1628, %cst_405 {dimension_numbers = #tpu.dot_dimension_numbers<[1], [0], [0], [1], [0, 0, 1, 1], [], []>} : vector<2x64xbf16>, vector<64x5xbf16>, vector<2x5xf32> -> vector<2x5xf32>
    %2073 = arith.addf %2072, %1640 : vector<2x5xf32>
    %c3_406 = arith.constant 3 : index
    %c0_407 = arith.constant 0 : index
    %c0_408 = arith.constant 0 : index
    %2074 = vector.load %arg22[%c3_406, %c0_407, %c0_408] : memref<8x2x5xf32, #tpu.memory_space<vmem>>, vector<1x2x5xf32>
    %2075 = vector.shape_cast %2074 : vector<1x2x5xf32> to vector<2x5xf32>
    %2076 = vector.shape_cast %2073 : vector<2x5xf32> to vector<1x2x5xf32>
    tpu.vector_store %arg22[%c3_406, %c0_407, %c0_408], %2076 {strides = array<i32>} : memref<8x2x5xf32, #tpu.memory_space<vmem>>, vector<1x2x5xf32>,
    %2077 = arith.mulf %1537, %1383 : vector<2x64xf32>
    %cst_409 = arith.constant dense<0.000000e+00> : vector<2xf32>
    %2078 = vector.multi_reduction <add>, %2077, %cst_409 [1] : vector<2x64xf32> to vector<2xf32>
    %2079 = vector.shape_cast %2078 : vector<2xf32> to vector<2x1xf32>
    %2080 = arith.mulf %1537, %1384 : vector<2x64xf32>
    %cst_410 = arith.constant dense<0.000000e+00> : vector<2xf32>
    %2081 = vector.multi_reduction <add>, %2080, %cst_410 [1] : vector<2x64xf32> to vector<2xf32>
    %2082 = vector.shape_cast %2081 : vector<2xf32> to vector<2x1xf32>
    %2083 = arith.mulf %1537, %1385 : vector<2x64xf32>
    %cst_411 = arith.constant dense<0.000000e+00> : vector<2xf32>
    %2084 = vector.multi_reduction <add>, %2083, %cst_411 [1] : vector<2x64xf32> to vector<2xf32>
    %2085 = vector.shape_cast %2084 : vector<2xf32> to vector<2x1xf32>
    %2086 = arith.mulf %1537, %1386 : vector<2x64xf32>
    %cst_412 = arith.constant dense<0.000000e+00> : vector<2xf32>
    %2087 = vector.multi_reduction <add>, %2086, %cst_412 [1] : vector<2x64xf32> to vector<2xf32>
    %2088 = vector.shape_cast %2087 : vector<2xf32> to vector<2x1xf32>
    %2089 = arith.mulf %1537, %1387 : vector<2x64xf32>
    %cst_413 = arith.constant dense<0.000000e+00> : vector<2xf32>
    %2090 = vector.multi_reduction <add>, %2089, %cst_413 [1] : vector<2x64xf32> to vector<2xf32>
    %2091 = vector.shape_cast %2090 : vector<2xf32> to vector<2x1xf32>
    %2092 = arith.mulf %1537, %1388 : vector<2x64xf32>
    %cst_414 = arith.constant dense<0.000000e+00> : vector<2xf32>
    %2093 = vector.multi_reduction <add>, %2092, %cst_414 [1] : vector<2x64xf32> to vector<2xf32>
    %2094 = vector.shape_cast %2093 : vector<2xf32> to vector<2x1xf32>
    %2095 = arith.mulf %1537, %1389 : vector<2x64xf32>
    %cst_415 = arith.constant dense<0.000000e+00> : vector<2xf32>
    %2096 = vector.multi_reduction <add>, %2095, %cst_415 [1] : vector<2x64xf32> to vector<2xf32>
    %2097 = vector.shape_cast %2096 : vector<2xf32> to vector<2x1xf32>
    %2098 = arith.mulf %1537, %1390 : vector<2x64xf32>
    %cst_416 = arith.constant dense<0.000000e+00> : vector<2xf32>
    %2099 = vector.multi_reduction <add>, %2098, %cst_416 [1] : vector<2x64xf32> to vector<2xf32>
    %2100 = vector.shape_cast %2099 : vector<2xf32> to vector<2x1xf32>
    %2101 = arith.maximumf %2079, %2082 : vector<2x1xf32>
    %2102 = arith.maximumf %2101, %2085 : vector<2x1xf32>
    %2103 = arith.maximumf %2102, %2088 : vector<2x1xf32>
    %2104 = arith.maximumf %2103, %2091 : vector<2x1xf32>
    %2105 = arith.maximumf %2104, %2094 : vector<2x1xf32>
    %2106 = arith.maximumf %2105, %2097 : vector<2x1xf32>
    %2107 = arith.maximumf %2106, %2100 : vector<2x1xf32>
    %2108 = arith.subf %2079, %2107 : vector<2x1xf32>
    %2109 = math.exp %2108 : vector<2x1xf32>
    %2110 = arith.subf %2082, %2107 : vector<2x1xf32>
    %2111 = math.exp %2110 : vector<2x1xf32>
    %2112 = arith.subf %2085, %2107 : vector<2x1xf32>
    %2113 = math.exp %2112 : vector<2x1xf32>
    %2114 = arith.subf %2088, %2107 : vector<2x1xf32>
    %2115 = math.exp %2114 : vector<2x1xf32>
    %2116 = arith.subf %2091, %2107 : vector<2x1xf32>
    %2117 = math.exp %2116 : vector<2x1xf32>
    %2118 = arith.subf %2094, %2107 : vector<2x1xf32>
    %2119 = math.exp %2118 : vector<2x1xf32>
    %2120 = arith.subf %2097, %2107 : vector<2x1xf32>
    %2121 = math.exp %2120 : vector<2x1xf32>
    %2122 = arith.subf %2100, %2107 : vector<2x1xf32>
    %2123 = math.exp %2122 : vector<2x1xf32>
    %2124 = arith.addf %2109, %2111 : vector<2x1xf32>
    %2125 = arith.addf %2124, %2113 : vector<2x1xf32>
    %2126 = arith.addf %2125, %2115 : vector<2x1xf32>
    %2127 = arith.addf %2126, %2117 : vector<2x1xf32>
    %2128 = arith.addf %2127, %2119 : vector<2x1xf32>
    %2129 = arith.addf %2128, %2121 : vector<2x1xf32>
    %2130 = arith.addf %2129, %2123 : vector<2x1xf32>
    %2131 = tpu.reciprocal %2130 {approx = true} : vector<2x1xf32> -> vector<2x1xf32>
    %2132 = arith.mulf %2109, %2131 : vector<2x1xf32>
    %2133 = vector.broadcast %2132 : vector<2x1xf32> to vector<2x64xf32>
    %2134 = arith.mulf %2133, %1383 : vector<2x64xf32>
    %2135 = arith.mulf %2111, %2131 : vector<2x1xf32>
    %2136 = vector.broadcast %2135 : vector<2x1xf32> to vector<2x64xf32>
    %2137 = arith.mulf %2136, %1384 : vector<2x64xf32>
    %2138 = arith.addf %2134, %2137 : vector<2x64xf32>
    %2139 = arith.mulf %2113, %2131 : vector<2x1xf32>
    %2140 = vector.broadcast %2139 : vector<2x1xf32> to vector<2x64xf32>
    %2141 = arith.mulf %2140, %1385 : vector<2x64xf32>
    %2142 = arith.addf %2138, %2141 : vector<2x64xf32>
    %2143 = arith.mulf %2115, %2131 : vector<2x1xf32>
    %2144 = vector.broadcast %2143 : vector<2x1xf32> to vector<2x64xf32>
    %2145 = arith.mulf %2144, %1386 : vector<2x64xf32>
    %2146 = arith.addf %2142, %2145 : vector<2x64xf32>
    %2147 = arith.mulf %2117, %2131 : vector<2x1xf32>
    %2148 = vector.broadcast %2147 : vector<2x1xf32> to vector<2x64xf32>
    %2149 = arith.mulf %2148, %1387 : vector<2x64xf32>
    %2150 = arith.addf %2146, %2149 : vector<2x64xf32>
    %2151 = arith.mulf %2119, %2131 : vector<2x1xf32>
    %2152 = vector.broadcast %2151 : vector<2x1xf32> to vector<2x64xf32>
    %2153 = arith.mulf %2152, %1388 : vector<2x64xf32>
    %2154 = arith.addf %2150, %2153 : vector<2x64xf32>
    %2155 = arith.mulf %2121, %2131 : vector<2x1xf32>
    %2156 = vector.broadcast %2155 : vector<2x1xf32> to vector<2x64xf32>
    %2157 = arith.mulf %2156, %1389 : vector<2x64xf32>
    %2158 = arith.addf %2154, %2157 : vector<2x64xf32>
    %2159 = arith.mulf %2123, %2131 : vector<2x1xf32>
    %2160 = vector.broadcast %2159 : vector<2x1xf32> to vector<2x64xf32>
    %2161 = arith.mulf %2160, %1390 : vector<2x64xf32>
    %2162 = arith.addf %2158, %2161 : vector<2x64xf32>
    %2163 = arith.truncf %2162 : vector<2x64xf32> to vector<2x64xbf16>
    %cst_417 = arith.constant dense<0.000000e+00> : vector<2x64xf32>
    %2164 = tpu.matmul %2163, %1625, %cst_417 {dimension_numbers = #tpu.dot_dimension_numbers<[1], [0], [0], [1], [0, 0, 1, 1], [], []>} : vector<2x64xbf16>, vector<64x64xbf16>, vector<2x64xf32> -> vector<2x64xf32>
    %2165 = arith.addf %2164, %1631 : vector<2x64xf32>
    %2166 = arith.truncf %2165 : vector<2x64xf32> to vector<2x64xbf16>
    %cst_418 = arith.constant dense<0.000000e+00> : vector<2x64xf32>
    %2167 = tpu.matmul %2166, %1626, %cst_418 {dimension_numbers = #tpu.dot_dimension_numbers<[1], [0], [0], [1], [0, 0, 1, 1], [], []>} : vector<2x64xbf16>, vector<64x64xbf16>, vector<2x64xf32> -> vector<2x64xf32>
    %2168 = arith.addf %2167, %1634 : vector<2x64xf32>
    %2169 = arith.truncf %1387 : vector<2x64xf32> to vector<2x64xbf16>
    %cst_419 = arith.constant dense<0.000000e+00> : vector<2x64xf32>
    %2170 = tpu.matmul %2169, %1627, %cst_419 {dimension_numbers = #tpu.dot_dimension_numbers<[1], [0], [0], [1], [0, 0, 1, 1], [], []>} : vector<2x64xbf16>, vector<64x64xbf16>, vector<2x64xf32> -> vector<2x64xf32>
    %2171 = arith.addf %2170, %1637 : vector<2x64xf32>
    %2172 = arith.addf %2168, %2171 : vector<2x64xf32>
    %2173 = arith.negf %2172 : vector<2x64xf32>
    %2174 = math.exp %2173 : vector<2x64xf32>
    %cst_420 = arith.constant 1.000000e+00 : f32
    %2175 = vector.broadcast %cst_420 : f32 to vector<2x64xf32>
    %2176 = arith.addf %2175, %2174 : vector<2x64xf32>
    %2177 = arith.divf %2175, %2176 : vector<2x64xf32>
    %2178 = arith.mulf %2165, %2177 : vector<2x64xf32>
    %2179 = arith.addf %2178, %1387 : vector<2x64xf32>
    %2180 = arith.truncf %2179 : vector<2x64xf32> to vector<2x64xbf16>
    %cst_421 = arith.constant dense<0.000000e+00> : vector<2x5xf32>
    %2181 = tpu.matmul %2180, %1628, %cst_421 {dimension_numbers = #tpu.dot_dimension_numbers<[1], [0], [0], [1], [0, 0, 1, 1], [], []>} : vector<2x64xbf16>, vector<64x5xbf16>, vector<2x5xf32> -> vector<2x5xf32>
    %2182 = arith.addf %2181, %1640 : vector<2x5xf32>
    %c4_422 = arith.constant 4 : index
    %c0_423 = arith.constant 0 : index
    %c0_424 = arith.constant 0 : index
    %2183 = vector.load %arg22[%c4_422, %c0_423, %c0_424] : memref<8x2x5xf32, #tpu.memory_space<vmem>>, vector<1x2x5xf32>
    %2184 = vector.shape_cast %2183 : vector<1x2x5xf32> to vector<2x5xf32>
    %2185 = vector.shape_cast %2182 : vector<2x5xf32> to vector<1x2x5xf32>
    tpu.vector_store %arg22[%c4_422, %c0_423, %c0_424], %2185 {strides = array<i32>} : memref<8x2x5xf32, #tpu.memory_space<vmem>>, vector<1x2x5xf32>,
    %2186 = arith.mulf %1566, %1383 : vector<2x64xf32>
    %cst_425 = arith.constant dense<0.000000e+00> : vector<2xf32>
    %2187 = vector.multi_reduction <add>, %2186, %cst_425 [1] : vector<2x64xf32> to vector<2xf32>
    %2188 = vector.shape_cast %2187 : vector<2xf32> to vector<2x1xf32>
    %2189 = arith.mulf %1566, %1384 : vector<2x64xf32>
    %cst_426 = arith.constant dense<0.000000e+00> : vector<2xf32>
    %2190 = vector.multi_reduction <add>, %2189, %cst_426 [1] : vector<2x64xf32> to vector<2xf32>
    %2191 = vector.shape_cast %2190 : vector<2xf32> to vector<2x1xf32>
    %2192 = arith.mulf %1566, %1385 : vector<2x64xf32>
    %cst_427 = arith.constant dense<0.000000e+00> : vector<2xf32>
    %2193 = vector.multi_reduction <add>, %2192, %cst_427 [1] : vector<2x64xf32> to vector<2xf32>
    %2194 = vector.shape_cast %2193 : vector<2xf32> to vector<2x1xf32>
    %2195 = arith.mulf %1566, %1386 : vector<2x64xf32>
    %cst_428 = arith.constant dense<0.000000e+00> : vector<2xf32>
    %2196 = vector.multi_reduction <add>, %2195, %cst_428 [1] : vector<2x64xf32> to vector<2xf32>
    %2197 = vector.shape_cast %2196 : vector<2xf32> to vector<2x1xf32>
    %2198 = arith.mulf %1566, %1387 : vector<2x64xf32>
    %cst_429 = arith.constant dense<0.000000e+00> : vector<2xf32>
    %2199 = vector.multi_reduction <add>, %2198, %cst_429 [1] : vector<2x64xf32> to vector<2xf32>
    %2200 = vector.shape_cast %2199 : vector<2xf32> to vector<2x1xf32>
    %2201 = arith.mulf %1566, %1388 : vector<2x64xf32>
    %cst_430 = arith.constant dense<0.000000e+00> : vector<2xf32>
    %2202 = vector.multi_reduction <add>, %2201, %cst_430 [1] : vector<2x64xf32> to vector<2xf32>
    %2203 = vector.shape_cast %2202 : vector<2xf32> to vector<2x1xf32>
    %2204 = arith.mulf %1566, %1389 : vector<2x64xf32>
    %cst_431 = arith.constant dense<0.000000e+00> : vector<2xf32>
    %2205 = vector.multi_reduction <add>, %2204, %cst_431 [1] : vector<2x64xf32> to vector<2xf32>
    %2206 = vector.shape_cast %2205 : vector<2xf32> to vector<2x1xf32>
    %2207 = arith.mulf %1566, %1390 : vector<2x64xf32>
    %cst_432 = arith.constant dense<0.000000e+00> : vector<2xf32>
    %2208 = vector.multi_reduction <add>, %2207, %cst_432 [1] : vector<2x64xf32> to vector<2xf32>
    %2209 = vector.shape_cast %2208 : vector<2xf32> to vector<2x1xf32>
    %2210 = arith.maximumf %2188, %2191 : vector<2x1xf32>
    %2211 = arith.maximumf %2210, %2194 : vector<2x1xf32>
    %2212 = arith.maximumf %2211, %2197 : vector<2x1xf32>
    %2213 = arith.maximumf %2212, %2200 : vector<2x1xf32>
    %2214 = arith.maximumf %2213, %2203 : vector<2x1xf32>
    %2215 = arith.maximumf %2214, %2206 : vector<2x1xf32>
    %2216 = arith.maximumf %2215, %2209 : vector<2x1xf32>
    %2217 = arith.subf %2188, %2216 : vector<2x1xf32>
    %2218 = math.exp %2217 : vector<2x1xf32>
    %2219 = arith.subf %2191, %2216 : vector<2x1xf32>
    %2220 = math.exp %2219 : vector<2x1xf32>
    %2221 = arith.subf %2194, %2216 : vector<2x1xf32>
    %2222 = math.exp %2221 : vector<2x1xf32>
    %2223 = arith.subf %2197, %2216 : vector<2x1xf32>
    %2224 = math.exp %2223 : vector<2x1xf32>
    %2225 = arith.subf %2200, %2216 : vector<2x1xf32>
    %2226 = math.exp %2225 : vector<2x1xf32>
    %2227 = arith.subf %2203, %2216 : vector<2x1xf32>
    %2228 = math.exp %2227 : vector<2x1xf32>
    %2229 = arith.subf %2206, %2216 : vector<2x1xf32>
    %2230 = math.exp %2229 : vector<2x1xf32>
    %2231 = arith.subf %2209, %2216 : vector<2x1xf32>
    %2232 = math.exp %2231 : vector<2x1xf32>
    %2233 = arith.addf %2218, %2220 : vector<2x1xf32>
    %2234 = arith.addf %2233, %2222 : vector<2x1xf32>
    %2235 = arith.addf %2234, %2224 : vector<2x1xf32>
    %2236 = arith.addf %2235, %2226 : vector<2x1xf32>
    %2237 = arith.addf %2236, %2228 : vector<2x1xf32>
    %2238 = arith.addf %2237, %2230 : vector<2x1xf32>
    %2239 = arith.addf %2238, %2232 : vector<2x1xf32>
    %2240 = tpu.reciprocal %2239 {approx = true} : vector<2x1xf32> -> vector<2x1xf32>
    %2241 = arith.mulf %2218, %2240 : vector<2x1xf32>
    %2242 = vector.broadcast %2241 : vector<2x1xf32> to vector<2x64xf32>
    %2243 = arith.mulf %2242, %1383 : vector<2x64xf32>
    %2244 = arith.mulf %2220, %2240 : vector<2x1xf32>
    %2245 = vector.broadcast %2244 : vector<2x1xf32> to vector<2x64xf32>
    %2246 = arith.mulf %2245, %1384 : vector<2x64xf32>
    %2247 = arith.addf %2243, %2246 : vector<2x64xf32>
    %2248 = arith.mulf %2222, %2240 : vector<2x1xf32>
    %2249 = vector.broadcast %2248 : vector<2x1xf32> to vector<2x64xf32>
    %2250 = arith.mulf %2249, %1385 : vector<2x64xf32>
    %2251 = arith.addf %2247, %2250 : vector<2x64xf32>
    %2252 = arith.mulf %2224, %2240 : vector<2x1xf32>
    %2253 = vector.broadcast %2252 : vector<2x1xf32> to vector<2x64xf32>
    %2254 = arith.mulf %2253, %1386 : vector<2x64xf32>
    %2255 = arith.addf %2251, %2254 : vector<2x64xf32>
    %2256 = arith.mulf %2226, %2240 : vector<2x1xf32>
    %2257 = vector.broadcast %2256 : vector<2x1xf32> to vector<2x64xf32>
    %2258 = arith.mulf %2257, %1387 : vector<2x64xf32>
    %2259 = arith.addf %2255, %2258 : vector<2x64xf32>
    %2260 = arith.mulf %2228, %2240 : vector<2x1xf32>
    %2261 = vector.broadcast %2260 : vector<2x1xf32> to vector<2x64xf32>
    %2262 = arith.mulf %2261, %1388 : vector<2x64xf32>
    %2263 = arith.addf %2259, %2262 : vector<2x64xf32>
    %2264 = arith.mulf %2230, %2240 : vector<2x1xf32>
    %2265 = vector.broadcast %2264 : vector<2x1xf32> to vector<2x64xf32>
    %2266 = arith.mulf %2265, %1389 : vector<2x64xf32>
    %2267 = arith.addf %2263, %2266 : vector<2x64xf32>
    %2268 = arith.mulf %2232, %2240 : vector<2x1xf32>
    %2269 = vector.broadcast %2268 : vector<2x1xf32> to vector<2x64xf32>
    %2270 = arith.mulf %2269, %1390 : vector<2x64xf32>
    %2271 = arith.addf %2267, %2270 : vector<2x64xf32>
    %2272 = arith.truncf %2271 : vector<2x64xf32> to vector<2x64xbf16>
    %cst_433 = arith.constant dense<0.000000e+00> : vector<2x64xf32>
    %2273 = tpu.matmul %2272, %1625, %cst_433 {dimension_numbers = #tpu.dot_dimension_numbers<[1], [0], [0], [1], [0, 0, 1, 1], [], []>} : vector<2x64xbf16>, vector<64x64xbf16>, vector<2x64xf32> -> vector<2x64xf32>
    %2274 = arith.addf %2273, %1631 : vector<2x64xf32>
    %2275 = arith.truncf %2274 : vector<2x64xf32> to vector<2x64xbf16>
    %cst_434 = arith.constant dense<0.000000e+00> : vector<2x64xf32>
    %2276 = tpu.matmul %2275, %1626, %cst_434 {dimension_numbers = #tpu.dot_dimension_numbers<[1], [0], [0], [1], [0, 0, 1, 1], [], []>} : vector<2x64xbf16>, vector<64x64xbf16>, vector<2x64xf32> -> vector<2x64xf32>
    %2277 = arith.addf %2276, %1634 : vector<2x64xf32>
    %2278 = arith.truncf %1388 : vector<2x64xf32> to vector<2x64xbf16>
    %cst_435 = arith.constant dense<0.000000e+00> : vector<2x64xf32>
    %2279 = tpu.matmul %2278, %1627, %cst_435 {dimension_numbers = #tpu.dot_dimension_numbers<[1], [0], [0], [1], [0, 0, 1, 1], [], []>} : vector<2x64xbf16>, vector<64x64xbf16>, vector<2x64xf32> -> vector<2x64xf32>
    %2280 = arith.addf %2279, %1637 : vector<2x64xf32>
    %2281 = arith.addf %2277, %2280 : vector<2x64xf32>
    %2282 = arith.negf %2281 : vector<2x64xf32>
    %2283 = math.exp %2282 : vector<2x64xf32>
    %cst_436 = arith.constant 1.000000e+00 : f32
    %2284 = vector.broadcast %cst_436 : f32 to vector<2x64xf32>
    %2285 = arith.addf %2284, %2283 : vector<2x64xf32>
    %2286 = arith.divf %2284, %2285 : vector<2x64xf32>
    %2287 = arith.mulf %2274, %2286 : vector<2x64xf32>
    %2288 = arith.addf %2287, %1388 : vector<2x64xf32>
    %2289 = arith.truncf %2288 : vector<2x64xf32> to vector<2x64xbf16>
    %cst_437 = arith.constant dense<0.000000e+00> : vector<2x5xf32>
    %2290 = tpu.matmul %2289, %1628, %cst_437 {dimension_numbers = #tpu.dot_dimension_numbers<[1], [0], [0], [1], [0, 0, 1, 1], [], []>} : vector<2x64xbf16>, vector<64x5xbf16>, vector<2x5xf32> -> vector<2x5xf32>
    %2291 = arith.addf %2290, %1640 : vector<2x5xf32>
    %c5_438 = arith.constant 5 : index
    %c0_439 = arith.constant 0 : index
    %c0_440 = arith.constant 0 : index
    %2292 = vector.load %arg22[%c5_438, %c0_439, %c0_440] : memref<8x2x5xf32, #tpu.memory_space<vmem>>, vector<1x2x5xf32>
    %2293 = vector.shape_cast %2292 : vector<1x2x5xf32> to vector<2x5xf32>
    %2294 = vector.shape_cast %2291 : vector<2x5xf32> to vector<1x2x5xf32>
    tpu.vector_store %arg22[%c5_438, %c0_439, %c0_440], %2294 {strides = array<i32>} : memref<8x2x5xf32, #tpu.memory_space<vmem>>, vector<1x2x5xf32>,
    %2295 = arith.mulf %1595, %1383 : vector<2x64xf32>
    %cst_441 = arith.constant dense<0.000000e+00> : vector<2xf32>
    %2296 = vector.multi_reduction <add>, %2295, %cst_441 [1] : vector<2x64xf32> to vector<2xf32>
    %2297 = vector.shape_cast %2296 : vector<2xf32> to vector<2x1xf32>
    %2298 = arith.mulf %1595, %1384 : vector<2x64xf32>
    %cst_442 = arith.constant dense<0.000000e+00> : vector<2xf32>
    %2299 = vector.multi_reduction <add>, %2298, %cst_442 [1] : vector<2x64xf32> to vector<2xf32>
    %2300 = vector.shape_cast %2299 : vector<2xf32> to vector<2x1xf32>
    %2301 = arith.mulf %1595, %1385 : vector<2x64xf32>
    %cst_443 = arith.constant dense<0.000000e+00> : vector<2xf32>
    %2302 = vector.multi_reduction <add>, %2301, %cst_443 [1] : vector<2x64xf32> to vector<2xf32>
    %2303 = vector.shape_cast %2302 : vector<2xf32> to vector<2x1xf32>
    %2304 = arith.mulf %1595, %1386 : vector<2x64xf32>
    %cst_444 = arith.constant dense<0.000000e+00> : vector<2xf32>
    %2305 = vector.multi_reduction <add>, %2304, %cst_444 [1] : vector<2x64xf32> to vector<2xf32>
    %2306 = vector.shape_cast %2305 : vector<2xf32> to vector<2x1xf32>
    %2307 = arith.mulf %1595, %1387 : vector<2x64xf32>
    %cst_445 = arith.constant dense<0.000000e+00> : vector<2xf32>
    %2308 = vector.multi_reduction <add>, %2307, %cst_445 [1] : vector<2x64xf32> to vector<2xf32>
    %2309 = vector.shape_cast %2308 : vector<2xf32> to vector<2x1xf32>
    %2310 = arith.mulf %1595, %1388 : vector<2x64xf32>
    %cst_446 = arith.constant dense<0.000000e+00> : vector<2xf32>
    %2311 = vector.multi_reduction <add>, %2310, %cst_446 [1] : vector<2x64xf32> to vector<2xf32>
    %2312 = vector.shape_cast %2311 : vector<2xf32> to vector<2x1xf32>
    %2313 = arith.mulf %1595, %1389 : vector<2x64xf32>
    %cst_447 = arith.constant dense<0.000000e+00> : vector<2xf32>
    %2314 = vector.multi_reduction <add>, %2313, %cst_447 [1] : vector<2x64xf32> to vector<2xf32>
    %2315 = vector.shape_cast %2314 : vector<2xf32> to vector<2x1xf32>
    %2316 = arith.mulf %1595, %1390 : vector<2x64xf32>
    %cst_448 = arith.constant dense<0.000000e+00> : vector<2xf32>
    %2317 = vector.multi_reduction <add>, %2316, %cst_448 [1] : vector<2x64xf32> to vector<2xf32>
    %2318 = vector.shape_cast %2317 : vector<2xf32> to vector<2x1xf32>
    %2319 = arith.maximumf %2297, %2300 : vector<2x1xf32>
    %2320 = arith.maximumf %2319, %2303 : vector<2x1xf32>
    %2321 = arith.maximumf %2320, %2306 : vector<2x1xf32>
    %2322 = arith.maximumf %2321, %2309 : vector<2x1xf32>
    %2323 = arith.maximumf %2322, %2312 : vector<2x1xf32>
    %2324 = arith.maximumf %2323, %2315 : vector<2x1xf32>
    %2325 = arith.maximumf %2324, %2318 : vector<2x1xf32>
    %2326 = arith.subf %2297, %2325 : vector<2x1xf32>
    %2327 = math.exp %2326 : vector<2x1xf32>
    %2328 = arith.subf %2300, %2325 : vector<2x1xf32>
    %2329 = math.exp %2328 : vector<2x1xf32>
    %2330 = arith.subf %2303, %2325 : vector<2x1xf32>
    %2331 = math.exp %2330 : vector<2x1xf32>
    %2332 = arith.subf %2306, %2325 : vector<2x1xf32>
    %2333 = math.exp %2332 : vector<2x1xf32>
    %2334 = arith.subf %2309, %2325 : vector<2x1xf32>
    %2335 = math.exp %2334 : vector<2x1xf32>
    %2336 = arith.subf %2312, %2325 : vector<2x1xf32>
    %2337 = math.exp %2336 : vector<2x1xf32>
    %2338 = arith.subf %2315, %2325 : vector<2x1xf32>
    %2339 = math.exp %2338 : vector<2x1xf32>
    %2340 = arith.subf %2318, %2325 : vector<2x1xf32>
    %2341 = math.exp %2340 : vector<2x1xf32>
    %2342 = arith.addf %2327, %2329 : vector<2x1xf32>
    %2343 = arith.addf %2342, %2331 : vector<2x1xf32>
    %2344 = arith.addf %2343, %2333 : vector<2x1xf32>
    %2345 = arith.addf %2344, %2335 : vector<2x1xf32>
    %2346 = arith.addf %2345, %2337 : vector<2x1xf32>
    %2347 = arith.addf %2346, %2339 : vector<2x1xf32>
    %2348 = arith.addf %2347, %2341 : vector<2x1xf32>
    %2349 = tpu.reciprocal %2348 {approx = true} : vector<2x1xf32> -> vector<2x1xf32>
    %2350 = arith.mulf %2327, %2349 : vector<2x1xf32>
    %2351 = vector.broadcast %2350 : vector<2x1xf32> to vector<2x64xf32>
    %2352 = arith.mulf %2351, %1383 : vector<2x64xf32>
    %2353 = arith.mulf %2329, %2349 : vector<2x1xf32>
    %2354 = vector.broadcast %2353 : vector<2x1xf32> to vector<2x64xf32>
    %2355 = arith.mulf %2354, %1384 : vector<2x64xf32>
    %2356 = arith.addf %2352, %2355 : vector<2x64xf32>
    %2357 = arith.mulf %2331, %2349 : vector<2x1xf32>
    %2358 = vector.broadcast %2357 : vector<2x1xf32> to vector<2x64xf32>
    %2359 = arith.mulf %2358, %1385 : vector<2x64xf32>
    %2360 = arith.addf %2356, %2359 : vector<2x64xf32>
    %2361 = arith.mulf %2333, %2349 : vector<2x1xf32>
    %2362 = vector.broadcast %2361 : vector<2x1xf32> to vector<2x64xf32>
    %2363 = arith.mulf %2362, %1386 : vector<2x64xf32>
    %2364 = arith.addf %2360, %2363 : vector<2x64xf32>
    %2365 = arith.mulf %2335, %2349 : vector<2x1xf32>
    %2366 = vector.broadcast %2365 : vector<2x1xf32> to vector<2x64xf32>
    %2367 = arith.mulf %2366, %1387 : vector<2x64xf32>
    %2368 = arith.addf %2364, %2367 : vector<2x64xf32>
    %2369 = arith.mulf %2337, %2349 : vector<2x1xf32>
    %2370 = vector.broadcast %2369 : vector<2x1xf32> to vector<2x64xf32>
    %2371 = arith.mulf %2370, %1388 : vector<2x64xf32>
    %2372 = arith.addf %2368, %2371 : vector<2x64xf32>
    %2373 = arith.mulf %2339, %2349 : vector<2x1xf32>
    %2374 = vector.broadcast %2373 : vector<2x1xf32> to vector<2x64xf32>
    %2375 = arith.mulf %2374, %1389 : vector<2x64xf32>
    %2376 = arith.addf %2372, %2375 : vector<2x64xf32>
    %2377 = arith.mulf %2341, %2349 : vector<2x1xf32>
    %2378 = vector.broadcast %2377 : vector<2x1xf32> to vector<2x64xf32>
    %2379 = arith.mulf %2378, %1390 : vector<2x64xf32>
    %2380 = arith.addf %2376, %2379 : vector<2x64xf32>
    %2381 = arith.truncf %2380 : vector<2x64xf32> to vector<2x64xbf16>
    %cst_449 = arith.constant dense<0.000000e+00> : vector<2x64xf32>
    %2382 = tpu.matmul %2381, %1625, %cst_449 {dimension_numbers = #tpu.dot_dimension_numbers<[1], [0], [0], [1], [0, 0, 1, 1], [], []>} : vector<2x64xbf16>, vector<64x64xbf16>, vector<2x64xf32> -> vector<2x64xf32>
    %2383 = arith.addf %2382, %1631 : vector<2x64xf32>
    %2384 = arith.truncf %2383 : vector<2x64xf32> to vector<2x64xbf16>
    %cst_450 = arith.constant dense<0.000000e+00> : vector<2x64xf32>
    %2385 = tpu.matmul %2384, %1626, %cst_450 {dimension_numbers = #tpu.dot_dimension_numbers<[1], [0], [0], [1], [0, 0, 1, 1], [], []>} : vector<2x64xbf16>, vector<64x64xbf16>, vector<2x64xf32> -> vector<2x64xf32>
    %2386 = arith.addf %2385, %1634 : vector<2x64xf32>
    %2387 = arith.truncf %1389 : vector<2x64xf32> to vector<2x64xbf16>
    %cst_451 = arith.constant dense<0.000000e+00> : vector<2x64xf32>
    %2388 = tpu.matmul %2387, %1627, %cst_451 {dimension_numbers = #tpu.dot_dimension_numbers<[1], [0], [0], [1], [0, 0, 1, 1], [], []>} : vector<2x64xbf16>, vector<64x64xbf16>, vector<2x64xf32> -> vector<2x64xf32>
    %2389 = arith.addf %2388, %1637 : vector<2x64xf32>
    %2390 = arith.addf %2386, %2389 : vector<2x64xf32>
    %2391 = arith.negf %2390 : vector<2x64xf32>
    %2392 = math.exp %2391 : vector<2x64xf32>
    %cst_452 = arith.constant 1.000000e+00 : f32
    %2393 = vector.broadcast %cst_452 : f32 to vector<2x64xf32>
    %2394 = arith.addf %2393, %2392 : vector<2x64xf32>
    %2395 = arith.divf %2393, %2394 : vector<2x64xf32>
    %2396 = arith.mulf %2383, %2395 : vector<2x64xf32>
    %2397 = arith.addf %2396, %1389 : vector<2x64xf32>
    %2398 = arith.truncf %2397 : vector<2x64xf32> to vector<2x64xbf16>
    %cst_453 = arith.constant dense<0.000000e+00> : vector<2x5xf32>
    %2399 = tpu.matmul %2398, %1628, %cst_453 {dimension_numbers = #tpu.dot_dimension_numbers<[1], [0], [0], [1], [0, 0, 1, 1], [], []>} : vector<2x64xbf16>, vector<64x5xbf16>, vector<2x5xf32> -> vector<2x5xf32>
    %2400 = arith.addf %2399, %1640 : vector<2x5xf32>
    %c6_454 = arith.constant 6 : index
    %c0_455 = arith.constant 0 : index
    %c0_456 = arith.constant 0 : index
    %2401 = vector.load %arg22[%c6_454, %c0_455, %c0_456] : memref<8x2x5xf32, #tpu.memory_space<vmem>>, vector<1x2x5xf32>
    %2402 = vector.shape_cast %2401 : vector<1x2x5xf32> to vector<2x5xf32>
    %2403 = vector.shape_cast %2400 : vector<2x5xf32> to vector<1x2x5xf32>
    tpu.vector_store %arg22[%c6_454, %c0_455, %c0_456], %2403 {strides = array<i32>} : memref<8x2x5xf32, #tpu.memory_space<vmem>>, vector<1x2x5xf32>,
    %2404 = arith.mulf %1624, %1383 : vector<2x64xf32>
    %cst_457 = arith.constant dense<0.000000e+00> : vector<2xf32>
    %2405 = vector.multi_reduction <add>, %2404, %cst_457 [1] : vector<2x64xf32> to vector<2xf32>
    %2406 = vector.shape_cast %2405 : vector<2xf32> to vector<2x1xf32>
    %2407 = arith.mulf %1624, %1384 : vector<2x64xf32>
    %cst_458 = arith.constant dense<0.000000e+00> : vector<2xf32>
    %2408 = vector.multi_reduction <add>, %2407, %cst_458 [1] : vector<2x64xf32> to vector<2xf32>
    %2409 = vector.shape_cast %2408 : vector<2xf32> to vector<2x1xf32>
    %2410 = arith.mulf %1624, %1385 : vector<2x64xf32>
    %cst_459 = arith.constant dense<0.000000e+00> : vector<2xf32>
    %2411 = vector.multi_reduction <add>, %2410, %cst_459 [1] : vector<2x64xf32> to vector<2xf32>
    %2412 = vector.shape_cast %2411 : vector<2xf32> to vector<2x1xf32>
    %2413 = arith.mulf %1624, %1386 : vector<2x64xf32>
    %cst_460 = arith.constant dense<0.000000e+00> : vector<2xf32>
    %2414 = vector.multi_reduction <add>, %2413, %cst_460 [1] : vector<2x64xf32> to vector<2xf32>
    %2415 = vector.shape_cast %2414 : vector<2xf32> to vector<2x1xf32>
    %2416 = arith.mulf %1624, %1387 : vector<2x64xf32>
    %cst_461 = arith.constant dense<0.000000e+00> : vector<2xf32>
    %2417 = vector.multi_reduction <add>, %2416, %cst_461 [1] : vector<2x64xf32> to vector<2xf32>
    %2418 = vector.shape_cast %2417 : vector<2xf32> to vector<2x1xf32>
    %2419 = arith.mulf %1624, %1388 : vector<2x64xf32>
    %cst_462 = arith.constant dense<0.000000e+00> : vector<2xf32>
    %2420 = vector.multi_reduction <add>, %2419, %cst_462 [1] : vector<2x64xf32> to vector<2xf32>
    %2421 = vector.shape_cast %2420 : vector<2xf32> to vector<2x1xf32>
    %2422 = arith.mulf %1624, %1389 : vector<2x64xf32>
    %cst_463 = arith.constant dense<0.000000e+00> : vector<2xf32>
    %2423 = vector.multi_reduction <add>, %2422, %cst_463 [1] : vector<2x64xf32> to vector<2xf32>
    %2424 = vector.shape_cast %2423 : vector<2xf32> to vector<2x1xf32>
    %2425 = arith.mulf %1624, %1390 : vector<2x64xf32>
    %cst_464 = arith.constant dense<0.000000e+00> : vector<2xf32>
    %2426 = vector.multi_reduction <add>, %2425, %cst_464 [1] : vector<2x64xf32> to vector<2xf32>
    %2427 = vector.shape_cast %2426 : vector<2xf32> to vector<2x1xf32>
    %2428 = arith.maximumf %2406, %2409 : vector<2x1xf32>
    %2429 = arith.maximumf %2428, %2412 : vector<2x1xf32>
    %2430 = arith.maximumf %2429, %2415 : vector<2x1xf32>
    %2431 = arith.maximumf %2430, %2418 : vector<2x1xf32>
    %2432 = arith.maximumf %2431, %2421 : vector<2x1xf32>
    %2433 = arith.maximumf %2432, %2424 : vector<2x1xf32>
    %2434 = arith.maximumf %2433, %2427 : vector<2x1xf32>
    %2435 = arith.subf %2406, %2434 : vector<2x1xf32>
    %2436 = math.exp %2435 : vector<2x1xf32>
    %2437 = arith.subf %2409, %2434 : vector<2x1xf32>
    %2438 = math.exp %2437 : vector<2x1xf32>
    %2439 = arith.subf %2412, %2434 : vector<2x1xf32>
    %2440 = math.exp %2439 : vector<2x1xf32>
    %2441 = arith.subf %2415, %2434 : vector<2x1xf32>
    %2442 = math.exp %2441 : vector<2x1xf32>
    %2443 = arith.subf %2418, %2434 : vector<2x1xf32>
    %2444 = math.exp %2443 : vector<2x1xf32>
    %2445 = arith.subf %2421, %2434 : vector<2x1xf32>
    %2446 = math.exp %2445 : vector<2x1xf32>
    %2447 = arith.subf %2424, %2434 : vector<2x1xf32>
    %2448 = math.exp %2447 : vector<2x1xf32>
    %2449 = arith.subf %2427, %2434 : vector<2x1xf32>
    %2450 = math.exp %2449 : vector<2x1xf32>
    %2451 = arith.addf %2436, %2438 : vector<2x1xf32>
    %2452 = arith.addf %2451, %2440 : vector<2x1xf32>
    %2453 = arith.addf %2452, %2442 : vector<2x1xf32>
    %2454 = arith.addf %2453, %2444 : vector<2x1xf32>
    %2455 = arith.addf %2454, %2446 : vector<2x1xf32>
    %2456 = arith.addf %2455, %2448 : vector<2x1xf32>
    %2457 = arith.addf %2456, %2450 : vector<2x1xf32>
    %2458 = tpu.reciprocal %2457 {approx = true} : vector<2x1xf32> -> vector<2x1xf32>
    %2459 = arith.mulf %2436, %2458 : vector<2x1xf32>
    %2460 = vector.broadcast %2459 : vector<2x1xf32> to vector<2x64xf32>
    %2461 = arith.mulf %2460, %1383 : vector<2x64xf32>
    %2462 = arith.mulf %2438, %2458 : vector<2x1xf32>
    %2463 = vector.broadcast %2462 : vector<2x1xf32> to vector<2x64xf32>
    %2464 = arith.mulf %2463, %1384 : vector<2x64xf32>
    %2465 = arith.addf %2461, %2464 : vector<2x64xf32>
    %2466 = arith.mulf %2440, %2458 : vector<2x1xf32>
    %2467 = vector.broadcast %2466 : vector<2x1xf32> to vector<2x64xf32>
    %2468 = arith.mulf %2467, %1385 : vector<2x64xf32>
    %2469 = arith.addf %2465, %2468 : vector<2x64xf32>
    %2470 = arith.mulf %2442, %2458 : vector<2x1xf32>
    %2471 = vector.broadcast %2470 : vector<2x1xf32> to vector<2x64xf32>
    %2472 = arith.mulf %2471, %1386 : vector<2x64xf32>
    %2473 = arith.addf %2469, %2472 : vector<2x64xf32>
    %2474 = arith.mulf %2444, %2458 : vector<2x1xf32>
    %2475 = vector.broadcast %2474 : vector<2x1xf32> to vector<2x64xf32>
    %2476 = arith.mulf %2475, %1387 : vector<2x64xf32>
    %2477 = arith.addf %2473, %2476 : vector<2x64xf32>
    %2478 = arith.mulf %2446, %2458 : vector<2x1xf32>
    %2479 = vector.broadcast %2478 : vector<2x1xf32> to vector<2x64xf32>
    %2480 = arith.mulf %2479, %1388 : vector<2x64xf32>
    %2481 = arith.addf %2477, %2480 : vector<2x64xf32>
    %2482 = arith.mulf %2448, %2458 : vector<2x1xf32>
    %2483 = vector.broadcast %2482 : vector<2x1xf32> to vector<2x64xf32>
    %2484 = arith.mulf %2483, %1389 : vector<2x64xf32>
    %2485 = arith.addf %2481, %2484 : vector<2x64xf32>
    %2486 = arith.mulf %2450, %2458 : vector<2x1xf32>
    %2487 = vector.broadcast %2486 : vector<2x1xf32> to vector<2x64xf32>
    %2488 = arith.mulf %2487, %1390 : vector<2x64xf32>
    %2489 = arith.addf %2485, %2488 : vector<2x64xf32>
    %2490 = arith.truncf %2489 : vector<2x64xf32> to vector<2x64xbf16>
    %cst_465 = arith.constant dense<0.000000e+00> : vector<2x64xf32>
    %2491 = tpu.matmul %2490, %1625, %cst_465 {dimension_numbers = #tpu.dot_dimension_numbers<[1], [0], [0], [1], [0, 0, 1, 1], [], []>} : vector<2x64xbf16>, vector<64x64xbf16>, vector<2x64xf32> -> vector<2x64xf32>
    %2492 = arith.addf %2491, %1631 : vector<2x64xf32>
    %2493 = arith.truncf %2492 : vector<2x64xf32> to vector<2x64xbf16>
    %cst_466 = arith.constant dense<0.000000e+00> : vector<2x64xf32>
    %2494 = tpu.matmul %2493, %1626, %cst_466 {dimension_numbers = #tpu.dot_dimension_numbers<[1], [0], [0], [1], [0, 0, 1, 1], [], []>} : vector<2x64xbf16>, vector<64x64xbf16>, vector<2x64xf32> -> vector<2x64xf32>
    %2495 = arith.addf %2494, %1634 : vector<2x64xf32>
    %2496 = arith.truncf %1390 : vector<2x64xf32> to vector<2x64xbf16>
    %cst_467 = arith.constant dense<0.000000e+00> : vector<2x64xf32>
    %2497 = tpu.matmul %2496, %1627, %cst_467 {dimension_numbers = #tpu.dot_dimension_numbers<[1], [0], [0], [1], [0, 0, 1, 1], [], []>} : vector<2x64xbf16>, vector<64x64xbf16>, vector<2x64xf32> -> vector<2x64xf32>
    %2498 = arith.addf %2497, %1637 : vector<2x64xf32>
    %2499 = arith.addf %2495, %2498 : vector<2x64xf32>
    %2500 = arith.negf %2499 : vector<2x64xf32>
    %2501 = math.exp %2500 : vector<2x64xf32>
    %cst_468 = arith.constant 1.000000e+00 : f32
    %2502 = vector.broadcast %cst_468 : f32 to vector<2x64xf32>
    %2503 = arith.addf %2502, %2501 : vector<2x64xf32>
    %2504 = arith.divf %2502, %2503 : vector<2x64xf32>
    %2505 = arith.mulf %2492, %2504 : vector<2x64xf32>
    %2506 = arith.addf %2505, %1390 : vector<2x64xf32>
    %2507 = arith.truncf %2506 : vector<2x64xf32> to vector<2x64xbf16>
    %cst_469 = arith.constant dense<0.000000e+00> : vector<2x5xf32>
    %2508 = tpu.matmul %2507, %1628, %cst_469 {dimension_numbers = #tpu.dot_dimension_numbers<[1], [0], [0], [1], [0, 0, 1, 1], [], []>} : vector<2x64xbf16>, vector<64x5xbf16>, vector<2x5xf32> -> vector<2x5xf32>
    %2509 = arith.addf %2508, %1640 : vector<2x5xf32>
    %c7_470 = arith.constant 7 : index
    %c0_471 = arith.constant 0 : index
    %c0_472 = arith.constant 0 : index
    %2510 = vector.load %arg22[%c7_470, %c0_471, %c0_472] : memref<8x2x5xf32, #tpu.memory_space<vmem>>, vector<1x2x5xf32>
    %2511 = vector.shape_cast %2510 : vector<1x2x5xf32> to vector<2x5xf32>
    %2512 = vector.shape_cast %2509 : vector<2x5xf32> to vector<1x2x5xf32>
    tpu.vector_store %arg22[%c7_470, %c0_471, %c0_472], %2512 {strides = array<i32>} : memref<8x2x5xf32, #tpu.memory_space<vmem>>, vector<1x2x5xf32>,
    return
  }
}

</mosaic_0001>

<bundles_post_ra>
// kernel: custom-call.4
= control target key start
LH: loop header
LB: loop body
LE: loop exit
PB: predicated region body
PF: predicated region fallthrough
CT: control target
= control target key end

     0   :  { %s6_s0 = inlined_call_operand.vmem [shape: s32[7,2,5], index: 0, kind: output, shape index: {}]  }

// kernel: grusaie_forward.1
= control target key start
LH: loop header
LB: loop body
LE: loop exit
PB: predicated region body
PF: predicated region fallthrough
CT: control target
= control target key end

     0   :  { %v12702_v0 = vmov 0.0   ;;  %vm9779_vm0 = vmmov 0   ;;  %v12704_v3 = vmov 0   ;;  %vm115_vm1 = vcmask 130048   ;;  %s12673_s2 = inlined_call_operand.vmem [shape: bf16[2,16,96], index: 2, kind: input, shape index: {}]   ;;  %s12674_s0 = inlined_call_operand.vmem [shape: f32[8,2,16], index: 0, kind: input, shape index: {}]   ;;  %s12675_s3 = inlined_call_operand.vmem [shape: bf16[2,32,96], index: 3, kind: input, shape index: {}]   ;;  %s12676_s1 = inlined_call_operand.vmem [shape: s32[2,1], index: 1, kind: input, shape index: {}]   ;;  %s12677_s5 = inlined_call_operand.vmem [shape: f32[2,1,96], index: 5, kind: input, shape index: {}]   ;;  %s12678_s4 = inlined_call_operand.vmem [shape: f32[2,1,96], index: 4, kind: input, shape index: {}]   ;;  %s12679_s6 = inlined_call_operand.vmem [shape: bf16[2,64,96], index: 6, kind: input, shape index: {}]   ;;  %s12680_s7 = inlined_call_operand.vmem [shape: bf16[2,32,96], index: 7, kind: input, shape index: {}]   ;;  %s12681_s9 = inlined_call_operand.vmem [shape: f32[2,1,96], index: 9, kind: input, shape index: {}]   ;;  %s12682_s8 = inlined_call_operand.vmem [shape: f32[2,1,96], index: 8, kind: input, shape index: {}]   ;;  %s12683_s10 = inlined_call_operand.vmem [shape: bf16[64,192], index: 10, kind: input, shape index: {}]   ;;  %s12684_s11 = inlined_call_operand.vmem [shape: bf16[64,192], index: 11, kind: input, shape index: {}]   ;;  %s12685_s13 = inlined_call_operand.vmem [shape: f32[1,192], index: 13, kind: input, shape index: {}]   ;;  %s12686_s12 = inlined_call_operand.vmem [shape: f32[1,192], index: 12, kind: input, shape index: {}]   ;;  %s12687_s14 = inlined_call_operand.vmem [shape: bf16[64,64], index: 14, kind: input, shape index: {}]   ;;  %s12688_s16 = inlined_call_operand.vmem [shape: bf16[64,64], index: 16, kind: input, shape index: {}]   ;;  %s12689_s18 = inlined_call_operand.vmem [shape: bf16[64,64], index: 18, kind: input, shape index: {}]   ;;  %s12690_s15 = inlined_call_operand.vmem [shape: f32[1,64], index: 15, kind: input, shape index: {}]   ;;  %s12691_s20 = inlined_call_operand.vmem [shape: bf16[64,5], index: 20, kind: input, shape index: {}]   ;;  %s12692_s17 = inlined_call_operand.vmem [shape: f32[1,64], index: 17, kind: input, shape index: {}]   ;;  %s12693_s19 = inlined_call_operand.vmem [shape: f32[1,64], index: 19, kind: input, shape index: {}]   ;;  %s12694_s21 = inlined_call_operand.vmem [shape: f32[1,5], index: 21, kind: input, shape index: {}]   ;;  %s12695_s22 = inlined_call_operand.vmem [shape: f32[8,2,5], index: 22, kind: output, shape index: {}]  }
   0x1   :  { %12715 = sst [smem:[#allocation10_spill]] %s12673_s2  ;;  %8292 = vmatprep.subr.bf16.mxu0 %v12702_v0  ;;  %8294 = vmatprep.mubr.msk.bf16.mxu0 %vm9779_vm0, %v12702_v0  ;;  %vm479_vm4 = vcmask 261120  }
   0x2   :  { %12716 = sst [smem:[#allocation11_spill]] %s12674_s0  ;;  %s12722_s29 = sld [smem:[#allocation10_spill]]  ;;  %9273 = vset.pattern.permute.xlu1 %v12704_v3  ;;  %8298 = vmatprep.subr.bf16.mxu1 %v12702_v0 }
   0x3   :  { %12717 = sst [smem:[#allocation12_spill]] %s12675_s3  ;;  %s12723_s2 = sld [smem:[#allocation11_spill]]  ;;  %8300 = vmatprep.mubr.msk.bf16.mxu1 %vm9779_vm0, %v12702_v0  ;;  %9274 = vset.pattern.permute.xlu0 %v12704_v3 }
   0x4   :  { %12718 = sst [smem:[#allocation13_spill]] %s12676_s1  ;;  %s12724_s27 = sld [smem:[#allocation12_spill]] }
   0x5   :  { %12719 = sst [smem:[#allocation14_spill]] %s12677_s5  ;;  %s12725_s23 = sld [smem:[#allocation13_spill]] }
   0x6   :  { %12720 = sst [smem:[#allocation15_spill]] %s12678_s4  ;;  %s12726_s24 = sld [smem:[#allocation14_spill]] }
   0x7   :  { %12721 = sst [smem:[#allocation16_spill]] %s12679_s6  ;;  %s9781_s6 = smov 64  }
   0x8   :  { %v9902_v1 = vld [vmem:[%s12722_s29] sm:$0xff]   ;;  %s12727_s3 = sld [smem:[#allocation15_spill]]  ;;  %s12728_s1 = sld [smem:[#allocation16_spill]] }
   0x9   :  { %v73_v2 = vld [vmem:[%s12723_s2] sm:$0x3]  ;;  %8293 = vmatpush3.bf16.msra.mxu0 %v9902_v1  ;;  %8299 = vmatpush3.bf16.msra.mxu1 %v9902_v1  ;;  %v7675_v5 = vld [vmem:[%s12723_s2 + $0x4] sm:$0x3]  ;;  %v7677_v7 = vld [vmem:[%s12723_s2 + $0x8] sm:$0x3] }
   0xa   :  { %v9912_v4 = vpack.c.bf16 %v73_v2, %v73_v2  ;;  %8304 = vmatprep.subr.bf16.mxu0 %v12702_v0  ;;  %8310 = vmatprep.subr.bf16.mxu1 %v12702_v0  ;;  %v9929_v6 = vpack.c.bf16 %v7675_v5, %v7675_v5  ;;  %v9940_v8 = vpack.c.bf16 %v7677_v7, %v7677_v7  ;;  %v7679_v9 = vld [vmem:[%s12723_s2 + $0xc] sm:$0x3]  ;;  %v9956_v11 = vld [vmem:[%s12724_s27] sm:$0xff]   ;;  %v7678_v53 = vld [vmem:[%s12723_s2 + $0xa] sm:$0x3] }
   0xb   :  { %v9951_v10 = vpack.c.bf16 %v7679_v9, %v7679_v9  ;;  %v9964_v12 = vld [vmem:[%s12724_s27 + $0x8] sm:$0xff]   ;;  %v9987_v27 = vld [vmem:[%s12725_s23] sm:$0x3]  ;;  %v7674_v48 = vld [vmem:[%s12723_s2 + $0x2] sm:$0x3]  ;;  %s9782_s23 = smov 96   ;;  %v10031_v54 = vpack.c.bf16 %v7678_v53, %v7678_v53 }
   0xc   :  { %8295 = vmatmul.mubr.msk.bf16.vlgmr.msra.gmra.mrb[0].mxu0 %vm115_vm1, %v9912_v4  ;;  %vm549_vm2 = vcmp.gt.s32.totalorder %v9987_v27, 0  ;;  %v9994_v31 = vld [vmem:[%s12726_s24] ss:$0 sm:$0xff]  ;;  %v10008_v49 = vpack.c.bf16 %v7674_v48, %v7674_v48  ;;  %v7676_v50 = vld [vmem:[%s12723_s2 + $0x6] sm:$0x3]  ;;  %vm629_vm5 = vcmp.gt.s32.totalorder %v9987_v27, 1 }
   0xd   :  { %8305 = vmatpush3.bf16.msra.mxu0 %v9902_v1  ;;  %8306 = vmatprep.mubr.msk.bf16.mxu0 %vm9779_vm0, %v12702_v0  ;;  %v550_v30 = vsel %vm549_vm2, 1, %v12704_v3  ;;  %v10020_v52 = vpack.c.bf16 %v7676_v50, %v7676_v50  ;;  %v7680_v55 = vld [vmem:[%s12723_s2 + $0xe] sm:$0x3]  ;;  %vm710_vm7 = vcmp.gt.s32.totalorder %v9987_v27, 2  ;;  %vm791_vm9 = vcmp.gt.s32.totalorder %v9987_v27, 3 }
   0xe   :  { %8316 = vmatprep.subr.bf16.mxu0 %v12702_v0  ;;  %552 = vperm.xlu1 %9273, %v550_v30   ;;  %v10001_v37 = vld [vmem:[%s12727_s3] ss:$0 sm:$0xff]  ;;  %v10042_v56 = vpack.c.bf16 %v7680_v55, %v7680_v55  ;;  %vm872_vm11 = vcmp.gt.s32.totalorder %v9987_v27, 4  ;;  %vm953_vm13 = vcmp.gt.s32.totalorder %v9987_v27, 5  ;;  %vm1034_vm15 = vcmp.gt.s32.totalorder %v9987_v27, 6 }
   0xf   :  { %8301 = vmatmul.mubr.msk.bf16.vlgmr.msra.gmra.mrb[0].mxu1 %vm115_vm1, %v10008_v49  ;;  %vm1115_vm2 = vcmp.gt.s32.totalorder %v9987_v27, 7 }
  0x10   :  { %8311 = vmatpush3.bf16.msra.mxu1 %v9902_v1  ;;  %8312 = vmatprep.mubr.msk.bf16.mxu1 %vm9779_vm0, %v12702_v0 }
  0x11   :  { %8322 = vmatprep.subr.bf16.mxu1 %v12702_v0 }
  0x14   :  { %8307 = vmatmul.mubr.msk.bf16.vlgmr.msra.gmra.mrb[4].mxu0 %vm115_vm1, %v9929_v6 }
  0x15   :  { %8317 = vmatpush3.bf16.msra.mxu0 %v9902_v1  ;;  %8318 = vmatprep.mubr.msk.bf16.mxu0 %vm9779_vm0, %v12702_v0 }
  0x16   :  { %8328 = vmatprep.subr.bf16.mxu0 %v12702_v0 }
  0x17   :  { %8313 = vmatmul.mubr.msk.bf16.vlgmr.msra.gmra.mrb[4].mxu1 %vm115_vm1, %v10020_v52 }
  0x18   :  { %8323 = vmatpush3.bf16.msra.mxu1 %v9902_v1  ;;  %8324 = vmatprep.mubr.msk.bf16.mxu1 %vm9779_vm0, %v12702_v0 }
  0x19   :  { %8334 = vmatprep.subr.bf16.mxu1 %v12702_v0 }
  0x1c   :  { %8319 = vmatmul.mubr.msk.bf16.vlgmr.msra.gmra.mrb[8].mxu0 %vm115_vm1, %v9940_v8 }
  0x1d   :  { %8329 = vmatpush3.bf16.msra.mxu0 %v9902_v1  ;;  %8330 = vmatprep.mubr.msk.bf16.mxu0 %vm9779_vm0, %v12702_v0 }
  0x1e   :  { %8340 = vmatprep.subr.bf16.mxu0 %v12702_v0 }
  0x1f   :  { %8325 = vmatmul.mubr.msk.bf16.vlgmr.msra.gmra.mrb[8].mxu1 %vm115_vm1, %v10031_v54 }
  0x20   :  { %8335 = vmatpush3.bf16.msra.mxu1 %v9902_v1  ;;  %8336 = vmatprep.mubr.msk.bf16.mxu1 %vm9779_vm0, %v12702_v0 }
  0x21   :  { %8348 = vmatprep.subr.bf16.mxu1 %v12702_v0 }
  0x24   :  { %8331 = vmatmul.mubr.msk.bf16.vlgmr.msra.gmra.mrb[12].mxu0 %vm115_vm1, %v9951_v10 }
  0x25   :  { %8341 = vmatpush3.bf16.msra.mxu0 %v9956_v11  ;;  %8344 = vmatprep.mubr.msk.bf16.mxu0 %vm9779_vm0, %v12702_v0 }
  0x26   :  { %8342 = vmatprep.subr.bf16.mxu0 %v12702_v0 }
  0x27   :  { %8337 = vmatmul.mubr.msk.bf16.vlgmr.msra.gmra.mrb[12].mxu1 %vm115_vm1, %v10042_v56 }
  0x28   :  { %8349 = vmatpush3.bf16.msra.mxu1 %v9956_v11  ;;  %8352 = vmatprep.mubr.msk.bf16.mxu1 %vm9779_vm0, %v12702_v0 }
  0x29   :  { %8343 = vmatpush3.bf16.msra.mxu0 %v9964_v12  ;;  %8350 = vmatprep.subr.bf16.mxu1 %v12702_v0 }
  0x2a   :  { %8356 = vmatprep.subr.bf16.mxu0 %v12702_v0 }
  0x2c   :  { %8345 = vmatmul.mubr.bf16.vlgmr.msra.gmra.mrb[16].mxu0 %v12704_v3  ;;  %8351 = vmatpush3.bf16.msra.mxu1 %v9964_v12 }
  0x2d   :  { %8357 = vmatpush3.bf16.msra.mxu0 %v9956_v11  ;;  %8360 = vmatprep.mubr.msk.bf16.mxu0 %vm9779_vm0, %v12702_v0 }
  0x2e   :  { %8358 = vmatprep.subr.bf16.mxu0 %v12702_v0  ;;  %8364 = vmatprep.subr.bf16.mxu1 %v12702_v0 }
  0x31   :  { %8359 = vmatpush3.bf16.msra.mxu0 %v9964_v12 }
  0x32   :  { %8372 = vmatprep.subr.bf16.mxu0 %v12702_v0 }
  0x8d   :  { %v10052_v57 = vpop.permute.xlu1 %552 }
  0x8e   :  { %vm554_vm3 = vcmp.eq.s32.totalorder %v10052_v57, 1 }
  0xdf   :  { %v153_v13 = vpop.f32.mrb[0].mxu0 }
  0xe0   :  { %v8296_v14 = vpop.f32.mrb[1].mxu0  ;;  %v154_v38 = vadd.f32 %v10001_v37, %v153_v13 }
  0xe1   :  { %v156_v15 = vpop.f32.mrb[2].mxu0 }
  0xe2   :  { %v8297_v16 = vpop.f32.mrb[3].mxu0  ;;  %v197_v2 = vpop.f32.mrb[0].mxu1 }
  0xe3   :  { %v8302_v5 = vpop.f32.mrb[1].mxu1 }
  0xe4   :  { %v200_v7 = vpop.f32.mrb[2].mxu1 }
  0xe5   :  { %v8303_v9 = vpop.f32.mrb[3].mxu1 }
  0xe7   :  { %v9978_v17 = vpop.f32.mrb[4].mxu0 }
  0xe8   :  { %v8308_v18 = vpop.f32.mrb[5].mxu0 }
  0xe9   :  { %v244_v19 = vpop.f32.mrb[6].mxu0 }
  0xea   :  { %v8309_v20 = vpop.f32.mrb[7].mxu0  ;;  %v10062_v13 = vpop.f32.mrb[4].mxu1 }
  0xeb   :  { %v8314_v14 = vpop.f32.mrb[5].mxu1 }
  0xec   :  { %v288_v15 = vpop.f32.mrb[6].mxu1  ;;  %v242_v14 = vadd.f32 %v10001_v37, %v9978_v17 }
  0xed   :  { %v8315_v16 = vpop.f32.mrb[7].mxu1 }
  0xef   :  { %v9980_v21 = vpop.f32.mrb[8].mxu0 }
  0xf0   :  { %v8320_v22 = vpop.f32.mrb[9].mxu0 }
  0xf1   :  { %v332_v23 = vpop.f32.mrb[10].mxu0 }
  0xf2   :  { %v8321_v24 = vpop.f32.mrb[11].mxu0  ;;  %v10064_v18 = vpop.f32.mrb[8].mxu1 }
  0xf3   :  { %v8326_v19 = vpop.f32.mrb[9].mxu1 }
  0xf4   :  { %v376_v20 = vpop.f32.mrb[10].mxu1 }
  0xf5   :  { %v8327_v22 = vpop.f32.mrb[11].mxu1 }
  0xf6   :  { %v711_v22 = vsel %vm710_vm7, 1, %v12704_v3  ;;  %vm2166_vm7 = vcmask 523264  }
  0xf7   :  { %v9982_v25 = vpop.f32.mrb[12].mxu0 }
  0xf8   :  { %v8332_v26 = vpop.f32.mrb[13].mxu0 }
  0xf9   :  { %v420_v28 = vpop.f32.mrb[14].mxu0 }
  0xfa   :  { %v8333_v29 = vpop.f32.mrb[15].mxu0  ;;  %v10066_v23 = vpop.f32.mrb[12].mxu1 }
  0xfb   :  { %v8338_v24 = vpop.f32.mrb[13].mxu1 }
  0xfc   :  { %v464_v26 = vpop.f32.mrb[14].mxu1 }
  0xfd   :  { %v8339_v28 = vpop.f32.mrb[15].mxu1 }
  0xff   :  { %v517_v32 = vpop.f32.mrb[16].mxu0 }
 0x100   :  { %v518_v33 = vadd.f32 %v9994_v31, %v517_v32  ;;  %v8346_v34 = vpop.f32.mrb[17].mxu0 }
 0x101   :  { %v520_v35 = vpop.f32.mrb[18].mxu0 }
 0x102   :  { %531 = vrot.lane.b32.xlu0 %v518_v33, %s9781_s6  ;;  %v8347_v36 = vpop.f32.mrb[19].mxu0  ;;  %v523_v39 = vadd.f32 %v518_v33, %v154_v38 }
 0x103   :  { %v630_v36 = vsel %vm629_vm5, 1, %v12704_v3 }
 0x104   :  { %v7694_v40 = vmul.f32 -1.442695, %v523_v39 }
 0x106   :  { %9333 = vpow2.f32 %v7694_v40 }
 0x110   :  { %v9334_v41 = vpop.eup %9333 }
 0x111   :  { %v527_v42 = vadd.f32 1.0, %v9334_v41 }
 0x113   :  { %9335 = vrcp.f32 %v527_v42 }
 0x11d   :  { %v9336_v43 = vpop.eup %9335 }
 0x11e   :  { %v541_v58 = vsub.f32 1.0, %v9336_v43  ;;  %v547_v60 = vmul.f32 0.0, %v9336_v43 }
 0x174   :  { %v532_v44 = vpop.permute.xlu0 %531 }
 0x175   :  { %v534_v45 = vmul.f32 %v9336_v43, %v532_v44 }
 0x177   :  { %536 = vrot.lane.b32.xlu0 %v534_v45, %s9781_s6 }
 0x1e9   :  { %v537_v46 = vpop.permute.xlu0 %536 }
 0x1ea   :  { %v539_v47 = vadd.f32 %v537_v46, %v154_v38  ;;  %v198_v38 = vadd.f32 %v10001_v37, %v197_v2 }
 0x1ec   :  { %9337 = vtanh.f32 %v539_v47 }
 0x1f6   :  { %v9338_v51 = vpop.eup %9337 }
 0x1f7   :  { %543 = vrot.lane.b32.xlu1 %v9338_v51, %s9782_s23 }
 0x269   :  { %v544_v59 = vpop.permute.xlu1 %543 }
 0x26a   :  { %v546_v61 = vmul.f32 %v544_v59, %v541_v58 }
 0x26c   :  { %v548_v62 = vadd.f32 %v547_v60, %v546_v61 }
 0x26e   :  { %v10057_v63 = vsel %vm554_vm3, %v548_v62, 0.0 }
 0x26f   :  { %v556_v1 = vpack.c.bf16 %v10057_v63, %v10057_v63 }
 0x271   :  { %558 = vrot.lane.b32.xlu0 %v556_v1, %s9782_s23 }
 0x2e3   :  { %v559_v29 = vpop.permute.xlu0 %558 }
 0x2e4   :  { %8353 = vmatmul.mubr.msk.bf16.vlgmr.msra.gmra.mrb[16].mxu1 %vm479_vm4, %v559_v29 }
 0x2e5   :  { %8365 = vmatpush3.bf16.msra.mxu1 %v9956_v11  ;;  %8368 = vmatprep.mubr.msk.bf16.mxu1 %vm9779_vm0, %v12702_v0 }
 0x2e6   :  { %8366 = vmatprep.subr.bf16.mxu1 %v12702_v0 }
 0x2e9   :  { %8367 = vmatpush3.bf16.msra.mxu1 %v9964_v12 }
 0x2ea   :  { %8380 = vmatprep.subr.bf16.mxu1 %v12702_v0 }
 0x3b7   :  { %v597_v30 = vpop.f32.mrb[16].mxu1 }
 0x3b8   :  { %v598_v32 = vadd.f32 %v9994_v31, %v597_v30  ;;  %v8354_v33 = vpop.f32.mrb[17].mxu1 }
 0x3b9   :  { %v600_v34 = vpop.f32.mrb[18].mxu1 }
 0x3ba   :  { %611 = vrot.lane.b32.xlu1 %v598_v32, %s9781_s6  ;;  %v8355_v35 = vpop.f32.mrb[19].mxu1  ;;  %v603_v39 = vadd.f32 %v598_v32, %v198_v38 }
 0x3bc   :  { %v7696_v40 = vmul.f32 -1.442695, %v603_v39 }
 0x3be   :  { %632 = vperm.xlu1 %9273, %v630_v36   ;;  %9339 = vpow2.f32 %v7696_v40 }
 0x3c8   :  { %v9340_v41 = vpop.eup %9339 }
 0x3c9   :  { %v607_v42 = vadd.f32 1.0, %v9340_v41 }
 0x3cb   :  { %9341 = vrcp.f32 %v607_v42 }
 0x3d5   :  { %v9342_v43 = vpop.eup %9341 }
 0x3d6   :  { %v621_v50 = vsub.f32 1.0, %v9342_v43  ;;  %v627_v55 = vmul.f32 %v9342_v43, %v10057_v63 }
 0x42c   :  { %v612_v44 = vpop.permute.xlu1 %611 }
 0x42d   :  { %v614_v45 = vmul.f32 %v9342_v43, %v612_v44 }
 0x42f   :  { %616 = vrot.lane.b32.xlu0 %v614_v45, %s9781_s6 }
 0x43d   :  { %v10082_v53 = vpop.permute.xlu1 %632 }
 0x43e   :  { %vm634_vm6 = vcmp.eq.s32.totalorder %v10082_v53, 1 }
 0x4a1   :  { %v617_v46 = vpop.permute.xlu0 %616 }
 0x4a2   :  { %v619_v47 = vadd.f32 %v617_v46, %v198_v38 }
 0x4a4   :  { %9343 = vtanh.f32 %v619_v47  ;;  %v792_v47 = vsel %vm791_vm9, 1, %v12704_v3 }
 0x4ae   :  { %v9344_v48 = vpop.eup %9343 }
 0x4af   :  { %623 = vrot.lane.b32.xlu0 %v9344_v48, %s9782_s23  ;;  %v286_v48 = vadd.f32 %v10001_v37, %v10062_v13 }
 0x521   :  { %v624_v51 = vpop.permute.xlu0 %623 }
 0x522   :  { %v626_v58 = vmul.f32 %v624_v51, %v621_v50 }
 0x524   :  { %v10085_v59 = vadd.f32 %v627_v55, %v626_v58 }
 0x526   :  { %v635_v60 = vsel %vm634_vm6, %v10085_v59, %v10057_v63 }
 0x527   :  { %v637_v61 = vpack.c.bf16 %v635_v60, %v635_v60 }
 0x529   :  { %639 = vrot.lane.b32.xlu1 %v637_v61, %s9782_s23 }
 0x59b   :  { %v640_v62 = vpop.permute.xlu1 %639 }
 0x59c   :  { %8361 = vmatmul.mubr.msk.bf16.vlgmr.msra.gmra.mrb[20].mxu0 %vm479_vm4, %v640_v62 }
 0x59d   :  { %8373 = vmatpush3.bf16.msra.mxu0 %v9956_v11  ;;  %8376 = vmatprep.mubr.msk.bf16.mxu0 %vm9779_vm0, %v12702_v0 }
 0x59e   :  { %8374 = vmatprep.subr.bf16.mxu0 %v12702_v0 }
 0x5a1   :  { %8375 = vmatpush3.bf16.msra.mxu0 %v9964_v12 }
 0x5a2   :  { %8388 = vmatprep.subr.bf16.mxu0 %v12702_v0 }
 0x66f   :  { %v678_v1 = vpop.f32.mrb[20].mxu0 }
 0x670   :  { %v679_v2 = vadd.f32 %v9994_v31, %v678_v1  ;;  %v8362_v5 = vpop.f32.mrb[21].mxu0 }
 0x671   :  { %v681_v7 = vpop.f32.mrb[22].mxu0 }
 0x672   :  { %692 = vrot.lane.b32.xlu0 %v679_v2, %s9781_s6  ;;  %v8363_v9 = vpop.f32.mrb[23].mxu0  ;;  %v684_v15 = vadd.f32 %v679_v2, %v242_v14 }
 0x674   :  { %v7698_v16 = vmul.f32 -1.442695, %v684_v15 }
 0x676   :  { %9345 = vpow2.f32 %v7698_v16  ;;  %713 = vperm.xlu0 %9274, %v711_v22  }
 0x680   :  { %v9346_v19 = vpop.eup %9345 }
 0x681   :  { %v688_v20 = vadd.f32 1.0, %v9346_v19 }
 0x683   :  { %9347 = vrcp.f32 %v688_v20 }
 0x68d   :  { %v9348_v24 = vpop.eup %9347 }
 0x68e   :  { %v702_v32 = vsub.f32 1.0, %v9348_v24  ;;  %v708_v35 = vmul.f32 %v9348_v24, %v635_v60 }
 0x6e4   :  { %v693_v26 = vpop.permute.xlu0 %692 }
 0x6e5   :  { %v695_v28 = vmul.f32 %v9348_v24, %v693_v26 }
 0x6e7   :  { %697 = vrot.lane.b32.xlu1 %v695_v28, %s9781_s6 }
 0x6f5   :  { %v10108_v33 = vpop.permute.xlu0 %713 }
 0x6f6   :  { %vm715_vm8 = vcmp.eq.s32.totalorder %v10108_v33, 1 }
 0x759   :  { %v698_v29 = vpop.permute.xlu1 %697 }
 0x75a   :  { %v700_v30 = vadd.f32 %v698_v29, %v242_v14 }
 0x75c   :  { %9349 = vtanh.f32 %v700_v30 }
 0x766   :  { %v9350_v17 = vpop.eup %9349 }
 0x767   :  { %704 = vrot.lane.b32.xlu1 %v9350_v17, %s9782_s23  ;;  %v873_v17 = vsel %vm872_vm11, 1, %v12704_v3 }
 0x7d9   :  { %v705_v34 = vpop.permute.xlu1 %704 }
 0x7da   :  { %v707_v36 = vmul.f32 %v705_v34, %v702_v32  ;;  %v330_v32 = vadd.f32 %v10001_v37, %v9980_v21 }
 0x7dc   :  { %v10111_v38 = vadd.f32 %v708_v35, %v707_v36 }
 0x7de   :  { %v716_v39 = vsel %vm715_vm8, %v10111_v38, %v635_v60 }
 0x7df   :  { %v718_v40 = vpack.c.bf16 %v716_v39, %v716_v39 }
 0x7e1   :  { %720 = vrot.lane.b32.xlu1 %v718_v40, %s9782_s23 }
 0x853   :  { %v721_v41 = vpop.permute.xlu1 %720 }
 0x854   :  { %8369 = vmatmul.mubr.msk.bf16.vlgmr.msra.gmra.mrb[20].mxu1 %vm479_vm4, %v721_v41 }
 0x855   :  { %8381 = vmatpush3.bf16.msra.mxu1 %v9956_v11  ;;  %8384 = vmatprep.mubr.msk.bf16.mxu1 %vm9779_vm0, %v12702_v0 }
 0x856   :  { %8382 = vmatprep.subr.bf16.mxu1 %v12702_v0 }
 0x859   :  { %8383 = vmatpush3.bf16.msra.mxu1 %v9964_v12 }
 0x85a   :  { %8396 = vmatprep.subr.bf16.mxu1 %v12702_v0 }
 0x927   :  { %v759_v42 = vpop.f32.mrb[20].mxu1 }
 0x928   :  { %v760_v43 = vadd.f32 %v9994_v31, %v759_v42  ;;  %v8370_v44 = vpop.f32.mrb[21].mxu1 }
 0x929   :  { %v762_v45 = vpop.f32.mrb[22].mxu1 }
 0x92a   :  { %773 = vrot.lane.b32.xlu0 %v760_v43, %s9781_s6  ;;  %v8371_v46 = vpop.f32.mrb[23].mxu1  ;;  %v765_v50 = vadd.f32 %v760_v43, %v286_v48 }
 0x92c   :  { %v7700_v51 = vmul.f32 -1.442695, %v765_v50 }
 0x92e   :  { %794 = vperm.xlu0 %9274, %v792_v47   ;;  %9351 = vpow2.f32 %v7700_v51 }
 0x938   :  { %v9352_v55 = vpop.eup %9351 }
 0x939   :  { %v769_v58 = vadd.f32 1.0, %v9352_v55 }
 0x93b   :  { %9353 = vrcp.f32 %v769_v58 }
 0x945   :  { %v9354_v60 = vpop.eup %9353 }
 0x946   :  { %v783_v7 = vsub.f32 1.0, %v9354_v60  ;;  %v789_v14 = vmul.f32 %v9354_v60, %v716_v39 }
 0x99c   :  { %v774_v61 = vpop.permute.xlu0 %773 }
 0x99d   :  { %v776_v62 = vmul.f32 %v9354_v60, %v774_v61 }
 0x99f   :  { %778 = vrot.lane.b32.xlu1 %v776_v62, %s9781_s6 }
 0x9ad   :  { %v10132_v13 = vpop.permute.xlu0 %794 }
 0x9ae   :  { %vm796_vm10 = vcmp.eq.s32.totalorder %v10132_v13, 1 }
 0xa11   :  { %v779_v1 = vpop.permute.xlu1 %778 }
 0xa12   :  { %v781_v2 = vadd.f32 %v779_v1, %v286_v48 }
 0xa14   :  { %9355 = vtanh.f32 %v781_v2 }
 0xa1e   :  { %v9356_v5 = vpop.eup %9355 }
 0xa1f   :  { %785 = vrot.lane.b32.xlu1 %v9356_v5, %s9782_s23 }
 0xa91   :  { %v786_v9 = vpop.permute.xlu1 %785 }
 0xa92   :  { %v788_v15 = vmul.f32 %v786_v9, %v783_v7  ;;  %v374_v7 = vadd.f32 %v10001_v37, %v10064_v18 }
 0xa94   :  { %v10134_v16 = vadd.f32 %v789_v14, %v788_v15 }
 0xa96   :  { %v797_v19 = vsel %vm796_vm10, %v10134_v16, %v716_v39 }
 0xa97   :  { %v799_v20 = vpack.c.bf16 %v797_v19, %v797_v19 }
 0xa99   :  { %801 = vrot.lane.b32.xlu0 %v799_v20, %s9782_s23 }
 0xb0b   :  { %v802_v22 = vpop.permute.xlu0 %801 }
 0xb0c   :  { %8377 = vmatmul.mubr.msk.bf16.vlgmr.msra.gmra.mrb[24].mxu0 %vm479_vm4, %v802_v22 }
 0xb0d   :  { %8389 = vmatpush3.bf16.msra.mxu0 %v9956_v11  ;;  %8392 = vmatprep.mubr.msk.bf16.mxu0 %vm9779_vm0, %v12702_v0 }
 0xb0e   :  { %8390 = vmatprep.subr.bf16.mxu0 %v12702_v0 }
 0xb11   :  { %8391 = vmatpush3.bf16.msra.mxu0 %v9964_v12 }
 0xb12   :  { %8404 = vmatprep.subr.bf16.mxu0 %v12702_v0 }
 0xbdf   :  { %v840_v24 = vpop.f32.mrb[24].mxu0 }
 0xbe0   :  { %v841_v26 = vadd.f32 %v9994_v31, %v840_v24  ;;  %v8378_v28 = vpop.f32.mrb[25].mxu0 }
 0xbe1   :  { %v843_v29 = vpop.f32.mrb[26].mxu0 }
 0xbe2   :  { %854 = vrot.lane.b32.xlu1 %v841_v26, %s9781_s6  ;;  %v8379_v30 = vpop.f32.mrb[27].mxu0  ;;  %v846_v34 = vadd.f32 %v841_v26, %v330_v32 }
 0xbe4   :  { %v7702_v35 = vmul.f32 -1.442695, %v846_v34 }
 0xbe6   :  { %875 = vperm.xlu1 %9273, %v873_v17   ;;  %9357 = vpow2.f32 %v7702_v35 }
 0xbf0   :  { %v9358_v36 = vpop.eup %9357 }
 0xbf1   :  { %v850_v39 = vadd.f32 1.0, %v9358_v36 }
 0xbf3   :  { %9359 = vrcp.f32 %v850_v39 }
 0xbfd   :  { %v9360_v40 = vpop.eup %9359 }
 0xbfe   :  { %v864_v46 = vsub.f32 1.0, %v9360_v40  ;;  %v870_v48 = vmul.f32 %v9360_v40, %v797_v19 }
 0xc54   :  { %v855_v41 = vpop.permute.xlu1 %854 }
 0xc55   :  { %v857_v42 = vmul.f32 %v9360_v40, %v855_v41  ;;  %v10199_v40 = vld [vmem:[%s12722_s29 + $0x8] sm:$0xff]  }
 0xc57   :  { %859 = vrot.lane.b32.xlu0 %v857_v42, %s9781_s6 }
 0xc65   :  { %v10156_v21 = vpop.permute.xlu1 %875 }
 0xc66   :  { %vm877_vm12 = vcmp.eq.s32.totalorder %v10156_v21, 1  ;;  %v12733_v21 = vmov 0  }
 0xcc9   :  { %v860_v43 = vpop.permute.xlu0 %859 }
 0xcca   :  { %v862_v44 = vadd.f32 %v860_v43, %v330_v32 }
 0xccc   :  { %9361 = vtanh.f32 %v862_v44  ;;  %v1035_v44 = vsel %vm1034_vm15, 1, %v12704_v3 }
 0xcd6   :  { %v9362_v45 = vpop.eup %9361 }
 0xcd7   :  { %866 = vrot.lane.b32.xlu0 %v9362_v45, %s9782_s23  ;;  %v418_v45 = vadd.f32 %v10001_v37, %v9982_v25 }
 0xd49   :  { %v867_v47 = vpop.permute.xlu0 %866 }
 0xd4a   :  { %v869_v50 = vmul.f32 %v867_v47, %v864_v46 }
 0xd4c   :  { %v10158_v51 = vadd.f32 %v870_v48, %v869_v50 }
 0xd4e   :  { %v878_v55 = vsel %vm877_vm12, %v10158_v51, %v797_v19 }
 0xd4f   :  { %v880_v58 = vpack.c.bf16 %v878_v55, %v878_v55 }
 0xd51   :  { %882 = vrot.lane.b32.xlu1 %v880_v58, %s9782_s23 }
 0xdc3   :  { %v883_v60 = vpop.permute.xlu1 %882 }
 0xdc4   :  { %8385 = vmatmul.mubr.msk.bf16.vlgmr.msra.gmra.mrb[24].mxu1 %vm479_vm4, %v883_v60 }
 0xdc5   :  { %8397 = vmatpush3.bf16.msra.mxu1 %v9956_v11  ;;  %8400 = vmatprep.mubr.msk.bf16.mxu1 %vm9779_vm0, %v12702_v0  ;;  %v954_v11 = vsel %vm953_vm13, 1, %v12704_v3 }
 0xdc6   :  { %8398 = vmatprep.subr.bf16.mxu1 %v12702_v0 }
 0xdc9   :  { %8399 = vmatpush3.bf16.msra.mxu1 %v9964_v12 }
 0xdca   :  { %8410 = vmatprep.subr.bf16.mxu1 %v12702_v0 }
 0xe97   :  { %v921_v61 = vpop.f32.mrb[24].mxu1 }
 0xe98   :  { %v922_v62 = vadd.f32 %v9994_v31, %v921_v61  ;;  %v8386_v1 = vpop.f32.mrb[25].mxu1 }
 0xe99   :  { %v924_v2 = vpop.f32.mrb[26].mxu1 }
 0xe9a   :  { %935 = vrot.lane.b32.xlu0 %v922_v62, %s9781_s6  ;;  %v8387_v5 = vpop.f32.mrb[27].mxu1  ;;  %v927_v9 = vadd.f32 %v922_v62, %v374_v7 }
 0xe9c   :  { %v7704_v12 = vmul.f32 -1.442695, %v927_v9 }
 0xe9e   :  { %956 = vperm.xlu0 %9274, %v954_v11   ;;  %9363 = vpow2.f32 %v7704_v12 }
 0xea8   :  { %v9364_v14 = vpop.eup %9363 }
 0xea9   :  { %v931_v15 = vadd.f32 1.0, %v9364_v14 }
 0xeab   :  { %9365 = vrcp.f32 %v931_v15 }
 0xeb5   :  { %v9366_v19 = vpop.eup %9365 }
 0xeb6   :  { %v945_v29 = vsub.f32 1.0, %v9366_v19  ;;  %v951_v17 = vmul.f32 %v9366_v19, %v878_v55 }
 0xf0c   :  { %v936_v20 = vpop.permute.xlu0 %935 }
 0xf0d   :  { %v938_v22 = vmul.f32 %v9366_v19, %v936_v20 }
 0xf0f   :  { %940 = vrot.lane.b32.xlu1 %v938_v22, %s9781_s6 }
 0xf1d   :  { %v10180_v18 = vpop.permute.xlu0 %956 }
 0xf1e   :  { %vm958_vm14 = vcmp.eq.s32.totalorder %v10180_v18, 1 }
 0xf81   :  { %v941_v24 = vpop.permute.xlu1 %940 }
 0xf82   :  { %v943_v26 = vadd.f32 %v941_v24, %v374_v7 }
 0xf84   :  { %9367 = vtanh.f32 %v943_v26 }
 0xf8e   :  { %v9368_v28 = vpop.eup %9367 }
 0xf8f   :  { %947 = vrot.lane.b32.xlu1 %v9368_v28, %s9782_s23 }
0x1001   :  { %v948_v30 = vpop.permute.xlu1 %947 }
0x1002   :  { %v950_v32 = vmul.f32 %v948_v30, %v945_v29 }
0x1004   :  { %v10182_v34 = vadd.f32 %v951_v17, %v950_v32  ;;  %v10264_v17 = vld [vmem:[%s12726_s24 + $0x1] ss:$0 sm:$0xff] }
0x1006   :  { %v10188_v35 = vsel %vm958_vm14, %v10182_v34, %v878_v55 }
0x1007   :  { %v961_v36 = vpack.c.bf16 %v10188_v35, %v10188_v35 }
0x1009   :  { %963 = vrot.lane.b32.xlu0 %v961_v36, %s9782_s23 }
0x107b   :  { %v964_v39 = vpop.permute.xlu0 %963 }
0x107c   :  { %8393 = vmatmul.mubr.msk.bf16.vlgmr.msra.gmra.mrb[28].mxu0 %vm479_vm4, %v964_v39  ;;  %v1116_v39 = vsel %vm1115_vm2, 1, %v12704_v3 }
0x107d   :  { %8406 = vmatprep.mubr.msk.bf16.mxu0 %vm9779_vm0, %v12702_v0  ;;  %8405 = vmatpush3.bf16.msra.mxu0 %v10199_v40 }
0x107e   :  { %8416 = vmatprep.subr.bf16.mxu0 %v12702_v0 }
0x1084   :  { %8407 = vmatmul.mubr.msk.bf16.vlgmr.msra.gmra.mrb[32].mxu0 %vm115_vm1, %v9912_v4  ;;  %v10224_v4 = vld [vmem:[%s12724_s27 + $0x10] sm:$0xff]  }
0x1085   :  { %8417 = vmatpush3.bf16.msra.mxu0 %v10199_v40  ;;  %8418 = vmatprep.mubr.msk.bf16.mxu0 %vm9779_vm0, %v12702_v0 }
0x1086   :  { %8428 = vmatprep.subr.bf16.mxu0 %v12702_v0 }
0x108c   :  { %8419 = vmatmul.mubr.msk.bf16.vlgmr.msra.gmra.mrb[36].mxu0 %vm115_vm1, %v9929_v6  ;;  %v10232_v6 = vld [vmem:[%s12724_s27 + $0x18] sm:$0xff]  }
0x108d   :  { %8429 = vmatpush3.bf16.msra.mxu0 %v10199_v40  ;;  %8430 = vmatprep.mubr.msk.bf16.mxu0 %vm9779_vm0, %v12702_v0 }
0x108e   :  { %8440 = vmatprep.subr.bf16.mxu0 %v12702_v0 }
0x1094   :  { %8431 = vmatmul.mubr.msk.bf16.vlgmr.msra.gmra.mrb[40].mxu0 %vm115_vm1, %v9940_v8 }
0x1095   :  { %8441 = vmatpush3.bf16.msra.mxu0 %v10199_v40  ;;  %8442 = vmatprep.mubr.msk.bf16.mxu0 %vm9779_vm0, %v12702_v0 }
0x1096   :  { %8452 = vmatprep.subr.bf16.mxu0 %v12702_v0 }
0x109c   :  { %8443 = vmatmul.mubr.msk.bf16.vlgmr.msra.gmra.mrb[44].mxu0 %vm115_vm1, %v9951_v10 }
0x109d   :  { %8453 = vmatpush3.bf16.msra.mxu0 %v10224_v4  ;;  %8456 = vmatprep.mubr.msk.bf16.mxu0 %vm9779_vm0, %v12702_v0 }
0x109e   :  { %8454 = vmatprep.subr.bf16.mxu0 %v12702_v0 }
0x10a1   :  { %8455 = vmatpush3.bf16.msra.mxu0 %v10232_v6 }
0x10a2   :  { %8468 = vmatprep.subr.bf16.mxu0 %v12702_v0 }
0x10a4   :  { %8457 = vmatmul.mubr.bf16.vlgmr.msra.gmra.mrb[48].mxu0 %v12704_v3 }
0x10a5   :  { %8469 = vmatpush3.bf16.msra.mxu0 %v10224_v4  ;;  %8472 = vmatprep.mubr.msk.bf16.mxu0 %vm9779_vm0, %v12702_v0 }
0x10a6   :  { %8470 = vmatprep.subr.bf16.mxu0 %v12702_v0 }
0x10a9   :  { %8471 = vmatpush3.bf16.msra.mxu0 %v10232_v6 }
0x10aa   :  { %8484 = vmatprep.subr.bf16.mxu0 %v12702_v0 }
0x114f   :  { %v1002_v8 = vpop.f32.mrb[28].mxu0 }
0x1150   :  { %v1003_v10 = vadd.f32 %v9994_v31, %v1002_v8  ;;  %v8394_v41 = vpop.f32.mrb[29].mxu0 }
0x1151   :  { %v1005_v42 = vpop.f32.mrb[30].mxu0 }
0x1152   :  { %1016 = vrot.lane.b32.xlu1 %v1003_v10, %s9781_s6  ;;  %v8395_v43 = vpop.f32.mrb[31].mxu0  ;;  %v1008_v46 = vadd.f32 %v1003_v10, %v418_v45 }
0x1154   :  { %v7706_v47 = vmul.f32 -1.442695, %v1008_v46 }
0x1156   :  { %1037 = vperm.xlu1 %9273, %v1035_v44   ;;  %9369 = vpow2.f32 %v7706_v47 }
0x1157   :  { %v10252_v48 = vpop.f32.mrb[32].mxu0 }
0x1158   :  { %v8408_v50 = vpop.f32.mrb[33].mxu0 }
0x1159   :  { %v1189_v31 = vpop.f32.mrb[34].mxu0 }
0x115a   :  { %v8409_v55 = vpop.f32.mrb[35].mxu0 }
0x115f   :  { %v10254_v61 = vpop.f32.mrb[36].mxu0 }
0x1160   :  { %v9370_v58 = vpop.eup %9369  ;;  %v8420_v62 = vpop.f32.mrb[37].mxu0 }
0x1161   :  { %v1012_v60 = vadd.f32 1.0, %v9370_v58  ;;  %v1269_v1 = vpop.f32.mrb[38].mxu0 }
0x1162   :  { %v8421_v2 = vpop.f32.mrb[39].mxu0 }
0x1163   :  { %9371 = vrcp.f32 %v1012_v60 }
0x1167   :  { %v10256_v5 = vpop.f32.mrb[40].mxu0 }
0x1168   :  { %v8432_v11 = vpop.f32.mrb[41].mxu0 }
0x1169   :  { %v1349_v25 = vpop.f32.mrb[42].mxu0 }
0x116a   :  { %v8433_v37 = vpop.f32.mrb[43].mxu0  ;;  %v10328_v25 = vld [vmem:[%s12727_s3 + $0x1] ss:$0 sm:$0xff] }
0x116d   :  { %v9372_v7 = vpop.eup %9371 }
0x116e   :  { %v1026_v8 = vsub.f32 1.0, %v9372_v7  ;;  %v1032_v42 = vmul.f32 %v9372_v7, %v10188_v35 }
0x116f   :  { %v10258_v12 = vpop.f32.mrb[44].mxu0 }
0x1170   :  { %v8444_v15 = vpop.f32.mrb[45].mxu0 }
0x1171   :  { %v1429_v19 = vpop.f32.mrb[46].mxu0 }
0x1172   :  { %v8445_v20 = vpop.f32.mrb[47].mxu0 }
0x1177   :  { %v1518_v22 = vpop.f32.mrb[48].mxu0 }
0x1178   :  { %v8458_v24 = vpop.f32.mrb[49].mxu0  ;;  %v1519_v36 = vadd.f32 %v10264_v17, %v1518_v22 }
0x1179   :  { %v1521_v26 = vpop.f32.mrb[50].mxu0 }
0x117a   :  { %v8459_v28 = vpop.f32.mrb[51].mxu0 }
0x11c4   :  { %v1017_v9 = vpop.permute.xlu1 %1016 }
0x11c5   :  { %v1019_v14 = vmul.f32 %v9372_v7, %v1017_v9 }
0x11c7   :  { %1021 = vrot.lane.b32.xlu0 %v1019_v14, %s9781_s6 }
0x11d5   :  { %v10271_v41 = vpop.permute.xlu1 %1037 }
0x11d6   :  { %vm1039_vm5 = vcmp.eq.s32.totalorder %v10271_v41, 1 }
0x1239   :  { %v1022_v29 = vpop.permute.xlu0 %1021 }
0x123a   :  { %v1024_v30 = vadd.f32 %v1022_v29, %v418_v45 }
0x123c   :  { %9373 = vtanh.f32 %v1024_v30 }
0x1246   :  { %v9374_v32 = vpop.eup %9373 }
0x1247   :  { %1028 = vrot.lane.b32.xlu0 %v9374_v32, %s9782_s23 }
0x124b   :  { %1532 = vrot.lane.b32.xlu0 %v1519_v36, %s9781_s6 }
0x124f   :  { %1118 = vperm.xlu0 %9274, %v1116_v39  }
0x12b9   :  { %v1029_v10 = vpop.permute.xlu0 %1028 }
0x12ba   :  { %v1031_v43 = vmul.f32 %v1029_v10, %v1026_v8 }
0x12bc   :  { %v10274_v44 = vadd.f32 %v1032_v42, %v1031_v43 }
0x12bd   :  { %v1533_v28 = vpop.permute.xlu0 %1532 }
0x12be   :  { %v10281_v27 = vsel %vm1039_vm5, %v10274_v44, %v10188_v35 }
0x12bf   :  { %v1042_v45 = vpack.c.bf16 %v10281_v27, %v10281_v27 }
0x12c1   :  { %1044 = vrot.lane.b32.xlu1 %v1042_v45, %s9782_s23 }
0x1333   :  { %v1045_v46 = vpop.permute.xlu1 %1044 }
0x1334   :  { %8401 = vmatmul.mubr.msk.bf16.vlgmr.msra.gmra.mrb[28].mxu1 %vm479_vm4, %v1045_v46 }
0x1335   :  { %8411 = vmatpush3.bf16.msra.mxu1 %v10199_v40  ;;  %8412 = vmatprep.mubr.msk.bf16.mxu1 %vm9779_vm0, %v12702_v0 }
0x1336   :  { %8422 = vmatprep.subr.bf16.mxu1 %v12702_v0 }
0x133c   :  { %8413 = vmatmul.mubr.msk.bf16.vlgmr.msra.gmra.mrb[32].mxu1 %vm115_vm1, %v10008_v49 }
0x133d   :  { %8423 = vmatpush3.bf16.msra.mxu1 %v10199_v40  ;;  %8424 = vmatprep.mubr.msk.bf16.mxu1 %vm9779_vm0, %v12702_v0 }
0x133e   :  { %8434 = vmatprep.subr.bf16.mxu1 %v12702_v0 }
0x1344   :  { %8425 = vmatmul.mubr.msk.bf16.vlgmr.msra.gmra.mrb[36].mxu1 %vm115_vm1, %v10020_v52 }
0x1345   :  { %8435 = vmatpush3.bf16.msra.mxu1 %v10199_v40  ;;  %8436 = vmatprep.mubr.msk.bf16.mxu1 %vm9779_vm0, %v12702_v0 }
0x1346   :  { %8446 = vmatprep.subr.bf16.mxu1 %v12702_v0 }
0x134c   :  { %8437 = vmatmul.mubr.msk.bf16.vlgmr.msra.gmra.mrb[40].mxu1 %vm115_vm1, %v10031_v54 }
0x134d   :  { %8447 = vmatpush3.bf16.msra.mxu1 %v10199_v40  ;;  %8448 = vmatprep.mubr.msk.bf16.mxu1 %vm9779_vm0, %v12702_v0 }
0x134e   :  { %8460 = vmatprep.subr.bf16.mxu1 %v12702_v0 }
0x1354   :  { %8449 = vmatmul.mubr.msk.bf16.vlgmr.msra.gmra.mrb[44].mxu1 %vm115_vm1, %v10042_v56 }
0x1355   :  { %8461 = vmatpush3.bf16.msra.mxu1 %v10224_v4  ;;  %8464 = vmatprep.mubr.msk.bf16.mxu1 %vm9779_vm0, %v12702_v0 }
0x1356   :  { %8462 = vmatprep.subr.bf16.mxu1 %v12702_v0 }
0x1359   :  { %8463 = vmatpush3.bf16.msra.mxu1 %v10232_v6 }
0x135a   :  { %8476 = vmatprep.subr.bf16.mxu1 %v12702_v0 }
0x1407   :  { %v10317_v49 = vpop.f32.mrb[28].mxu1 }
0x1408   :  { %v8402_v52 = vpop.f32.mrb[29].mxu1 }
0x1409   :  { %v1086_v54 = vpop.f32.mrb[30].mxu1 }
0x140a   :  { %v8403_v35 = vpop.f32.mrb[31].mxu1 }
0x140f   :  { %v10319_v40 = vpop.f32.mrb[32].mxu1 }
0x1410   :  { %v8414_v47 = vpop.f32.mrb[33].mxu1 }
0x1411   :  { %v1229_v56 = vpop.f32.mrb[34].mxu1 }
0x1412   :  { %v8415_v50 = vpop.f32.mrb[35].mxu1 }
0x1417   :  { %v10321_v31 = vpop.f32.mrb[36].mxu1 }
0x1418   :  { %v8426_v55 = vpop.f32.mrb[37].mxu1 }
0x1419   :  { %v1309_v58 = vpop.f32.mrb[38].mxu1 }
0x141a   :  { %v8427_v60 = vpop.f32.mrb[39].mxu1  ;;  %v1427_v58 = vadd.f32 %v10328_v25, %v10258_v12 }
0x141f   :  { %v10323_v62 = vpop.f32.mrb[40].mxu1 }
0x1420   :  { %v8438_v1 = vpop.f32.mrb[41].mxu1 }
0x1421   :  { %v1389_v2 = vpop.f32.mrb[42].mxu1 }
0x1422   :  { %v8439_v11 = vpop.f32.mrb[43].mxu1 }
0x1427   :  { %v1466_v37 = vpop.f32.mrb[44].mxu1 }
0x1428   :  { %v1467_v7 = vadd.f32 %v10328_v25, %v1466_v37  ;;  %v8450_v9 = vpop.f32.mrb[45].mxu1 }
0x1429   :  { %v1469_v14 = vpop.f32.mrb[46].mxu1 }
0x142a   :  { %v1524_v15 = vadd.f32 %v1519_v36, %v1467_v7  ;;  %v8451_v19 = vpop.f32.mrb[47].mxu1  ;;  %v10333_v36 = vpop.permute.xlu0 %1118 }
0x142b   :  { %vm1120_vm1 = vcmp.eq.s32.totalorder %v10333_v36, 1 }
0x142c   :  { %v7730_v20 = vmul.f32 -1.442695, %v1524_v15 }
0x142e   :  { %9375 = vpow2.f32 %v7730_v20 }
0x1438   :  { %v9376_v22 = vpop.eup %9375 }
0x1439   :  { %v1528_v24 = vadd.f32 1.0, %v9376_v22 }
0x143b   :  { %9377 = vrcp.f32 %v1528_v24 }
0x1445   :  { %v9378_v26 = vpop.eup %9377 }
0x1446   :  { %v1535_v29 = vmul.f32 %v9378_v26, %v1533_v28  ;;  %v1542_v8 = vsub.f32 1.0, %v9378_v26  ;;  %v1548_v42 = vmul.f32 0.0, %v9378_v26 }
0x1448   :  { %1537 = vrot.lane.b32.xlu1 %v1535_v29, %s9781_s6 }
0x14ba   :  { %v1538_v30 = vpop.permute.xlu1 %1537 }
0x14bb   :  { %v1540_v32 = vadd.f32 %v1538_v30, %v1467_v7 }
0x14bd   :  { %9379 = vtanh.f32 %v1540_v32 }
0x14c7   :  { %v9380_v39 = vpop.eup %9379 }
0x14c8   :  { %1544 = vrot.lane.b32.xlu1 %v9380_v39, %s9782_s23 }
0x153a   :  { %v1545_v10 = vpop.permute.xlu1 %1544 }
0x153b   :  { %v1547_v43 = vmul.f32 %v1545_v10, %v1542_v8 }
0x153d   :  { %v1549_v45 = vadd.f32 %v1548_v42, %v1547_v43  ;;  %v1387_v43 = vadd.f32 %v10328_v25, %v10323_v62 }
0x153f   :  { %v10338_v46 = vsel %vm1120_vm1, %v1549_v45, 0.0 }
0x1540   :  { %v1551_v52 = vpack.c.bf16 %v10338_v46, %v10338_v46 }
0x1542   :  { %1553 = vrot.lane.b32.xlu0 %v1551_v52, %s9782_s23 }
0x15b4   :  { %v1554_v54 = vpop.permute.xlu0 %1553 }
0x15b5   :  { %8465 = vmatmul.mubr.msk.bf16.vlgmr.msra.gmra.mrb[48].mxu1 %vm479_vm4, %v1554_v54 }
0x15b6   :  { %8477 = vmatpush3.bf16.msra.mxu1 %v10224_v4  ;;  %8480 = vmatprep.mubr.msk.bf16.mxu1 %vm9779_vm0, %v12702_v0 }
0x15b7   :  { %8478 = vmatprep.subr.bf16.mxu1 %v12702_v0 }
0x15ba   :  { %8479 = vmatpush3.bf16.msra.mxu1 %v10232_v6 }
0x15bb   :  { %8492 = vmatprep.subr.bf16.mxu1 %v12702_v0 }
0x1688   :  { %v1592_v35 = vpop.f32.mrb[48].mxu1 }
0x1689   :  { %v1593_v47 = vadd.f32 %v10264_v17, %v1592_v35  ;;  %v8466_v56 = vpop.f32.mrb[49].mxu1 }
0x168a   :  { %v1595_v50 = vpop.f32.mrb[50].mxu1 }
0x168b   :  { %1606 = vrot.lane.b32.xlu1 %v1593_v47, %s9781_s6  ;;  %v8467_v55 = vpop.f32.mrb[51].mxu1  ;;  %v1598_v60 = vadd.f32 %v1593_v47, %v1427_v58 }
0x168d   :  { %v7732_v1 = vmul.f32 -1.442695, %v1598_v60 }
0x168f   :  { %9381 = vpow2.f32 %v7732_v1 }
0x1699   :  { %v9382_v2 = vpop.eup %9381 }
0x169a   :  { %v1602_v11 = vadd.f32 1.0, %v9382_v2 }
0x169c   :  { %9383 = vrcp.f32 %v1602_v11 }
0x16a6   :  { %v9384_v37 = vpop.eup %9383 }
0x16a7   :  { %v1616_v20 = vsub.f32 1.0, %v9384_v37  ;;  %v1622_v12 = vmul.f32 %v9384_v37, %v10338_v46 }
0x16fd   :  { %v1607_v7 = vpop.permute.xlu1 %1606 }
0x16fe   :  { %v1609_v9 = vmul.f32 %v9384_v37, %v1607_v7 }
0x1700   :  { %1611 = vrot.lane.b32.xlu0 %v1609_v9, %s9781_s6 }
0x1772   :  { %v1612_v14 = vpop.permute.xlu0 %1611 }
0x1773   :  { %v1614_v15 = vadd.f32 %v1612_v14, %v1427_v58 }
0x1775   :  { %9385 = vtanh.f32 %v1614_v15 }
0x177f   :  { %v9386_v19 = vpop.eup %9385 }
0x1780   :  { %1618 = vrot.lane.b32.xlu1 %v9386_v19, %s9782_s23 }
0x17f2   :  { %v1619_v22 = vpop.permute.xlu1 %1618 }
0x17f3   :  { %v1621_v24 = vmul.f32 %v1619_v22, %v1616_v20 }
0x17f5   :  { %v10357_v26 = vadd.f32 %v1622_v12, %v1621_v24  ;;  %v1347_v24 = vadd.f32 %v10328_v25, %v10256_v5 }
0x17f7   :  { %v1624_v28 = vsel %vm1039_vm5, %v10357_v26, %v10338_v46 }
0x17f8   :  { %v1626_v29 = vpack.c.bf16 %v1624_v28, %v1624_v28 }
0x17fa   :  { %1628 = vrot.lane.b32.xlu0 %v1626_v29, %s9782_s23 }
0x186c   :  { %v1629_v30 = vpop.permute.xlu0 %1628 }
0x186d   :  { %8473 = vmatmul.mubr.msk.bf16.vlgmr.msra.gmra.mrb[52].mxu0 %vm479_vm4, %v1629_v30 }
0x186e   :  { %8485 = vmatpush3.bf16.msra.mxu0 %v10224_v4  ;;  %8488 = vmatprep.mubr.msk.bf16.mxu0 %vm9779_vm0, %v12702_v0 }
0x186f   :  { %8486 = vmatprep.subr.bf16.mxu0 %v12702_v0 }
0x1872   :  { %8487 = vmatpush3.bf16.msra.mxu0 %v10232_v6 }
0x1873   :  { %8500 = vmatprep.subr.bf16.mxu0 %v12702_v0 }
0x1940   :  { %v1667_v32 = vpop.f32.mrb[52].mxu0 }
0x1941   :  { %v1668_v39 = vadd.f32 %v10264_v17, %v1667_v32  ;;  %v8474_v8 = vpop.f32.mrb[53].mxu0 }
0x1942   :  { %v1670_v10 = vpop.f32.mrb[54].mxu0 }
0x1943   :  { %1681 = vrot.lane.b32.xlu1 %v1668_v39, %s9781_s6  ;;  %v8475_v42 = vpop.f32.mrb[55].mxu0  ;;  %v1673_v45 = vadd.f32 %v1668_v39, %v1387_v43 }
0x1945   :  { %v7734_v52 = vmul.f32 -1.442695, %v1673_v45 }
0x1947   :  { %9387 = vpow2.f32 %v7734_v52 }
0x1951   :  { %v9388_v54 = vpop.eup %9387 }
0x1952   :  { %v1677_v35 = vadd.f32 1.0, %v9388_v54 }
0x1954   :  { %9389 = vrcp.f32 %v1677_v35 }
0x195e   :  { %v9390_v47 = vpop.eup %9389 }
0x195f   :  { %v1691_v1 = vsub.f32 1.0, %v9390_v47  ;;  %v1697_v62 = vmul.f32 %v9390_v47, %v1624_v28 }
0x19b5   :  { %v1682_v56 = vpop.permute.xlu1 %1681 }
0x19b6   :  { %v1684_v50 = vmul.f32 %v9390_v47, %v1682_v56 }
0x19b8   :  { %1686 = vrot.lane.b32.xlu0 %v1684_v50, %s9781_s6 }
0x1a2a   :  { %v1687_v55 = vpop.permute.xlu0 %1686 }
0x1a2b   :  { %v1689_v58 = vadd.f32 %v1687_v55, %v1387_v43 }
0x1a2d   :  { %9391 = vtanh.f32 %v1689_v58 }
0x1a37   :  { %v9392_v60 = vpop.eup %9391 }
0x1a38   :  { %1693 = vrot.lane.b32.xlu1 %v9392_v60, %s9782_s23 }
0x1aaa   :  { %v1694_v2 = vpop.permute.xlu1 %1693 }
0x1aab   :  { %v1696_v11 = vmul.f32 %v1694_v2, %v1691_v1 }
0x1aad   :  { %v10377_v37 = vadd.f32 %v1697_v62, %v1696_v11  ;;  %v1307_v11 = vadd.f32 %v10328_v25, %v10321_v31 }
0x1aaf   :  { %v1699_v7 = vsel %vm958_vm14, %v10377_v37, %v1624_v28 }
0x1ab0   :  { %v1701_v9 = vpack.c.bf16 %v1699_v7, %v1699_v7 }
0x1ab2   :  { %1703 = vrot.lane.b32.xlu0 %v1701_v9, %s9782_s23 }
0x1b24   :  { %v1704_v14 = vpop.permute.xlu0 %1703 }
0x1b25   :  { %8481 = vmatmul.mubr.msk.bf16.vlgmr.msra.gmra.mrb[52].mxu1 %vm479_vm4, %v1704_v14 }
0x1b26   :  { %8493 = vmatpush3.bf16.msra.mxu1 %v10224_v4  ;;  %8496 = vmatprep.mubr.msk.bf16.mxu1 %vm9779_vm0, %v12702_v0 }
0x1b27   :  { %8494 = vmatprep.subr.bf16.mxu1 %v12702_v0 }
0x1b2a   :  { %8495 = vmatpush3.bf16.msra.mxu1 %v10232_v6 }
0x1b2b   :  { %8508 = vmatprep.subr.bf16.mxu1 %v12702_v0 }
0x1bf8   :  { %v1742_v15 = vpop.f32.mrb[52].mxu1 }
0x1bf9   :  { %v1743_v19 = vadd.f32 %v10264_v17, %v1742_v15  ;;  %v8482_v20 = vpop.f32.mrb[53].mxu1 }
0x1bfa   :  { %v1745_v22 = vpop.f32.mrb[54].mxu1 }
0x1bfb   :  { %1756 = vrot.lane.b32.xlu1 %v1743_v19, %s9781_s6  ;;  %v8483_v12 = vpop.f32.mrb[55].mxu1  ;;  %v1748_v28 = vadd.f32 %v1743_v19, %v1347_v24 }
0x1bfd   :  { %v7736_v29 = vmul.f32 -1.442695, %v1748_v28 }
0x1bff   :  { %9393 = vpow2.f32 %v7736_v29 }
0x1c09   :  { %v9394_v30 = vpop.eup %9393 }
0x1c0a   :  { %v1752_v32 = vadd.f32 1.0, %v9394_v30 }
0x1c0c   :  { %9395 = vrcp.f32 %v1752_v32 }
0x1c16   :  { %v9396_v39 = vpop.eup %9395 }
0x1c17   :  { %v1766_v52 = vsub.f32 1.0, %v9396_v39  ;;  %v1772_v5 = vmul.f32 %v9396_v39, %v1699_v7 }
0x1c6d   :  { %v1757_v8 = vpop.permute.xlu1 %1756 }
0x1c6e   :  { %v1759_v10 = vmul.f32 %v9396_v39, %v1757_v8 }
0x1c70   :  { %1761 = vrot.lane.b32.xlu0 %v1759_v10, %s9781_s6 }
0x1ce2   :  { %v1762_v42 = vpop.permute.xlu0 %1761 }
0x1ce3   :  { %v1764_v43 = vadd.f32 %v1762_v42, %v1347_v24 }
0x1ce5   :  { %9397 = vtanh.f32 %v1764_v43 }
0x1cef   :  { %v9398_v45 = vpop.eup %9397 }
0x1cf0   :  { %1768 = vrot.lane.b32.xlu1 %v9398_v45, %s9782_s23 }
0x1d62   :  { %v1769_v54 = vpop.permute.xlu1 %1768 }
0x1d63   :  { %v1771_v35 = vmul.f32 %v1769_v54, %v1766_v52 }
0x1d65   :  { %v10396_v47 = vadd.f32 %v1772_v5, %v1771_v35 }
0x1d67   :  { %v1774_v56 = vsel %vm877_vm12, %v10396_v47, %v1699_v7 }
0x1d68   :  { %v1776_v50 = vpack.c.bf16 %v1774_v56, %v1774_v56 }
0x1d6a   :  { %1778 = vrot.lane.b32.xlu0 %v1776_v50, %s9782_s23 }
0x1ddc   :  { %v1779_v55 = vpop.permute.xlu0 %1778 }
0x1ddd   :  { %8489 = vmatmul.mubr.msk.bf16.vlgmr.msra.gmra.mrb[56].mxu0 %vm479_vm4, %v1779_v55 }
0x1dde   :  { %8501 = vmatpush3.bf16.msra.mxu0 %v10224_v4  ;;  %8504 = vmatprep.mubr.msk.bf16.mxu0 %vm9779_vm0, %v12702_v0 }
0x1ddf   :  { %8502 = vmatprep.subr.bf16.mxu0 %v12702_v0 }
0x1de2   :  { %8503 = vmatpush3.bf16.msra.mxu0 %v10232_v6 }
0x1de3   :  { %8516 = vmatprep.subr.bf16.mxu0 %v12702_v0 }
0x1eb0   :  { %v1817_v58 = vpop.f32.mrb[56].mxu0 }
0x1eb1   :  { %v1818_v60 = vadd.f32 %v10264_v17, %v1817_v58  ;;  %v8490_v1 = vpop.f32.mrb[57].mxu0 }
0x1eb2   :  { %v1820_v2 = vpop.f32.mrb[58].mxu0 }
0x1eb3   :  { %1831 = vrot.lane.b32.xlu1 %v1818_v60, %s9781_s6  ;;  %v8491_v62 = vpop.f32.mrb[59].mxu0  ;;  %v1823_v7 = vadd.f32 %v1818_v60, %v1307_v11 }
0x1eb5   :  { %v7738_v9 = vmul.f32 -1.442695, %v1823_v7 }
0x1eb7   :  { %9399 = vpow2.f32 %v7738_v9 }
0x1ec1   :  { %v9400_v14 = vpop.eup %9399 }
0x1ec2   :  { %v1827_v15 = vadd.f32 1.0, %v9400_v14 }
0x1ec4   :  { %9401 = vrcp.f32 %v1827_v15 }
0x1ece   :  { %v9402_v19 = vpop.eup %9401 }
0x1ecf   :  { %v1841_v29 = vsub.f32 1.0, %v9402_v19  ;;  %v1847_v31 = vmul.f32 %v9402_v19, %v1774_v56 }
0x1f25   :  { %v1832_v20 = vpop.permute.xlu1 %1831 }
0x1f26   :  { %v1834_v22 = vmul.f32 %v9402_v19, %v1832_v20 }
0x1f28   :  { %1836 = vrot.lane.b32.xlu0 %v1834_v22, %s9781_s6 }
0x1f9a   :  { %v1837_v12 = vpop.permute.xlu0 %1836 }
0x1f9b   :  { %v1839_v24 = vadd.f32 %v1837_v12, %v1307_v11 }
0x1f9d   :  { %9403 = vtanh.f32 %v1839_v24 }
0x1fa7   :  { %v9404_v28 = vpop.eup %9403 }
0x1fa8   :  { %1843 = vrot.lane.b32.xlu1 %v9404_v28, %s9782_s23 }
0x201a   :  { %v1844_v30 = vpop.permute.xlu1 %1843 }
0x201b   :  { %v1846_v32 = vmul.f32 %v1844_v30, %v1841_v29  ;;  %v1227_v30 = vadd.f32 %v10328_v25, %v10319_v40 }
0x201d   :  { %v10415_v39 = vadd.f32 %v1847_v31, %v1846_v32 }
0x201f   :  { %v1849_v8 = vsel %vm796_vm10, %v10415_v39, %v1774_v56 }
0x2020   :  { %v1851_v10 = vpack.c.bf16 %v1849_v8, %v1849_v8 }
0x2022   :  { %1853 = vrot.lane.b32.xlu0 %v1851_v10, %s9782_s23 }
0x2094   :  { %v1854_v42 = vpop.permute.xlu0 %1853 }
0x2095   :  { %8497 = vmatmul.mubr.msk.bf16.vlgmr.msra.gmra.mrb[56].mxu1 %vm479_vm4, %v1854_v42 }
0x2096   :  { %8509 = vmatpush3.bf16.msra.mxu1 %v10224_v4  ;;  %8512 = vmatprep.mubr.msk.bf16.mxu1 %vm9779_vm0, %v12702_v0  ;;  %v1267_v4 = vadd.f32 %v10328_v25, %v10254_v61 }
0x2097   :  { %8510 = vmatprep.subr.bf16.mxu1 %v12702_v0 }
0x209a   :  { %8511 = vmatpush3.bf16.msra.mxu1 %v10232_v6 }
0x209b   :  { %8528 = vmatprep.subr.bf16.mxu1 %v12702_v0 }
0x2168   :  { %v1892_v43 = vpop.f32.mrb[56].mxu1 }
0x2169   :  { %v1893_v45 = vadd.f32 %v10264_v17, %v1892_v43  ;;  %v8498_v52 = vpop.f32.mrb[57].mxu1 }
0x216a   :  { %v1895_v54 = vpop.f32.mrb[58].mxu1 }
0x216b   :  { %1906 = vrot.lane.b32.xlu1 %v1893_v45, %s9781_s6  ;;  %v8499_v5 = vpop.f32.mrb[59].mxu1  ;;  %v1898_v35 = vadd.f32 %v1893_v45, %v1267_v4 }
0x216d   :  { %v7740_v56 = vmul.f32 -1.442695, %v1898_v35 }
0x216f   :  { %9405 = vpow2.f32 %v7740_v56 }
0x2179   :  { %v9406_v50 = vpop.eup %9405 }
0x217a   :  { %v1902_v55 = vadd.f32 1.0, %v9406_v50 }
0x217c   :  { %9407 = vrcp.f32 %v1902_v55 }
0x2186   :  { %v9408_v6 = vpop.eup %9407 }
0x2187   :  { %v1916_v11 = vsub.f32 1.0, %v9408_v6  ;;  %v1922_v61 = vmul.f32 %v9408_v6, %v1849_v8 }
0x21dd   :  { %v1907_v58 = vpop.permute.xlu1 %1906 }
0x21de   :  { %v1909_v60 = vmul.f32 %v9408_v6, %v1907_v58 }
0x21e0   :  { %1911 = vrot.lane.b32.xlu0 %v1909_v60, %s9781_s6 }
0x2252   :  { %v1912_v1 = vpop.permute.xlu0 %1911 }
0x2253   :  { %v1914_v2 = vadd.f32 %v1912_v1, %v1267_v4 }
0x2255   :  { %9409 = vtanh.f32 %v1914_v2 }
0x225f   :  { %v9410_v62 = vpop.eup %9409 }
0x2260   :  { %1918 = vrot.lane.b32.xlu1 %v9410_v62, %s9782_s23 }
0x22d2   :  { %v1919_v7 = vpop.permute.xlu1 %1918 }
0x22d3   :  { %v1921_v9 = vmul.f32 %v1919_v7, %v1916_v11  ;;  %v1187_v7 = vadd.f32 %v10328_v25, %v10252_v48  ;;  %v10476_v48 = vld [vmem:[%s12728_s1] sm:$0xff]  }
0x22d4   :  { %v9743_v25 = vld [vmem:[%s12726_s24] ss:$0 sm:$0xff] }
0x22d5   :  { %v10434_v14 = vadd.f32 %v1922_v61, %v1921_v9 }
0x22d7   :  { %v1924_v15 = vsel %vm715_vm8, %v10434_v14, %v1849_v8 }
0x22d8   :  { %v1926_v19 = vpack.c.bf16 %v1924_v15, %v1924_v15 }
0x22da   :  { %1928 = vrot.lane.b32.xlu0 %v1926_v19, %s9782_s23 }
0x234c   :  { %v1929_v20 = vpop.permute.xlu0 %1928 }
0x234d   :  { %8505 = vmatmul.mubr.msk.bf16.vlgmr.msra.gmra.mrb[60].mxu0 %vm479_vm4, %v1929_v20 }
0x234e   :  { %8524 = vmatprep.mubr.msk.bf16.mxu0 %vm9779_vm0, %v12702_v0  ;;  %8517 = vmatpush3.bf16.msra.mxu0 %v10476_v48 }
0x234f   :  { %8518 = vmatprep.subr.bf16.mxu0 %v12702_v0 }
0x2420   :  { %v1967_v22 = vpop.f32.mrb[60].mxu0 }
0x2421   :  { %v1968_v12 = vadd.f32 %v10264_v17, %v1967_v22  ;;  %v8506_v24 = vpop.f32.mrb[61].mxu0 }
0x2422   :  { %v1970_v28 = vpop.f32.mrb[62].mxu0  ;;  %v1084_v24 = vadd.f32 %v9743_v25, %v10317_v49 }
0x2423   :  { %1981 = vrot.lane.b32.xlu1 %v1968_v12, %s9781_s6  ;;  %v8507_v29 = vpop.f32.mrb[63].mxu0  ;;  %v1973_v31 = vadd.f32 %v1968_v12, %v1227_v30 }
0x2425   :  { %v7742_v32 = vmul.f32 -1.442695, %v1973_v31 }
0x2427   :  { %9411 = vpow2.f32 %v7742_v32  ;;  %v10503_v32 = vld [vmem:[%s12728_s1 + $0x10] sm:$0xff]  }
0x2431   :  { %v9412_v8 = vpop.eup %9411 }
0x2432   :  { %v1977_v10 = vadd.f32 1.0, %v9412_v8 }
0x2434   :  { %9413 = vrcp.f32 %v1977_v10 }
0x243e   :  { %v9414_v42 = vpop.eup %9413 }
0x243f   :  { %v1991_v4 = vsub.f32 1.0, %v9414_v42  ;;  %v1997_v40 = vmul.f32 %v9414_v42, %v1924_v15 }
0x2495   :  { %v1982_v43 = vpop.permute.xlu1 %1981 }
0x2496   :  { %v1984_v45 = vmul.f32 %v9414_v42, %v1982_v43 }
0x2498   :  { %1986 = vrot.lane.b32.xlu0 %v1984_v45, %s9781_s6 }
0x250a   :  { %v1987_v52 = vpop.permute.xlu0 %1986 }
0x250b   :  { %v1989_v54 = vadd.f32 %v1987_v52, %v1227_v30 }
0x250d   :  { %9415 = vtanh.f32 %v1989_v54 }
0x2517   :  { %v9416_v5 = vpop.eup %9415 }
0x2518   :  { %1993 = vrot.lane.b32.xlu1 %v9416_v5, %s9782_s23 }
0x258a   :  { %v1994_v35 = vpop.permute.xlu1 %1993 }
0x258b   :  { %v1996_v56 = vmul.f32 %v1994_v35, %v1991_v4  ;;  %v717_v4 = vsel %vm715_vm8, %v10111_v38, 0.0  ;;  %v1041_v35 = vsel %vm1039_vm5, %v10274_v44, 0.0 }
0x258d   :  { %v10449_v50 = vadd.f32 %v1997_v40, %v1996_v56 }
0x258f   :  { %v10454_v55 = vsel %vm634_vm6, %v10449_v50, %v1924_v15 }
0x2590   :  { %v2001_v6 = vpack.c.bf16 %v10454_v55, %v10454_v55 }
0x2592   :  { %2003 = vrot.lane.b32.xlu0 %v2001_v6, %s9782_s23 }
0x2604   :  { %v2004_v58 = vpop.permute.xlu0 %2003 }
0x2605   :  { %8513 = vmatmul.mubr.msk.bf16.vlgmr.msra.gmra.mrb[60].mxu1 %vm479_vm4, %v2004_v58 }
0x2606   :  { %8536 = vmatprep.mubr.msk.bf16.mxu1 %vm9779_vm0, %v12702_v0  ;;  %8529 = vmatpush3.bf16.msra.mxu1 %v10476_v48 }
0x2607   :  { %8530 = vmatprep.subr.bf16.mxu1 %v12702_v0 }
0x26d8   :  { %v2042_v60 = vpop.f32.mrb[60].mxu1 }
0x26d9   :  { %v2043_v1 = vadd.f32 %v10264_v17, %v2042_v60  ;;  %v8514_v2 = vpop.f32.mrb[61].mxu1  ;;  %v879_v17 = vsel %vm877_vm12, %v10158_v51, 0.0  ;;  %v9744_v51 = vld [vmem:[%s12727_s3] ss:$0 sm:$0xff] }
0x26da   :  { %v2045_v62 = vpop.f32.mrb[62].mxu1  ;;  %v462_v49 = vadd.f32 %v9744_v51, %v10066_v23  ;;  %v10512_v23 = vld [vmem:[%s12728_s1 + $0x18] sm:$0xff]  }
0x26db   :  { %2056 = vrot.lane.b32.xlu1 %v2043_v1, %s9781_s6  ;;  %v8515_v11 = vpop.f32.mrb[63].mxu1  ;;  %v2048_v61 = vadd.f32 %v2043_v1, %v1187_v7 }
0x26dc   :  { %v1089_v28 = vadd.f32 %v1084_v24, %v462_v49 }
0x26dd   :  { %v7744_v9 = vmul.f32 -1.442695, %v2048_v61  ;;  %v1925_v61 = vsel %vm715_vm8, %v10434_v14, 0.0 }
0x26de   :  { %v7708_v29 = vmul.f32 -1.442695, %v1089_v28 }
0x26df   :  { %9417 = vpow2.f32 %v7744_v9 }
0x26e9   :  { %v9418_v15 = vpop.eup %9417 }
0x26ea   :  { %v2052_v19 = vadd.f32 1.0, %v9418_v15  ;;  %v960_v15 = vsel %vm958_vm14, %v10182_v34, 0.0 }
0x26ec   :  { %9419 = vrcp.f32 %v2052_v19 }
0x26ed   :  { %9421 = vpow2.f32 %v7708_v29 }
0x26f6   :  { %v9420_v20 = vpop.eup %9419 }
0x26f7   :  { %v9422_v30 = vpop.eup %9421  ;;  %v2066_v40 = vsub.f32 1.0, %v9420_v20  ;;  %v2072_v6 = vmul.f32 %v9420_v20, %v10454_v55 }
0x26f8   :  { %v1093_v31 = vadd.f32 1.0, %v9422_v30 }
0x26fa   :  { %9423 = vrcp.f32 %v1093_v31 }
0x2704   :  { %v10518_v45 = vpop.eup %9423 }
0x274d   :  { %v2057_v22 = vpop.permute.xlu1 %2056 }
0x274e   :  { %v2059_v12 = vmul.f32 %v9420_v20, %v2057_v22  ;;  %v1625_v20 = vsel %vm1039_vm5, %v10357_v26, 0.0  ;;  %v10611_v26 = vld [vmem:[%s12680_s7 + $0x8] sm:$0xff]  }
0x2750   :  { %2061 = vrot.lane.b32.xlu0 %v2059_v12, %s9781_s6  ;;  %v10600_v12 = vld [vmem:[%s12680_s7] sm:$0xff]  }
0x2754   :  { %2076 = vrot.lane.b32.xlu0 %v10057_v63, %s9782_s23  ;;  %v10485_v63 = vld [vmem:[%s12728_s1 + $0x8] sm:$0xff]  }
0x2755   :  { %8519 = vmatpush3.bf16.msra.mxu0 %v10485_v63  ;;  %8531 = vmatpush3.bf16.msra.mxu1 %v10485_v63 }
0x2756   :  { %8520 = vmatprep.subr.bf16.mxu0 %v12702_v0  ;;  %8532 = vmatprep.subr.bf16.mxu1 %v12702_v0 }
0x2758   :  { %2096 = vrot.lane.b32.xlu0 %v879_v17, %s9782_s23 }
0x2759   :  { %8521 = vmatpush3.bf16.msra.mxu0 %v10503_v32  ;;  %8533 = vmatpush3.bf16.msra.mxu1 %v10503_v32 }
0x275a   :  { %8522 = vmatprep.subr.bf16.mxu0 %v12702_v0  ;;  %8534 = vmatprep.subr.bf16.mxu1 %v12702_v0 }
0x275c   :  { %1097 = vrot.lane.b32.xlu0 %v1084_v24, %s9781_s6  ;;  %v2000_v24 = vsel %vm634_vm6, %v10449_v50, 0.0 }
0x275d   :  { %8523 = vmatpush3.bf16.msra.mxu0 %v10512_v23  ;;  %8535 = vmatpush3.bf16.msra.mxu1 %v10512_v23 }
0x275e   :  { %8540 = vmatprep.subr.bf16.mxu0 %v12702_v0  ;;  %8552 = vmatprep.subr.bf16.mxu1 %v12702_v0 }
0x27c2   :  { %v2062_v8 = vpop.permute.xlu0 %2061 }
0x27c3   :  { %v2064_v10 = vadd.f32 %v2062_v8, %v1187_v7  ;;  %v636_v7 = vsel %vm634_vm6, %v10085_v59, 0.0  ;;  %v1775_v59 = vsel %vm877_vm12, %v10396_v47, 0.0 }
0x27c5   :  { %9425 = vtanh.f32 %v2064_v10 }
0x27c6   :  { %v2077_v42 = vpop.permute.xlu0 %2076 }
0x27ca   :  { %v2097_v43 = vpop.permute.xlu0 %2096 }
0x27cb   :  { %v2099_v34 = vsel %vm479_vm4, %v2097_v43, %v1775_v59 }
0x27cc   :  { %v10579_v14 = vpack.c.bf16 %v2099_v34, %v2099_v34 }
0x27ce   :  { %v1098_v52 = vpop.permute.xlu0 %1097 }
0x27cf   :  { %v9426_v54 = vpop.eup %9425  ;;  %v1100_v5 = vmul.f32 %v10518_v45, %v1098_v52 }
0x27d0   :  { %2068 = vrot.lane.b32.xlu1 %v9426_v54, %s9782_s23 }
0x27d1   :  { %1102 = vrot.lane.b32.xlu0 %v1100_v5, %s9781_s6 }
0x27d4   :  { %2086 = vrot.lane.b32.xlu1 %v717_v4, %s9782_s23 }
0x27d8   :  { %2106 = vrot.lane.b32.xlu1 %v1041_v35, %s9782_s23 }
0x2842   :  { %v2069_v56 = vpop.permute.xlu1 %2068 }
0x2843   :  { %v2071_v58 = vmul.f32 %v2069_v56, %v2066_v40  ;;  %v1103_v60 = vpop.permute.xlu0 %1102 }
0x2844   :  { %v1105_v1 = vadd.f32 %v1103_v60, %v462_v49 }
0x2845   :  { %v2073_v2 = vadd.f32 %v2072_v6, %v2071_v58  ;;  %v10652_v58 = vld [vmem:[%s12681_s9] ss:$0 sm:$0xff] }
0x2846   :  { %9427 = vtanh.f32 %v1105_v1  ;;  %v2087_v55 = vpop.permute.xlu1 %2086 }
0x2847   :  { %v2074_v38 = vsel %vm554_vm3, %v2073_v2, 0.0  ;;  %v2089_v9 = vsel %vm479_vm4, %v2087_v55, %v1925_v61 }
0x2848   :  { %v2079_v62 = vsel %vm479_vm4, %v2077_v42, %v2074_v38  ;;  %v10560_v19 = vpack.c.bf16 %v2089_v9, %v2089_v9  ;;  %v10661_v9 = vld [vmem:[%s12682_s8] ss:$0 sm:$0xff] }
0x2849   :  { %v10535_v11 = vpack.c.bf16 %v2079_v62, %v2079_v62 }
0x284a   :  { %v2107_v47 = vpop.permute.xlu1 %2106 }
0x284b   :  { %8525 = vmatmul.mubr.msk.bf16.vlgmr.msra.gmra.mrb[64].mxu0 %vm2166_vm7, %v10535_v11  ;;  %v2109_v22 = vsel %vm479_vm4, %v2107_v47, %v1625_v20 }
0x284c   :  { %8541 = vmatpush3.bf16.msra.mxu0 %v10476_v48  ;;  %8548 = vmatprep.mubr.msk.bf16.mxu0 %vm9779_vm0, %v12702_v0  ;;  %v10602_v17 = vpack.c.bf16 %v2109_v22, %v2109_v22 }
0x284d   :  { %8542 = vmatprep.subr.bf16.mxu0 %v12702_v0 }
0x2850   :  { %v9428_v44 = vpop.eup %9427  ;;  %8543 = vmatpush3.bf16.msra.mxu0 %v10485_v63 }
0x2851   :  { %1109 = vrot.lane.b32.xlu0 %v9428_v44, %s9782_s23  ;;  %8544 = vmatprep.subr.bf16.mxu0 %v12702_v0 }
0x2854   :  { %8545 = vmatpush3.bf16.msra.mxu0 %v10503_v32 }
0x2855   :  { %2081 = vrot.lane.b32.xlu0 %v636_v7, %s9782_s23  ;;  %8546 = vmatprep.subr.bf16.mxu0 %v12702_v0 }
0x2858   :  { %8547 = vmatpush3.bf16.msra.mxu0 %v10512_v23 }
0x2859   :  { %2101 = vrot.lane.b32.xlu0 %v960_v15, %s9782_s23  ;;  %8564 = vmatprep.subr.bf16.mxu0 %v12702_v0 }
0x285b   :  { %8549 = vmatmul.mubr.msk.bf16.vlgmr.msra.gmra.mrb[68].mxu0 %vm2166_vm7, %v10560_v19 }
0x285c   :  { %8565 = vmatpush3.bf16.msra.mxu0 %v10476_v48  ;;  %8572 = vmatprep.mubr.msk.bf16.mxu0 %vm9779_vm0, %v12702_v0 }
0x285d   :  { %8566 = vmatprep.subr.bf16.mxu0 %v12702_v0 }
0x2860   :  { %8567 = vmatpush3.bf16.msra.mxu0 %v10485_v63 }
0x2861   :  { %8568 = vmatprep.subr.bf16.mxu0 %v12702_v0 }
0x2864   :  { %8569 = vmatpush3.bf16.msra.mxu0 %v10503_v32 }
0x2865   :  { %8570 = vmatprep.subr.bf16.mxu0 %v12702_v0 }
0x2868   :  { %8571 = vmatpush3.bf16.msra.mxu0 %v10512_v23 }
0x2869   :  { %8588 = vmatprep.subr.bf16.mxu0 %v12702_v0 }
0x286b   :  { %8573 = vmatmul.mubr.msk.bf16.vlgmr.msra.gmra.mrb[72].mxu0 %vm2166_vm7, %v10579_v14 }
0x286c   :  { %8589 = vmatpush3.bf16.msra.mxu0 %v10476_v48  ;;  %8596 = vmatprep.mubr.msk.bf16.mxu0 %vm9779_vm0, %v12702_v0 }
0x286d   :  { %8590 = vmatprep.subr.bf16.mxu0 %v12702_v0 }
0x2870   :  { %8591 = vmatpush3.bf16.msra.mxu0 %v10485_v63 }
0x2871   :  { %8592 = vmatprep.subr.bf16.mxu0 %v12702_v0 }
0x2874   :  { %8593 = vmatpush3.bf16.msra.mxu0 %v10503_v32 }
0x2875   :  { %8594 = vmatprep.subr.bf16.mxu0 %v12702_v0 }
0x2878   :  { %8595 = vmatpush3.bf16.msra.mxu0 %v10512_v23 }
0x2879   :  { %8612 = vmatprep.subr.bf16.mxu0 %v12702_v0 }
0x287b   :  { %8597 = vmatmul.mubr.msk.bf16.vlgmr.msra.gmra.mrb[76].mxu0 %vm2166_vm7, %v10602_v17 }
0x287c   :  { %8613 = vmatpush3.bf16.msra.mxu0 %v10600_v12  ;;  %8616 = vmatprep.mubr.msk.bf16.mxu0 %vm9779_vm0, %v12702_v0 }
0x287d   :  { %8614 = vmatprep.subr.bf16.mxu0 %v12702_v0 }
0x2880   :  { %8615 = vmatpush3.bf16.msra.mxu0 %v10611_v26 }
0x2881   :  { %8628 = vmatprep.subr.bf16.mxu0 %v12702_v0 }
0x2883   :  { %8617 = vmatmul.mubr.bf16.vlgmr.msra.gmra.mrb[80].mxu0 %v12704_v3 }
0x2884   :  { %8629 = vmatpush3.bf16.msra.mxu0 %v10600_v12  ;;  %8632 = vmatprep.mubr.msk.bf16.mxu0 %vm9779_vm0, %v12702_v0 }
0x2885   :  { %8630 = vmatprep.subr.bf16.mxu0 %v12702_v0 }
0x2888   :  { %8631 = vmatpush3.bf16.msra.mxu0 %v10611_v26 }
0x2889   :  { %8644 = vmatprep.subr.bf16.mxu0 %v12702_v0 }
0x28c3   :  { %v1110_v25 = vpop.permute.xlu0 %1109 }
0x28c7   :  { %v2082_v51 = vpop.permute.xlu0 %2081 }
0x28c8   :  { %v2084_v49 = vsel %vm479_vm4, %v2082_v51, %v2000_v24 }
0x28c9   :  { %v10629_v28 = vpack.c.bf16 %v2084_v49, %v2084_v49 }
0x28cb   :  { %8537 = vmatmul.mubr.msk.bf16.vlgmr.msra.gmra.mrb[64].mxu1 %vm2166_vm7, %v10629_v28 }
0x28cc   :  { %8553 = vmatpush3.bf16.msra.mxu1 %v10476_v48  ;;  %8560 = vmatprep.mubr.msk.bf16.mxu1 %vm9779_vm0, %v12702_v0 }
0x28cd   :  { %8554 = vmatprep.subr.bf16.mxu1 %v12702_v0 }
0x28d0   :  { %8555 = vmatpush3.bf16.msra.mxu1 %v10485_v63 }
0x28d1   :  { %8556 = vmatprep.subr.bf16.mxu1 %v12702_v0 }
0x28d4   :  { %8557 = vmatpush3.bf16.msra.mxu1 %v10503_v32 }
0x28d5   :  { %8558 = vmatprep.subr.bf16.mxu1 %v12702_v0 }
0x28d8   :  { %8559 = vmatpush3.bf16.msra.mxu1 %v10512_v23 }
0x28d9   :  { %8576 = vmatprep.subr.bf16.mxu1 %v12702_v0 }
0x291e   :  { %v2204_v50 = vpop.f32.mrb[64].mxu0 }
0x291f   :  { %v8526_v29 = vpop.f32.mrb[65].mxu0  ;;  %v2205_v15 = vadd.f32 %v10661_v9, %v2204_v50  ;;  %v1113_v50 = vmul.f32 %v10518_v45, %v10281_v27  ;;  %v1850_v27 = vsel %vm796_vm10, %v10415_v39, 0.0  ;;  %v2102_v39 = vpop.permute.xlu0 %2101 }
0x2920   :  { %v2207_v30 = vpop.f32.mrb[66].mxu0 }
0x2921   :  { %v8527_v31 = vpop.f32.mrb[67].mxu0  ;;  %v1107_v30 = vsub.f32 1.0, %v10518_v45 }
0x292e   :  { %v10643_v8 = vpop.f32.mrb[68].mxu0 }
0x292f   :  { %v8550_v10 = vpop.f32.mrb[69].mxu0 }
0x2930   :  { %v2295_v42 = vpop.f32.mrb[70].mxu0  ;;  %v1112_v10 = vmul.f32 %v1110_v25, %v1107_v30 }
0x2931   :  { %v8551_v43 = vpop.f32.mrb[71].mxu0  ;;  %v798_v42 = vsel %vm796_vm10, %v10134_v16, 0.0 }
0x2932   :  { %v1114_v43 = vadd.f32 %v1113_v50, %v1112_v10 }
0x293e   :  { %v10645_v52 = vpop.f32.mrb[72].mxu0 }
0x293f   :  { %v8574_v54 = vpop.f32.mrb[73].mxu0 }
0x2940   :  { %v2383_v5 = vpop.f32.mrb[74].mxu0  ;;  %v1121_v54 = vsel %vm1120_vm1, %v1114_v43, 0.0 }
0x2941   :  { %v8575_v4 = vpop.f32.mrb[75].mxu0 }
0x294e   :  { %v10647_v35 = vpop.f32.mrb[76].mxu0 }
0x294f   :  { %v8598_v40 = vpop.f32.mrb[77].mxu0 }
0x2950   :  { %v2471_v56 = vpop.f32.mrb[78].mxu0 }
0x2951   :  { %v8599_v6 = vpop.f32.mrb[79].mxu0 }
0x2956   :  { %v2564_v60 = vpop.f32.mrb[80].mxu0 }
0x2957   :  { %v2565_v1 = vadd.f32 %v10652_v58, %v2564_v60  ;;  %v8618_v2 = vpop.f32.mrb[81].mxu0 }
0x2958   :  { %v2567_v38 = vpop.f32.mrb[82].mxu0  ;;  %v1700_v2 = vsel %vm958_vm14, %v10377_v37, 0.0 }
0x2959   :  { %2578 = vrot.lane.b32.xlu1 %v2565_v1, %s9781_s6  ;;  %v8619_v62 = vpop.f32.mrb[83].mxu0  ;;  %v2570_v59 = vadd.f32 %v2565_v1, %v2205_v15  ;;  %v2104_v38 = vsel %vm479_vm4, %v2102_v39, %v1700_v2 }
0x295a   :  { %v10704_v62 = vpack.c.bf16 %v2104_v38, %v2104_v38 }
0x295b   :  { %v7761_v34 = vmul.f32 -1.442695, %v2570_v59 }
0x295d   :  { %9429 = vpow2.f32 %v7761_v34 }
0x2967   :  { %v9430_v47 = vpop.eup %9429 }
0x2968   :  { %v2574_v20 = vadd.f32 1.0, %v9430_v47 }
0x296a   :  { %9431 = vrcp.f32 %v2574_v20 }
0x2974   :  { %v9432_v22 = vpop.eup %9431 }
0x2975   :  { %v2588_v5 = vsub.f32 1.0, %v9432_v22  ;;  %v2594_v25 = vmul.f32 0.0, %v9432_v22 }
0x299e   :  { %v10656_v44 = vpop.f32.mrb[64].mxu1 }
0x299f   :  { %v8538_v55 = vpop.f32.mrb[65].mxu1  ;;  %v2249_v10 = vadd.f32 %v10661_v9, %v10656_v44 }
0x29a0   :  { %v2251_v7 = vpop.f32.mrb[66].mxu1 }
0x29a1   :  { %v8539_v61 = vpop.f32.mrb[67].mxu1 }
0x29cb   :  { %v2579_v24 = vpop.permute.xlu1 %2578 }
0x29cc   :  { %v2581_v51 = vmul.f32 %v9432_v22, %v2579_v24 }
0x29ce   :  { %2583 = vrot.lane.b32.xlu1 %v2581_v51, %s9781_s6 }
0x2a40   :  { %v2584_v49 = vpop.permute.xlu1 %2583 }
0x2a41   :  { %v2586_v29 = vadd.f32 %v2584_v49, %v2205_v15 }
0x2a43   :  { %9433 = vtanh.f32 %v2586_v29 }
0x2a4d   :  { %v9434_v31 = vpop.eup %9433 }
0x2a4e   :  { %2590 = vrot.lane.b32.xlu1 %v9434_v31, %s9782_s23 }
0x2a52   :  { %2091 = vrot.lane.b32.xlu1 %v798_v42, %s9782_s23 }
0x2a56   :  { %2111 = vrot.lane.b32.xlu1 %v1121_v54, %s9782_s23 }
0x2ac0   :  { %v2591_v4 = vpop.permute.xlu1 %2590 }
0x2ac1   :  { %v2593_v40 = vmul.f32 %v2591_v4, %v2588_v5 }
0x2ac3   :  { %v2595_v56 = vadd.f32 %v2594_v25, %v2593_v40 }
0x2ac4   :  { %v2092_v45 = vpop.permute.xlu1 %2091 }
0x2ac5   :  { %v10681_v16 = vsel %vm554_vm3, %v2595_v56, 0.0  ;;  %v2094_v6 = vsel %vm479_vm4, %v2092_v45, %v1850_v27 }
0x2ac6   :  { %v10684_v60 = vpack.c.bf16 %v2094_v6, %v2094_v6  ;;  %v2597_v1 = vpack.c.bf16 %v10681_v16, %v10681_v16 }
0x2ac8   :  { %2599 = vrot.lane.b32.xlu0 %v2597_v1, %s9782_s23  ;;  %8561 = vmatmul.mubr.msk.bf16.vlgmr.msra.gmra.mrb[68].mxu1 %vm2166_vm7, %v10684_v60  ;;  %v2112_v37 = vpop.permute.xlu1 %2111 }
0x2ac9   :  { %8577 = vmatpush3.bf16.msra.mxu1 %v10476_v48  ;;  %8584 = vmatprep.mubr.msk.bf16.mxu1 %vm9779_vm0, %v12702_v0  ;;  %v2114_v55 = vsel %vm479_vm4, %v2112_v37, %v10338_v46 }
0x2aca   :  { %8578 = vmatprep.subr.bf16.mxu1 %v12702_v0 }
0x2acd   :  { %8579 = vmatpush3.bf16.msra.mxu1 %v10485_v63 }
0x2ace   :  { %8580 = vmatprep.subr.bf16.mxu1 %v12702_v0 }
0x2ad1   :  { %8581 = vmatpush3.bf16.msra.mxu1 %v10503_v32 }
0x2ad2   :  { %8582 = vmatprep.subr.bf16.mxu1 %v12702_v0 }
0x2ad5   :  { %8583 = vmatpush3.bf16.msra.mxu1 %v10512_v23 }
0x2ad6   :  { %8600 = vmatprep.subr.bf16.mxu1 %v12702_v0 }
0x2ad8   :  { %8585 = vmatmul.mubr.msk.bf16.vlgmr.msra.gmra.mrb[72].mxu1 %vm2166_vm7, %v10704_v62 }
0x2ad9   :  { %8601 = vmatpush3.bf16.msra.mxu1 %v10476_v48  ;;  %8608 = vmatprep.mubr.msk.bf16.mxu1 %vm9779_vm0, %v12702_v0  ;;  %v10720_v48 = vpack.c.bf16 %v2114_v55, %v2114_v55 }
0x2ada   :  { %8602 = vmatprep.subr.bf16.mxu1 %v12702_v0 }
0x2add   :  { %8603 = vmatpush3.bf16.msra.mxu1 %v10485_v63 }
0x2ade   :  { %8604 = vmatprep.subr.bf16.mxu1 %v12702_v0 }
0x2ae1   :  { %8605 = vmatpush3.bf16.msra.mxu1 %v10503_v32 }
0x2ae2   :  { %8606 = vmatprep.subr.bf16.mxu1 %v12702_v0 }
0x2ae5   :  { %8607 = vmatpush3.bf16.msra.mxu1 %v10512_v23 }
0x2ae6   :  { %8620 = vmatprep.subr.bf16.mxu1 %v12702_v0 }
0x2ae8   :  { %8609 = vmatmul.mubr.msk.bf16.vlgmr.msra.gmra.mrb[76].mxu1 %vm2166_vm7, %v10720_v48 }
0x2ae9   :  { %8621 = vmatpush3.bf16.msra.mxu1 %v10600_v12  ;;  %8624 = vmatprep.mubr.msk.bf16.mxu1 %vm9779_vm0, %v12702_v0 }
0x2aea   :  { %8622 = vmatprep.subr.bf16.mxu1 %v12702_v0 }
0x2aed   :  { %8623 = vmatpush3.bf16.msra.mxu1 %v10611_v26 }
0x2aee   :  { %8636 = vmatprep.subr.bf16.mxu1 %v12702_v0 }
0x2b3a   :  { %v2600_v46 = vpop.permute.xlu0 %2599 }
0x2b3b   :  { %8625 = vmatmul.mubr.msk.bf16.vlgmr.msra.gmra.mrb[80].mxu1 %vm479_vm4, %v2600_v46 }
0x2b3c   :  { %8637 = vmatpush3.bf16.msra.mxu1 %v10600_v12  ;;  %8640 = vmatprep.mubr.msk.bf16.mxu1 %vm9779_vm0, %v12702_v0 }
0x2b3d   :  { %8638 = vmatprep.subr.bf16.mxu1 %v12702_v0 }
0x2b40   :  { %8639 = vmatpush3.bf16.msra.mxu1 %v10611_v26 }
0x2b41   :  { %8652 = vmatprep.subr.bf16.mxu1 %v12702_v0 }
0x2b9b   :  { %v10738_v63 = vpop.f32.mrb[68].mxu1 }
0x2b9c   :  { %v8562_v32 = vpop.f32.mrb[69].mxu1 }
0x2b9d   :  { %v2339_v23 = vpop.f32.mrb[70].mxu1 }
0x2b9e   :  { %v8563_v7 = vpop.f32.mrb[71].mxu1 }
0x2bab   :  { %v10740_v61 = vpop.f32.mrb[72].mxu1 }
0x2bac   :  { %v8586_v15 = vpop.f32.mrb[73].mxu1 }
0x2bad   :  { %v2427_v59 = vpop.f32.mrb[74].mxu1  ;;  %v2293_v15 = vadd.f32 %v10661_v9, %v10643_v8 }
0x2bae   :  { %v8587_v34 = vpop.f32.mrb[75].mxu1 }
0x2bbb   :  { %v10742_v47 = vpop.f32.mrb[76].mxu1 }
0x2bbc   :  { %v8610_v20 = vpop.f32.mrb[77].mxu1 }
0x2bbd   :  { %v2515_v22 = vpop.f32.mrb[78].mxu1 }
0x2bbe   :  { %v8611_v24 = vpop.f32.mrb[79].mxu1 }
0x2c0e   :  { %v2638_v51 = vpop.f32.mrb[80].mxu1 }
0x2c0f   :  { %v2639_v49 = vadd.f32 %v10652_v58, %v2638_v51  ;;  %v8626_v29 = vpop.f32.mrb[81].mxu1 }
0x2c10   :  { %v2641_v30 = vpop.f32.mrb[82].mxu1 }
0x2c11   :  { %2652 = vrot.lane.b32.xlu1 %v2639_v49, %s9781_s6  ;;  %v8627_v31 = vpop.f32.mrb[83].mxu1  ;;  %v2644_v50 = vadd.f32 %v2639_v49, %v2249_v10 }
0x2c13   :  { %v7763_v42 = vmul.f32 -1.442695, %v2644_v50 }
0x2c15   :  { %9435 = vpow2.f32 %v7763_v42 }
0x2c1f   :  { %v9436_v43 = vpop.eup %9435 }
0x2c20   :  { %v2648_v54 = vadd.f32 1.0, %v9436_v43 }
0x2c22   :  { %9437 = vrcp.f32 %v2648_v54 }
0x2c2c   :  { %v9438_v5 = vpop.eup %9437 }
0x2c2d   :  { %v2662_v45 = vsub.f32 1.0, %v9438_v5  ;;  %v2668_v44 = vmul.f32 %v9438_v5, %v10681_v16 }
0x2c83   :  { %v2653_v4 = vpop.permute.xlu1 %2652 }
0x2c84   :  { %v2655_v25 = vmul.f32 %v9438_v5, %v2653_v4 }
0x2c86   :  { %2657 = vrot.lane.b32.xlu0 %v2655_v25, %s9781_s6 }
0x2cf8   :  { %v2658_v40 = vpop.permute.xlu0 %2657 }
0x2cf9   :  { %v2660_v56 = vadd.f32 %v2658_v40, %v2249_v10 }
0x2cfb   :  { %9439 = vtanh.f32 %v2660_v56 }
0x2d05   :  { %v9440_v27 = vpop.eup %9439 }
0x2d06   :  { %2664 = vrot.lane.b32.xlu1 %v9440_v27, %s9782_s23 }
0x2d78   :  { %v2665_v6 = vpop.permute.xlu1 %2664 }
0x2d79   :  { %v2667_v1 = vmul.f32 %v2665_v6, %v2662_v45  ;;  %v2337_v6 = vadd.f32 %v10661_v9, %v10738_v63 }
0x2d7b   :  { %v10751_v39 = vadd.f32 %v2668_v44, %v2667_v1 }
0x2d7d   :  { %v2670_v2 = vsel %vm634_vm6, %v10751_v39, %v10681_v16 }
0x2d7e   :  { %v2672_v38 = vpack.c.bf16 %v2670_v2, %v2670_v2 }
0x2d80   :  { %2674 = vrot.lane.b32.xlu0 %v2672_v38, %s9782_s23 }
0x2df2   :  { %v2675_v37 = vpop.permute.xlu0 %2674 }
0x2df3   :  { %8633 = vmatmul.mubr.msk.bf16.vlgmr.msra.gmra.mrb[84].mxu0 %vm479_vm4, %v2675_v37 }
0x2df4   :  { %8645 = vmatpush3.bf16.msra.mxu0 %v10600_v12  ;;  %8648 = vmatprep.mubr.msk.bf16.mxu0 %vm9779_vm0, %v12702_v0 }
0x2df5   :  { %8646 = vmatprep.subr.bf16.mxu0 %v12702_v0 }
0x2df8   :  { %8647 = vmatpush3.bf16.msra.mxu0 %v10611_v26 }
0x2df9   :  { %8660 = vmatprep.subr.bf16.mxu0 %v12702_v0 }
0x2ec6   :  { %v2713_v55 = vpop.f32.mrb[84].mxu0 }
0x2ec7   :  { %v2714_v46 = vadd.f32 %v10652_v58, %v2713_v55  ;;  %v8634_v32 = vpop.f32.mrb[85].mxu0 }
0x2ec8   :  { %v2716_v23 = vpop.f32.mrb[86].mxu0 }
0x2ec9   :  { %2727 = vrot.lane.b32.xlu1 %v2714_v46, %s9781_s6  ;;  %v8635_v7 = vpop.f32.mrb[87].mxu0  ;;  %v2719_v59 = vadd.f32 %v2714_v46, %v2293_v15 }
0x2ecb   :  { %v7765_v34 = vmul.f32 -1.442695, %v2719_v59 }
0x2ecd   :  { %9441 = vpow2.f32 %v7765_v34 }
0x2ed7   :  { %v9442_v20 = vpop.eup %9441 }
0x2ed8   :  { %v2723_v22 = vadd.f32 1.0, %v9442_v20 }
0x2eda   :  { %9443 = vrcp.f32 %v2723_v22 }
0x2ee4   :  { %v9444_v24 = vpop.eup %9443 }
0x2ee5   :  { %v2737_v10 = vsub.f32 1.0, %v9444_v24  ;;  %v2743_v8 = vmul.f32 %v9444_v24, %v2670_v2 }
0x2f3b   :  { %v2728_v51 = vpop.permute.xlu1 %2727 }
0x2f3c   :  { %v2730_v49 = vmul.f32 %v9444_v24, %v2728_v51 }
0x2f3e   :  { %2732 = vrot.lane.b32.xlu0 %v2730_v49, %s9781_s6 }
0x2fb0   :  { %v2733_v29 = vpop.permute.xlu0 %2732 }
0x2fb1   :  { %v2735_v30 = vadd.f32 %v2733_v29, %v2293_v15 }
0x2fb3   :  { %9445 = vtanh.f32 %v2735_v30 }
0x2fbd   :  { %v9446_v31 = vpop.eup %9445 }
0x2fbe   :  { %2739 = vrot.lane.b32.xlu1 %v9446_v31, %s9782_s23 }
0x3030   :  { %v2740_v50 = vpop.permute.xlu1 %2739 }
0x3031   :  { %v2742_v42 = vmul.f32 %v2740_v50, %v2737_v10  ;;  %v2381_v50 = vadd.f32 %v10661_v9, %v10645_v52 }
0x3033   :  { %v10771_v43 = vadd.f32 %v2743_v8, %v2742_v42 }
0x3035   :  { %v2745_v54 = vsel %vm715_vm8, %v10771_v43, %v2670_v2 }
0x3036   :  { %v2747_v5 = vpack.c.bf16 %v2745_v54, %v2745_v54 }
0x3038   :  { %2749 = vrot.lane.b32.xlu0 %v2747_v5, %s9782_s23 }
0x30aa   :  { %v2750_v4 = vpop.permute.xlu0 %2749 }
0x30ab   :  { %8641 = vmatmul.mubr.msk.bf16.vlgmr.msra.gmra.mrb[84].mxu1 %vm479_vm4, %v2750_v4 }
0x30ac   :  { %8653 = vmatpush3.bf16.msra.mxu1 %v10600_v12  ;;  %8656 = vmatprep.mubr.msk.bf16.mxu1 %vm9779_vm0, %v12702_v0 }
0x30ad   :  { %8654 = vmatprep.subr.bf16.mxu1 %v12702_v0 }
0x30b0   :  { %8655 = vmatpush3.bf16.msra.mxu1 %v10611_v26 }
0x30b1   :  { %8668 = vmatprep.subr.bf16.mxu1 %v12702_v0 }
0x317e   :  { %v2788_v25 = vpop.f32.mrb[84].mxu1 }
0x317f   :  { %v2789_v40 = vadd.f32 %v10652_v58, %v2788_v25  ;;  %v8642_v56 = vpop.f32.mrb[85].mxu1 }
0x3180   :  { %v2791_v27 = vpop.f32.mrb[86].mxu1 }
0x3181   :  { %2802 = vrot.lane.b32.xlu1 %v2789_v40, %s9781_s6  ;;  %v8643_v45 = vpop.f32.mrb[87].mxu1  ;;  %v2794_v44 = vadd.f32 %v2789_v40, %v2337_v6 }
0x3183   :  { %v7767_v1 = vmul.f32 -1.442695, %v2794_v44 }
0x3185   :  { %9447 = vpow2.f32 %v7767_v1 }
0x318f   :  { %v9448_v2 = vpop.eup %9447 }
0x3190   :  { %v2798_v38 = vadd.f32 1.0, %v9448_v2 }
0x3192   :  { %9449 = vrcp.f32 %v2798_v38 }
0x319c   :  { %v9450_v37 = vpop.eup %9449 }
0x319d   :  { %v2812_v15 = vsub.f32 1.0, %v9450_v37  ;;  %v2818_v63 = vmul.f32 %v9450_v37, %v2745_v54 }
0x31f3   :  { %v2803_v55 = vpop.permute.xlu1 %2802 }
0x31f4   :  { %v2805_v46 = vmul.f32 %v9450_v37, %v2803_v55 }
0x31f6   :  { %2807 = vrot.lane.b32.xlu0 %v2805_v46, %s9781_s6 }
0x3268   :  { %v2808_v32 = vpop.permute.xlu0 %2807 }
0x3269   :  { %v2810_v23 = vadd.f32 %v2808_v32, %v2337_v6 }
0x326b   :  { %9451 = vtanh.f32 %v2810_v23 }
0x3275   :  { %v9452_v7 = vpop.eup %9451 }
0x3276   :  { %2814 = vrot.lane.b32.xlu1 %v9452_v7, %s9782_s23 }
0x32e8   :  { %v2815_v59 = vpop.permute.xlu1 %2814 }
0x32e9   :  { %v2817_v34 = vmul.f32 %v2815_v59, %v2812_v15 }
0x32eb   :  { %v10790_v20 = vadd.f32 %v2818_v63, %v2817_v34 }
0x32ed   :  { %v2820_v22 = vsel %vm796_vm10, %v10790_v20, %v2745_v54 }
0x32ee   :  { %v2822_v24 = vpack.c.bf16 %v2820_v22, %v2820_v22 }
0x32f0   :  { %2824 = vrot.lane.b32.xlu0 %v2822_v24, %s9782_s23 }
0x3362   :  { %v2825_v51 = vpop.permute.xlu0 %2824 }
0x3363   :  { %8649 = vmatmul.mubr.msk.bf16.vlgmr.msra.gmra.mrb[88].mxu0 %vm479_vm4, %v2825_v51 }
0x3364   :  { %8661 = vmatpush3.bf16.msra.mxu0 %v10600_v12  ;;  %8664 = vmatprep.mubr.msk.bf16.mxu0 %vm9779_vm0, %v12702_v0 }
0x3365   :  { %8662 = vmatprep.subr.bf16.mxu0 %v12702_v0 }
0x3368   :  { %8663 = vmatpush3.bf16.msra.mxu0 %v10611_v26 }
0x3369   :  { %8676 = vmatprep.subr.bf16.mxu0 %v12702_v0 }
0x3436   :  { %v2863_v49 = vpop.f32.mrb[88].mxu0 }
0x3437   :  { %v2864_v29 = vadd.f32 %v10652_v58, %v2863_v49  ;;  %v8650_v30 = vpop.f32.mrb[89].mxu0 }
0x3438   :  { %v2866_v31 = vpop.f32.mrb[90].mxu0 }
0x3439   :  { %2877 = vrot.lane.b32.xlu1 %v2864_v29, %s9781_s6  ;;  %v8651_v10 = vpop.f32.mrb[91].mxu0  ;;  %v2869_v8 = vadd.f32 %v2864_v29, %v2381_v50 }
0x343b   :  { %v7769_v42 = vmul.f32 -1.442695, %v2869_v8 }
0x343d   :  { %9453 = vpow2.f32 %v7769_v42 }
0x3447   :  { %v9454_v54 = vpop.eup %9453 }
0x3448   :  { %v2873_v5 = vadd.f32 1.0, %v9454_v54 }
0x344a   :  { %9455 = vrcp.f32 %v2873_v5  ;;  %v10841_v5 = vld [vmem:[%s12728_s1 + $0x20] sm:$0xff]  }
0x3454   :  { %v9456_v4 = vpop.eup %9455 }
0x3455   :  { %v2887_v6 = vsub.f32 1.0, %v9456_v4  ;;  %v2893_v52 = vmul.f32 %v9456_v4, %v2820_v22 }
0x34ab   :  { %v2878_v25 = vpop.permute.xlu1 %2877 }
0x34ac   :  { %v2880_v40 = vmul.f32 %v9456_v4, %v2878_v25  ;;  %v10848_v25 = vld [vmem:[%s12728_s1 + $0x28] sm:$0xff]  }
0x34ae   :  { %2882 = vrot.lane.b32.xlu0 %v2880_v40, %s9781_s6  ;;  %v10857_v40 = vld [vmem:[%s12728_s1 + $0x30] sm:$0xff]  }
0x3520   :  { %v2883_v56 = vpop.permute.xlu0 %2882 }
0x3521   :  { %v2885_v27 = vadd.f32 %v2883_v56, %v2381_v50  ;;  %v10864_v56 = vld [vmem:[%s12728_s1 + $0x38] sm:$0xff]  }
0x3523   :  { %9457 = vtanh.f32 %v2885_v27 }
0x352d   :  { %v9458_v45 = vpop.eup %9457 }
0x352e   :  { %2889 = vrot.lane.b32.xlu1 %v9458_v45, %s9782_s23 }
0x35a0   :  { %v2890_v44 = vpop.permute.xlu1 %2889 }
0x35a1   :  { %v2892_v1 = vmul.f32 %v2890_v44, %v2887_v6 }
0x35a3   :  { %v10809_v2 = vadd.f32 %v2893_v52, %v2892_v1 }
0x35a5   :  { %v2895_v38 = vsel %vm877_vm12, %v10809_v2, %v2820_v22 }
0x35a6   :  { %v2897_v37 = vpack.c.bf16 %v2895_v38, %v2895_v38 }
0x35a8   :  { %2899 = vrot.lane.b32.xlu0 %v2897_v37, %s9782_s23 }
0x361a   :  { %v2900_v55 = vpop.permute.xlu0 %2899 }
0x361b   :  { %8657 = vmatmul.mubr.msk.bf16.vlgmr.msra.gmra.mrb[88].mxu1 %vm479_vm4, %v2900_v55 }
0x361c   :  { %8669 = vmatpush3.bf16.msra.mxu1 %v10600_v12  ;;  %8672 = vmatprep.mubr.msk.bf16.mxu1 %vm9779_vm0, %v12702_v0  ;;  %v2425_v12 = vadd.f32 %v10661_v9, %v10740_v61 }
0x361d   :  { %8670 = vmatprep.subr.bf16.mxu1 %v12702_v0 }
0x3620   :  { %8671 = vmatpush3.bf16.msra.mxu1 %v10611_v26 }
0x3621   :  { %8688 = vmatprep.subr.bf16.mxu1 %v12702_v0 }
0x36ee   :  { %v2938_v46 = vpop.f32.mrb[88].mxu1 }
0x36ef   :  { %v2939_v32 = vadd.f32 %v10652_v58, %v2938_v46  ;;  %v8658_v23 = vpop.f32.mrb[89].mxu1 }
0x36f0   :  { %v2941_v7 = vpop.f32.mrb[90].mxu1 }
0x36f1   :  { %2952 = vrot.lane.b32.xlu1 %v2939_v32, %s9781_s6  ;;  %v8659_v15 = vpop.f32.mrb[91].mxu1  ;;  %v2944_v59 = vadd.f32 %v2939_v32, %v2425_v12 }
0x36f3   :  { %v7771_v63 = vmul.f32 -1.442695, %v2944_v59 }
0x36f5   :  { %9459 = vpow2.f32 %v7771_v63  ;;  %v2469_v63 = vadd.f32 %v10661_v9, %v10647_v35  ;;  %v10931_v35 = vld [vmem:[%s12680_s7 + $0x18] sm:$0xff]  }
0x36ff   :  { %v9460_v34 = vpop.eup %9459 }
0x3700   :  { %v2948_v22 = vadd.f32 1.0, %v9460_v34 }
0x3702   :  { %9461 = vrcp.f32 %v2948_v22 }
0x370c   :  { %v9462_v26 = vpop.eup %9461 }
0x370d   :  { %v2962_v31 = vsub.f32 1.0, %v9462_v26  ;;  %v2968_v61 = vmul.f32 %v9462_v26, %v2895_v38 }
0x3763   :  { %v2953_v24 = vpop.permute.xlu1 %2952 }
0x3764   :  { %v2955_v51 = vmul.f32 %v9462_v26, %v2953_v24 }
0x3766   :  { %2957 = vrot.lane.b32.xlu0 %v2955_v51, %s9781_s6 }
0x37d8   :  { %v2958_v49 = vpop.permute.xlu0 %2957 }
0x37d9   :  { %v2960_v29 = vadd.f32 %v2958_v49, %v2425_v12 }
0x37db   :  { %9463 = vtanh.f32 %v2960_v29 }
0x37e5   :  { %v9464_v30 = vpop.eup %9463 }
0x37e6   :  { %2964 = vrot.lane.b32.xlu1 %v9464_v30, %s9782_s23 }
0x3858   :  { %v2965_v10 = vpop.permute.xlu1 %2964 }
0x3859   :  { %v2967_v50 = vmul.f32 %v2965_v10, %v2962_v31  ;;  %v10925_v10 = vld [vmem:[%s12680_s7 + $0x10] sm:$0xff]  }
0x385b   :  { %v10828_v8 = vadd.f32 %v2968_v61, %v2967_v50 }
0x385d   :  { %v10833_v42 = vsel %vm958_vm14, %v10828_v8, %v2895_v38 }
0x385e   :  { %v2972_v54 = vpack.c.bf16 %v10833_v42, %v10833_v42 }
0x3860   :  { %2974 = vrot.lane.b32.xlu0 %v2972_v54, %s9782_s23 }
0x38d2   :  { %v2975_v4 = vpop.permute.xlu0 %2974 }
0x38d3   :  { %8665 = vmatmul.mubr.msk.bf16.vlgmr.msra.gmra.mrb[92].mxu0 %vm479_vm4, %v2975_v4 }
0x38d4   :  { %8677 = vmatpush3.bf16.msra.mxu0 %v10841_v5  ;;  %8684 = vmatprep.mubr.msk.bf16.mxu0 %vm9779_vm0, %v12702_v0 }
0x38d5   :  { %8678 = vmatprep.subr.bf16.mxu0 %v12702_v0 }
0x38d8   :  { %8679 = vmatpush3.bf16.msra.mxu0 %v10848_v25 }
0x38d9   :  { %8680 = vmatprep.subr.bf16.mxu0 %v12702_v0 }
0x38dc   :  { %8681 = vmatpush3.bf16.msra.mxu0 %v10857_v40 }
0x38dd   :  { %8682 = vmatprep.subr.bf16.mxu0 %v12702_v0 }
0x38e0   :  { %8683 = vmatpush3.bf16.msra.mxu0 %v10864_v56 }
0x38e1   :  { %8700 = vmatprep.subr.bf16.mxu0 %v12702_v0 }
0x38e3   :  { %8685 = vmatmul.mubr.msk.bf16.vlgmr.msra.gmra.mrb[96].mxu0 %vm2166_vm7, %v10535_v11 }
0x38e4   :  { %8701 = vmatpush3.bf16.msra.mxu0 %v10841_v5  ;;  %8708 = vmatprep.mubr.msk.bf16.mxu0 %vm9779_vm0, %v12702_v0 }
0x38e5   :  { %8702 = vmatprep.subr.bf16.mxu0 %v12702_v0 }
0x38e8   :  { %8703 = vmatpush3.bf16.msra.mxu0 %v10848_v25 }
0x38e9   :  { %8704 = vmatprep.subr.bf16.mxu0 %v12702_v0 }
0x38ec   :  { %8705 = vmatpush3.bf16.msra.mxu0 %v10857_v40 }
0x38ed   :  { %8706 = vmatprep.subr.bf16.mxu0 %v12702_v0 }
0x38f0   :  { %8707 = vmatpush3.bf16.msra.mxu0 %v10864_v56 }
0x38f1   :  { %8724 = vmatprep.subr.bf16.mxu0 %v12702_v0 }
0x38f3   :  { %8709 = vmatmul.mubr.msk.bf16.vlgmr.msra.gmra.mrb[100].mxu0 %vm2166_vm7, %v10560_v19 }
0x38f4   :  { %8725 = vmatpush3.bf16.msra.mxu0 %v10841_v5  ;;  %8732 = vmatprep.mubr.msk.bf16.mxu0 %vm9779_vm0, %v12702_v0 }
0x38f5   :  { %8726 = vmatprep.subr.bf16.mxu0 %v12702_v0 }
0x38f8   :  { %8727 = vmatpush3.bf16.msra.mxu0 %v10848_v25 }
0x38f9   :  { %8728 = vmatprep.subr.bf16.mxu0 %v12702_v0 }
0x38fc   :  { %8729 = vmatpush3.bf16.msra.mxu0 %v10857_v40 }
0x38fd   :  { %8730 = vmatprep.subr.bf16.mxu0 %v12702_v0 }
0x3900   :  { %8731 = vmatpush3.bf16.msra.mxu0 %v10864_v56 }
0x3901   :  { %8748 = vmatprep.subr.bf16.mxu0 %v12702_v0 }
0x3903   :  { %8733 = vmatmul.mubr.msk.bf16.vlgmr.msra.gmra.mrb[104].mxu0 %vm2166_vm7, %v10579_v14 }
0x3904   :  { %8749 = vmatpush3.bf16.msra.mxu0 %v10841_v5  ;;  %8756 = vmatprep.mubr.msk.bf16.mxu0 %vm9779_vm0, %v12702_v0 }
0x3905   :  { %8750 = vmatprep.subr.bf16.mxu0 %v12702_v0 }
0x3908   :  { %8751 = vmatpush3.bf16.msra.mxu0 %v10848_v25 }
0x3909   :  { %8752 = vmatprep.subr.bf16.mxu0 %v12702_v0 }
0x390c   :  { %8753 = vmatpush3.bf16.msra.mxu0 %v10857_v40 }
0x390d   :  { %8754 = vmatprep.subr.bf16.mxu0 %v12702_v0 }
0x3910   :  { %8755 = vmatpush3.bf16.msra.mxu0 %v10864_v56 }
0x3911   :  { %8772 = vmatprep.subr.bf16.mxu0 %v12702_v0 }
0x3913   :  { %8757 = vmatmul.mubr.msk.bf16.vlgmr.msra.gmra.mrb[108].mxu0 %vm2166_vm7, %v10602_v17 }
0x3914   :  { %8776 = vmatprep.mubr.msk.bf16.mxu0 %vm9779_vm0, %v12702_v0  ;;  %8773 = vmatpush3.bf16.msra.mxu0 %v10925_v10 }
0x3915   :  { %8774 = vmatprep.subr.bf16.mxu0 %v12702_v0 }
0x3918   :  { %8775 = vmatpush3.bf16.msra.mxu0 %v10931_v35 }
0x3919   :  { %8788 = vmatprep.subr.bf16.mxu0 %v12702_v0 }
0x391b   :  { %8777 = vmatmul.mubr.bf16.vlgmr.msra.gmra.mrb[112].mxu0 %v12704_v3 }
0x391c   :  { %8789 = vmatpush3.bf16.msra.mxu0 %v10925_v10  ;;  %8792 = vmatprep.mubr.msk.bf16.mxu0 %vm9779_vm0, %v12702_v0 }
0x391d   :  { %8790 = vmatprep.subr.bf16.mxu0 %v12702_v0 }
0x3920   :  { %8791 = vmatpush3.bf16.msra.mxu0 %v10931_v35 }
0x3921   :  { %8804 = vmatprep.subr.bf16.mxu0 %v12702_v0 }
0x39a6   :  { %v3013_v11 = vpop.f32.mrb[92].mxu0 }
0x39a7   :  { %v3014_v19 = vadd.f32 %v10652_v58, %v3013_v11  ;;  %v8666_v14 = vpop.f32.mrb[93].mxu0 }
0x39a8   :  { %v3016_v27 = vpop.f32.mrb[94].mxu0 }
0x39a9   :  { %3027 = vrot.lane.b32.xlu1 %v3014_v19, %s9781_s6  ;;  %v8667_v45 = vpop.f32.mrb[95].mxu0  ;;  %v3019_v34 = vadd.f32 %v3014_v19, %v2469_v63  ;;  %v10959_v27 = vld [vmem:[%s12681_s9 + $0x1] ss:$0 sm:$0xff] }
0x39ab   :  { %v7773_v22 = vmul.f32 -1.442695, %v3019_v34 }
0x39ad   :  { %9465 = vpow2.f32 %v7773_v22 }
0x39b6   :  { %v10911_v6 = vpop.f32.mrb[96].mxu0 }
0x39b7   :  { %v8686_v44 = vpop.f32.mrb[97].mxu0  ;;  %v9466_v26 = vpop.eup %9465 }
0x39b8   :  { %v3213_v52 = vpop.f32.mrb[98].mxu0  ;;  %v3023_v24 = vadd.f32 1.0, %v9466_v26 }
0x39b9   :  { %v8687_v1 = vpop.f32.mrb[99].mxu0 }
0x39ba   :  { %9467 = vrcp.f32 %v3023_v24 }
0x39c4   :  { %v9468_v51 = vpop.eup %9467 }
0x39c5   :  { %v3037_v61 = vsub.f32 1.0, %v9468_v51  ;;  %v3043_v54 = vmul.f32 %v9468_v51, %v10833_v42 }
0x39c6   :  { %v10913_v38 = vpop.f32.mrb[100].mxu0 }
0x39c7   :  { %v8710_v37 = vpop.f32.mrb[101].mxu0 }
0x39c8   :  { %v3293_v17 = vpop.f32.mrb[102].mxu0 }
0x39c9   :  { %v8711_v55 = vpop.f32.mrb[103].mxu0 }
0x39d6   :  { %v10915_v46 = vpop.f32.mrb[104].mxu0 }
0x39d7   :  { %v8734_v32 = vpop.f32.mrb[105].mxu0 }
0x39d8   :  { %v3373_v23 = vpop.f32.mrb[106].mxu0 }
0x39d9   :  { %v8735_v58 = vpop.f32.mrb[107].mxu0 }
0x39e6   :  { %v10917_v7 = vpop.f32.mrb[108].mxu0 }
0x39e7   :  { %v8758_v15 = vpop.f32.mrb[109].mxu0 }
0x39e8   :  { %v3453_v12 = vpop.f32.mrb[110].mxu0 }
0x39e9   :  { %v8759_v59 = vpop.f32.mrb[111].mxu0 }
0x39ee   :  { %v3542_v45 = vpop.f32.mrb[112].mxu0 }
0x39ef   :  { %v10962_v44 = vadd.f32 %v10959_v27, %v3542_v45  ;;  %v8778_v52 = vpop.f32.mrb[113].mxu0 }
0x39f0   :  { %v3545_v1 = vpop.f32.mrb[114].mxu0 }
0x39f1   :  { %v8779_v37 = vpop.f32.mrb[115].mxu0 }
0x3a1b   :  { %v3028_v49 = vpop.permute.xlu1 %3027 }
0x3a1c   :  { %v3030_v29 = vmul.f32 %v9468_v51, %v3028_v49 }
0x3a1e   :  { %3032 = vrot.lane.b32.xlu0 %v3030_v29, %s9781_s6 }
0x3a90   :  { %v3033_v30 = vpop.permute.xlu0 %3032 }
0x3a91   :  { %v3035_v31 = vadd.f32 %v3033_v30, %v2469_v63  ;;  %v11032_v63 = vld [vmem:[%s12682_s8 + $0x1] ss:$0 sm:$0xff] }
0x3a93   :  { %9469 = vtanh.f32 %v3035_v31 }
0x3a9d   :  { %v9470_v9 = vpop.eup %9469 }
0x3a9e   :  { %3039 = vrot.lane.b32.xlu1 %v9470_v9, %s9782_s23 }
0x3aa2   :  { %3556 = vrot.lane.b32.xlu1 %v10962_v44, %s9781_s6 }
0x3b10   :  { %v3040_v50 = vpop.permute.xlu1 %3039 }
0x3b11   :  { %v3042_v4 = vmul.f32 %v3040_v50, %v3037_v61 }
0x3b13   :  { %v10945_v11 = vadd.f32 %v3043_v54, %v3042_v4 }
0x3b14   :  { %v3557_v9 = vpop.permute.xlu1 %3556 }
0x3b15   :  { %v10951_v19 = vsel %vm1039_vm5, %v10945_v11, %v10833_v42 }
0x3b16   :  { %v3047_v14 = vpack.c.bf16 %v10951_v19, %v10951_v19 }
0x3b18   :  { %3049 = vrot.lane.b32.xlu0 %v3047_v14, %s9782_s23 }
0x3b8a   :  { %v3050_v42 = vpop.permute.xlu0 %3049 }
0x3b8b   :  { %8673 = vmatmul.mubr.msk.bf16.vlgmr.msra.gmra.mrb[92].mxu1 %vm479_vm4, %v3050_v42 }
0x3b8c   :  { %8689 = vmatpush3.bf16.msra.mxu1 %v10841_v5  ;;  %8696 = vmatprep.mubr.msk.bf16.mxu1 %vm9779_vm0, %v12702_v0 }
0x3b8d   :  { %8690 = vmatprep.subr.bf16.mxu1 %v12702_v0 }
0x3b90   :  { %8691 = vmatpush3.bf16.msra.mxu1 %v10848_v25 }
0x3b91   :  { %8692 = vmatprep.subr.bf16.mxu1 %v12702_v0 }
0x3b94   :  { %8693 = vmatpush3.bf16.msra.mxu1 %v10857_v40 }
0x3b95   :  { %8694 = vmatprep.subr.bf16.mxu1 %v12702_v0 }
0x3b98   :  { %8695 = vmatpush3.bf16.msra.mxu1 %v10864_v56 }
0x3b99   :  { %8712 = vmatprep.subr.bf16.mxu1 %v12702_v0 }
0x3b9b   :  { %8697 = vmatmul.mubr.msk.bf16.vlgmr.msra.gmra.mrb[96].mxu1 %vm2166_vm7, %v10629_v28 }
0x3b9c   :  { %8713 = vmatpush3.bf16.msra.mxu1 %v10841_v5  ;;  %8720 = vmatprep.mubr.msk.bf16.mxu1 %vm9779_vm0, %v12702_v0 }
0x3b9d   :  { %8714 = vmatprep.subr.bf16.mxu1 %v12702_v0 }
0x3ba0   :  { %8715 = vmatpush3.bf16.msra.mxu1 %v10848_v25 }
0x3ba1   :  { %8716 = vmatprep.subr.bf16.mxu1 %v12702_v0 }
0x3ba4   :  { %8717 = vmatpush3.bf16.msra.mxu1 %v10857_v40 }
0x3ba5   :  { %8718 = vmatprep.subr.bf16.mxu1 %v12702_v0 }
0x3ba8   :  { %8719 = vmatpush3.bf16.msra.mxu1 %v10864_v56 }
0x3ba9   :  { %8736 = vmatprep.subr.bf16.mxu1 %v12702_v0 }
0x3bab   :  { %8721 = vmatmul.mubr.msk.bf16.vlgmr.msra.gmra.mrb[100].mxu1 %vm2166_vm7, %v10684_v60 }
0x3bac   :  { %8737 = vmatpush3.bf16.msra.mxu1 %v10841_v5  ;;  %8744 = vmatprep.mubr.msk.bf16.mxu1 %vm9779_vm0, %v12702_v0 }
0x3bad   :  { %8738 = vmatprep.subr.bf16.mxu1 %v12702_v0 }
0x3bb0   :  { %8739 = vmatpush3.bf16.msra.mxu1 %v10848_v25 }
0x3bb1   :  { %8740 = vmatprep.subr.bf16.mxu1 %v12702_v0 }
0x3bb4   :  { %8741 = vmatpush3.bf16.msra.mxu1 %v10857_v40 }
0x3bb5   :  { %8742 = vmatprep.subr.bf16.mxu1 %v12702_v0 }
0x3bb8   :  { %8743 = vmatpush3.bf16.msra.mxu1 %v10864_v56 }
0x3bb9   :  { %8760 = vmatprep.subr.bf16.mxu1 %v12702_v0 }
0x3bbb   :  { %8745 = vmatmul.mubr.msk.bf16.vlgmr.msra.gmra.mrb[104].mxu1 %vm2166_vm7, %v10704_v62 }
0x3bbc   :  { %8761 = vmatpush3.bf16.msra.mxu1 %v10841_v5  ;;  %8768 = vmatprep.mubr.msk.bf16.mxu1 %vm9779_vm0, %v12702_v0 }
0x3bbd   :  { %8762 = vmatprep.subr.bf16.mxu1 %v12702_v0 }
0x3bc0   :  { %8763 = vmatpush3.bf16.msra.mxu1 %v10848_v25 }
0x3bc1   :  { %8764 = vmatprep.subr.bf16.mxu1 %v12702_v0 }
0x3bc4   :  { %8765 = vmatpush3.bf16.msra.mxu1 %v10857_v40 }
0x3bc5   :  { %8766 = vmatprep.subr.bf16.mxu1 %v12702_v0 }
0x3bc8   :  { %8767 = vmatpush3.bf16.msra.mxu1 %v10864_v56 }
0x3bc9   :  { %8780 = vmatprep.subr.bf16.mxu1 %v12702_v0 }
0x3bcb   :  { %8769 = vmatmul.mubr.msk.bf16.vlgmr.msra.gmra.mrb[108].mxu1 %vm2166_vm7, %v10720_v48 }
0x3bcc   :  { %8781 = vmatpush3.bf16.msra.mxu1 %v10925_v10  ;;  %8784 = vmatprep.mubr.msk.bf16.mxu1 %vm9779_vm0, %v12702_v0 }
0x3bcd   :  { %8782 = vmatprep.subr.bf16.mxu1 %v12702_v0 }
0x3bd0   :  { %8783 = vmatpush3.bf16.msra.mxu1 %v10931_v35 }
0x3bd1   :  { %8796 = vmatprep.subr.bf16.mxu1 %v12702_v0 }
0x3c5e   :  { %v11021_v28 = vpop.f32.mrb[92].mxu1 }
0x3c5f   :  { %v8674_v60 = vpop.f32.mrb[93].mxu1 }
0x3c60   :  { %v3091_v62 = vpop.f32.mrb[94].mxu1 }
0x3c61   :  { %v8675_v5 = vpop.f32.mrb[95].mxu1 }
0x3c6e   :  { %v11023_v25 = vpop.f32.mrb[96].mxu1 }
0x3c6f   :  { %v8698_v40 = vpop.f32.mrb[97].mxu1 }
0x3c70   :  { %v3253_v48 = vpop.f32.mrb[98].mxu1 }
0x3c71   :  { %v8699_v56 = vpop.f32.mrb[99].mxu1 }
0x3c7e   :  { %v11025_v17 = vpop.f32.mrb[100].mxu1 }
0x3c7f   :  { %v8722_v55 = vpop.f32.mrb[101].mxu1 }
0x3c80   :  { %v3333_v32 = vpop.f32.mrb[102].mxu1 }
0x3c81   :  { %v8723_v23 = vpop.f32.mrb[103].mxu1  ;;  %v3451_v32 = vadd.f32 %v11032_v63, %v10917_v7 }
0x3c8e   :  { %v11027_v58 = vpop.f32.mrb[104].mxu1 }
0x3c8f   :  { %v8746_v15 = vpop.f32.mrb[105].mxu1 }
0x3c90   :  { %v3413_v12 = vpop.f32.mrb[106].mxu1 }
0x3c91   :  { %v8747_v59 = vpop.f32.mrb[107].mxu1 }
0x3c9e   :  { %v3490_v34 = vpop.f32.mrb[108].mxu1 }
0x3c9f   :  { %v3491_v22 = vadd.f32 %v11032_v63, %v3490_v34  ;;  %v8770_v26 = vpop.f32.mrb[109].mxu1 }
0x3ca0   :  { %v3493_v24 = vpop.f32.mrb[110].mxu1 }
0x3ca1   :  { %v3548_v51 = vadd.f32 %v10962_v44, %v3491_v22  ;;  %v8771_v49 = vpop.f32.mrb[111].mxu1 }
0x3ca3   :  { %v7806_v29 = vmul.f32 -1.442695, %v3548_v51 }
0x3ca5   :  { %9471 = vpow2.f32 %v7806_v29 }
0x3caf   :  { %v9472_v30 = vpop.eup %9471 }
0x3cb0   :  { %v3552_v31 = vadd.f32 1.0, %v9472_v30 }
0x3cb2   :  { %9473 = vrcp.f32 %v3552_v31 }
0x3cbc   :  { %v9474_v61 = vpop.eup %9473 }
0x3cbd   :  { %v3559_v50 = vmul.f32 %v9474_v61, %v3557_v9  ;;  %v3566_v45 = vsub.f32 1.0, %v9474_v61  ;;  %v3572_v44 = vmul.f32 0.0, %v9474_v61 }
0x3cbf   :  { %3561 = vrot.lane.b32.xlu0 %v3559_v50, %s9781_s6 }
0x3d31   :  { %v3562_v54 = vpop.permute.xlu0 %3561 }
0x3d32   :  { %v3564_v4 = vadd.f32 %v3562_v54, %v3491_v22 }
0x3d34   :  { %9475 = vtanh.f32 %v3564_v4 }
0x3d3e   :  { %v9476_v14 = vpop.eup %9475 }
0x3d3f   :  { %3568 = vrot.lane.b32.xlu1 %v9476_v14, %s9782_s23 }
0x3db1   :  { %v3569_v52 = vpop.permute.xlu1 %3568 }
0x3db2   :  { %v3571_v1 = vmul.f32 %v3569_v52, %v3566_v45 }
0x3db4   :  { %v3573_v37 = vadd.f32 %v3572_v44, %v3571_v1  ;;  %v3411_v1 = vadd.f32 %v11032_v63, %v11027_v58 }
0x3db6   :  { %v11040_v42 = vsel %vm1120_vm1, %v3573_v37, 0.0 }
0x3db7   :  { %v3575_v60 = vpack.c.bf16 %v11040_v42, %v11040_v42 }
0x3db9   :  { %3577 = vrot.lane.b32.xlu0 %v3575_v60, %s9782_s23 }
0x3e2b   :  { %v3578_v62 = vpop.permute.xlu0 %3577 }
0x3e2c   :  { %8785 = vmatmul.mubr.msk.bf16.vlgmr.msra.gmra.mrb[112].mxu1 %vm479_vm4, %v3578_v62 }
0x3e2d   :  { %8797 = vmatpush3.bf16.msra.mxu1 %v10925_v10  ;;  %8800 = vmatprep.mubr.msk.bf16.mxu1 %vm9779_vm0, %v12702_v0 }
0x3e2e   :  { %8798 = vmatprep.subr.bf16.mxu1 %v12702_v0 }
0x3e31   :  { %8799 = vmatpush3.bf16.msra.mxu1 %v10931_v35 }
0x3e32   :  { %8812 = vmatprep.subr.bf16.mxu1 %v12702_v0 }
0x3eff   :  { %v3616_v5 = vpop.f32.mrb[112].mxu1 }
0x3f00   :  { %v3617_v40 = vadd.f32 %v10959_v27, %v3616_v5  ;;  %v8786_v48 = vpop.f32.mrb[113].mxu1 }
0x3f01   :  { %v3619_v56 = vpop.f32.mrb[114].mxu1 }
0x3f02   :  { %3630 = vrot.lane.b32.xlu1 %v3617_v40, %s9781_s6  ;;  %v8787_v55 = vpop.f32.mrb[115].mxu1  ;;  %v3622_v23 = vadd.f32 %v3617_v40, %v3451_v32 }
0x3f04   :  { %v7808_v15 = vmul.f32 -1.442695, %v3622_v23 }
0x3f06   :  { %9477 = vpow2.f32 %v7808_v15 }
0x3f10   :  { %v9478_v12 = vpop.eup %9477 }
0x3f11   :  { %v3626_v59 = vadd.f32 1.0, %v9478_v12 }
0x3f13   :  { %9479 = vrcp.f32 %v3626_v59 }
0x3f1d   :  { %v9480_v34 = vpop.eup %9479 }
0x3f1e   :  { %v3640_v29 = vsub.f32 1.0, %v9480_v34  ;;  %v3646_v7 = vmul.f32 %v9480_v34, %v11040_v42 }
0x3f74   :  { %v3631_v22 = vpop.permute.xlu1 %3630 }
0x3f75   :  { %v3633_v26 = vmul.f32 %v9480_v34, %v3631_v22 }
0x3f77   :  { %3635 = vrot.lane.b32.xlu0 %v3633_v26, %s9781_s6 }
0x3fe9   :  { %v3636_v24 = vpop.permute.xlu0 %3635 }
0x3fea   :  { %v3638_v51 = vadd.f32 %v3636_v24, %v3451_v32 }
0x3fec   :  { %9481 = vtanh.f32 %v3638_v51 }
0x3ff6   :  { %v9482_v49 = vpop.eup %9481 }
0x3ff7   :  { %3642 = vrot.lane.b32.xlu1 %v9482_v49, %s9782_s23 }
0x4069   :  { %v3643_v30 = vpop.permute.xlu1 %3642 }
0x406a   :  { %v3645_v31 = vmul.f32 %v3643_v30, %v3640_v29 }
0x406c   :  { %v11059_v9 = vadd.f32 %v3646_v7, %v3645_v31  ;;  %v3371_v31 = vadd.f32 %v11032_v63, %v10915_v46 }
0x406e   :  { %v3648_v61 = vsel %vm1039_vm5, %v11059_v9, %v11040_v42 }
0x406f   :  { %v3650_v50 = vpack.c.bf16 %v3648_v61, %v3648_v61 }
0x4071   :  { %3652 = vrot.lane.b32.xlu0 %v3650_v50, %s9782_s23 }
0x40e3   :  { %v3653_v54 = vpop.permute.xlu0 %3652 }
0x40e4   :  { %8793 = vmatmul.mubr.msk.bf16.vlgmr.msra.gmra.mrb[116].mxu0 %vm479_vm4, %v3653_v54 }
0x40e5   :  { %8805 = vmatpush3.bf16.msra.mxu0 %v10925_v10  ;;  %8808 = vmatprep.mubr.msk.bf16.mxu0 %vm9779_vm0, %v12702_v0 }
0x40e6   :  { %8806 = vmatprep.subr.bf16.mxu0 %v12702_v0 }
0x40e9   :  { %8807 = vmatpush3.bf16.msra.mxu0 %v10931_v35 }
0x40ea   :  { %8820 = vmatprep.subr.bf16.mxu0 %v12702_v0 }
0x41b7   :  { %v3691_v4 = vpop.f32.mrb[116].mxu0 }
0x41b8   :  { %v3692_v14 = vadd.f32 %v10959_v27, %v3691_v4  ;;  %v8794_v45 = vpop.f32.mrb[117].mxu0 }
0x41b9   :  { %v3694_v52 = vpop.f32.mrb[118].mxu0 }
0x41ba   :  { %3705 = vrot.lane.b32.xlu1 %v3692_v14, %s9781_s6  ;;  %v8795_v44 = vpop.f32.mrb[119].mxu0  ;;  %v3697_v37 = vadd.f32 %v3692_v14, %v3411_v1 }
0x41bc   :  { %v7810_v60 = vmul.f32 -1.442695, %v3697_v37 }
0x41be   :  { %9483 = vpow2.f32 %v7810_v60 }
0x41c8   :  { %v9484_v62 = vpop.eup %9483 }
0x41c9   :  { %v3701_v5 = vadd.f32 1.0, %v9484_v62 }
0x41cb   :  { %9485 = vrcp.f32 %v3701_v5 }
0x41d5   :  { %v9486_v40 = vpop.eup %9485 }
0x41d6   :  { %v3715_v15 = vsub.f32 1.0, %v9486_v40  ;;  %v3721_v58 = vmul.f32 %v9486_v40, %v3648_v61 }
0x422c   :  { %v3706_v48 = vpop.permute.xlu1 %3705 }
0x422d   :  { %v3708_v56 = vmul.f32 %v9486_v40, %v3706_v48 }
0x422f   :  { %3710 = vrot.lane.b32.xlu0 %v3708_v56, %s9781_s6 }
0x42a1   :  { %v3711_v55 = vpop.permute.xlu0 %3710 }
0x42a2   :  { %v3713_v32 = vadd.f32 %v3711_v55, %v3411_v1 }
0x42a4   :  { %9487 = vtanh.f32 %v3713_v32 }
0x42ae   :  { %v9488_v23 = vpop.eup %9487 }
0x42af   :  { %3717 = vrot.lane.b32.xlu1 %v9488_v23, %s9782_s23 }
0x4321   :  { %v3718_v12 = vpop.permute.xlu1 %3717 }
0x4322   :  { %v3720_v59 = vmul.f32 %v3718_v12, %v3715_v15 }
0x4324   :  { %v11079_v34 = vadd.f32 %v3721_v58, %v3720_v59  ;;  %v3331_v59 = vadd.f32 %v11032_v63, %v11025_v17 }
0x4326   :  { %v3723_v22 = vsel %vm958_vm14, %v11079_v34, %v3648_v61 }
0x4327   :  { %v3725_v26 = vpack.c.bf16 %v3723_v22, %v3723_v22 }
0x4329   :  { %3727 = vrot.lane.b32.xlu0 %v3725_v26, %s9782_s23 }
0x439b   :  { %v3728_v24 = vpop.permute.xlu0 %3727 }
0x439c   :  { %8801 = vmatmul.mubr.msk.bf16.vlgmr.msra.gmra.mrb[116].mxu1 %vm479_vm4, %v3728_v24 }
0x439d   :  { %8813 = vmatpush3.bf16.msra.mxu1 %v10925_v10  ;;  %8816 = vmatprep.mubr.msk.bf16.mxu1 %vm9779_vm0, %v12702_v0 }
0x439e   :  { %8814 = vmatprep.subr.bf16.mxu1 %v12702_v0 }
0x43a1   :  { %8815 = vmatpush3.bf16.msra.mxu1 %v10931_v35 }
0x43a2   :  { %8828 = vmatprep.subr.bf16.mxu1 %v12702_v0 }
0x446f   :  { %v3766_v51 = vpop.f32.mrb[116].mxu1 }
0x4470   :  { %v3767_v49 = vadd.f32 %v10959_v27, %v3766_v51  ;;  %v8802_v29 = vpop.f32.mrb[117].mxu1 }
0x4471   :  { %v3769_v30 = vpop.f32.mrb[118].mxu1 }
0x4472   :  { %3780 = vrot.lane.b32.xlu1 %v3767_v49, %s9781_s6  ;;  %v8803_v7 = vpop.f32.mrb[119].mxu1  ;;  %v3772_v61 = vadd.f32 %v3767_v49, %v3371_v31 }
0x4474   :  { %v7812_v50 = vmul.f32 -1.442695, %v3772_v61 }
0x4476   :  { %9489 = vpow2.f32 %v7812_v50 }
0x4480   :  { %v9490_v54 = vpop.eup %9489 }
0x4481   :  { %v3776_v4 = vadd.f32 1.0, %v9490_v54 }
0x4483   :  { %9491 = vrcp.f32 %v3776_v4 }
0x448d   :  { %v9492_v14 = vpop.eup %9491 }
0x448e   :  { %v3790_v60 = vsub.f32 1.0, %v9492_v14  ;;  %v3796_v46 = vmul.f32 %v9492_v14, %v3723_v22 }
0x44e4   :  { %v3781_v45 = vpop.permute.xlu1 %3780 }
0x44e5   :  { %v3783_v52 = vmul.f32 %v9492_v14, %v3781_v45 }
0x44e7   :  { %3785 = vrot.lane.b32.xlu0 %v3783_v52, %s9781_s6 }
0x4559   :  { %v3786_v44 = vpop.permute.xlu0 %3785 }
0x455a   :  { %v3788_v1 = vadd.f32 %v3786_v44, %v3371_v31 }
0x455c   :  { %9493 = vtanh.f32 %v3788_v1 }
0x4566   :  { %v9494_v37 = vpop.eup %9493 }
0x4567   :  { %3792 = vrot.lane.b32.xlu1 %v9494_v37, %s9782_s23 }
0x45d9   :  { %v3793_v62 = vpop.permute.xlu1 %3792 }
0x45da   :  { %v3795_v5 = vmul.f32 %v3793_v62, %v3790_v60 }
0x45dc   :  { %v11098_v40 = vadd.f32 %v3796_v46, %v3795_v5  ;;  %v3291_v5 = vadd.f32 %v11032_v63, %v10913_v38 }
0x45de   :  { %v3798_v48 = vsel %vm877_vm12, %v11098_v40, %v3723_v22 }
0x45df   :  { %v3800_v56 = vpack.c.bf16 %v3798_v48, %v3798_v48 }
0x45e1   :  { %3802 = vrot.lane.b32.xlu0 %v3800_v56, %s9782_s23 }
0x4653   :  { %v3803_v55 = vpop.permute.xlu0 %3802 }
0x4654   :  { %8809 = vmatmul.mubr.msk.bf16.vlgmr.msra.gmra.mrb[120].mxu0 %vm479_vm4, %v3803_v55 }
0x4655   :  { %8821 = vmatpush3.bf16.msra.mxu0 %v10925_v10  ;;  %8824 = vmatprep.mubr.msk.bf16.mxu0 %vm9779_vm0, %v12702_v0 }
0x4656   :  { %8822 = vmatprep.subr.bf16.mxu0 %v12702_v0 }
0x4659   :  { %8823 = vmatpush3.bf16.msra.mxu0 %v10931_v35 }
0x4727   :  { %v3841_v32 = vpop.f32.mrb[120].mxu0 }
0x4728   :  { %v3842_v23 = vadd.f32 %v10959_v27, %v3841_v32  ;;  %v8810_v15 = vpop.f32.mrb[121].mxu0 }
0x4729   :  { %v3844_v12 = vpop.f32.mrb[122].mxu0 }
0x472a   :  { %3855 = vrot.lane.b32.xlu1 %v3842_v23, %s9781_s6  ;;  %v8811_v58 = vpop.f32.mrb[123].mxu0  ;;  %v3847_v22 = vadd.f32 %v3842_v23, %v3331_v59 }
0x472c   :  { %v7814_v26 = vmul.f32 -1.442695, %v3847_v22 }
0x472e   :  { %9495 = vpow2.f32 %v7814_v26 }
0x4738   :  { %v9496_v24 = vpop.eup %9495 }
0x4739   :  { %v3851_v51 = vadd.f32 1.0, %v9496_v24 }
0x473b   :  { %9497 = vrcp.f32 %v3851_v51 }
0x4745   :  { %v9498_v49 = vpop.eup %9497 }
0x4746   :  { %v3865_v50 = vsub.f32 1.0, %v9498_v49  ;;  %v3871_v17 = vmul.f32 %v9498_v49, %v3798_v48 }
0x479c   :  { %v3856_v29 = vpop.permute.xlu1 %3855 }
0x479d   :  { %v3858_v30 = vmul.f32 %v9498_v49, %v3856_v29 }
0x479f   :  { %3860 = vrot.lane.b32.xlu0 %v3858_v30, %s9781_s6 }
0x4811   :  { %v3861_v7 = vpop.permute.xlu0 %3860 }
0x4812   :  { %v3863_v31 = vadd.f32 %v3861_v7, %v3331_v59 }
0x4814   :  { %9499 = vtanh.f32 %v3863_v31 }
0x481e   :  { %v9500_v61 = vpop.eup %9499 }
0x481f   :  { %3867 = vrot.lane.b32.xlu1 %v9500_v61, %s9782_s23 }
0x4891   :  { %v3868_v54 = vpop.permute.xlu1 %3867 }
0x4892   :  { %v3870_v4 = vmul.f32 %v3868_v54, %v3865_v50  ;;  %v3251_v54 = vadd.f32 %v11032_v63, %v11023_v25 }
0x4894   :  { %v11116_v14 = vadd.f32 %v3871_v17, %v3870_v4 }
0x4896   :  { %v3873_v45 = vsel %vm796_vm10, %v11116_v14, %v3798_v48 }
0x4897   :  { %v3875_v52 = vpack.c.bf16 %v3873_v45, %v3873_v45 }
0x4899   :  { %3877 = vrot.lane.b32.xlu0 %v3875_v52, %s9782_s23 }
0x490b   :  { %v3878_v44 = vpop.permute.xlu0 %3877 }
0x490c   :  { %8817 = vmatmul.mubr.msk.bf16.vlgmr.msra.gmra.mrb[120].mxu1 %vm479_vm4, %v3878_v44 }
0x490d   :  { %8829 = vmatpush3.bf16.msra.mxu1 %v10925_v10  ;;  %8832 = vmatprep.mubr.msk.bf16.mxu1 %vm9779_vm0, %v12702_v0 }
0x490e   :  { %8830 = vmatprep.subr.bf16.mxu1 %v12702_v0 }
0x4911   :  { %8831 = vmatpush3.bf16.msra.mxu1 %v10931_v35 }
0x49df   :  { %v3916_v1 = vpop.f32.mrb[120].mxu1 }
0x49e0   :  { %v3917_v37 = vadd.f32 %v10959_v27, %v3916_v1  ;;  %v8818_v60 = vpop.f32.mrb[121].mxu1 }
0x49e1   :  { %v3919_v62 = vpop.f32.mrb[122].mxu1 }
0x49e2   :  { %3930 = vrot.lane.b32.xlu1 %v3917_v37, %s9781_s6  ;;  %v8819_v46 = vpop.f32.mrb[123].mxu1  ;;  %v3922_v48 = vadd.f32 %v3917_v37, %v3291_v5 }
0x49e4   :  { %v7816_v10 = vmul.f32 -1.442695, %v3922_v48 }
0x49e6   :  { %9501 = vpow2.f32 %v7816_v10 }
0x49f0   :  { %v9502_v56 = vpop.eup %9501 }
0x49f1   :  { %v3926_v55 = vadd.f32 1.0, %v9502_v56 }
0x49f3   :  { %9503 = vrcp.f32 %v3926_v55 }
0x49fd   :  { %v9504_v32 = vpop.eup %9503 }
0x49fe   :  { %v3940_v59 = vsub.f32 1.0, %v9504_v32  ;;  %v3946_v38 = vmul.f32 %v9504_v32, %v3873_v45 }
0x4a54   :  { %v3931_v23 = vpop.permute.xlu1 %3930 }
0x4a55   :  { %v3933_v35 = vmul.f32 %v9504_v32, %v3931_v23 }
0x4a57   :  { %3935 = vrot.lane.b32.xlu0 %v3933_v35, %s9781_s6  ;;  %v11160_v35 = vld [vmem:[%s12683_s10 + $0x4] ss:$8 sps:$4 sm:$0xff]  }
0x4a58   :  { %4274 = vmatprep.subr.bf16.mxu1 %v11160_v35  ;;  %4229 = vmatprep.subr.bf16.mxu0 %v11160_v35 }
0x4ac9   :  { %v3936_v15 = vpop.permute.xlu0 %3935 }
0x4aca   :  { %v3938_v12 = vadd.f32 %v3936_v15, %v3291_v5  ;;  %v11165_v15 = vld [vmem:[%s12683_s10] ss:$8 sps:$4 sm:$0xff]  }
0x4acc   :  { %9505 = vtanh.f32 %v3938_v12  ;;  %v11171_v12 = vld [vmem:[%s12683_s10 + $0x14] ss:$8 sps:$4 sm:$0xff]  }
0x4ad6   :  { %v9506_v58 = vpop.eup %9505 }
0x4ad7   :  { %3942 = vrot.lane.b32.xlu1 %v9506_v58, %s9782_s23  ;;  %v11178_v58 = vld [vmem:[%s12683_s10 + $0x10] ss:$8 sps:$4 sm:$0xff]  }
0x4b49   :  { %v3943_v22 = vpop.permute.xlu1 %3942 }
0x4b4a   :  { %v3945_v26 = vmul.f32 %v3943_v22, %v3940_v59  ;;  %v11185_v59 = vld [vmem:[%s12683_s10 + $0x24] ss:$8 sps:$4 sm:$0xff]   ;;  %v11195_v22 = vld [vmem:[%s12683_s10 + $0x20] ss:$8 sps:$4 sm:$0xff]  }
0x4b4c   :  { %v11134_v24 = vadd.f32 %v3946_v38, %v3945_v26  ;;  %v11202_v38 = vld [vmem:[%s12683_s10 + $0x34] ss:$8 sps:$4 sm:$0xff]   ;;  %v11207_v26 = vld [vmem:[%s12683_s10 + $0x30] ss:$8 sps:$4 sm:$0xff]  }
0x4b4e   :  { %v3948_v51 = vsel %vm715_vm8, %v11134_v24, %v3873_v45 }
0x4b4f   :  { %v3950_v49 = vpack.c.bf16 %v3948_v51, %v3948_v51 }
0x4b51   :  { %3952 = vrot.lane.b32.xlu0 %v3950_v49, %s9782_s23 }
0x4bc3   :  { %v3953_v29 = vpop.permute.xlu0 %3952 }
0x4bc4   :  { %8825 = vmatmul.mubr.msk.bf16.vlgmr.msra.gmra.mrb[124].mxu0 %vm479_vm4, %v3953_v29 }
0x4bc5   :  { %4261 = vmatprep.mubr.bf16.mxu0 %v12704_v3  ;;  %4230 = vmatpush1.bf16.msra.mxu0 %v11165_v15 }
0x4bc6   :  { %4231 = vmatprep.subr.bf16.mxu0 %v11171_v12 }
0x4bc9   :  { %4232 = vmatpush1.bf16.msra.mxu0 %v11178_v58 }
0x4bca   :  { %4233 = vmatprep.subr.bf16.mxu0 %v11185_v59 }
0x4bcd   :  { %4234 = vmatpush1.bf16.msra.mxu0 %v11195_v22 }
0x4bce   :  { %4235 = vmatprep.subr.bf16.mxu0 %v11202_v38 }
0x4bd1   :  { %4236 = vmatpush1.bf16.msra.mxu0 %v11207_v26 }
0x4bd2   :  { %4319 = vmatprep.subr.bf16.mxu0 %v11160_v35 }
0x4c97   :  { %v3991_v30 = vpop.f32.mrb[124].mxu0 }
0x4c98   :  { %v3992_v7 = vadd.f32 %v10959_v27, %v3991_v30  ;;  %v8826_v31 = vpop.f32.mrb[125].mxu0 }
0x4c99   :  { %v3994_v61 = vpop.f32.mrb[126].mxu0  ;;  %v2671_v31 = vsel %vm634_vm6, %v10751_v39, 0.0  ;;  %v3046_v39 = vsel %vm1039_vm5, %v10945_v11, 0.0 }
0x4c9a   :  { %4005 = vrot.lane.b32.xlu1 %v3992_v7, %s9781_s6  ;;  %v8827_v50 = vpop.f32.mrb[127].mxu0  ;;  %v3997_v17 = vadd.f32 %v3992_v7, %v3251_v54  ;;  %v2971_v61 = vsel %vm958_vm14, %v10828_v8, 0.0  ;;  %v3211_v8 = vadd.f32 %v11032_v63, %v10911_v6  ;;  %v2821_v6 = vsel %vm796_vm10, %v10790_v20, 0.0 }
0x4c9c   :  { %v7818_v4 = vmul.f32 -1.442695, %v3997_v17 }
0x4c9e   :  { %9507 = vpow2.f32 %v7818_v4 }
0x4ca8   :  { %v9508_v45 = vpop.eup %9507 }
0x4ca9   :  { %v4001_v52 = vadd.f32 1.0, %v9508_v45 }
0x4cab   :  { %9509 = vrcp.f32 %v4001_v52 }
0x4cb5   :  { %v9510_v44 = vpop.eup %9509 }
0x4cb6   :  { %v4015_v5 = vsub.f32 1.0, %v9510_v44  ;;  %v4021_v25 = vmul.f32 %v9510_v44, %v3948_v51 }
0x4d0c   :  { %v4006_v1 = vpop.permute.xlu1 %4005 }
0x4d0d   :  { %v4008_v37 = vmul.f32 %v9510_v44, %v4006_v1  ;;  %v3874_v1 = vsel %vm796_vm10, %v11116_v14, 0.0  ;;  %v3724_v14 = vsel %vm958_vm14, %v11079_v34, 0.0  ;;  %v11310_v34 = vld [vmem:[%s12684_s11 + $0x14] ss:$8 sps:$4 sm:$0xff]  }
0x4d0f   :  { %4010 = vrot.lane.b32.xlu0 %v4008_v37, %s9781_s6 }
0x4d81   :  { %v4011_v60 = vpop.permute.xlu0 %4010 }
0x4d82   :  { %v4013_v62 = vadd.f32 %v4011_v60, %v3251_v54 }
0x4d84   :  { %9511 = vtanh.f32 %v4013_v62 }
0x4d8e   :  { %v9512_v46 = vpop.eup %9511 }
0x4d8f   :  { %4017 = vrot.lane.b32.xlu1 %v9512_v46, %s9782_s23 }
0x4e01   :  { %v4018_v48 = vpop.permute.xlu1 %4017 }
0x4e02   :  { %v4020_v10 = vmul.f32 %v4018_v48, %v4015_v5  ;;  %v11291_v5 = vld [vmem:[%s12684_s11 + $0x4] ss:$8 sps:$4 sm:$0xff]  }
0x4e04   :  { %v4022_v56 = vadd.f32 %v4021_v25, %v4020_v10  ;;  %v11300_v25 = vld [vmem:[%s12684_s11] ss:$8 sps:$4 sm:$0xff]   ;;  %v11318_v10 = vld [vmem:[%s12684_s11 + $0x10] ss:$8 sps:$4 sm:$0xff]  }
0x4e06   :  { %v11150_v55 = vsel %vm634_vm6, %v4022_v56, %v3948_v51  ;;  %v4024_v11 = vsel %vm634_vm6, %v4022_v56, 0.0  ;;  %v11325_v56 = vld [vmem:[%s12684_s11 + $0x24] ss:$8 sps:$4 sm:$0xff]   ;;  %vm5098_vm6 = vcmask 517120  }
0x4e07   :  { %v4025_v32 = vpack.c.bf16 %v11150_v55, %v11150_v55 }
0x4e09   :  { %4027 = vrot.lane.b32.xlu0 %v4025_v32, %s9782_s23  ;;  %v11331_v32 = vld [vmem:[%s12684_s11 + $0x20] ss:$8 sps:$4 sm:$0xff]  }
0x4e7b   :  { %v4028_v23 = vpop.permute.xlu0 %4027 }
0x4e7c   :  { %8833 = vmatmul.mubr.msk.bf16.vlgmr.msra.gmra.mrb[124].mxu1 %vm479_vm4, %v4028_v23  ;;  %v11337_v23 = vld [vmem:[%s12684_s11 + $0x34] ss:$8 sps:$4 sm:$0xff]  }
0x4e7d   :  { %4306 = vmatprep.mubr.bf16.mxu1 %v12704_v3  ;;  %4275 = vmatpush1.bf16.msra.mxu1 %v11165_v15 }
0x4e7e   :  { %4276 = vmatprep.subr.bf16.mxu1 %v11171_v12 }
0x4e81   :  { %4277 = vmatpush1.bf16.msra.mxu1 %v11178_v58 }
0x4e82   :  { %4278 = vmatprep.subr.bf16.mxu1 %v11185_v59 }
0x4e85   :  { %4279 = vmatpush1.bf16.msra.mxu1 %v11195_v22 }
0x4e86   :  { %4280 = vmatprep.subr.bf16.mxu1 %v11202_v38 }
0x4e89   :  { %4281 = vmatpush1.bf16.msra.mxu1 %v11207_v26 }
0x4e8a   :  { %4364 = vmatprep.subr.bf16.mxu1 %v11160_v35 }
0x4f4f   :  { %v4066_v51 = vpop.f32.mrb[124].mxu1 }
0x4f50   :  { %v4067_v49 = vadd.f32 %v10959_v27, %v4066_v51  ;;  %v8834_v29 = vpop.f32.mrb[125].mxu1  ;;  %v2746_v27 = vsel %vm715_vm8, %v10771_v43, 0.0  ;;  %v11343_v51 = vld [vmem:[%s12684_s11 + $0x30] ss:$8 sps:$4 sm:$0xff]  }
0x4f51   :  { %v4069_v30 = vpop.f32.mrb[126].mxu1 }
0x4f52   :  { %4080 = vrot.lane.b32.xlu1 %v4067_v49, %s9781_s6  ;;  %v8835_v7 = vpop.f32.mrb[127].mxu1  ;;  %v4072_v50 = vadd.f32 %v4067_v49, %v3211_v8 }
0x4f54   :  { %v7820_v54 = vmul.f32 -1.442695, %v4072_v50 }
0x4f56   :  { %4106 = vrot.lane.b32.xlu1 %v2671_v31, %s9782_s23  ;;  %9513 = vpow2.f32 %v7820_v54 }
0x4f5a   :  { %4126 = vrot.lane.b32.xlu1 %v2971_v61, %s9782_s23 }
0x4f5e   :  { %4101 = vrot.lane.b32.xlu1 %v10681_v16, %s9782_s23 }
0x4f60   :  { %v9514_v17 = vpop.eup %9513 }
0x4f61   :  { %v4076_v16 = vadd.f32 1.0, %v9514_v17 }
0x4f62   :  { %4111 = vrot.lane.b32.xlu1 %v2746_v27, %s9782_s23 }
0x4f63   :  { %9515 = vrcp.f32 %v4076_v16 }
0x4f66   :  { %4131 = vrot.lane.b32.xlu1 %v3046_v39, %s9782_s23 }
0x4f6d   :  { %v11237_v4 = vpop.eup %9515 }
0x4f6e   :  { %v4090_v31 = vsub.f32 1.0, %v11237_v4  ;;  %v4096_v27 = vmul.f32 %v11237_v4, %v11150_v55 }
0x4fc4   :  { %v4081_v43 = vpop.permute.xlu1 %4080 }
0x4fc5   :  { %v4083_v45 = vmul.f32 %v11237_v4, %v4081_v43  ;;  %v3949_v43 = vsel %vm715_vm8, %v11134_v24, 0.0 }
0x4fc7   :  { %4085 = vrot.lane.b32.xlu0 %v4083_v45, %s9781_s6 }
0x4fc8   :  { %v4107_v52 = vpop.permute.xlu1 %4106 }
0x4fc9   :  { %v11244_v44 = vsel %vm479_vm4, %v4107_v52, %v4024_v11 }
0x4fca   :  { %v11251_v63 = vpack.c.bf16 %v11244_v44, %v11244_v44 }
0x4fcb   :  { %4116 = vrot.lane.b32.xlu0 %v2821_v6, %s9782_s23 }
0x4fcc   :  { %7830 = vmatmul.mubr.msk.bf16.vlgmr.msra.gmra.mrb[128].mxu1 %vm2166_vm7, %v11251_v63  ;;  %v4127_v13 = vpop.permute.xlu1 %4126 }
0x4fcd   :  { %4365 = vmatpush1.bf16.msra.mxu1 %v11165_v15  ;;  %4396 = vmatprep.mubr.bf16.mxu1 %v12704_v3  ;;  %v11294_v48 = vsel %vm479_vm4, %v4127_v13, %v3724_v14 }
0x4fce   :  { %4366 = vmatprep.subr.bf16.mxu1 %v11171_v12  ;;  %v11304_v18 = vpack.c.bf16 %v11294_v48, %v11294_v48 }
0x4fd0   :  { %12730 = vst [vmem:[#allocation3_spill] sm:$0xff] %v11304_v18  ;;  %v4102_v50 = vpop.permute.xlu1 %4101 }
0x4fd1   :  { %4367 = vmatpush1.bf16.msra.mxu1 %v11178_v58 }
0x4fd2   :  { %4368 = vmatprep.subr.bf16.mxu1 %v11185_v59 }
0x4fd4   :  { %v4112_v4 = vpop.permute.xlu1 %4111 }
0x4fd5   :  { %4369 = vmatpush1.bf16.msra.mxu1 %v11195_v22  ;;  %v11390_v45 = vsel %vm479_vm4, %v4112_v4, %v3949_v43 }
0x4fd6   :  { %4370 = vmatprep.subr.bf16.mxu1 %v11202_v38  ;;  %v11395_v11 = vpack.c.bf16 %v11390_v45, %v11390_v45 }
0x4fd8   :  { %12731 = vst [vmem:[#allocation4_spill] sm:$0xff] %v11395_v11 }
0x4fd9   :  { %4371 = vmatpush1.bf16.msra.mxu1 %v11207_v26 }
0x4fda   :  { %4454 = vmatprep.subr.bf16.mxu1 %v11160_v35 }
0x5039   :  { %v4086_v53 = vpop.permute.xlu0 %4085 }
0x503a   :  { %v4088_v20 = vadd.f32 %v4086_v53, %v3211_v8 }
0x503c   :  { %9517 = vtanh.f32 %v4088_v20 }
0x503d   :  { %v4117_v37 = vpop.permute.xlu0 %4116 }
0x503e   :  { %v11269_v60 = vsel %vm479_vm4, %v4117_v37, %v3874_v1 }
0x503f   :  { %v11273_v62 = vpack.c.bf16 %v11269_v60, %v11269_v60 }
0x5041   :  { %12729 = vst [vmem:[#allocation2_spill] sm:$0xff] %v11273_v62  ;;  %7832 = vmatmul.mubr.msk.bf16.vlgmr.msra.gmra.mrb[132].mxu1 %vm2166_vm7, %v11273_v62 }
0x5042   :  { %4455 = vmatpush1.bf16.msra.mxu1 %v11165_v15  ;;  %4486 = vmatprep.mubr.bf16.mxu1 %v12704_v3 }
0x5043   :  { %4456 = vmatprep.subr.bf16.mxu1 %v11171_v12 }
0x5046   :  { %v9518_v46 = vpop.eup %9517  ;;  %4457 = vmatpush1.bf16.msra.mxu1 %v11178_v58 }
0x5047   :  { %4092 = vrot.lane.b32.xlu0 %v9518_v46, %s9782_s23  ;;  %4458 = vmatprep.subr.bf16.mxu1 %v11185_v59 }
0x504a   :  { %4459 = vmatpush1.bf16.msra.mxu1 %v11195_v22 }
0x504b   :  { %4460 = vmatprep.subr.bf16.mxu1 %v11202_v38 }
0x504e   :  { %4461 = vmatpush1.bf16.msra.mxu1 %v11207_v26 }
0x504f   :  { %4582 = vmatprep.subr.bf16.mxu1 %v11291_v5 }
0x5051   :  { %7834 = vmatmul.mubr.msk.bf16.vlgmr.msra.gmra.mrb[136].mxu1 %vm2166_vm7, %v11304_v18 }
0x5052   :  { %4583 = vmatpush1.bf16.msra.mxu1 %v11300_v25  ;;  %4614 = vmatprep.mubr.bf16.mxu1 %v12704_v3 }
0x5053   :  { %4584 = vmatprep.subr.bf16.mxu1 %v11310_v34 }
0x5056   :  { %4585 = vmatpush1.bf16.msra.mxu1 %v11318_v10 }
0x5057   :  { %4586 = vmatprep.subr.bf16.mxu1 %v11325_v56 }
0x505a   :  { %4587 = vmatpush1.bf16.msra.mxu1 %v11331_v32 }
0x505b   :  { %4588 = vmatprep.subr.bf16.mxu1 %v11337_v23 }
0x505e   :  { %4589 = vmatpush1.bf16.msra.mxu1 %v11343_v51 }
0x505f   :  { %4714 = vmatprep.subr.bf16.mxu1 %v11291_v5 }
0x5061   :  { %4615 = vmatmul.mubr.bf16.vlgmr.msra.gmra.mrb[140].mxu1 %v12704_v3 }
0x5062   :  { %4715 = vmatpush1.bf16.msra.mxu1 %v11300_v25  ;;  %4746 = vmatprep.mubr.bf16.mxu1 %v12704_v3 }
0x5063   :  { %4716 = vmatprep.subr.bf16.mxu1 %v11310_v34 }
0x5066   :  { %4717 = vmatpush1.bf16.msra.mxu1 %v11318_v10 }
0x5067   :  { %4718 = vmatprep.subr.bf16.mxu1 %v11325_v56 }
0x506a   :  { %4719 = vmatpush1.bf16.msra.mxu1 %v11331_v32 }
0x506b   :  { %4720 = vmatprep.subr.bf16.mxu1 %v11337_v23 }
0x506e   :  { %4721 = vmatpush1.bf16.msra.mxu1 %v11343_v51 }
0x506f   :  { %4846 = vmatprep.subr.bf16.mxu1 %v11291_v5 }
0x509f   :  { %v11358_v49 = vpop.f32.mrb[128].mxu1 }
0x50a0   :  { %v11360_v29 = vpop.f32.mrb[129].mxu1 }
0x50a1   :  { %v4312_v30 = vpop.f32.mrb[130].mxu1 }
0x50a2   :  { %v4313_v7 = vpop.f32.mrb[131].mxu1 }
0x50a3   :  { %v4164_v7 = vlaneseq }
0x50b9   :  { %v4093_v61 = vpop.permute.xlu0 %4092 }
0x50ba   :  { %v4095_v39 = vmul.f32 %v4093_v61, %v4090_v31  ;;  %v4165_v31 = vshrl.u32 %v4164_v7, 7 }
0x50bc   :  { %v11365_v8 = vadd.f32 %v4096_v27, %v4095_v39  ;;  %v4166_v61 = vsub.s32 0, %v4165_v31  ;;  %v4161_v39 = vld [vmem:[%s12686_s12] sm:$0x3]  ;;  %v4170_v62 = vsub.s32 1, %v4165_v31 }
0x50be   :  { %v4099_v54 = vsel %vm554_vm3, %v11365_v8, 0.0 }
0x50bf   :  { %v11371_v17 = vsel %vm479_vm4, %v4102_v50, %v4099_v54  ;;  %v11425_v50 = vrot.slane %v4161_v39, %v4166_v61 }
0x50c0   :  { %v11375_v16 = vpack.c.bf16 %v11371_v17, %v11371_v17 }
0x50c2   :  { %7829 = vmatmul.mubr.msk.bf16.vlgmr.msra.gmra.mrb[128].mxu0 %vm2166_vm7, %v11375_v16 }
0x50c3   :  { %4320 = vmatpush1.bf16.msra.mxu0 %v11165_v15  ;;  %4351 = vmatprep.mubr.bf16.mxu0 %v12704_v3 }
0x50c4   :  { %4321 = vmatprep.subr.bf16.mxu0 %v11171_v12 }
0x50c7   :  { %4322 = vmatpush1.bf16.msra.mxu0 %v11178_v58 }
0x50c8   :  { %4323 = vmatprep.subr.bf16.mxu0 %v11185_v59 }
0x50cb   :  { %4324 = vmatpush1.bf16.msra.mxu0 %v11195_v22 }
0x50cc   :  { %4325 = vmatprep.subr.bf16.mxu0 %v11202_v38 }
0x50cf   :  { %4326 = vmatpush1.bf16.msra.mxu0 %v11207_v26 }
0x50d0   :  { %4409 = vmatprep.subr.bf16.mxu0 %v11160_v35 }
0x50d2   :  { %7831 = vmatmul.mubr.msk.bf16.vlgmr.msra.gmra.mrb[132].mxu0 %vm2166_vm7, %v11395_v11  ;;  %v11435_v11 = vrot.slane %v4161_v39, %v4170_v62  ;;  %v3799_v39 = vsel %vm877_vm12, %v11098_v40, 0.0  ;;  %v4132_v40 = vpop.permute.xlu1 %4131 }
0x50d3   :  { %4410 = vmatpush1.bf16.msra.mxu0 %v11165_v15  ;;  %4441 = vmatprep.mubr.bf16.mxu0 %v12704_v3 }
0x50d4   :  { %4411 = vmatprep.subr.bf16.mxu0 %v11171_v12 }
0x50d7   :  { %4412 = vmatpush1.bf16.msra.mxu0 %v11178_v58 }
0x50d8   :  { %4413 = vmatprep.subr.bf16.mxu0 %v11185_v59 }
0x50db   :  { %4414 = vmatpush1.bf16.msra.mxu0 %v11195_v22 }
0x50dc   :  { %4415 = vmatprep.subr.bf16.mxu0 %v11202_v38 }
0x50df   :  { %4416 = vmatpush1.bf16.msra.mxu0 %v11207_v26 }
0x50e0   :  { %4499 = vmatprep.subr.bf16.mxu0 %v11160_v35  ;;  %v4162_v35 = vld [vmem:[%s12685_s13] sm:$0x3] }
0x50e1   :  { %v11420_v27 = vrot.slane %v4162_v35, %v4166_v61 }
0x5114   :  { %v11409_v33 = vpop.f32.mrb[132].mxu1 }
0x5115   :  { %v11411_v24 = vpop.f32.mrb[133].mxu1 }
0x5116   :  { %v4402_v52 = vpop.f32.mrb[134].mxu1 }
0x5117   :  { %v4403_v6 = vpop.f32.mrb[135].mxu1 }
0x5124   :  { %v11413_v53 = vpop.f32.mrb[136].mxu1 }
0x5125   :  { %v11415_v20 = vpop.f32.mrb[137].mxu1 }
0x5126   :  { %v4492_v1 = vpop.f32.mrb[138].mxu1 }
0x5127   :  { %v4493_v37 = vpop.f32.mrb[139].mxu1 }
0x5134   :  { %v4616_v46 = vpop.f32.mrb[140].mxu1 }
0x5135   :  { %v4618_v13 = vpop.f32.mrb[141].mxu1  ;;  %v4617_v54 = vadd.f32 %v4616_v46, %v11420_v27  ;;  %v11433_v46 = vrot.slane %v4162_v35, %v4170_v62 }
0x5136   :  { %v4620_v14 = vpop.f32.mrb[142].mxu1 }
0x5137   :  { %v4621_v30 = vpop.f32.mrb[143].mxu1 }
0x5195   :  { %v4263_v4 = vpop.f32.mrb[128].mxu0 }
0x5196   :  { %v4264_v43 = vadd.f32 %v4263_v4, %v11425_v50  ;;  %v4265_v52 = vpop.f32.mrb[129].mxu0  ;;  %v4619_v4 = vadd.f32 %v4618_v13, %v11433_v46 }
0x5197   :  { %v4267_v6 = vpop.f32.mrb[130].mxu0 }
0x5198   :  { %v4623_v1 = vadd.f32 %v4617_v54, %v4264_v43  ;;  %v4268_v37 = vpop.f32.mrb[131].mxu0  ;;  %v4266_v43 = vadd.f32 %v4265_v52, %v11435_v11 }
0x519a   :  { %v7844_v14 = vmul.f32 -1.442695, %v4623_v1 }
0x519c   :  { %9519 = vpow2.f32 %v7844_v14 }
0x51a5   :  { %v11429_v30 = vpop.f32.mrb[132].mxu0 }
0x51a6   :  { %v9520_v7 = vpop.eup %9519  ;;  %v11431_v0 = vpop.f32.mrb[133].mxu0 }
0x51a7   :  { %v4627_v3 = vadd.f32 1.0, %v9520_v7  ;;  %v4357_v18 = vpop.f32.mrb[134].mxu0 }
0x51a8   :  { %v4358_v61 = vpop.f32.mrb[135].mxu0 }
0x51a9   :  { %9521 = vrcp.f32 %v4627_v3  ;;  %v2896_v3 = vsel %vm877_vm12, %v10809_v2, 0.0  ;;  %v3649_v61 = vsel %vm1039_vm5, %v11059_v9, 0.0 }
0x51b3   :  { %v9522_v54 = vpop.eup %9521 }
0x51b4   :  { %v4630_v6 = vmul.f32 %v9522_v54, %v4619_v4  ;;  %v4633_v18 = vsub.f32 1.0, %v9522_v54  ;;  %v4639_v31 = vmul.f32 0.0, %v9522_v54  ;;  %v11472_v4 = vsel %vm479_vm4, %v4132_v40, %v3649_v61 }
0x51b5   :  { %v4311_v40 = vadd.f32 %v11360_v29, %v11435_v11 }
0x51b6   :  { %v4631_v1 = vadd.f32 %v4630_v6, %v4266_v43  ;;  %v4309_v6 = vadd.f32 %v11358_v49, %v11425_v50 }
0x51b8   :  { %9523 = vtanh.f32 %v4631_v1 }
0x51c2   :  { %v9524_v37 = vpop.eup %9523 }
0x51c3   :  { %4635 = vrot.lane.b32.xlu0 %v9524_v37, %s9781_s6 }
0x51c7   :  { %4121 = vrot.lane.b32.xlu0 %v2896_v3, %s9782_s23 }
0x5235   :  { %v4636_v62 = vpop.permute.xlu0 %4635 }
0x5236   :  { %v4638_v35 = vmul.f32 %v4636_v62, %v4633_v18 }
0x5238   :  { %v11444_v13 = vadd.f32 %v4639_v31, %v4638_v35 }
0x5239   :  { %v4122_v52 = vpop.permute.xlu0 %4121 }
0x523a   :  { %v11450_v14 = vsel %vm479_vm4, %v4122_v52, %v3799_v39  ;;  %v4641_v7 = vpack.c.bf16 %v11444_v13, %v11444_v13 }
0x523b   :  { %v11456_v2 = vpack.c.bf16 %v11450_v14, %v11450_v14 }
0x523c   :  { %4643 = vrot.lane.b32.xlu0 %v4641_v7, %s9781_s6 }
0x523d   :  { %12732 = vst [vmem:[#allocation5_spill] sm:$0xff] %v11456_v2  ;;  %7833 = vmatmul.mubr.msk.bf16.vlgmr.msra.gmra.mrb[136].mxu0 %vm2166_vm7, %v11456_v2 }
0x523e   :  { %4500 = vmatpush1.bf16.msra.mxu0 %v11165_v15  ;;  %4531 = vmatprep.mubr.bf16.mxu0 %v12733_v21  ;;  %v11477_v15 = vpack.c.bf16 %v11472_v4, %v11472_v4 }
0x523f   :  { %4501 = vmatprep.subr.bf16.mxu0 %v11171_v12 }
0x5240   :  { %12734 = vst [vmem:[#allocation6_spill] sm:$0xff] %v11477_v15 }
0x5242   :  { %4502 = vmatpush1.bf16.msra.mxu0 %v11178_v58 }
0x5243   :  { %4503 = vmatprep.subr.bf16.mxu0 %v11185_v59 }
0x5246   :  { %4504 = vmatpush1.bf16.msra.mxu0 %v11195_v22 }
0x5247   :  { %4505 = vmatprep.subr.bf16.mxu0 %v11202_v38 }
0x524a   :  { %4506 = vmatpush1.bf16.msra.mxu0 %v11207_v26 }
0x524b   :  { %4648 = vmatprep.subr.bf16.mxu0 %v11291_v5 }
0x524d   :  { %7835 = vmatmul.mubr.msk.bf16.vlgmr.msra.gmra.mrb[140].mxu0 %vm2166_vm7, %v11477_v15 }
0x524e   :  { %4649 = vmatpush1.bf16.msra.mxu0 %v11300_v25  ;;  %4680 = vmatprep.mubr.bf16.mxu0 %v12733_v21 }
0x524f   :  { %4650 = vmatprep.subr.bf16.mxu0 %v11310_v34 }
0x5252   :  { %4651 = vmatpush1.bf16.msra.mxu0 %v11318_v10 }
0x5253   :  { %4652 = vmatprep.subr.bf16.mxu0 %v11325_v56 }
0x5256   :  { %4653 = vmatpush1.bf16.msra.mxu0 %v11331_v32 }
0x5257   :  { %4654 = vmatprep.subr.bf16.mxu0 %v11337_v23 }
0x525a   :  { %4655 = vmatpush1.bf16.msra.mxu0 %v11343_v51 }
0x525b   :  { %4780 = vmatprep.subr.bf16.mxu0 %v11291_v5 }
0x52ae   :  { %v4644_v41 = vpop.permute.xlu0 %4643 }
0x52af   :  { %7845 = vmatmul.mubr.msk.bf16.vlgmr.msra.gmra.mrb[144].mxu0 %vm2166_vm7, %v4644_v41 }
0x52b0   :  { %4781 = vmatpush1.bf16.msra.mxu0 %v11300_v25  ;;  %4812 = vmatprep.mubr.bf16.mxu0 %v12733_v21 }
0x52b1   :  { %4782 = vmatprep.subr.bf16.mxu0 %v11310_v34 }
0x52b4   :  { %4783 = vmatpush1.bf16.msra.mxu0 %v11318_v10 }
0x52b5   :  { %4784 = vmatprep.subr.bf16.mxu0 %v11325_v56 }
0x52b8   :  { %4785 = vmatpush1.bf16.msra.mxu0 %v11331_v32 }
0x52b9   :  { %4786 = vmatprep.subr.bf16.mxu0 %v11337_v23 }
0x52bc   :  { %4787 = vmatpush1.bf16.msra.mxu0 %v11343_v51 }
0x52bd   :  { %4912 = vmatprep.subr.bf16.mxu0 %v11291_v5 }
0x5310   :  { %v11501_v9 = vpop.f32.mrb[136].mxu0 }
0x5311   :  { %v11503_v12 = vpop.f32.mrb[137].mxu0 }
0x5312   :  { %v4447_v58 = vpop.f32.mrb[138].mxu0 }
0x5313   :  { %v4448_v59 = vpop.f32.mrb[139].mxu0 }
0x5320   :  { %v11505_v22 = vpop.f32.mrb[140].mxu0 }
0x5321   :  { %v11507_v38 = vpop.f32.mrb[141].mxu0 }
0x5322   :  { %v4537_v26 = vpop.f32.mrb[142].mxu0 }
0x5323   :  { %v4538_v54 = vpop.f32.mrb[143].mxu0 }
0x5382   :  { %v4682_v43 = vpop.f32.mrb[144].mxu0 }
0x5383   :  { %v4683_v1 = vadd.f32 %v4682_v43, %v11420_v27  ;;  %v4684_v37 = vpop.f32.mrb[145].mxu0 }
0x5384   :  { %v4686_v3 = vpop.f32.mrb[146].mxu0  ;;  %v4685_v52 = vadd.f32 %v4684_v37, %v11433_v46  ;;  %v4354_v37 = vadd.f32 %v11429_v30, %v11425_v50 }
0x5385   :  { %v4689_v18 = vadd.f32 %v4683_v1, %v4309_v6  ;;  %v4687_v62 = vpop.f32.mrb[147].mxu0 }
0x5387   :  { %v7846_v31 = vmul.f32 -1.442695, %v4689_v18 }
0x5389   :  { %9525 = vpow2.f32 %v7846_v31 }
0x5393   :  { %v9526_v35 = vpop.eup %9525 }
0x5394   :  { %v4693_v39 = vadd.f32 1.0, %v9526_v35 }
0x5396   :  { %9527 = vrcp.f32 %v4693_v39 }
0x53a0   :  { %v9528_v7 = vpop.eup %9527 }
0x53a1   :  { %v4696_v61 = vmul.f32 %v9528_v7, %v4685_v52  ;;  %v4699_v58 = vsub.f32 1.0, %v9528_v7  ;;  %v4705_v26 = vmul.f32 %v9528_v7, %v11444_v13 }
0x53a3   :  { %v4697_v41 = vadd.f32 %v4696_v61, %v4311_v40 }
0x53a5   :  { %9529 = vtanh.f32 %v4697_v41 }
0x53af   :  { %v9530_v49 = vpop.eup %9529 }
0x53b0   :  { %4701 = vrot.lane.b32.xlu1 %v9530_v49, %s9781_s6 }
0x5422   :  { %v4702_v59 = vpop.permute.xlu1 %4701 }
0x5423   :  { %v4704_v54 = vmul.f32 %v4702_v59, %v4699_v58 }
0x5425   :  { %v11517_v43 = vadd.f32 %v4705_v26, %v4704_v54 }
0x5427   :  { %v4707_v6 = vpack.c.bf16 %v11517_v43, %v11517_v43 }
0x5429   :  { %4709 = vrot.lane.b32.xlu0 %v4707_v6, %s9781_s6 }
0x549b   :  { %v4710_v1 = vpop.permute.xlu0 %4709 }
0x549c   :  { %7847 = vmatmul.mubr.msk.bf16.vlgmr.msra.gmra.mrb[144].mxu1 %vm2166_vm7, %v4710_v1 }
0x549d   :  { %4847 = vmatpush1.bf16.msra.mxu1 %v11300_v25  ;;  %4878 = vmatprep.mubr.bf16.mxu1 %v12733_v21 }
0x549e   :  { %4848 = vmatprep.subr.bf16.mxu1 %v11310_v34 }
0x54a1   :  { %4849 = vmatpush1.bf16.msra.mxu1 %v11318_v10 }
0x54a2   :  { %4850 = vmatprep.subr.bf16.mxu1 %v11325_v56 }
0x54a5   :  { %4851 = vmatpush1.bf16.msra.mxu1 %v11331_v32 }
0x54a6   :  { %4852 = vmatprep.subr.bf16.mxu1 %v11337_v23 }
0x54a9   :  { %4853 = vmatpush1.bf16.msra.mxu1 %v11343_v51 }
0x54aa   :  { %4978 = vmatprep.subr.bf16.mxu1 %v11291_v5  ;;  %v4356_v5 = vadd.f32 %v11431_v0, %v11435_v11  ;;  %v12735_v0 = vmov 0.0  }
0x556f   :  { %v4748_v29 = vpop.f32.mrb[144].mxu1 }
0x5570   :  { %v4749_v3 = vadd.f32 %v4748_v29, %v11420_v27  ;;  %v4750_v18 = vpop.f32.mrb[145].mxu1 }
0x5571   :  { %v4752_v62 = vpop.f32.mrb[146].mxu1  ;;  %v4751_v40 = vadd.f32 %v4750_v18, %v11433_v46 }
0x5572   :  { %v4755_v31 = vadd.f32 %v4749_v3, %v4354_v37  ;;  %v4753_v35 = vpop.f32.mrb[147].mxu1  ;;  %v4399_v3 = vadd.f32 %v11409_v33, %v11425_v50 }
0x5574   :  { %v7848_v39 = vmul.f32 -1.442695, %v4755_v31 }
0x5576   :  { %9531 = vpow2.f32 %v7848_v39 }
0x5580   :  { %v9532_v52 = vpop.eup %9531 }
0x5581   :  { %v4759_v7 = vadd.f32 1.0, %v9532_v52 }
0x5583   :  { %9533 = vrcp.f32 %v4759_v7 }
0x558d   :  { %v9534_v61 = vpop.eup %9533 }
0x558e   :  { %v4762_v41 = vmul.f32 %v9534_v61, %v4751_v40  ;;  %v4765_v58 = vsub.f32 1.0, %v9534_v61  ;;  %v4771_v26 = vmul.f32 %v9534_v61, %v11517_v43 }
0x5590   :  { %v4763_v49 = vadd.f32 %v4762_v41, %v4356_v5  ;;  %v4401_v41 = vadd.f32 %v11411_v24, %v11435_v11 }
0x5592   :  { %9535 = vtanh.f32 %v4763_v49 }
0x559c   :  { %v9536_v30 = vpop.eup %9535 }
0x559d   :  { %4767 = vrot.lane.b32.xlu1 %v9536_v30, %s9781_s6 }
0x560f   :  { %v4768_v59 = vpop.permute.xlu1 %4767 }
0x5610   :  { %v4770_v54 = vmul.f32 %v4768_v59, %v4765_v58  ;;  %v9745_v58 = vld [vmem:[%s12681_s9] ss:$0 sm:$0xff] }
0x5611   :  { %v3089_v59 = vadd.f32 %v9745_v58, %v11021_v28 }
0x5612   :  { %v11540_v6 = vadd.f32 %v4771_v26, %v4770_v54  ;;  %v9746_v26 = vld [vmem:[%s12682_s8] ss:$0 sm:$0xff] }
0x5613   :  { %v2513_v24 = vadd.f32 %v9746_v26, %v10742_v47  ;;  %v4444_v26 = vadd.f32 %v11501_v9, %v11425_v50 }
0x5614   :  { %v4773_v1 = vpack.c.bf16 %v11540_v6, %v11540_v6 }
0x5615   :  { %v3094_v54 = vadd.f32 %v3089_v59, %v2513_v24 }
0x5616   :  { %4775 = vrot.lane.b32.xlu0 %v4773_v1, %s9781_s6 }
0x5617   :  { %v7775_v1 = vmul.f32 -1.442695, %v3094_v54 }
0x5688   :  { %v4776_v29 = vpop.permute.xlu0 %4775 }
0x5689   :  { %7849 = vmatmul.mubr.msk.bf16.vlgmr.msra.gmra.mrb[148].mxu0 %vm2166_vm7, %v4776_v29 }
0x568a   :  { %4913 = vmatpush1.bf16.msra.mxu0 %v11300_v25  ;;  %4944 = vmatprep.mubr.bf16.mxu0 %v12733_v21 }
0x568b   :  { %4914 = vmatprep.subr.bf16.mxu0 %v11310_v34 }
0x568e   :  { %4915 = vmatpush1.bf16.msra.mxu0 %v11318_v10 }
0x568f   :  { %4916 = vmatprep.subr.bf16.mxu0 %v11325_v56 }
0x5692   :  { %4917 = vmatpush1.bf16.msra.mxu0 %v11331_v32 }
0x5693   :  { %4918 = vmatprep.subr.bf16.mxu0 %v11337_v23 }
0x5696   :  { %4919 = vmatpush1.bf16.msra.mxu0 %v11343_v51 }
0x5697   :  { %8836 = vmatprep.subr.bf16.mxu0 %v12735_v0 }
0x575c   :  { %v4814_v37 = vpop.f32.mrb[148].mxu0 }
0x575d   :  { %v4815_v18 = vadd.f32 %v4814_v37, %v11420_v27  ;;  %v4816_v62 = vpop.f32.mrb[149].mxu0 }
0x575e   :  { %v4818_v31 = vpop.f32.mrb[150].mxu0  ;;  %v4817_v61 = vadd.f32 %v4816_v62, %v11433_v46 }
0x575f   :  { %v4821_v35 = vadd.f32 %v4815_v18, %v4399_v3  ;;  %v4819_v39 = vpop.f32.mrb[151].mxu0 }
0x5761   :  { %v7850_v52 = vmul.f32 -1.442695, %v4821_v35 }
0x5763   :  { %9537 = vpow2.f32 %v7850_v52 }
0x576d   :  { %v9538_v7 = vpop.eup %9537 }
0x576e   :  { %v4825_v40 = vadd.f32 1.0, %v9538_v7 }
0x5770   :  { %9539 = vrcp.f32 %v4825_v40 }
0x577a   :  { %v9540_v5 = vpop.eup %9539 }
0x577b   :  { %v4828_v49 = vmul.f32 %v9540_v5, %v4817_v61  ;;  %v4831_v3 = vsub.f32 1.0, %v9540_v5  ;;  %v4837_v62 = vmul.f32 %v9540_v5, %v11540_v6 }
0x577d   :  { %v4829_v30 = vadd.f32 %v4828_v49, %v4401_v41 }
0x577f   :  { %9541 = vtanh.f32 %v4829_v30 }
0x5780   :  { %9543 = vpow2.f32 %v7775_v1 }
0x5789   :  { %v9542_v33 = vpop.eup %9541 }
0x578a   :  { %4833 = vrot.lane.b32.xlu1 %v9542_v33, %s9781_s6  ;;  %v9544_v29 = vpop.eup %9543 }
0x578b   :  { %v3098_v37 = vadd.f32 1.0, %v9544_v29 }
0x578d   :  { %9545 = vrcp.f32 %v3098_v37 }
0x578e   :  { %3102 = vrot.lane.b32.xlu1 %v3089_v59, %s9781_s6 }
0x5797   :  { %v9546_v47 = vpop.eup %9545 }
0x57fc   :  { %v4834_v18 = vpop.permute.xlu1 %4833 }
0x57fd   :  { %v4836_v31 = vmul.f32 %v4834_v18, %v4831_v3 }
0x57ff   :  { %v11572_v28 = vadd.f32 %v4837_v62, %v4836_v31 }
0x5800   :  { %v3103_v39 = vpop.permute.xlu1 %3102 }
0x5801   :  { %v4839_v35 = vpack.c.bf16 %v11572_v28, %v11572_v28  ;;  %v3105_v52 = vmul.f32 %v9546_v47, %v3103_v39  ;;  %v4446_v39 = vadd.f32 %v11503_v12, %v11435_v11 }
0x5803   :  { %4841 = vrot.lane.b32.xlu0 %v4839_v35, %s9781_s6 }
0x5807   :  { %3107 = vrot.lane.b32.xlu0 %v3105_v52, %s9781_s6 }
0x5875   :  { %v4842_v7 = vpop.permute.xlu0 %4841 }
0x5876   :  { %7851 = vmatmul.mubr.msk.bf16.vlgmr.msra.gmra.mrb[148].mxu1 %vm2166_vm7, %v4842_v7 }
0x5877   :  { %4979 = vmatpush1.bf16.msra.mxu1 %v11300_v25  ;;  %5010 = vmatprep.mubr.bf16.mxu1 %v12733_v21 }
0x5878   :  { %4980 = vmatprep.subr.bf16.mxu1 %v11310_v34  ;;  %v4098_v34 = vsel %vm554_vm3, %v11365_v8, %v11150_v55  ;;  %vm5469_vm3 = vcmask 33792  }
0x5879   :  { %v3108_v40 = vpop.permute.xlu0 %3107 }
0x587a   :  { %v3110_v61 = vadd.f32 %v3108_v40, %v2513_v24 }
0x587b   :  { %4981 = vmatpush1.bf16.msra.mxu1 %v11318_v10  ;;  %v3112_v10 = vsub.f32 1.0, %v9546_v47 }
0x587c   :  { %9547 = vtanh.f32 %v3110_v61  ;;  %4982 = vmatprep.subr.bf16.mxu1 %v11325_v56 }
0x587f   :  { %4983 = vmatpush1.bf16.msra.mxu1 %v11331_v32  ;;  %v3118_v32 = vmul.f32 %v9546_v47, %v10951_v19 }
0x5880   :  { %4984 = vmatprep.subr.bf16.mxu1 %v11337_v23 }
0x5883   :  { %4985 = vmatpush1.bf16.msra.mxu1 %v11343_v51 }
0x5884   :  { %8848 = vmatprep.subr.bf16.mxu1 %v12735_v0 }
0x5886   :  { %v9548_v25 = vpop.eup %9547 }
0x5887   :  { %3114 = vrot.lane.b32.xlu0 %v9548_v25, %s9782_s23 }
0x588b   :  { %4141 = vrot.lane.b32.xlu0 %v4098_v34, %s9782_s23 }
0x58f9   :  { %v3115_v56 = vpop.permute.xlu0 %3114 }
0x58fa   :  { %v3117_v21 = vmul.f32 %v3115_v56, %v3112_v10 }
0x58fc   :  { %v3119_v23 = vadd.f32 %v3118_v32, %v3117_v21 }
0x58fd   :  { %v4142_v5 = vpop.permute.xlu0 %4141 }
0x58fe   :  { %v3120_v51 = vsel %vm1120_vm1, %v3119_v23, %v10951_v19  ;;  %v3121_v12 = vsel %vm1120_vm1, %v3119_v23, 0.0 }
0x58ff   :  { %v4144_v41 = vsel %vm479_vm4, %v4142_v5, %v3120_v51 }
0x5900   :  { %v5097_v49 = vmul.f32 %v4144_v41, %v11371_v17  ;;  %v5106_v55 = vmul.f32 %v4144_v41, %v11390_v45  ;;  %v5110_v30 = vmul.f32 %v4144_v41, %v11269_v60  ;;  %v5118_v58 = vmul.f32 %v4144_v41, %v11294_v48 }
0x5901   :  { %v5102_v56 = vmul.f32 %v4144_v41, %v11244_v44  ;;  %v5114_v21 = vmul.f32 %v4144_v41, %v11450_v14  ;;  %v5122_v51 = vmul.f32 %v4144_v41, %v11472_v4 }
0x5902   :  { %v5099_v57 = vsel %vm5098_vm6, %v5097_v49, 0.0  ;;  %v5107_v8 = vsel %vm5098_vm6, %v5106_v55, 0.0  ;;  %v5111_v33 = vsel %vm5098_vm6, %v5110_v30, 0.0  ;;  %v5119_v19 = vsel %vm5098_vm6, %v5118_v58, 0.0  ;;  %v11641_v30 = vld [vmem:[%s12687_s14] sm:$0xff]  }
0x5903   :  { %5100 = vadd.xlane.f32.xlu0 %v5099_v57  ;;  %v5103_v32 = vsel %vm5098_vm6, %v5102_v56, 0.0  ;;  %v5115_v5 = vsel %vm5098_vm6, %v5114_v21, 0.0  ;;  %v5123_v49 = vsel %vm5098_vm6, %v5122_v51, 0.0 }
0x5907   :  { %5108 = vadd.xlane.f32.xlu0 %v5107_v8 }
0x590b   :  { %5112 = vadd.xlane.f32.xlu0 %v5111_v33  ;;  %v11647_v33 = vld [vmem:[%s12687_s14 + $0x8] sm:$0xff]  }
0x590f   :  { %5120 = vadd.xlane.f32.xlu0 %v5119_v19 }
0x5949   :  { %v4880_v59 = vpop.f32.mrb[148].mxu1 }
0x594a   :  { %v4881_v24 = vadd.f32 %v4880_v59, %v11420_v27  ;;  %v4882_v54 = vpop.f32.mrb[149].mxu1 }
0x594b   :  { %v4884_v1 = vpop.f32.mrb[150].mxu1  ;;  %v4883_v31 = vadd.f32 %v4882_v54, %v11433_v46 }
0x594c   :  { %v4887_v29 = vadd.f32 %v4881_v24, %v4444_v26  ;;  %v4885_v37 = vpop.f32.mrb[151].mxu1 }
0x594e   :  { %v7852_v3 = vmul.f32 -1.442695, %v4887_v29 }
0x5950   :  { %9549 = vpow2.f32 %v7852_v3 }
0x595a   :  { %v9550_v18 = vpop.eup %9549 }
0x595b   :  { %v4891_v62 = vadd.f32 1.0, %v9550_v18 }
0x595d   :  { %9551 = vrcp.f32 %v4891_v62 }
0x5967   :  { %v9552_v35 = vpop.eup %9551 }
0x5968   :  { %v4894_v47 = vmul.f32 %v9552_v35, %v4883_v31  ;;  %v4897_v7 = vsub.f32 1.0, %v9552_v35  ;;  %v4903_v61 = vmul.f32 %v9552_v35, %v11572_v28 }
0x596a   :  { %v4895_v52 = vadd.f32 %v4894_v47, %v4446_v39 }
0x596c   :  { %9553 = vtanh.f32 %v4895_v52 }
0x5976   :  { %v9554_v9 = vpop.eup %9553 }
0x5977   :  { %4899 = vrot.lane.b32.xlu1 %v9554_v9, %s9781_s6 }
0x5990   :  { %v5101_v58 = vpop.xlane.xlu0 %5100 }
0x5994   :  { %v5109_v26 = vpop.xlane.xlu0 %5108 }
0x5998   :  { %v5113_v54 = vpop.xlane.xlu0 %5112 }
0x599c   :  { %v5121_v3 = vpop.xlane.xlu0 %5120 }
0x59e9   :  { %v4900_v40 = vpop.permute.xlu1 %4899 }
0x59ea   :  { %v4902_v25 = vmul.f32 %v4900_v40, %v4897_v7 }
0x59ec   :  { %v11615_v34 = vadd.f32 %v4903_v61, %v4902_v25 }
0x59ee   :  { %v4905_v10 = vpack.c.bf16 %v11615_v34, %v11615_v34 }
0x59f0   :  { %4907 = vrot.lane.b32.xlu1 %v4905_v10, %s9781_s6 }
0x59f4   :  { %4136 = vrot.lane.b32.xlu1 %v3121_v12, %s9782_s23 }
0x5a18   :  { %5104 = vadd.xlane.f32.xlu1 %v5103_v32 }
0x5a1c   :  { %5116 = vadd.xlane.f32.xlu1 %v5115_v5 }
0x5a20   :  { %5124 = vadd.xlane.f32.xlu1 %v5123_v49 }
0x5a62   :  { %v4908_v57 = vpop.permute.xlu1 %4907 }
0x5a63   :  { %7853 = vmatmul.mubr.msk.bf16.vlgmr.msra.gmra.mrb[152].mxu0 %vm2166_vm7, %v4908_v57 }
0x5a64   :  { %8844 = vmatprep.mubr.msk.bf16.mxu0 %vm9779_vm0, %v12735_v0  ;;  %8837 = vmatpush3.bf16.msra.mxu0 %v11641_v30 }
0x5a65   :  { %8838 = vmatprep.subr.bf16.mxu0 %v12735_v0 }
0x5a66   :  { %v4137_v36 = vpop.permute.xlu1 %4136 }
0x5a67   :  { %v11634_v23 = vsel %vm479_vm4, %v4137_v36, %v11040_v42  ;;  %v11654_v42 = vld [vmem:[%s12687_s14 + $0x10] sm:$0xff]  }
0x5a68   :  { %v5126_v55 = vmul.f32 %v4144_v41, %v11634_v23  ;;  %8839 = vmatpush3.bf16.msra.mxu0 %v11647_v33  ;;  %v11661_v41 = vld [vmem:[%s12687_s14 + $0x18] sm:$0xff]  }
0x5a69   :  { %8840 = vmatprep.subr.bf16.mxu0 %v12735_v0 }
0x5a6a   :  { %v5127_v8 = vsel %vm5098_vm6, %v5126_v55, 0.0 }
0x5a6b   :  { %5128 = vadd.xlane.f32.xlu0 %v5127_v8 }
0x5a6c   :  { %8841 = vmatpush3.bf16.msra.mxu0 %v11654_v42 }
0x5a6d   :  { %8842 = vmatprep.subr.bf16.mxu0 %v12735_v0 }
0x5a70   :  { %8843 = vmatpush3.bf16.msra.mxu0 %v11661_v41 }
0x5a71   :  { %8872 = vmatprep.subr.bf16.mxu0 %v12735_v0 }
0x5aa5   :  { %v5105_v19 = vpop.xlane.xlu1 %5104 }
0x5aa6   :  { %v5130_v59 = vmax.f32 %v5101_v58, %v5105_v19 }
0x5aa8   :  { %v5131_v24 = vmax.f32 %v5130_v59, %v5109_v26 }
0x5aa9   :  { %v5117_v29 = vpop.xlane.xlu1 %5116 }
0x5aaa   :  { %v5132_v1 = vmax.f32 %v5131_v24, %v5113_v54 }
0x5aac   :  { %v5133_v37 = vmax.f32 %v5132_v1, %v5117_v29 }
0x5aad   :  { %v5125_v62 = vpop.xlane.xlu1 %5124 }
0x5aae   :  { %v5134_v18 = vmax.f32 %v5133_v37, %v5121_v3 }
0x5ab0   :  { %v5135_v31 = vmax.f32 %v5134_v18, %v5125_v62 }
0x5af8   :  { %v5129_v35 = vpop.xlane.xlu0 %5128 }
0x5af9   :  { %v5136_v39 = vmax.f32 %v5135_v31, %v5129_v35 }
0x5afb   :  { %v5137_v47 = vsub.f32 %v5101_v58, %v5136_v39  ;;  %v5140_v52 = vsub.f32 %v5105_v19, %v5136_v39  ;;  %v5143_v9 = vsub.f32 %v5109_v26, %v5136_v39  ;;  %v5146_v7 = vsub.f32 %v5113_v54, %v5136_v39 }
0x5afc   :  { %v5149_v10 = vsub.f32 %v5117_v29, %v5136_v39  ;;  %v5152_v56 = vsub.f32 %v5121_v3, %v5136_v39  ;;  %v5155_v21 = vsub.f32 %v5125_v62, %v5136_v39  ;;  %v5158_v51 = vsub.f32 %v5129_v35, %v5136_v39 }
0x5afd   :  { %v5138_v40 = vmul.f32 1.442695, %v5137_v47  ;;  %v5141_v61 = vmul.f32 1.442695, %v5140_v52  ;;  %v5144_v25 = vmul.f32 1.442695, %v5143_v9 }
0x5afe   :  { %v5147_v12 = vmul.f32 1.442695, %v5146_v7  ;;  %v5150_v32 = vmul.f32 1.442695, %v5149_v10  ;;  %v5153_v5 = vmul.f32 1.442695, %v5152_v56 }
0x5aff   :  { %9555 = vpow2.f32 %v5138_v40  ;;  %v5156_v49 = vmul.f32 1.442695, %v5155_v21  ;;  %v5159_v57 = vmul.f32 1.442695, %v5158_v51 }
0x5b00   :  { %9557 = vpow2.f32 %v5141_v61 }
0x5b01   :  { %9559 = vpow2.f32 %v5144_v25 }
0x5b02   :  { %9561 = vpow2.f32 %v5147_v12 }
0x5b03   :  { %9563 = vpow2.f32 %v5150_v32 }
0x5b04   :  { %9565 = vpow2.f32 %v5153_v5 }
0x5b05   :  { %9567 = vpow2.f32 %v5156_v49 }
0x5b06   :  { %9569 = vpow2.f32 %v5159_v57 }
0x5b09   :  { %v9556_v36 = vpop.eup %9555 }
0x5b0a   :  { %v9558_v55 = vpop.eup %9557 }
0x5b0b   :  { %v5161_v8 = vadd.f32 %v9558_v55, %v9556_v36  ;;  %v9560_v58 = vpop.eup %9559 }
0x5b0c   :  { %v9562_v59 = vpop.eup %9561 }
0x5b0d   :  { %v5162_v19 = vadd.f32 %v9560_v58, %v5161_v8  ;;  %v9564_v24 = vpop.eup %9563 }
0x5b0e   :  { %v9566_v1 = vpop.eup %9565 }
0x5b0f   :  { %v5163_v26 = vadd.f32 %v9562_v59, %v5162_v19  ;;  %v9568_v37 = vpop.eup %9567 }
0x5b10   :  { %v9570_v18 = vpop.eup %9569 }
0x5b11   :  { %v5164_v54 = vadd.f32 %v9564_v24, %v5163_v26 }
0x5b13   :  { %v5165_v29 = vadd.f32 %v9566_v1, %v5164_v54 }
0x5b15   :  { %v5166_v3 = vadd.f32 %v9568_v37, %v5165_v29 }
0x5b17   :  { %v5167_v62 = vadd.f32 %v9570_v18, %v5166_v3 }
0x5b19   :  { %9571 = vrcp.f32 %v5167_v62 }
0x5b23   :  { %v9572_v31 = vpop.eup %9571 }
0x5b24   :  { %v5169_v35 = vmul.f32 %v9572_v31, %v9556_v36  ;;  %v5171_v39 = vmul.f32 %v9572_v31, %v9558_v55  ;;  %v5174_v47 = vmul.f32 %v9572_v31, %v9560_v58  ;;  %v5177_v7 = vmul.f32 %v9572_v31, %v9562_v59 }
0x5b25   :  { %v5180_v25 = vmul.f32 %v9572_v31, %v9564_v24  ;;  %v5183_v56 = vmul.f32 %v9572_v31, %v9566_v1  ;;  %v5186_v5 = vmul.f32 %v9572_v31, %v9568_v37  ;;  %v5189_v51 = vmul.f32 %v9572_v31, %v9570_v18 }
0x5b26   :  { %v5170_v52 = vmul.f32 %v5169_v35, %v11371_v17  ;;  %v5172_v9 = vmul.f32 %v5171_v39, %v11244_v44  ;;  %v5175_v61 = vmul.f32 %v5174_v47, %v11390_v45  ;;  %v5178_v12 = vmul.f32 %v5177_v7, %v11269_v60 }
0x5b27   :  { %v5181_v21 = vmul.f32 %v5180_v25, %v11450_v14  ;;  %v5184_v57 = vmul.f32 %v5183_v56, %v11294_v48  ;;  %v5187_v55 = vmul.f32 %v5186_v5, %v11472_v4  ;;  %v5190_v58 = vmul.f32 %v5189_v51, %v11634_v23 }
0x5b28   :  { %v5173_v40 = vadd.f32 %v5172_v9, %v5170_v52  ;;  %v4489_v24 = vadd.f32 %v11413_v53, %v11425_v50  ;;  %v4491_v53 = vadd.f32 %v11415_v20, %v11435_v11 }
0x5b2a   :  { %v5176_v10 = vadd.f32 %v5175_v61, %v5173_v40 }
0x5b2c   :  { %v5179_v32 = vadd.f32 %v5178_v12, %v5176_v10 }
0x5b2e   :  { %v5182_v49 = vadd.f32 %v5181_v21, %v5179_v32 }
0x5b30   :  { %v5185_v36 = vadd.f32 %v5184_v57, %v5182_v49 }
0x5b32   :  { %v5188_v8 = vadd.f32 %v5187_v55, %v5185_v36 }
0x5b34   :  { %v5191_v19 = vadd.f32 %v5190_v58, %v5188_v8 }
0x5b36   :  { %v4946_v59 = vpop.f32.mrb[152].mxu0  ;;  %v5192_v26 = vpack.c.bf16 %v5191_v19, %v5191_v19 }
0x5b37   :  { %v4947_v54 = vadd.f32 %v4946_v59, %v11420_v27  ;;  %v4948_v1 = vpop.f32.mrb[153].mxu0 }
0x5b38   :  { %8845 = vmatmul.mubr.msk.bf16.vlgmr.msra.gmra.mrb[156].mxu0 %vm2166_vm7, %v5192_v26  ;;  %v4950_v29 = vpop.f32.mrb[154].mxu0  ;;  %v4949_v35 = vadd.f32 %v4948_v1, %v11433_v46  ;;  %v11734_v26 = vld [vmem:[%s12688_s16] sm:$0xff]  }
0x5b39   :  { %v4953_v37 = vadd.f32 %v4947_v54, %v4489_v24  ;;  %v4951_v3 = vpop.f32.mrb[155].mxu0  ;;  %8880 = vmatprep.mubr.msk.bf16.mxu0 %vm9779_vm0, %v12735_v0  ;;  %v11741_v54 = vld [vmem:[%s12688_s16 + $0x8] sm:$0xff]  }
0x5b3b   :  { %v7854_v18 = vmul.f32 -1.442695, %v4953_v37 }
0x5b3d   :  { %9573 = vpow2.f32 %v7854_v18  ;;  %v11755_v18 = vld [vmem:[%s12688_s16 + $0x10] sm:$0xff]  }
0x5b47   :  { %v9574_v62 = vpop.eup %9573 }
0x5b48   :  { %v4957_v31 = vadd.f32 1.0, %v9574_v62  ;;  %v11762_v62 = vld [vmem:[%s12690_s15] ss:$0 sm:$0xff] }
0x5b4a   :  { %9575 = vrcp.f32 %v4957_v31 }
0x5b54   :  { %v9576_v39 = vpop.eup %9575 }
0x5b55   :  { %v4960_v47 = vmul.f32 %v9576_v39, %v4949_v35  ;;  %v4963_v20 = vsub.f32 1.0, %v9576_v39  ;;  %v4969_v40 = vmul.f32 %v9576_v39, %v11615_v34  ;;  %v11772_v39 = vld [vmem:[%s12688_s16 + $0x18] sm:$0xff]  }
0x5b57   :  { %v4961_v52 = vadd.f32 %v4960_v47, %v4491_v53 }
0x5b59   :  { %9577 = vtanh.f32 %v4961_v52 }
0x5b63   :  { %v9578_v9 = vpop.eup %9577 }
0x5b64   :  { %4965 = vrot.lane.b32.xlu1 %v9578_v9, %s9781_s6  ;;  %v11787_v9 = vld [vmem:[%s12689_s18] sm:$0xff]  }
0x5b68   :  { %5472 = vrot.lane.b32.xlu1 %v11371_v17, %s9781_s6 }
0x5b6c   :  { %5484 = vrot.lane.b32.xlu1 %v11244_v44, %s9781_s6 }
0x5b70   :  { %5508 = vrot.lane.b32.xlu1 %v11269_v60, %s9781_s6 }
0x5b74   :  { %5532 = vrot.lane.b32.xlu1 %v11294_v48, %s9781_s6 }
0x5b78   :  { %5556 = vrot.lane.b32.xlu1 %v11634_v23, %s9781_s6 }
0x5bd6   :  { %v4966_v7 = vpop.permute.xlu1 %4965 }
0x5bd7   :  { %v4968_v61 = vmul.f32 %v4966_v7, %v4963_v20  ;;  %v11807_v7 = vld [vmem:[%s12689_s18 + $0x10] sm:$0xff]  }
0x5bd9   :  { %v11695_v25 = vadd.f32 %v4969_v40, %v4968_v61  ;;  %v11814_v40 = vld [vmem:[%s12689_s18 + $0x18] sm:$0xff]  }
0x5bda   :  { %v11697_v10 = vpop.permute.xlu1 %5472 }
0x5bdb   :  { %v4971_v12 = vpack.c.bf16 %v11695_v25, %v11695_v25  ;;  %v5475_v36 = vmul.f32 %v11697_v10, %v11444_v13 }
0x5bdd   :  { %4973 = vrot.lane.b32.xlu0 %v4971_v12, %s9781_s6 }
0x5bde   :  { %v11702_v56 = vpop.permute.xlu1 %5484 }
0x5bdf   :  { %v5487_v32 = vmul.f32 %v11702_v56, %v11444_v13 }
0x5be1   :  { %5496 = vrot.lane.b32.xlu0 %v11390_v45, %s9781_s6  ;;  %5489 = vrot.lane.b32.xlu1 %v5487_v32, %s9781_s6 }
0x5be2   :  { %v11709_v21 = vpop.permute.xlu1 %5508 }
0x5be3   :  { %v5511_v5 = vmul.f32 %v11709_v21, %v11444_v13 }
0x5be5   :  { %5520 = vrot.lane.b32.xlu0 %v11450_v14, %s9781_s6  ;;  %5513 = vrot.lane.b32.xlu1 %v5511_v5, %s9781_s6 }
0x5be6   :  { %v11716_v51 = vpop.permute.xlu1 %5532 }
0x5be7   :  { %v5535_v49 = vmul.f32 %v11716_v51, %v11444_v13 }
0x5be9   :  { %5544 = vrot.lane.b32.xlu0 %v11472_v4, %s9781_s6  ;;  %5537 = vrot.lane.b32.xlu1 %v5535_v49, %s9781_s6 }
0x5bea   :  { %v11723_v57 = vpop.permute.xlu1 %5556 }
0x5beb   :  { %v5559_v55 = vmul.f32 %v11723_v57, %v11444_v13 }
0x5bed   :  { %5477 = vrot.lane.b32.xlu0 %v5475_v36, %s9781_s6  ;;  %5561 = vrot.lane.b32.xlu1 %v5559_v55, %s9781_s6 }
0x5c0b   :  { %v5254_v8 = vpop.f32.mrb[156].mxu0 }
0x5c0c   :  { %v8846_v58 = vpop.f32.mrb[157].mxu0  ;;  %v11775_v53 = vadd.f32 %v11762_v62, %v5254_v8 }
0x5c0d   :  { %v5257_v19 = vpop.f32.mrb[158].mxu0 }
0x5c0e   :  { %v8847_v59 = vpop.f32.mrb[159].mxu0  ;;  %v5260_v20 = vpack.c.bf16 %v11775_v53, %v11775_v53 }
0x5c4f   :  { %v4974_v24 = vpop.permute.xlu0 %4973 }
0x5c50   :  { %7855 = vmatmul.mubr.msk.bf16.vlgmr.msra.gmra.mrb[152].mxu1 %vm2166_vm7, %v4974_v24 }
0x5c51   :  { %8849 = vmatpush3.bf16.msra.mxu1 %v11734_v26  ;;  %8856 = vmatprep.mubr.msk.bf16.mxu1 %vm9779_vm0, %v12735_v0 }
0x5c52   :  { %8850 = vmatprep.subr.bf16.mxu1 %v12735_v0 }
0x5c53   :  { %v11746_v1 = vpop.permute.xlu0 %5496  ;;  %v5490_v29 = vpop.permute.xlu1 %5489 }
0x5c54   :  { %v5492_v37 = vsel %vm5098_vm6, %v5490_v29, 0.0  ;;  %v5499_v3 = vmul.f32 %v11746_v1, %v11444_v13 }
0x5c55   :  { %8851 = vmatpush3.bf16.msra.mxu1 %v11741_v54  ;;  %5493 = vadd.xlane.f32.xlu1 %v5492_v37  ;;  %v11841_v37 = vld [vmem:[%s12691_s20] sm:$0xff]  }
0x5c56   :  { %5501 = vrot.lane.b32.xlu0 %v5499_v3, %s9781_s6  ;;  %8852 = vmatprep.subr.bf16.mxu1 %v12735_v0  ;;  %v11847_v3 = vld [vmem:[%s12691_s20 + $0x8] sm:$0xff]  }
0x5c57   :  { %v11764_v31 = vpop.permute.xlu0 %5520  ;;  %8873 = vmatpush3.bf16.msra.mxu0 %v11841_v37 }
0x5c58   :  { %v5523_v35 = vmul.f32 %v11764_v31, %v11444_v13  ;;  %8874 = vmatprep.subr.bf16.mxu0 %v12735_v0 }
0x5c59   :  { %8853 = vmatpush3.bf16.msra.mxu1 %v11755_v18 }
0x5c5a   :  { %5525 = vrot.lane.b32.xlu0 %v5523_v35, %s9781_s6  ;;  %8854 = vmatprep.subr.bf16.mxu1 %v12735_v0  ;;  %v11855_v35 = vld [vmem:[%s12691_s20 + $0x10] sm:$0xff]  }
0x5c5b   :  { %v11779_v47 = vpop.permute.xlu0 %5544  ;;  %8875 = vmatpush3.bf16.msra.mxu0 %v11847_v3 }
0x5c5c   :  { %v5547_v52 = vmul.f32 %v11779_v47, %v11444_v13  ;;  %v11798_v13 = vld [vmem:[%s12689_s18 + $0x8] sm:$0xff]   ;;  %8876 = vmatprep.subr.bf16.mxu0 %v12735_v0 }
0x5c5d   :  { %8855 = vmatpush3.bf16.msra.mxu1 %v11772_v39 }
0x5c5e   :  { %5549 = vrot.lane.b32.xlu0 %v5547_v52, %s9781_s6  ;;  %8860 = vmatprep.subr.bf16.mxu1 %v12735_v0  ;;  %v5812_v52 = vmul.f32 %v11697_v10, %v11517_v43 }
0x5c5f   :  { %v5478_v61 = vpop.permute.xlu0 %5477  ;;  %8877 = vmatpush3.bf16.msra.mxu0 %v11855_v35 }
0x5c60   :  { %8857 = vmatmul.mubr.msk.bf16.vlgmr.msra.gmra.mrb[156].mxu1 %vm2166_vm7, %v5260_v20  ;;  %v5480_v12 = vsel %vm5098_vm6, %v5478_v61, 0.0  ;;  %8878 = vmatprep.subr.bf16.mxu0 %v12735_v0  ;;  %v11864_v20 = vld [vmem:[%s12691_s20 + $0x18] sm:$0xff]   ;;  %v5828_v61 = vmul.f32 %v11746_v1, %v11517_v43 }
0x5c61   :  { %8861 = vmatpush3.bf16.msra.mxu1 %v11787_v9  ;;  %8868 = vmatprep.mubr.msk.bf16.mxu1 %vm9779_vm0, %v12735_v0 }
0x5c62   :  { %8862 = vmatprep.subr.bf16.mxu1 %v12735_v0 }
0x5c63   :  { %8879 = vmatpush3.bf16.msra.mxu0 %v11864_v20 }
0x5c64   :  { %8884 = vmatprep.subr.bf16.mxu0 %v12735_v0 }
0x5c65   :  { %8863 = vmatpush3.bf16.msra.mxu1 %v11798_v13 }
0x5c66   :  { %8864 = vmatprep.subr.bf16.mxu1 %v12735_v0 }
0x5c69   :  { %8865 = vmatpush3.bf16.msra.mxu1 %v11807_v7 }
0x5c6a   :  { %8866 = vmatprep.subr.bf16.mxu1 %v12735_v0 }
0x5c6d   :  { %8867 = vmatpush3.bf16.msra.mxu1 %v11814_v40 }
0x5c6e   :  { %8896 = vmatprep.subr.bf16.mxu1 %v12735_v0 }
0x5c70   :  { %8869 = vmatmul.mubr.msk.bf16.vlgmr.msra.gmra.mrb[156].mxu1 %vm2166_vm7, %v11375_v16  ;;  %v5514_v16 = vpop.permute.xlu1 %5513 }
0x5c71   :  { %8897 = vmatpush3.bf16.msra.mxu1 %v11734_v26  ;;  %8904 = vmatprep.mubr.msk.bf16.mxu1 %vm9779_vm0, %v12735_v0  ;;  %v5516_v8 = vsel %vm5098_vm6, %v5514_v16, 0.0  ;;  %v5820_v16 = vmul.f32 %v11702_v56, %v11517_v43 }
0x5c72   :  { %8898 = vmatprep.subr.bf16.mxu1 %v12735_v0 }
0x5c74   :  { %v5538_v49 = vpop.permute.xlu1 %5537 }
0x5c75   :  { %8899 = vmatpush3.bf16.msra.mxu1 %v11741_v54  ;;  %v5540_v59 = vsel %vm5098_vm6, %v5538_v49, 0.0  ;;  %v5868_v49 = vmul.f32 %v11723_v57, %v11517_v43 }
0x5c76   :  { %8900 = vmatprep.subr.bf16.mxu1 %v12735_v0 }
0x5c78   :  { %v5562_v24 = vpop.permute.xlu1 %5561 }
0x5c79   :  { %8901 = vmatpush3.bf16.msra.mxu1 %v11755_v18  ;;  %v5564_v29 = vsel %vm5098_vm6, %v5562_v24, 0.0 }
0x5c7a   :  { %8902 = vmatprep.subr.bf16.mxu1 %v12735_v0 }
0x5c7d   :  { %5481 = vadd.xlane.f32.xlu0 %v5480_v12  ;;  %8903 = vmatpush3.bf16.msra.mxu1 %v11772_v39  ;;  %v5836_v12 = vmul.f32 %v11709_v21, %v11517_v43 }
0x5c7e   :  { %8908 = vmatprep.subr.bf16.mxu1 %v12735_v0 }
0x5cc8   :  { %v5502_v32 = vpop.permute.xlu0 %5501 }
0x5cc9   :  { %v5504_v5 = vsel %vm5098_vm6, %v5502_v32, 0.0  ;;  %v5852_v32 = vmul.f32 %v11716_v51, %v11517_v43 }
0x5cca   :  { %5505 = vadd.xlane.f32.xlu0 %v5504_v5  ;;  %v5844_v5 = vmul.f32 %v11764_v31, %v11517_v43 }
0x5ccc   :  { %v5526_v36 = vpop.permute.xlu0 %5525 }
0x5ccd   :  { %v5528_v55 = vsel %vm5098_vm6, %v5526_v36, 0.0  ;;  %v5860_v36 = vmul.f32 %v11779_v47, %v11517_v43  ;;  %v7858_v43 = vld [vmem:[%s12692_s17] ss:$0 sm:$0xff] }
0x5cce   :  { %5529 = vadd.xlane.f32.xlu1 %v5528_v55  ;;  %5517 = vadd.xlane.f32.xlu0 %v5516_v8  ;;  %v4534_v8 = vadd.f32 %v11505_v22, %v11425_v50 }
0x5cd0   :  { %v5550_v58 = vpop.permute.xlu0 %5549 }
0x5cd1   :  { %v5552_v19 = vsel %vm5098_vm6, %v5550_v58, 0.0 }
0x5cd2   :  { %5553 = vadd.xlane.f32.xlu1 %v5552_v19  ;;  %5541 = vadd.xlane.f32.xlu0 %v5540_v59 }
0x5cd6   :  { %5565 = vadd.xlane.f32.xlu0 %v5564_v29 }
0x5ce3   :  { %5814 = vrot.lane.b32.xlu1 %v5812_v52, %s9781_s6 }
0x5ce7   :  { %5830 = vrot.lane.b32.xlu1 %v5828_v61, %s9781_s6 }
0x5ceb   :  { %5838 = vrot.lane.b32.xlu1 %v5836_v12, %s9781_s6 }
0x5cec   :  { %5822 = vrot.lane.b32.xlu0 %v5820_v16, %s9781_s6  ;;  %v7859_v16 = vld [vmem:[%s12693_s19] ss:$0 sm:$0xff] }
0x5cef   :  { %5854 = vrot.lane.b32.xlu1 %v5852_v32, %s9781_s6  ;;  %v4536_v32 = vadd.f32 %v11507_v38, %v11435_v11 }
0x5cf0   :  { %5846 = vrot.lane.b32.xlu0 %v5844_v5, %s9781_s6 }
0x5cf3   :  { %5870 = vrot.lane.b32.xlu1 %v5868_v49, %s9781_s6 }
0x5cf4   :  { %5862 = vrot.lane.b32.xlu0 %v5860_v36, %s9781_s6 }
0x5d23   :  { %v5012_v55 = vpop.f32.mrb[152].mxu1 }
0x5d24   :  { %v5013_v58 = vadd.f32 %v5012_v55, %v11420_v27  ;;  %v5014_v19 = vpop.f32.mrb[153].mxu1  ;;  %v11900_v27 = vadd.f32 %v7859_v16, %v7858_v43 }
0x5d25   :  { %v5016_v59 = vpop.f32.mrb[154].mxu1  ;;  %v5015_v50 = vadd.f32 %v5014_v19, %v11433_v46  ;;  %v5482_v19 = vpop.xlane.xlu0 %5481 }
0x5d26   :  { %v5019_v24 = vadd.f32 %v5013_v58, %v4534_v8  ;;  %v5017_v29 = vpop.f32.mrb[155].mxu1 }
0x5d28   :  { %v7856_v52 = vmul.f32 -1.442695, %v5019_v24 }
0x5d2a   :  { %9579 = vpow2.f32 %v7856_v52  ;;  %v5494_v52 = vpop.xlane.xlu1 %5493 }
0x5d34   :  { %v9580_v61 = vpop.eup %9579 }
0x5d35   :  { %v5023_v12 = vadd.f32 1.0, %v9580_v61 }
0x5d37   :  { %9581 = vrcp.f32 %v5023_v12  ;;  %v5567_v12 = vmax.f32 %v5482_v19, %v5494_v52 }
0x5d41   :  { %v11902_v22 = vpop.eup %9581 }
0x5d42   :  { %12736 = vst [vmem:[#allocation7_spill] sm:$0xff] %v11902_v22  ;;  %v5026_v5 = vmul.f32 %v11902_v22, %v5015_v50 }
0x5d43   :  { %v5386_v49 = vpop.f32.mrb[156].mxu1 }
0x5d44   :  { %v11907_v36 = vadd.f32 %v5026_v5, %v4536_v32  ;;  %v9221_v55 = vadd.f32 %v11900_v27, %v5386_v49  ;;  %v8870_v8 = vpop.f32.mrb[157].mxu1 }
0x5d45   :  { %v5389_v58 = vpop.f32.mrb[158].mxu1 }
0x5d46   :  { %12737 = vst [vmem:[#allocation8_spill] sm:$0xff] %v11907_v36  ;;  %v7876_v59 = vmul.f32 -1.442695, %v9221_v55  ;;  %v8871_v24 = vpop.f32.mrb[159].mxu1 }
0x5d48   :  { %9583 = vpow2.f32 %v7876_v59 }
0x5d52   :  { %v9584_v46 = vpop.eup %9583 }
0x5d53   :  { %v5396_v29 = vadd.f32 1.0, %v9584_v46 }
0x5d55   :  { %9585 = vrcp.f32 %v5396_v29 }
0x5d57   :  { %v5506_v61 = vpop.xlane.xlu0 %5505 }
0x5d58   :  { %v5568_v11 = vmax.f32 %v5567_v12, %v5506_v61 }
0x5d5b   :  { %v5518_v38 = vpop.xlane.xlu0 %5517  ;;  %v5530_v43 = vpop.xlane.xlu1 %5529 }
0x5d5c   :  { %v5569_v16 = vmax.f32 %v5568_v11, %v5518_v38 }
0x5d5e   :  { %v5570_v50 = vmax.f32 %v5569_v16, %v5530_v43 }
0x5d5f   :  { %v9586_v32 = vpop.eup %9585  ;;  %v5542_v5 = vpop.xlane.xlu0 %5541 }
0x5d60   :  { %v5554_v49 = vpop.xlane.xlu1 %5553  ;;  %v5571_v8 = vmax.f32 %v5570_v50, %v5542_v5  ;;  %v5399_v55 = vmul.f32 %v9586_v32, %v11775_v53 }
0x5d62   :  { %v5572_v58 = vmax.f32 %v5571_v8, %v5554_v49  ;;  %v5400_v59 = vadd.f32 %v5399_v55, %v11371_v17 }
0x5d63   :  { %v5566_v24 = vpop.xlane.xlu0 %5565 }
0x5d64   :  { %v5815_v46 = vpop.permute.xlu1 %5814  ;;  %v5573_v29 = vmax.f32 %v5572_v58, %v5566_v24  ;;  %v5401_v2 = vpack.c.bf16 %v5400_v59, %v5400_v59 }
0x5d65   :  { %v5817_v15 = vsel %vm5098_vm6, %v5815_v46, 0.0 }
0x5d66   :  { %5818 = vadd.xlane.f32.xlu0 %v5817_v15  ;;  %v5574_v12 = vsub.f32 %v5482_v19, %v5573_v29  ;;  %v5577_v22 = vsub.f32 %v5494_v52, %v5573_v29  ;;  %v5580_v11 = vsub.f32 %v5506_v61, %v5573_v29  ;;  %8881 = vmatmul.mubr.msk.bf16.vlgmr.msra.gmra.mrb[160].mxu0 %vm2166_vm7, %v5401_v2 }
0x5d67   :  { %v5583_v16 = vsub.f32 %v5518_v38, %v5573_v29  ;;  %v5823_v36 = vpop.permute.xlu0 %5822  ;;  %8885 = vmatpush3.bf16.msra.mxu0 %v11641_v30  ;;  %8892 = vmatprep.mubr.msk.bf16.mxu0 %vm9779_vm0, %v12735_v0  ;;  %v5586_v55 = vsub.f32 %v5530_v43, %v5573_v29  ;;  %v5589_v2 = vsub.f32 %v5542_v5, %v5573_v29 }
0x5d68   :  { %v5831_v50 = vpop.permute.xlu1 %5830  ;;  %v5575_v53 = vmul.f32 1.442695, %v5574_v12  ;;  %v5578_v32 = vmul.f32 1.442695, %v5577_v22  ;;  %8886 = vmatprep.subr.bf16.mxu0 %v12735_v0  ;;  %v5581_v8 = vmul.f32 1.442695, %v5580_v11  ;;  %v5592_v43 = vsub.f32 %v5554_v49, %v5573_v29 }
0x5d69   :  { %v5833_v15 = vsel %vm5098_vm6, %v5831_v50, 0.0  ;;  %v5584_v19 = vmul.f32 1.442695, %v5583_v16  ;;  %v5825_v52 = vsel %vm5098_vm6, %v5823_v36, 0.0  ;;  %v5587_v38 = vmul.f32 1.442695, %v5586_v55 }
0x5d6a   :  { %9587 = vpow2.f32 %v5575_v53  ;;  %5834 = vadd.xlane.f32.xlu0 %v5833_v15  ;;  %5826 = vadd.xlane.f32.xlu1 %v5825_v52  ;;  %v5590_v59 = vmul.f32 1.442695, %v5589_v2  ;;  %v5595_v5 = vsub.f32 %v5566_v24, %v5573_v29  ;;  %v5593_v12 = vmul.f32 1.442695, %v5592_v43 }
0x5d6b   :  { %9589 = vpow2.f32 %v5578_v32  ;;  %v5847_v61 = vpop.permute.xlu0 %5846  ;;  %8887 = vmatpush3.bf16.msra.mxu0 %v11647_v33  ;;  %v6137_v43 = vmul.f32 %v11746_v1, %v11540_v6 }
0x5d6c   :  { %v5839_v30 = vpop.permute.xlu1 %5838  ;;  %8888 = vmatprep.subr.bf16.mxu0 %v12735_v0  ;;  %9591 = vpow2.f32 %v5581_v8  ;;  %v5849_v58 = vsel %vm5098_vm6, %v5847_v61, 0.0  ;;  %v5596_v49 = vmul.f32 1.442695, %v5595_v5 }
0x5d6d   :  { %v5841_v22 = vsel %vm5098_vm6, %v5839_v30, 0.0  ;;  %9593 = vpow2.f32 %v5584_v19 }
0x5d6e   :  { %5842 = vadd.xlane.f32.xlu0 %v5841_v22  ;;  %5850 = vadd.xlane.f32.xlu1 %v5849_v58  ;;  %9595 = vpow2.f32 %v5587_v38  ;;  %v6121_v38 = vmul.f32 %v11697_v10, %v11540_v6  ;;  %v6145_v58 = vmul.f32 %v11709_v21, %v11540_v6 }
0x5d6f   :  { %v5863_v36 = vpop.permute.xlu0 %5862  ;;  %8889 = vmatpush3.bf16.msra.mxu0 %v11654_v42  ;;  %9597 = vpow2.f32 %v5590_v59  ;;  %v6129_v59 = vmul.f32 %v11702_v56, %v11540_v6 }
0x5d70   :  { %v5855_v46 = vpop.permute.xlu1 %5854  ;;  %8890 = vmatprep.subr.bf16.mxu0 %v12735_v0  ;;  %v5865_v11 = vsel %vm5098_vm6, %v5863_v36, 0.0  ;;  %9599 = vpow2.f32 %v5593_v12  ;;  %v6161_v36 = vmul.f32 %v11716_v51, %v11540_v6 }
0x5d71   :  { %v5857_v33 = vsel %vm5098_vm6, %v5855_v46, 0.0  ;;  %9601 = vpow2.f32 %v5596_v49  ;;  %v6153_v46 = vmul.f32 %v11764_v31, %v11540_v6 }
0x5d72   :  { %5858 = vadd.xlane.f32.xlu0 %v5857_v33  ;;  %5866 = vadd.xlane.f32.xlu1 %v5865_v11 }
0x5d73   :  { %8891 = vmatpush3.bf16.msra.mxu0 %v11661_v41 }
0x5d74   :  { %v5871_v16 = vpop.permute.xlu1 %5870  ;;  %v9588_v24 = vpop.eup %9587  ;;  %8920 = vmatprep.subr.bf16.mxu0 %v12735_v0 }
0x5d75   :  { %v5873_v29 = vsel %vm5098_vm6, %v5871_v16, 0.0  ;;  %v9590_v42 = vpop.eup %9589 }
0x5d76   :  { %v5598_v50 = vadd.f32 %v9590_v42, %v9588_v24  ;;  %v9592_v53 = vpop.eup %9591  ;;  %5874 = vadd.xlane.f32.xlu0 %v5873_v29 }
0x5d77   :  { %v9594_v8 = vpop.eup %9593 }
0x5d78   :  { %v5599_v32 = vadd.f32 %v9592_v53, %v5598_v50  ;;  %v9596_v15 = vpop.eup %9595  ;;  %v6177_v50 = vmul.f32 %v11723_v57, %v11540_v6 }
0x5d79   :  { %v9598_v2 = vpop.eup %9597 }
0x5d7a   :  { %v5600_v55 = vadd.f32 %v9594_v8, %v5599_v32  ;;  %v9600_v41 = vpop.eup %9599  ;;  %v6169_v32 = vmul.f32 %v11779_v47, %v11540_v6 }
0x5d7b   :  { %v9602_v30 = vpop.eup %9601 }
0x5d7c   :  { %v5601_v19 = vadd.f32 %v9596_v15, %v5600_v55 }
0x5d7e   :  { %v5602_v52 = vadd.f32 %v9598_v2, %v5601_v19 }
0x5d80   :  { %v5603_v61 = vadd.f32 %v9600_v41, %v5602_v52 }
0x5d82   :  { %v5604_v22 = vadd.f32 %v9602_v30, %v5603_v61 }
0x5d83   :  { %6123 = vrot.lane.b32.xlu1 %v6121_v38, %s9781_s6 }
0x5d84   :  { %9603 = vrcp.f32 %v5604_v22 }
0x5d87   :  { %6139 = vrot.lane.b32.xlu1 %v6137_v43, %s9781_s6 }
0x5d8b   :  { %6147 = vrot.lane.b32.xlu1 %v6145_v58, %s9781_s6 }
0x5d8c   :  { %6131 = vrot.lane.b32.xlu0 %v6129_v59, %s9781_s6 }
0x5d8e   :  { %v9604_v5 = vpop.eup %9603 }
0x5d8f   :  { %v5606_v33 = vmul.f32 %v9604_v5, %v9588_v24  ;;  %v5608_v12 = vmul.f32 %v9604_v5, %v9590_v42  ;;  %v5611_v11 = vmul.f32 %v9604_v5, %v9592_v53  ;;  %6163 = vrot.lane.b32.xlu1 %v6161_v36, %s9781_s6  ;;  %v5614_v29 = vmul.f32 %v9604_v5, %v9594_v8 }
0x5d90   :  { %6155 = vrot.lane.b32.xlu0 %v6153_v46, %s9781_s6  ;;  %v5617_v42 = vmul.f32 %v9604_v5, %v9596_v15  ;;  %v5620_v52 = vmul.f32 %v9604_v5, %v9598_v2  ;;  %v5623_v22 = vmul.f32 %v9604_v5, %v9600_v41  ;;  %v5626_v38 = vmul.f32 %v9604_v5, %v9602_v30 }
0x5d91   :  { %v5607_v49 = vmul.f32 %v5606_v33, %v11371_v17  ;;  %v5609_v16 = vmul.f32 %v5608_v12, %v11244_v44  ;;  %v5612_v24 = vmul.f32 %v5611_v11, %v11390_v45  ;;  %v5615_v19 = vmul.f32 %v5614_v29, %v11269_v60 }
0x5d92   :  { %v5618_v8 = vmul.f32 %v5617_v42, %v11450_v14  ;;  %v5621_v6 = vmul.f32 %v5620_v52, %v11294_v48  ;;  %v5624_v59 = vmul.f32 %v5623_v22, %v11472_v4  ;;  %v5627_v36 = vmul.f32 %v5626_v38, %v11634_v23 }
0x5d93   :  { %v5610_v55 = vadd.f32 %v5609_v16, %v5607_v49  ;;  %6179 = vrot.lane.b32.xlu1 %v6177_v50, %s9781_s6 }
0x5d94   :  { %6171 = vrot.lane.b32.xlu0 %v6169_v32, %s9781_s6 }
0x5d95   :  { %v5613_v53 = vadd.f32 %v5612_v24, %v5610_v55 }
0x5d97   :  { %v5616_v61 = vadd.f32 %v5615_v19, %v5613_v53 }
0x5d99   :  { %v5619_v43 = vadd.f32 %v5618_v8, %v5616_v61 }
0x5d9b   :  { %v5622_v58 = vadd.f32 %v5621_v6, %v5619_v43 }
0x5d9d   :  { %v5625_v15 = vadd.f32 %v5624_v59, %v5622_v58 }
0x5d9f   :  { %v5628_v46 = vadd.f32 %v5627_v36, %v5625_v15 }
0x5da1   :  { %v5629_v33 = vpack.c.bf16 %v5628_v46, %v5628_v46 }
0x5da3   :  { %8893 = vmatmul.mubr.msk.bf16.vlgmr.msra.gmra.mrb[164].mxu0 %vm2166_vm7, %v5629_v33 }
0x5da4   :  { %8921 = vmatpush3.bf16.msra.mxu0 %v11841_v37  ;;  %8928 = vmatprep.mubr.msk.bf16.mxu0 %vm9779_vm0, %v12735_v0 }
0x5da5   :  { %8922 = vmatprep.subr.bf16.mxu0 %v12735_v0 }
0x5da8   :  { %8923 = vmatpush3.bf16.msra.mxu0 %v11847_v3 }
0x5da9   :  { %8924 = vmatprep.subr.bf16.mxu0 %v12735_v0 }
0x5dac   :  { %8925 = vmatpush3.bf16.msra.mxu0 %v11855_v35 }
0x5dad   :  { %8926 = vmatprep.subr.bf16.mxu0 %v12735_v0 }
0x5db0   :  { %8927 = vmatpush3.bf16.msra.mxu0 %v11864_v20 }
0x5db1   :  { %8932 = vmatprep.subr.bf16.mxu0 %v12735_v0 }
0x5df3   :  { %v5819_v2 = vpop.xlane.xlu0 %5818 }
0x5df7   :  { %v5835_v41 = vpop.xlane.xlu0 %5834  ;;  %v5827_v37 = vpop.xlane.xlu1 %5826 }
0x5df8   :  { %v5876_v30 = vmax.f32 %v5819_v2, %v5827_v37 }
0x5dfa   :  { %v5877_v12 = vmax.f32 %v5876_v30, %v5835_v41 }
0x5dfb   :  { %v5843_v5 = vpop.xlane.xlu0 %5842  ;;  %v5851_v11 = vpop.xlane.xlu1 %5850 }
0x5dfc   :  { %v5878_v49 = vmax.f32 %v5877_v12, %v5843_v5 }
0x5dfe   :  { %v5879_v16 = vmax.f32 %v5878_v49, %v5851_v11 }
0x5dff   :  { %v5859_v3 = vpop.xlane.xlu0 %5858  ;;  %v5867_v29 = vpop.xlane.xlu1 %5866 }
0x5e00   :  { %v5880_v50 = vmax.f32 %v5879_v16, %v5859_v3 }
0x5e02   :  { %v5881_v32 = vmax.f32 %v5880_v50, %v5867_v29 }
0x5e03   :  { %v5875_v35 = vpop.xlane.xlu0 %5874  ;;  %v6124_v55 = vpop.permute.xlu1 %6123 }
0x5e04   :  { %v5882_v24 = vmax.f32 %v5881_v32, %v5875_v35  ;;  %v6126_v20 = vsel %vm5098_vm6, %v6124_v55, 0.0 }
0x5e05   :  { %6127 = vadd.xlane.f32.xlu0 %v6126_v20 }
0x5e06   :  { %v5883_v42 = vsub.f32 %v5819_v2, %v5882_v24  ;;  %v5886_v53 = vsub.f32 %v5827_v37, %v5882_v24  ;;  %v5889_v19 = vsub.f32 %v5835_v41, %v5882_v24  ;;  %v5892_v52 = vsub.f32 %v5843_v5, %v5882_v24 }
0x5e07   :  { %v6132_v61 = vpop.permute.xlu0 %6131  ;;  %v5895_v8 = vsub.f32 %v5851_v11, %v5882_v24  ;;  %v5898_v22 = vsub.f32 %v5859_v3, %v5882_v24  ;;  %v5901_v38 = vsub.f32 %v5867_v29, %v5882_v24  ;;  %v5904_v43 = vsub.f32 %v5875_v35, %v5882_v24  ;;  %v6140_v6 = vpop.permute.xlu1 %6139 }
0x5e08   :  { %v5884_v58 = vmul.f32 1.442695, %v5883_v42  ;;  %v5887_v59 = vmul.f32 1.442695, %v5886_v53  ;;  %v5890_v15 = vmul.f32 1.442695, %v5889_v19 }
0x5e09   :  { %v6134_v36 = vsel %vm5098_vm6, %v6132_v61, 0.0  ;;  %v5893_v33 = vmul.f32 1.442695, %v5892_v52  ;;  %v6142_v2 = vsel %vm5098_vm6, %v6140_v6, 0.0  ;;  %v5896_v30 = vmul.f32 1.442695, %v5895_v8 }
0x5e0a   :  { %9605 = vpow2.f32 %v5884_v58  ;;  %6135 = vadd.xlane.f32.xlu1 %v6134_v36  ;;  %6143 = vadd.xlane.f32.xlu0 %v6142_v2  ;;  %v5899_v11 = vmul.f32 1.442695, %v5898_v22  ;;  %v5902_v3 = vmul.f32 1.442695, %v5901_v38  ;;  %v5905_v50 = vmul.f32 1.442695, %v5904_v43 }
0x5e0b   :  { %v6156_v46 = vpop.permute.xlu0 %6155  ;;  %9607 = vpow2.f32 %v5887_v59  ;;  %v6148_v41 = vpop.permute.xlu1 %6147  ;;  %v6446_v36 = vmul.f32 %v11746_v1, %v11572_v28 }
0x5e0c   :  { %v6158_v37 = vsel %vm5098_vm6, %v6156_v46, 0.0  ;;  %9609 = vpow2.f32 %v5890_v15  ;;  %v6150_v5 = vsel %vm5098_vm6, %v6148_v41, 0.0  ;;  %v6430_v15 = vmul.f32 %v11697_v10, %v11572_v28 }
0x5e0d   :  { %9611 = vpow2.f32 %v5893_v33  ;;  %v6454_v46 = vmul.f32 %v11709_v21, %v11572_v28  ;;  %v6438_v33 = vmul.f32 %v11702_v56, %v11572_v28  ;;  %v6470_v41 = vmul.f32 %v11716_v51, %v11572_v28 }
0x5e0e   :  { %6159 = vadd.xlane.f32.xlu1 %v6158_v37  ;;  %6151 = vadd.xlane.f32.xlu0 %v6150_v5  ;;  %9613 = vpow2.f32 %v5896_v30  ;;  %v6462_v37 = vmul.f32 %v11764_v31, %v11572_v28 }
0x5e0f   :  { %v6172_v12 = vpop.permute.xlu0 %6171  ;;  %v6164_v49 = vpop.permute.xlu1 %6163  ;;  %9615 = vpow2.f32 %v5899_v11 }
0x5e10   :  { %v6174_v16 = vsel %vm5098_vm6, %v6172_v12, 0.0  ;;  %v6166_v29 = vsel %vm5098_vm6, %v6164_v49, 0.0  ;;  %9617 = vpow2.f32 %v5902_v3 }
0x5e11   :  { %9619 = vpow2.f32 %v5905_v50 }
0x5e12   :  { %6175 = vadd.xlane.f32.xlu1 %v6174_v16  ;;  %6167 = vadd.xlane.f32.xlu0 %v6166_v29 }
0x5e13   :  { %v6180_v32 = vpop.permute.xlu1 %6179 }
0x5e14   :  { %v9606_v35 = vpop.eup %9605  ;;  %v6182_v24 = vsel %vm5098_vm6, %v6180_v32, 0.0 }
0x5e15   :  { %v9608_v55 = vpop.eup %9607 }
0x5e16   :  { %v5907_v20 = vadd.f32 %v9608_v55, %v9606_v35  ;;  %v9610_v42 = vpop.eup %9609  ;;  %6183 = vadd.xlane.f32.xlu0 %v6182_v24  ;;  %v6486_v24 = vmul.f32 %v11723_v57, %v11572_v28 }
0x5e17   :  { %v9612_v19 = vpop.eup %9611 }
0x5e18   :  { %v5908_v53 = vadd.f32 %v9610_v42, %v5907_v20  ;;  %v9614_v61 = vpop.eup %9613 }
0x5e19   :  { %v9616_v22 = vpop.eup %9615 }
0x5e1a   :  { %v5909_v52 = vadd.f32 %v9612_v19, %v5908_v53  ;;  %v9618_v43 = vpop.eup %9617 }
0x5e1b   :  { %v9620_v58 = vpop.eup %9619 }
0x5e1c   :  { %v5910_v8 = vadd.f32 %v9614_v61, %v5909_v52 }
0x5e1e   :  { %v5911_v38 = vadd.f32 %v9616_v22, %v5910_v8 }
0x5e20   :  { %v5912_v6 = vadd.f32 %v9618_v43, %v5911_v38 }
0x5e22   :  { %v5913_v59 = vadd.f32 %v9620_v58, %v5912_v6 }
0x5e23   :  { %6432 = vrot.lane.b32.xlu1 %v6430_v15, %s9781_s6 }
0x5e24   :  { %9621 = vrcp.f32 %v5913_v59 }
0x5e27   :  { %6448 = vrot.lane.b32.xlu1 %v6446_v36, %s9781_s6 }
0x5e2b   :  { %6456 = vrot.lane.b32.xlu1 %v6454_v46, %s9781_s6 }
0x5e2c   :  { %6440 = vrot.lane.b32.xlu0 %v6438_v33, %s9781_s6 }
0x5e2e   :  { %v9622_v2 = vpop.eup %9621 }
0x5e2f   :  { %v5935_v30 = vmul.f32 %v9622_v2, %v9620_v58  ;;  %v5915_v5 = vmul.f32 %v9622_v2, %v9606_v35  ;;  %v5917_v12 = vmul.f32 %v9622_v2, %v9608_v55  ;;  %v5920_v11 = vmul.f32 %v9622_v2, %v9610_v42  ;;  %6472 = vrot.lane.b32.xlu1 %v6470_v41, %s9781_s6  ;;  %v12011_v42 = vld [vmem:[%s12694_s21] ss:$0 sm:$0xff] }
0x5e30   :  { %v5923_v49 = vmul.f32 %v9622_v2, %v9612_v19  ;;  %v5926_v16 = vmul.f32 %v9622_v2, %v9614_v61  ;;  %v5929_v3 = vmul.f32 %v9622_v2, %v9616_v22  ;;  %v5932_v29 = vmul.f32 %v9622_v2, %v9618_v43  ;;  %6464 = vrot.lane.b32.xlu0 %v6462_v37, %s9781_s6 }
0x5e31   :  { %v5916_v50 = vmul.f32 %v5915_v5, %v11371_v17  ;;  %v5918_v32 = vmul.f32 %v5917_v12, %v11244_v44  ;;  %v5921_v35 = vmul.f32 %v5920_v11, %v11390_v45  ;;  %v6478_v55 = vmul.f32 %v11779_v47, %v11572_v28 }
0x5e32   :  { %v5924_v19 = vmul.f32 %v5923_v49, %v11269_v60  ;;  %v5927_v8 = vmul.f32 %v5926_v16, %v11450_v14  ;;  %v5930_v6 = vmul.f32 %v5929_v3, %v11294_v48  ;;  %v5933_v15 = vmul.f32 %v5932_v29, %v11472_v4 }
0x5e33   :  { %v5919_v20 = vadd.f32 %v5918_v32, %v5916_v50  ;;  %6488 = vrot.lane.b32.xlu1 %v6486_v24, %s9781_s6  ;;  %v5936_v46 = vmul.f32 %v5935_v30, %v11634_v23 }
0x5e34   :  { %6480 = vrot.lane.b32.xlu0 %v6478_v55, %s9781_s6 }
0x5e35   :  { %v5922_v53 = vadd.f32 %v5921_v35, %v5919_v20 }
0x5e37   :  { %v5925_v61 = vadd.f32 %v5924_v19, %v5922_v53 }
0x5e39   :  { %v5463_v52 = vpop.f32.mrb[160].mxu0  ;;  %v5928_v28 = vadd.f32 %v5927_v8, %v5925_v61 }
0x5e3a   :  { %v5464_v22 = vadd.f32 %v12011_v42, %v5463_v52  ;;  %v8882_v38 = vpop.f32.mrb[161].mxu0 }
0x5e3b   :  { %v5466_v43 = vpop.f32.mrb[162].mxu0  ;;  %v5931_v59 = vadd.f32 %v5930_v6, %v5928_v28 }
0x5e3c   :  { %5470 = vst.msk [vmem:[%s12695_s22] sm:$0x3] %vm5469_vm3, %v5464_v22  ;;  %v8883_v58 = vpop.f32.mrb[163].mxu0 }
0x5e3d   :  { %v5934_v36 = vadd.f32 %v5933_v15, %v5931_v59 }
0x5e3f   :  { %v12024_v33 = vadd.f32 %v5936_v46, %v5934_v36 }
0x5e76   :  { %v5667_v2 = vpop.f32.mrb[164].mxu0 }
0x5e77   :  { %v12027_v41 = vadd.f32 %v11762_v62, %v5667_v2  ;;  %v8894_v37 = vpop.f32.mrb[165].mxu0 }
0x5e78   :  { %v5670_v5 = vpop.f32.mrb[166].mxu0 }
0x5e79   :  { %v5673_v12 = vpack.c.bf16 %v12027_v41, %v12027_v41  ;;  %v8895_v11 = vpop.f32.mrb[167].mxu0 }
0x5e7b   :  { %8905 = vmatmul.mubr.msk.bf16.vlgmr.msra.gmra.mrb[160].mxu1 %vm2166_vm7, %v5673_v12 }
0x5e7c   :  { %8909 = vmatpush3.bf16.msra.mxu1 %v11787_v9  ;;  %8916 = vmatprep.mubr.msk.bf16.mxu1 %vm9779_vm0, %v12735_v0 }
0x5e7d   :  { %8910 = vmatprep.subr.bf16.mxu1 %v12735_v0 }
0x5e80   :  { %8911 = vmatpush3.bf16.msra.mxu1 %v11798_v13 }
0x5e81   :  { %8912 = vmatprep.subr.bf16.mxu1 %v12735_v0 }
0x5e84   :  { %8913 = vmatpush3.bf16.msra.mxu1 %v11807_v7 }
0x5e85   :  { %8914 = vmatprep.subr.bf16.mxu1 %v12735_v0 }
0x5e88   :  { %8915 = vmatpush3.bf16.msra.mxu1 %v11814_v40 }
0x5e89   :  { %8944 = vmatprep.subr.bf16.mxu1 %v12735_v0 }
0x5e8b   :  { %8917 = vmatmul.mubr.msk.bf16.vlgmr.msra.gmra.mrb[160].mxu1 %vm2166_vm7, %v11251_v63 }
0x5e8c   :  { %8945 = vmatpush3.bf16.msra.mxu1 %v11734_v26  ;;  %8952 = vmatprep.mubr.msk.bf16.mxu1 %vm9779_vm0, %v12735_v0 }
0x5e8d   :  { %8946 = vmatprep.subr.bf16.mxu1 %v12735_v0 }
0x5e90   :  { %8947 = vmatpush3.bf16.msra.mxu1 %v11741_v54 }
0x5e91   :  { %8948 = vmatprep.subr.bf16.mxu1 %v12735_v0 }
0x5e92   :  { %v6128_v62 = vpop.xlane.xlu0 %6127 }
0x5e94   :  { %8949 = vmatpush3.bf16.msra.mxu1 %v11755_v18 }
0x5e95   :  { %8950 = vmatprep.subr.bf16.mxu1 %v12735_v0 }
0x5e97   :  { %v6136_v63 = vpop.xlane.xlu1 %6135  ;;  %v6144_v26 = vpop.xlane.xlu0 %6143 }
0x5e98   :  { %8951 = vmatpush3.bf16.msra.mxu1 %v11772_v39  ;;  %v6185_v9 = vmax.f32 %v6128_v62, %v6136_v63 }
0x5e99   :  { %8956 = vmatprep.subr.bf16.mxu1 %v12735_v0 }
0x5e9a   :  { %v6186_v13 = vmax.f32 %v6185_v9, %v6144_v26 }
0x5e9b   :  { %v6160_v7 = vpop.xlane.xlu1 %6159  ;;  %v6152_v40 = vpop.xlane.xlu0 %6151 }
0x5e9c   :  { %v6187_v30 = vmax.f32 %v6186_v13, %v6152_v40 }
0x5e9e   :  { %v6188_v49 = vmax.f32 %v6187_v30, %v6160_v7 }
0x5e9f   :  { %v6176_v54 = vpop.xlane.xlu1 %6175  ;;  %v6168_v16 = vpop.xlane.xlu0 %6167 }
0x5ea0   :  { %v6189_v3 = vmax.f32 %v6188_v49, %v6168_v16 }
0x5ea2   :  { %v6190_v29 = vmax.f32 %v6189_v3, %v6176_v54 }
0x5ea3   :  { %v6433_v18 = vpop.permute.xlu1 %6432  ;;  %v6184_v50 = vpop.xlane.xlu0 %6183 }
0x5ea4   :  { %v6435_v32 = vsel %vm5098_vm6, %v6433_v18, 0.0  ;;  %v6191_v24 = vmax.f32 %v6190_v29, %v6184_v50 }
0x5ea5   :  { %6436 = vadd.xlane.f32.xlu0 %v6435_v32 }
0x5ea6   :  { %v6192_v39 = vsub.f32 %v6128_v62, %v6191_v24  ;;  %v6195_v20 = vsub.f32 %v6136_v63, %v6191_v24  ;;  %v6198_v35 = vsub.f32 %v6144_v26, %v6191_v24  ;;  %v6201_v55 = vsub.f32 %v6152_v40, %v6191_v24 }
0x5ea7   :  { %v6449_v53 = vpop.permute.xlu1 %6448  ;;  %v6204_v19 = vsub.f32 %v6160_v7, %v6191_v24  ;;  %v6207_v52 = vsub.f32 %v6168_v16, %v6191_v24  ;;  %v6210_v61 = vsub.f32 %v6176_v54, %v6191_v24  ;;  %v6213_v8 = vsub.f32 %v6184_v50, %v6191_v24  ;;  %v6441_v22 = vpop.permute.xlu0 %6440 }
0x5ea8   :  { %v6193_v38 = vmul.f32 1.442695, %v6192_v39  ;;  %v6196_v43 = vmul.f32 1.442695, %v6195_v20  ;;  %v6199_v28 = vmul.f32 1.442695, %v6198_v35 }
0x5ea9   :  { %v6443_v6 = vsel %vm5098_vm6, %v6441_v22, 0.0  ;;  %v6202_v59 = vmul.f32 1.442695, %v6201_v55  ;;  %v6451_v15 = vsel %vm5098_vm6, %v6449_v53, 0.0  ;;  %v6205_v2 = vmul.f32 1.442695, %v6204_v19 }
0x5eaa   :  { %9623 = vpow2.f32 %v6193_v38  ;;  %6444 = vadd.xlane.f32.xlu1 %v6443_v6  ;;  %6452 = vadd.xlane.f32.xlu0 %v6451_v15  ;;  %v6208_v12 = vmul.f32 1.442695, %v6207_v52  ;;  %v6211_v63 = vmul.f32 1.442695, %v6210_v61  ;;  %v6214_v13 = vmul.f32 1.442695, %v6213_v8 }
0x5eab   :  { %v6457_v58 = vpop.permute.xlu1 %6456  ;;  %9625 = vpow2.f32 %v6196_v43  ;;  %v6465_v36 = vpop.permute.xlu0 %6464  ;;  %v6739_v53 = vmul.f32 %v11697_v10, %v11615_v34  ;;  %v6755_v19 = vmul.f32 %v11746_v1, %v11615_v34  ;;  %v6763_v52 = vmul.f32 %v11709_v21, %v11615_v34 }
0x5eac   :  { %v6467_v46 = vsel %vm5098_vm6, %v6465_v36, 0.0  ;;  %9627 = vpow2.f32 %v6199_v28  ;;  %v6459_v37 = vsel %vm5098_vm6, %v6457_v58, 0.0  ;;  %v6747_v61 = vmul.f32 %v11702_v56, %v11615_v34 }
0x5ead   :  { %9629 = vpow2.f32 %v6202_v59  ;;  %v6779_v22 = vmul.f32 %v11716_v51, %v11615_v34  ;;  %v6771_v38 = vmul.f32 %v11764_v31, %v11615_v34 }
0x5eae   :  { %6468 = vadd.xlane.f32.xlu1 %v6467_v46  ;;  %6460 = vadd.xlane.f32.xlu0 %v6459_v37  ;;  %9631 = vpow2.f32 %v6205_v2 }
0x5eaf   :  { %v6473_v5 = vpop.permute.xlu1 %6472  ;;  %v6481_v11 = vpop.permute.xlu0 %6480  ;;  %9633 = vpow2.f32 %v6208_v12 }
0x5eb0   :  { %v6483_v62 = vsel %vm5098_vm6, %v6481_v11, 0.0  ;;  %v6475_v26 = vsel %vm5098_vm6, %v6473_v5, 0.0  ;;  %9635 = vpow2.f32 %v6211_v63  ;;  %v6795_v5 = vmul.f32 %v11723_v57, %v11615_v34 }
0x5eb1   :  { %9637 = vpow2.f32 %v6214_v13 }
0x5eb2   :  { %6484 = vadd.xlane.f32.xlu1 %v6483_v62  ;;  %6476 = vadd.xlane.f32.xlu0 %v6475_v26  ;;  %v6787_v62 = vmul.f32 %v11779_v47, %v11615_v34 }
0x5eb3   :  { %v6489_v9 = vpop.permute.xlu1 %6488 }
0x5eb4   :  { %v9624_v7 = vpop.eup %9623  ;;  %v6491_v30 = vsel %vm5098_vm6, %v6489_v9, 0.0 }
0x5eb5   :  { %v9626_v40 = vpop.eup %9625 }
0x5eb6   :  { %v6216_v49 = vadd.f32 %v9626_v40, %v9624_v7  ;;  %v9628_v54 = vpop.eup %9627  ;;  %6492 = vadd.xlane.f32.xlu0 %v6491_v30 }
0x5eb7   :  { %v9630_v3 = vpop.eup %9629 }
0x5eb8   :  { %v6217_v16 = vadd.f32 %v9628_v54, %v6216_v49  ;;  %v9632_v18 = vpop.eup %9631 }
0x5eb9   :  { %v9634_v32 = vpop.eup %9633 }
0x5eba   :  { %v6218_v29 = vadd.f32 %v9630_v3, %v6217_v16  ;;  %v9636_v39 = vpop.eup %9635 }
0x5ebb   :  { %v9638_v35 = vpop.eup %9637 }
0x5ebc   :  { %v6219_v50 = vadd.f32 %v9632_v18, %v6218_v29 }
0x5ebe   :  { %v6220_v24 = vadd.f32 %v9634_v32, %v6219_v50 }
0x5ec0   :  { %v6221_v20 = vadd.f32 %v9636_v39, %v6220_v24 }
0x5ec2   :  { %v6222_v55 = vadd.f32 %v9638_v35, %v6221_v20 }
0x5ec3   :  { %6741 = vrot.lane.b32.xlu1 %v6739_v53, %s9781_s6 }
0x5ec4   :  { %9639 = vrcp.f32 %v6222_v55 }
0x5ec7   :  { %6757 = vrot.lane.b32.xlu1 %v6755_v19, %s9781_s6 }
0x5ecb   :  { %6765 = vrot.lane.b32.xlu1 %v6763_v52, %s9781_s6 }
0x5ecc   :  { %6749 = vrot.lane.b32.xlu0 %v6747_v61, %s9781_s6 }
0x5ece   :  { %v9640_v8 = vpop.eup %9639 }
0x5ecf   :  { %v6244_v43 = vmul.f32 %v9640_v8, %v9638_v35  ;;  %v6224_v28 = vmul.f32 %v9640_v8, %v9624_v7  ;;  %v6226_v6 = vmul.f32 %v9640_v8, %v9626_v40  ;;  %v6229_v58 = vmul.f32 %v9640_v8, %v9628_v54  ;;  %6781 = vrot.lane.b32.xlu1 %v6779_v22, %s9781_s6 }
0x5ed0   :  { %v6232_v59 = vmul.f32 %v9640_v8, %v9630_v3  ;;  %v6235_v15 = vmul.f32 %v9640_v8, %v9632_v18  ;;  %v6238_v36 = vmul.f32 %v9640_v8, %v9634_v32  ;;  %v6241_v46 = vmul.f32 %v9640_v8, %v9636_v39  ;;  %6773 = vrot.lane.b32.xlu0 %v6771_v38, %s9781_s6 }
0x5ed1   :  { %v6225_v2 = vmul.f32 %v6224_v28, %v11371_v17  ;;  %v6227_v37 = vmul.f32 %v6226_v6, %v11244_v44  ;;  %v6230_v11 = vmul.f32 %v6229_v58, %v11390_v45  ;;  %v6245_v16 = vmul.f32 %v6244_v43, %v11634_v23 }
0x5ed2   :  { %v6233_v26 = vmul.f32 %v6232_v59, %v11269_v60  ;;  %v6236_v13 = vmul.f32 %v6235_v15, %v11450_v14  ;;  %v6239_v40 = vmul.f32 %v6238_v36, %v11294_v48  ;;  %v6242_v49 = vmul.f32 %v6241_v46, %v11472_v4 }
0x5ed3   :  { %v6228_v12 = vadd.f32 %v6227_v37, %v6225_v2  ;;  %6797 = vrot.lane.b32.xlu1 %v6795_v5, %s9781_s6 }
0x5ed4   :  { %6789 = vrot.lane.b32.xlu0 %v6787_v62, %s9781_s6 }
0x5ed5   :  { %v6231_v63 = vadd.f32 %v6230_v11, %v6228_v12 }
0x5ed7   :  { %v6234_v9 = vadd.f32 %v6233_v26, %v6231_v63 }
0x5ed9   :  { %v6237_v7 = vadd.f32 %v6236_v13, %v6234_v9 }
0x5edb   :  { %v6240_v30 = vadd.f32 %v6239_v40, %v6237_v7 }
0x5edd   :  { %v6243_v54 = vadd.f32 %v6242_v49, %v6240_v30 }
0x5edf   :  { %v12094_v3 = vadd.f32 %v6245_v16, %v6243_v54 }
0x5f32   :  { %v6437_v34 = vpop.xlane.xlu0 %6436 }
0x5f37   :  { %v6445_v29 = vpop.xlane.xlu1 %6444  ;;  %v6453_v18 = vpop.xlane.xlu0 %6452 }
0x5f38   :  { %v6494_v50 = vmax.f32 %v6437_v34, %v6445_v29 }
0x5f3a   :  { %v6495_v32 = vmax.f32 %v6494_v50, %v6453_v18 }
0x5f3b   :  { %v6469_v24 = vpop.xlane.xlu1 %6468  ;;  %v6461_v39 = vpop.xlane.xlu0 %6460 }
0x5f3c   :  { %v6496_v20 = vmax.f32 %v6495_v32, %v6461_v39 }
0x5f3e   :  { %v6497_v35 = vmax.f32 %v6496_v20, %v6469_v24 }
0x5f3f   :  { %v6485_v55 = vpop.xlane.xlu1 %6484  ;;  %v6477_v53 = vpop.xlane.xlu0 %6476 }
0x5f40   :  { %v6498_v19 = vmax.f32 %v6497_v35, %v6477_v53 }
0x5f42   :  { %v6499_v52 = vmax.f32 %v6498_v19, %v6485_v55 }
0x5f43   :  { %v6742_v61 = vpop.permute.xlu1 %6741  ;;  %v6493_v8 = vpop.xlane.xlu0 %6492 }
0x5f44   :  { %v6744_v22 = vsel %vm5098_vm6, %v6742_v61, 0.0  ;;  %v6500_v38 = vmax.f32 %v6499_v52, %v6493_v8 }
0x5f45   :  { %6745 = vadd.xlane.f32.xlu0 %v6744_v22 }
0x5f46   :  { %v6501_v43 = vsub.f32 %v6437_v34, %v6500_v38  ;;  %v6504_v28 = vsub.f32 %v6445_v29, %v6500_v38  ;;  %v6507_v6 = vsub.f32 %v6453_v18, %v6500_v38  ;;  %v6510_v58 = vsub.f32 %v6461_v39, %v6500_v38 }
0x5f47   :  { %v6758_v59 = vpop.permute.xlu1 %6757  ;;  %v6513_v15 = vsub.f32 %v6469_v24, %v6500_v38  ;;  %v6516_v36 = vsub.f32 %v6477_v53, %v6500_v38  ;;  %v6519_v46 = vsub.f32 %v6485_v55, %v6500_v38  ;;  %v6522_v2 = vsub.f32 %v6493_v8, %v6500_v38  ;;  %v6750_v37 = vpop.permute.xlu0 %6749 }
0x5f48   :  { %v6502_v5 = vmul.f32 1.442695, %v6501_v43  ;;  %v6505_v12 = vmul.f32 1.442695, %v6504_v28  ;;  %v6508_v11 = vmul.f32 1.442695, %v6507_v6 }
0x5f49   :  { %v6752_v62 = vsel %vm5098_vm6, %v6750_v37, 0.0  ;;  %v6511_v26 = vmul.f32 1.442695, %v6510_v58  ;;  %v6760_v9 = vsel %vm5098_vm6, %v6758_v59, 0.0  ;;  %v6514_v40 = vmul.f32 1.442695, %v6513_v15 }
0x5f4a   :  { %9641 = vpow2.f32 %v6502_v5  ;;  %6753 = vadd.xlane.f32.xlu1 %v6752_v62  ;;  %6761 = vadd.xlane.f32.xlu0 %v6760_v9  ;;  %v6517_v54 = vmul.f32 1.442695, %v6516_v36  ;;  %v6520_v29 = vmul.f32 1.442695, %v6519_v46  ;;  %v6523_v32 = vmul.f32 1.442695, %v6522_v2 }
0x5f4b   :  { %v6766_v63 = vpop.permute.xlu1 %6765  ;;  %9643 = vpow2.f32 %v6505_v12  ;;  %v6774_v13 = vpop.permute.xlu0 %6773  ;;  %v7048_v5 = vmul.f32 %v11697_v10, %v11695_v25  ;;  %v7064_v12 = vmul.f32 %v11746_v1, %v11695_v25 }
0x5f4c   :  { %v6776_v7 = vsel %vm5098_vm6, %v6774_v13, 0.0  ;;  %9645 = vpow2.f32 %v6508_v11  ;;  %v6768_v30 = vsel %vm5098_vm6, %v6766_v63, 0.0  ;;  %v7072_v63 = vmul.f32 %v11709_v21, %v11695_v25 }
0x5f4d   :  { %9647 = vpow2.f32 %v6511_v26  ;;  %v7056_v26 = vmul.f32 %v11702_v56, %v11695_v25  ;;  %v7088_v13 = vmul.f32 %v11716_v51, %v11695_v25 }
0x5f4e   :  { %6777 = vadd.xlane.f32.xlu1 %v6776_v7  ;;  %6769 = vadd.xlane.f32.xlu0 %v6768_v30  ;;  %9649 = vpow2.f32 %v6514_v40  ;;  %v7080_v7 = vmul.f32 %v11764_v31, %v11695_v25 }
0x5f4f   :  { %v6782_v49 = vpop.permute.xlu1 %6781  ;;  %v6790_v16 = vpop.permute.xlu0 %6789  ;;  %9651 = vpow2.f32 %v6517_v54 }
0x5f50   :  { %v6792_v34 = vsel %vm5098_vm6, %v6790_v16, 0.0  ;;  %v6784_v18 = vsel %vm5098_vm6, %v6782_v49, 0.0  ;;  %9653 = vpow2.f32 %v6520_v29 }
0x5f51   :  { %9655 = vpow2.f32 %v6523_v32 }
0x5f52   :  { %6793 = vadd.xlane.f32.xlu1 %v6792_v34  ;;  %6785 = vadd.xlane.f32.xlu0 %v6784_v18 }
0x5f53   :  { %v6798_v50 = vpop.permute.xlu1 %6797 }
0x5f54   :  { %v9642_v24 = vpop.eup %9641  ;;  %v6800_v20 = vsel %vm5098_vm6, %v6798_v50, 0.0 }
0x5f55   :  { %v9644_v39 = vpop.eup %9643 }
0x5f56   :  { %v6525_v35 = vadd.f32 %v9644_v39, %v9642_v24  ;;  %v9646_v55 = vpop.eup %9645  ;;  %6801 = vadd.xlane.f32.xlu0 %v6800_v20  ;;  %v7104_v20 = vmul.f32 %v11723_v57, %v11695_v25 }
0x5f57   :  { %v9648_v52 = vpop.eup %9647 }
0x5f58   :  { %v6526_v53 = vadd.f32 %v9646_v55, %v6525_v35  ;;  %v9650_v43 = vpop.eup %9649 }
0x5f59   :  { %v9652_v59 = vpop.eup %9651 }
0x5f5a   :  { %v6527_v22 = vadd.f32 %v9648_v52, %v6526_v53  ;;  %v9654_v36 = vpop.eup %9653 }
0x5f5b   :  { %v9656_v2 = vpop.eup %9655 }
0x5f5c   :  { %v6528_v58 = vadd.f32 %v9650_v43, %v6527_v22 }
0x5f5e   :  { %v5751_v19 = vpop.f32.mrb[160].mxu1  ;;  %v6529_v15 = vadd.f32 %v9652_v59, %v6528_v58 }
0x5f5f   :  { %v9223_v61 = vadd.f32 %v11900_v27, %v5751_v19  ;;  %v8918_v8 = vpop.f32.mrb[161].mxu1 }
0x5f60   :  { %v5754_v38 = vpop.f32.mrb[162].mxu1  ;;  %v6530_v46 = vadd.f32 %v9654_v36, %v6529_v15 }
0x5f61   :  { %v7885_v28 = vmul.f32 -1.442695, %v9223_v61  ;;  %v8919_v6 = vpop.f32.mrb[163].mxu1 }
0x5f62   :  { %v6531_v37 = vadd.f32 %v9656_v2, %v6530_v46  ;;  %v12154_v46 = vld [vmem:[%s12687_s14 + $0x8] sm:$0xff]  }
0x5f63   :  { %9657 = vpow2.f32 %v7885_v28  ;;  %7050 = vrot.lane.b32.xlu1 %v7048_v5, %s9781_s6  ;;  %v5938_v5 = vpack.c.bf16 %v12024_v33, %v12024_v33  ;;  %v12187_v33 = vld [vmem:[%s12691_s20 + $0x8] sm:$0xff]  }
0x5f64   :  { %9659 = vrcp.f32 %v6531_v37  ;;  %v12168_v37 = vld [vmem:[%s12687_s14 + $0x18] sm:$0xff]  }
0x5f67   :  { %7066 = vrot.lane.b32.xlu1 %v7064_v12, %s9781_s6  ;;  %v12178_v12 = vld [vmem:[%s12691_s20] sm:$0xff]  }
0x5f6b   :  { %7074 = vrot.lane.b32.xlu1 %v7072_v63, %s9781_s6 }
0x5f6c   :  { %7058 = vrot.lane.b32.xlu0 %v7056_v26, %s9781_s6 }
0x5f6d   :  { %v9658_v11 = vpop.eup %9657 }
0x5f6e   :  { %v5761_v62 = vadd.f32 1.0, %v9658_v11  ;;  %v9660_v9 = vpop.eup %9659  ;;  %v12194_v11 = vld [vmem:[%s12691_s20 + $0x10] sm:$0xff]  }
0x5f6f   :  { %v6553_v40 = vmul.f32 %v9660_v9, %v9656_v2  ;;  %v6533_v30 = vmul.f32 %v9660_v9, %v9642_v24  ;;  %v6535_v49 = vmul.f32 %v9660_v9, %v9644_v39  ;;  %v6538_v54 = vmul.f32 %v9660_v9, %v9646_v55  ;;  %7090 = vrot.lane.b32.xlu1 %v7088_v13, %s9781_s6  ;;  %v12161_v2 = vld [vmem:[%s12687_s14 + $0x10] sm:$0xff]  }
0x5f70   :  { %9661 = vrcp.f32 %v5761_v62  ;;  %v6541_v16 = vmul.f32 %v9660_v9, %v9648_v52  ;;  %v6544_v34 = vmul.f32 %v9660_v9, %v9650_v43  ;;  %v6547_v29 = vmul.f32 %v9660_v9, %v9652_v59  ;;  %7082 = vrot.lane.b32.xlu0 %v7080_v7, %s9781_s6  ;;  %v12201_v62 = vld [vmem:[%s12691_s20 + $0x18] sm:$0xff]  }
0x5f71   :  { %v6550_v18 = vmul.f32 %v9660_v9, %v9654_v36  ;;  %v6534_v50 = vmul.f32 %v6533_v30, %v11371_v17  ;;  %v6536_v32 = vmul.f32 %v6535_v49, %v11244_v44  ;;  %v6539_v24 = vmul.f32 %v6538_v54, %v11390_v45 }
0x5f72   :  { %v7096_v55 = vmul.f32 %v11779_v47, %v11695_v25  ;;  %v6542_v52 = vmul.f32 %v6541_v16, %v11269_v60  ;;  %v6545_v22 = vmul.f32 %v6544_v34, %v11450_v14  ;;  %v6548_v28 = vmul.f32 %v6547_v29, %v11294_v48 }
0x5f73   :  { %v6537_v35 = vadd.f32 %v6536_v32, %v6534_v50  ;;  %7106 = vrot.lane.b32.xlu1 %v7104_v20, %s9781_s6  ;;  %v6551_v58 = vmul.f32 %v6550_v18, %v11472_v4  ;;  %v6554_v15 = vmul.f32 %v6553_v40, %v11634_v23 }
0x5f74   :  { %7098 = vrot.lane.b32.xlu0 %v7096_v55, %s9781_s6 }
0x5f75   :  { %v6540_v19 = vadd.f32 %v6539_v24, %v6537_v35 }
0x5f77   :  { %v6543_v8 = vadd.f32 %v6542_v52, %v6540_v19 }
0x5f79   :  { %v6546_v43 = vadd.f32 %v6545_v22, %v6543_v8 }
0x5f7a   :  { %v9662_v39 = vpop.eup %9661 }
0x5f7b   :  { %v5764_v53 = vmul.f32 %v9662_v39, %v12027_v41  ;;  %v6549_v6 = vadd.f32 %v6548_v28, %v6546_v43  ;;  %v12142_v41 = vld [vmem:[%s12687_s14] sm:$0xff]  }
0x5f7d   :  { %v5765_v61 = vadd.f32 %v5764_v53, %v11244_v44  ;;  %v6552_v59 = vadd.f32 %v6551_v58, %v6549_v6 }
0x5f7f   :  { %v5766_v38 = vpack.c.bf16 %v5765_v61, %v5765_v61  ;;  %v12149_v36 = vadd.f32 %v6554_v15, %v6552_v59 }
0x5f81   :  { %8929 = vmatmul.mubr.msk.bf16.vlgmr.msra.gmra.mrb[168].mxu0 %vm2166_vm7, %v5766_v38  ;;  %12738 = vst [vmem:[#allocation9_spill] sm:$0xff] %v12149_v36 }
0x5f82   :  { %8933 = vmatpush3.bf16.msra.mxu0 %v12142_v41  ;;  %8940 = vmatprep.mubr.msk.bf16.mxu0 %vm9779_vm0, %v12735_v0 }
0x5f83   :  { %8934 = vmatprep.subr.bf16.mxu0 %v12735_v0 }
0x5f86   :  { %8935 = vmatpush3.bf16.msra.mxu0 %v12154_v46 }
0x5f87   :  { %8936 = vmatprep.subr.bf16.mxu0 %v12735_v0 }
0x5f8a   :  { %8937 = vmatpush3.bf16.msra.mxu0 %v12161_v2 }
0x5f8b   :  { %8938 = vmatprep.subr.bf16.mxu0 %v12735_v0 }
0x5f8e   :  { %8939 = vmatpush3.bf16.msra.mxu0 %v12168_v37 }
0x5f8f   :  { %8968 = vmatprep.subr.bf16.mxu0 %v12735_v0 }
0x5f91   :  { %8941 = vmatmul.mubr.msk.bf16.vlgmr.msra.gmra.mrb[172].mxu0 %vm2166_vm7, %v5938_v5 }
0x5f92   :  { %8969 = vmatpush3.bf16.msra.mxu0 %v12178_v12  ;;  %8976 = vmatprep.mubr.msk.bf16.mxu0 %vm9779_vm0, %v12735_v0 }
0x5f93   :  { %8970 = vmatprep.subr.bf16.mxu0 %v12735_v0 }
0x5f96   :  { %8971 = vmatpush3.bf16.msra.mxu0 %v12187_v33 }
0x5f97   :  { %8972 = vmatprep.subr.bf16.mxu0 %v12735_v0 }
0x5f9a   :  { %8973 = vmatpush3.bf16.msra.mxu0 %v12194_v11 }
0x5f9b   :  { %8974 = vmatprep.subr.bf16.mxu0 %v12735_v0 }
0x5f9e   :  { %8975 = vmatpush3.bf16.msra.mxu0 %v12201_v62 }
0x5f9f   :  { %8980 = vmatprep.subr.bf16.mxu0 %v12735_v0 }
0x5fd2   :  { %v6746_v63 = vpop.xlane.xlu0 %6745 }
0x5fd7   :  { %v6754_v26 = vpop.xlane.xlu1 %6753  ;;  %v6762_v9 = vpop.xlane.xlu0 %6761 }
0x5fd8   :  { %v6803_v13 = vmax.f32 %v6746_v63, %v6754_v26 }
0x5fda   :  { %v6804_v7 = vmax.f32 %v6803_v13, %v6762_v9 }
0x5fdb   :  { %v6778_v40 = vpop.xlane.xlu1 %6777  ;;  %v6770_v30 = vpop.xlane.xlu0 %6769 }
0x5fdc   :  { %v6805_v49 = vmax.f32 %v6804_v7, %v6770_v30 }
0x5fde   :  { %v6806_v54 = vmax.f32 %v6805_v49, %v6778_v40 }
0x5fdf   :  { %v6794_v16 = vpop.xlane.xlu1 %6793  ;;  %v6786_v34 = vpop.xlane.xlu0 %6785 }
0x5fe0   :  { %v6807_v29 = vmax.f32 %v6806_v54, %v6786_v34 }
0x5fe2   :  { %v6808_v18 = vmax.f32 %v6807_v29, %v6794_v16 }
0x5fe3   :  { %v7051_v50 = vpop.permute.xlu1 %7050  ;;  %v6802_v32 = vpop.xlane.xlu0 %6801 }
0x5fe4   :  { %v7053_v20 = vsel %vm5098_vm6, %v7051_v50, 0.0  ;;  %v6809_v35 = vmax.f32 %v6808_v18, %v6802_v32 }
0x5fe5   :  { %7054 = vadd.xlane.f32.xlu0 %v7053_v20 }
0x5fe6   :  { %v6810_v24 = vsub.f32 %v6746_v63, %v6809_v35  ;;  %v6813_v39 = vsub.f32 %v6754_v26, %v6809_v35  ;;  %v6816_v55 = vsub.f32 %v6762_v9, %v6809_v35  ;;  %v6819_v53 = vsub.f32 %v6770_v30, %v6809_v35 }
0x5fe7   :  { %v7067_v19 = vpop.permute.xlu1 %7066  ;;  %v6822_v52 = vsub.f32 %v6778_v40, %v6809_v35  ;;  %v6825_v61 = vsub.f32 %v6786_v34, %v6809_v35  ;;  %v6828_v8 = vsub.f32 %v6794_v16, %v6809_v35  ;;  %v6831_v22 = vsub.f32 %v6802_v32, %v6809_v35  ;;  %v7059_v38 = vpop.permute.xlu0 %7058 }
0x5fe8   :  { %v6811_v43 = vmul.f32 1.442695, %v6810_v24  ;;  %v6814_v28 = vmul.f32 1.442695, %v6813_v39  ;;  %v6817_v6 = vmul.f32 1.442695, %v6816_v55 }
0x5fe9   :  { %v7061_v58 = vsel %vm5098_vm6, %v7059_v38, 0.0  ;;  %v6820_v15 = vmul.f32 1.442695, %v6819_v53  ;;  %v7069_v5 = vsel %vm5098_vm6, %v7067_v19, 0.0  ;;  %v6823_v9 = vmul.f32 1.442695, %v6822_v52 }
0x5fea   :  { %9663 = vpow2.f32 %v6811_v43  ;;  %7062 = vadd.xlane.f32.xlu1 %v7061_v58  ;;  %7070 = vadd.xlane.f32.xlu0 %v7069_v5  ;;  %v6826_v40 = vmul.f32 1.442695, %v6825_v61  ;;  %v6829_v54 = vmul.f32 1.442695, %v6828_v8  ;;  %v6832_v29 = vmul.f32 1.442695, %v6831_v22 }
0x5feb   :  { %v7075_v59 = vpop.permute.xlu1 %7074  ;;  %9665 = vpow2.f32 %v6814_v28  ;;  %v7083_v63 = vpop.permute.xlu0 %7082  ;;  %v12739_v55 = vld [vmem:[#allocation8_spill] sm:$0xff] }
0x5fec   :  { %v7085_v26 = vsel %vm5098_vm6, %v7083_v63, 0.0  ;;  %9667 = vpow2.f32 %v6817_v6  ;;  %v7077_v13 = vsel %vm5098_vm6, %v7075_v59, 0.0 }
0x5fed   :  { %9669 = vpow2.f32 %v6820_v15 }
0x5fee   :  { %7086 = vadd.xlane.f32.xlu1 %v7085_v26  ;;  %7078 = vadd.xlane.f32.xlu0 %v7077_v13  ;;  %9671 = vpow2.f32 %v6823_v9 }
0x5fef   :  { %v7091_v7 = vpop.permute.xlu1 %7090  ;;  %v7099_v30 = vpop.permute.xlu0 %7098  ;;  %9673 = vpow2.f32 %v6826_v40 }
0x5ff0   :  { %v7101_v49 = vsel %vm5098_vm6, %v7099_v30, 0.0  ;;  %v7093_v16 = vsel %vm5098_vm6, %v7091_v7, 0.0  ;;  %9675 = vpow2.f32 %v6829_v54 }
0x5ff1   :  { %9677 = vpow2.f32 %v6832_v29 }
0x5ff2   :  { %7102 = vadd.xlane.f32.xlu1 %v7101_v49  ;;  %7094 = vadd.xlane.f32.xlu0 %v7093_v16  ;;  %9679 = vtanh.f32 %v12739_v55 }
0x5ff3   :  { %v7107_v34 = vpop.permute.xlu1 %7106 }
0x5ff4   :  { %v9664_v18 = vpop.eup %9663  ;;  %v7109_v32 = vsel %vm5098_vm6, %v7107_v34, 0.0 }
0x5ff5   :  { %v9666_v50 = vpop.eup %9665 }
0x5ff6   :  { %v6834_v20 = vadd.f32 %v9666_v50, %v9664_v18  ;;  %v9668_v35 = vpop.eup %9667  ;;  %7110 = vadd.xlane.f32.xlu0 %v7109_v32 }
0x5ff7   :  { %v9670_v39 = vpop.eup %9669 }
0x5ff8   :  { %v6835_v24 = vadd.f32 %v9668_v35, %v6834_v20  ;;  %v9672_v19 = vpop.eup %9671 }
0x5ff9   :  { %v9674_v61 = vpop.eup %9673 }
0x5ffa   :  { %v6836_v53 = vadd.f32 %v9670_v39, %v6835_v24  ;;  %v9676_v22 = vpop.eup %9675 }
0x5ffb   :  { %v9678_v43 = vpop.eup %9677 }
0x5ffc   :  { %v6837_v52 = vadd.f32 %v9672_v19, %v6836_v53  ;;  %v9680_v6 = vpop.eup %9679 }
0x5ffe   :  { %v6838_v8 = vadd.f32 %v9674_v61, %v6837_v52 }
0x6000   :  { %v6839_v38 = vadd.f32 %v9676_v22, %v6838_v8 }
0x6002   :  { %v6840_v28 = vadd.f32 %v9678_v43, %v6839_v38  ;;  %v12233_v38 = vld [vmem:[%s12690_s15] ss:$0 sm:$0xff] }
0x6003   :  { %5031 = vrot.lane.b32.xlu1 %v9680_v6, %s9781_s6 }
0x6004   :  { %9681 = vrcp.f32 %v6840_v28 }
0x600e   :  { %v9682_v58 = vpop.eup %9681 }
0x600f   :  { %v6862_v59 = vmul.f32 %v9682_v58, %v9678_v43  ;;  %v6842_v15 = vmul.f32 %v9682_v58, %v9664_v18  ;;  %v6844_v5 = vmul.f32 %v9682_v58, %v9666_v50  ;;  %v6847_v63 = vmul.f32 %v9682_v58, %v9668_v35 }
0x6010   :  { %v6850_v26 = vmul.f32 %v9682_v58, %v9670_v39  ;;  %v6853_v9 = vmul.f32 %v9682_v58, %v9672_v19  ;;  %v6856_v13 = vmul.f32 %v9682_v58, %v9674_v61  ;;  %v6859_v7 = vmul.f32 %v9682_v58, %v9676_v22 }
0x6011   :  { %v6843_v40 = vmul.f32 %v6842_v15, %v11371_v17  ;;  %v6845_v30 = vmul.f32 %v6844_v5, %v11244_v44  ;;  %v6848_v54 = vmul.f32 %v6847_v63, %v11390_v45  ;;  %v6863_v39 = vmul.f32 %v6862_v59, %v11634_v23  ;;  %v12244_v59 = vld [vmem:[%s12689_s18] sm:$0xff]   ;;  %v12253_v15 = vld [vmem:[%s12689_s18 + $0x8] sm:$0xff]   ;;  %v12260_v5 = vld [vmem:[%s12689_s18 + $0x10] sm:$0xff]  }
0x6012   :  { %v6851_v34 = vmul.f32 %v6850_v26, %v11269_v60  ;;  %v6854_v32 = vmul.f32 %v6853_v9, %v11450_v14  ;;  %v6857_v50 = vmul.f32 %v6856_v13, %v11294_v48  ;;  %v6860_v35 = vmul.f32 %v6859_v7, %v11472_v4  ;;  %v12267_v63 = vld [vmem:[%s12689_s18 + $0x18] sm:$0xff]   ;;  %v12741_v26 = vld [vmem:[#allocation4_spill] sm:$0xff]  ;;  %v12276_v9 = vld [vmem:[%s12688_s16] sm:$0xff]  }
0x6013   :  { %v6846_v49 = vadd.f32 %v6845_v30, %v6843_v40  ;;  %v12285_v7 = vld [vmem:[%s12688_s16 + $0x8] sm:$0xff]  }
0x6015   :  { %v6849_v16 = vadd.f32 %v6848_v54, %v6846_v49  ;;  %v12292_v54 = vld [vmem:[%s12688_s16 + $0x10] sm:$0xff]  }
0x6017   :  { %v6852_v29 = vadd.f32 %v6851_v34, %v6849_v16 }
0x6019   :  { %v6855_v18 = vadd.f32 %v6854_v32, %v6852_v29 }
0x601b   :  { %v6858_v20 = vadd.f32 %v6857_v50, %v6855_v18  ;;  %v12299_v18 = vld [vmem:[%s12688_s16 + $0x18] sm:$0xff]  }
0x601c   :  { %12742 = vst [vmem:[#allocation4_spill] sm:$0xff] %v12299_v18 }
0x601d   :  { %v6861_v24 = vadd.f32 %v6860_v35, %v6858_v20 }
0x601f   :  { %v12223_v55 = vadd.f32 %v6863_v39, %v6861_v24  ;;  %v12743_v39 = vld [vmem:[#allocation7_spill] sm:$0xff] }
0x6021   :  { %12740 = vst [vmem:[#allocation8_spill] sm:$0xff] %v12223_v55 }
0x6054   :  { %v5804_v53 = vpop.f32.mrb[168].mxu0 }
0x6055   :  { %v5805_v19 = vadd.f32 %v12011_v42, %v5804_v53  ;;  %v8930_v52 = vpop.f32.mrb[169].mxu0  ;;  %v5029_v53 = vsub.f32 1.0, %v12743_v39 }
0x6056   :  { %v5807_v61 = vpop.f32.mrb[170].mxu0 }
0x6057   :  { %7887 = vst.msk [vmem:[%s12695_s22 + $0x2] sm:$0x3] %vm5469_vm3, %v5805_v19  ;;  %v8931_v8 = vpop.f32.mrb[171].mxu0 }
0x6058   :  { %v5035_v8 = vmul.f32 %v12743_v39, %v11695_v25 }
0x6064   :  { %v5976_v22 = vpop.f32.mrb[172].mxu0 }
0x6065   :  { %v12236_v43 = vadd.f32 %v12233_v38, %v5976_v22  ;;  %v8942_v28 = vpop.f32.mrb[173].mxu0 }
0x6066   :  { %v5979_v6 = vpop.f32.mrb[174].mxu0 }
0x6067   :  { %v5982_v42 = vpack.c.bf16 %v12236_v43, %v12236_v43  ;;  %v8943_v58 = vpop.f32.mrb[175].mxu0 }
0x6069   :  { %8953 = vmatmul.mubr.msk.bf16.vlgmr.msra.gmra.mrb[164].mxu1 %vm2166_vm7, %v5982_v42 }
0x606a   :  { %8957 = vmatpush3.bf16.msra.mxu1 %v12244_v59  ;;  %8964 = vmatprep.mubr.msk.bf16.mxu1 %vm9779_vm0, %v12735_v0 }
0x606b   :  { %8958 = vmatprep.subr.bf16.mxu1 %v12735_v0 }
0x606e   :  { %8959 = vmatpush3.bf16.msra.mxu1 %v12253_v15 }
0x606f   :  { %8960 = vmatprep.subr.bf16.mxu1 %v12735_v0 }
0x6072   :  { %8961 = vmatpush3.bf16.msra.mxu1 %v12260_v5  ;;  %v7055_v13 = vpop.xlane.xlu0 %7054 }
0x6073   :  { %8962 = vmatprep.subr.bf16.mxu1 %v12735_v0 }
0x6076   :  { %8963 = vmatpush3.bf16.msra.mxu1 %v12267_v63 }
0x6077   :  { %8992 = vmatprep.subr.bf16.mxu1 %v12735_v0  ;;  %v7063_v40 = vpop.xlane.xlu1 %7062  ;;  %v7071_v30 = vpop.xlane.xlu0 %7070 }
0x6078   :  { %v7112_v49 = vmax.f32 %v7055_v13, %v7063_v40 }
0x6079   :  { %8965 = vmatmul.mubr.msk.bf16.vlgmr.msra.gmra.mrb[164].mxu1 %vm2166_vm7, %v12741_v26 }
0x607a   :  { %8993 = vmatpush3.bf16.msra.mxu1 %v12276_v9  ;;  %9000 = vmatprep.mubr.msk.bf16.mxu1 %vm9779_vm0, %v12735_v0  ;;  %v7113_v16 = vmax.f32 %v7112_v49, %v7071_v30 }
0x607b   :  { %8994 = vmatprep.subr.bf16.mxu1 %v12735_v0  ;;  %v7087_v34 = vpop.xlane.xlu1 %7086  ;;  %v7079_v29 = vpop.xlane.xlu0 %7078 }
0x607c   :  { %v7114_v32 = vmax.f32 %v7113_v16, %v7079_v29 }
0x607e   :  { %8995 = vmatpush3.bf16.msra.mxu1 %v12285_v7  ;;  %v7115_v50 = vmax.f32 %v7114_v32, %v7087_v34 }
0x607f   :  { %8996 = vmatprep.subr.bf16.mxu1 %v12735_v0  ;;  %v7103_v20 = vpop.xlane.xlu1 %7102  ;;  %v7095_v35 = vpop.xlane.xlu0 %7094 }
0x6080   :  { %v7116_v24 = vmax.f32 %v7115_v50, %v7095_v35 }
0x6082   :  { %8997 = vmatpush3.bf16.msra.mxu1 %v12292_v54  ;;  %v7117_v19 = vmax.f32 %v7116_v24, %v7103_v20 }
0x6083   :  { %8998 = vmatprep.subr.bf16.mxu1 %v12735_v0  ;;  %v5032_v52 = vpop.permute.xlu1 %5031  ;;  %v7111_v61 = vpop.xlane.xlu0 %7110 }
0x6084   :  { %v5034_v22 = vmul.f32 %v5032_v52, %v5029_v53  ;;  %v7118_v28 = vmax.f32 %v7117_v19, %v7111_v61 }
0x6086   :  { %8999 = vmatpush3.bf16.msra.mxu1 %v12299_v18  ;;  %v12306_v6 = vadd.f32 %v5035_v8, %v5034_v22  ;;  %v7119_v42 = vsub.f32 %v7055_v13, %v7118_v28  ;;  %v7122_v58 = vsub.f32 %v7063_v40, %v7118_v28  ;;  %v7125_v26 = vsub.f32 %v7071_v30, %v7118_v28 }
0x6087   :  { %9004 = vmatprep.subr.bf16.mxu1 %v12735_v0  ;;  %v7128_v49 = vsub.f32 %v7079_v29, %v7118_v28  ;;  %v7131_v16 = vsub.f32 %v7087_v34, %v7118_v28  ;;  %v7134_v32 = vsub.f32 %v7095_v35, %v7118_v28  ;;  %v7137_v55 = vsub.f32 %v7103_v20, %v7118_v28 }
0x6088   :  { %v7120_v50 = vmul.f32 1.442695, %v7119_v42  ;;  %v7123_v36 = vmul.f32 1.442695, %v7122_v58  ;;  %v7373_v24 = vmul.f32 %v11746_v1, %v12306_v6  ;;  %v7126_v18 = vmul.f32 1.442695, %v7125_v26 }
0x6089   :  { %v7357_v25 = vmul.f32 %v11697_v10, %v12306_v6  ;;  %v7129_v13 = vmul.f32 1.442695, %v7128_v49  ;;  %v7397_v40 = vmul.f32 %v11716_v51, %v12306_v6  ;;  %v7132_v30 = vmul.f32 1.442695, %v7131_v16 }
0x608a   :  { %9683 = vpow2.f32 %v7120_v50  ;;  %7375 = vrot.lane.b32.xlu1 %v7373_v24, %s9781_s6  ;;  %v7365_v34 = vmul.f32 %v11702_v56, %v12306_v6  ;;  %v7135_v1 = vmul.f32 1.442695, %v7134_v32  ;;  %v7140_v10 = vsub.f32 %v7111_v61, %v7118_v28 }
0x608b   :  { %9685 = vpow2.f32 %v7123_v36  ;;  %7359 = vrot.lane.b32.xlu0 %v7357_v25, %s9781_s6  ;;  %v7405_v36 = vmul.f32 %v11779_v47, %v12306_v6  ;;  %v7138_v29 = vmul.f32 1.442695, %v7137_v55  ;;  %v7381_v51 = vmul.f32 %v11709_v21, %v12306_v6 }
0x608c   :  { %9687 = vpow2.f32 %v7126_v18  ;;  %v7141_v18 = vmul.f32 1.442695, %v7140_v10  ;;  %v7389_v35 = vmul.f32 %v11764_v31, %v12306_v6 }
0x608d   :  { %9689 = vpow2.f32 %v7129_v13 }
0x608e   :  { %7399 = vrot.lane.b32.xlu1 %v7397_v40, %s9781_s6  ;;  %9691 = vpow2.f32 %v7132_v30 }
0x608f   :  { %7367 = vrot.lane.b32.xlu0 %v7365_v34, %s9781_s6  ;;  %9693 = vpow2.f32 %v7135_v1 }
0x6090   :  { %9695 = vpow2.f32 %v7138_v29 }
0x6091   :  { %9697 = vpow2.f32 %v7141_v18 }
0x6092   :  { %7407 = vrot.lane.b32.xlu1 %v7405_v36, %s9781_s6 }
0x6093   :  { %7383 = vrot.lane.b32.xlu0 %v7381_v51, %s9781_s6 }
0x6094   :  { %v9684_v56 = vpop.eup %9683 }
0x6095   :  { %v9686_v20 = vpop.eup %9685 }
0x6096   :  { %v7143_v39 = vadd.f32 %v9686_v20, %v9684_v56  ;;  %v9688_v53 = vpop.eup %9687 }
0x6097   :  { %7391 = vrot.lane.b32.xlu0 %v7389_v35, %s9781_s6  ;;  %v9690_v55 = vpop.eup %9689 }
0x6098   :  { %v7144_v47 = vadd.f32 %v9688_v53, %v7143_v39  ;;  %v9692_v19 = vpop.eup %9691 }
0x6099   :  { %v9694_v61 = vpop.eup %9693 }
0x609a   :  { %v7145_v21 = vadd.f32 %v9690_v55, %v7144_v47  ;;  %v9696_v22 = vpop.eup %9695 }
0x609b   :  { %v9698_v42 = vpop.eup %9697 }
0x609c   :  { %v7146_v52 = vadd.f32 %v9692_v19, %v7145_v21 }
0x609e   :  { %v7147_v8 = vadd.f32 %v9694_v61, %v7146_v52 }
0x60a0   :  { %v7148_v28 = vadd.f32 %v9696_v22, %v7147_v8 }
0x60a2   :  { %v7149_v58 = vadd.f32 %v9698_v42, %v7148_v28 }
0x60a4   :  { %9699 = vrcp.f32 %v7149_v58 }
0x60ae   :  { %v9700_v26 = vpop.eup %9699 }
0x60af   :  { %v7171_v49 = vmul.f32 %v9700_v26, %v9698_v42  ;;  %v7151_v31 = vmul.f32 %v9700_v26, %v9684_v56  ;;  %v7153_v16 = vmul.f32 %v9700_v26, %v9686_v20  ;;  %v7156_v32 = vmul.f32 %v9700_v26, %v9688_v53 }
0x60b0   :  { %v7159_v50 = vmul.f32 %v9700_v26, %v9690_v55  ;;  %v7162_v24 = vmul.f32 %v9700_v26, %v9692_v19  ;;  %v7165_v25 = vmul.f32 %v9700_v26, %v9694_v61  ;;  %v7168_v13 = vmul.f32 %v9700_v26, %v9696_v22 }
0x60b1   :  { %v7152_v40 = vmul.f32 %v7151_v31, %v11371_v17  ;;  %v7154_v30 = vmul.f32 %v7153_v16, %v11244_v44  ;;  %v7157_v1 = vmul.f32 %v7156_v32, %v11390_v45  ;;  %v7172_v53 = vmul.f32 %v7171_v49, %v11634_v23 }
0x60b2   :  { %v7160_v36 = vmul.f32 %v7159_v50, %v11269_v60  ;;  %v7163_v51 = vmul.f32 %v7162_v24, %v11450_v14  ;;  %v7166_v56 = vmul.f32 %v7165_v25, %v11294_v48  ;;  %v7169_v35 = vmul.f32 %v7168_v13, %v11472_v4 }
0x60b3   :  { %v7155_v34 = vadd.f32 %v7154_v30, %v7152_v40  ;;  %v7413_v32 = vmul.f32 %v11723_v57, %v12306_v6  ;;  %v6247_v57 = vpack.c.bf16 %v12094_v3, %v12094_v3 }
0x60b5   :  { %v7158_v10 = vadd.f32 %v7157_v1, %v7155_v34 }
0x60b7   :  { %v7161_v29 = vadd.f32 %v7160_v36, %v7158_v10 }
0x60b9   :  { %v7164_v18 = vadd.f32 %v7163_v51, %v7161_v29 }
0x60bb   :  { %v7167_v20 = vadd.f32 %v7166_v56, %v7164_v18 }
0x60bd   :  { %v7170_v39 = vadd.f32 %v7169_v35, %v7167_v20  ;;  %v12384_v20 = vld [vmem:[%s12694_s21] ss:$0 sm:$0xff] }
0x60bf   :  { %v12337_v47 = vadd.f32 %v7172_v53, %v7170_v39 }
0x60fc   :  { %v7376_v61 = vpop.permute.xlu1 %7375 }
0x60fd   :  { %v7360_v55 = vpop.permute.xlu0 %7359  ;;  %v7378_v22 = vsel %vm5098_vm6, %v7376_v61, 0.0 }
0x60fe   :  { %v7362_v21 = vsel %vm5098_vm6, %v7360_v55, 0.0 }
0x60ff   :  { %7363 = vadd.xlane.f32.xlu1 %v7362_v21 }
0x6100   :  { %v7400_v42 = vpop.permute.xlu1 %7399 }
0x6101   :  { %v7368_v19 = vpop.permute.xlu0 %7367  ;;  %v7402_v49 = vsel %vm5098_vm6, %v7400_v42, 0.0  ;;  %v12745_v42 = vld [vmem:[#allocation4_spill] sm:$0xff] }
0x6102   :  { %v7370_v52 = vsel %vm5098_vm6, %v7368_v19, 0.0 }
0x6103   :  { %7371 = vadd.xlane.f32.xlu0 %v7370_v52 }
0x6104   :  { %v7408_v31 = vpop.permute.xlu1 %7407 }
0x6105   :  { %v7384_v8 = vpop.permute.xlu0 %7383  ;;  %v7410_v16 = vsel %vm5098_vm6, %v7408_v31, 0.0 }
0x6106   :  { %v7386_v28 = vsel %vm5098_vm6, %v7384_v8, 0.0 }
0x6107   :  { %7379 = vadd.xlane.f32.xlu0 %v7378_v22  ;;  %7387 = vadd.xlane.f32.xlu1 %v7386_v28  ;;  %v12744_v28 = vld [vmem:[#allocation2_spill] sm:$0xff] }
0x6109   :  { %v7392_v58 = vpop.permute.xlu0 %7391 }
0x610a   :  { %v7394_v26 = vsel %vm5098_vm6, %v7392_v58, 0.0 }
0x610b   :  { %7395 = vadd.xlane.f32.xlu0 %v7394_v26 }
0x610f   :  { %7403 = vadd.xlane.f32.xlu0 %v7402_v49 }
0x6113   :  { %7411 = vadd.xlane.f32.xlu0 %v7410_v16 }
0x6118   :  { %7415 = vrot.lane.b32.xlu1 %v7413_v32, %s9781_s6 }
0x614c   :  { %v6060_v50 = vpop.f32.mrb[164].mxu1 }
0x614d   :  { %v9225_v24 = vadd.f32 %v11900_v27, %v6060_v50  ;;  %v8966_v25 = vpop.f32.mrb[165].mxu1 }
0x614e   :  { %v6063_v13 = vpop.f32.mrb[166].mxu1 }
0x614f   :  { %v7891_v40 = vmul.f32 -1.442695, %v9225_v24  ;;  %v8967_v30 = vpop.f32.mrb[167].mxu1 }
0x6151   :  { %9701 = vpow2.f32 %v7891_v40 }
0x615b   :  { %v9702_v34 = vpop.eup %9701 }
0x615c   :  { %v6070_v1 = vadd.f32 1.0, %v9702_v34  ;;  %v12746_v34 = vld [vmem:[#allocation9_spill] sm:$0xff] }
0x615e   :  { %9703 = vrcp.f32 %v6070_v1  ;;  %v6556_v1 = vpack.c.bf16 %v12746_v34, %v12746_v34 }
0x6168   :  { %v9704_v10 = vpop.eup %9703 }
0x6169   :  { %v6073_v36 = vmul.f32 %v9704_v10, %v12236_v43 }
0x616b   :  { %v6074_v29 = vadd.f32 %v6073_v36, %v11390_v45 }
0x616d   :  { %v6075_v51 = vpack.c.bf16 %v6074_v29, %v6074_v29 }
0x616f   :  { %8977 = vmatmul.mubr.msk.bf16.vlgmr.msra.gmra.mrb[176].mxu0 %vm2166_vm7, %v6075_v51 }
0x6170   :  { %8981 = vmatpush3.bf16.msra.mxu0 %v12142_v41  ;;  %8988 = vmatprep.mubr.msk.bf16.mxu0 %vm9779_vm0, %v12735_v0 }
0x6171   :  { %8982 = vmatprep.subr.bf16.mxu0 %v12735_v0 }
0x6174   :  { %8983 = vmatpush3.bf16.msra.mxu0 %v12154_v46 }
0x6175   :  { %8984 = vmatprep.subr.bf16.mxu0 %v12735_v0 }
0x6178   :  { %8985 = vmatpush3.bf16.msra.mxu0 %v12161_v2 }
0x6179   :  { %8986 = vmatprep.subr.bf16.mxu0 %v12735_v0 }
0x617c   :  { %8987 = vmatpush3.bf16.msra.mxu0 %v12168_v37 }
0x617d   :  { %9016 = vmatprep.subr.bf16.mxu0 %v12735_v0 }
0x617f   :  { %8989 = vmatmul.mubr.msk.bf16.vlgmr.msra.gmra.mrb[180].mxu0 %vm2166_vm7, %v6247_v57 }
0x6180   :  { %9017 = vmatpush3.bf16.msra.mxu0 %v12178_v12  ;;  %9024 = vmatprep.mubr.msk.bf16.mxu0 %vm9779_vm0, %v12735_v0 }
0x6181   :  { %9018 = vmatprep.subr.bf16.mxu0 %v12735_v0 }
0x6184   :  { %9019 = vmatpush3.bf16.msra.mxu0 %v12187_v33 }
0x6185   :  { %9020 = vmatprep.subr.bf16.mxu0 %v12735_v0 }
0x6188   :  { %9021 = vmatpush3.bf16.msra.mxu0 %v12194_v11 }
0x6189   :  { %9022 = vmatprep.subr.bf16.mxu0 %v12735_v0 }
0x618c   :  { %9023 = vmatpush3.bf16.msra.mxu0 %v12201_v62  ;;  %v12376_v3 = vpop.xlane.xlu1 %7363 }
0x618d   :  { %9028 = vmatprep.subr.bf16.mxu0 %v12735_v0 }
0x6194   :  { %v12378_v43 = vpop.xlane.xlu1 %7387 }
0x6198   :  { %v7416_v6 = vpop.permute.xlu1 %7415 }
0x6199   :  { %v7418_v18 = vsel %vm5098_vm6, %v7416_v6, 0.0 }
0x619a   :  { %7419 = vadd.xlane.f32.xlu0 %v7418_v18 }
0x6242   :  { %v6113_v56 = vpop.f32.mrb[176].mxu0 }
0x6243   :  { %v6114_v35 = vadd.f32 %v12384_v20, %v6113_v56  ;;  %v8978_v39 = vpop.f32.mrb[177].mxu0 }
0x6244   :  { %v6116_v53 = vpop.f32.mrb[178].mxu0 }
0x6245   :  { %7893 = vst.msk [vmem:[%s12695_s22 + $0x4] sm:$0x3] %vm5469_vm3, %v6114_v35  ;;  %v8979_v55 = vpop.f32.mrb[179].mxu0 }
0x6246   :  { %v12747_v55 = vld [vmem:[#allocation5_spill] sm:$0xff] }
0x6252   :  { %v6285_v21 = vpop.f32.mrb[180].mxu0 }
0x6253   :  { %v6286_v19 = vadd.f32 %v12233_v38, %v6285_v21  ;;  %v8990_v52 = vpop.f32.mrb[181].mxu0 }
0x6254   :  { %v6288_v61 = vpop.f32.mrb[182].mxu0 }
0x6255   :  { %v6291_v8 = vpack.c.bf16 %v6286_v19, %v6286_v19  ;;  %v8991_v22 = vpop.f32.mrb[183].mxu0 }
0x6257   :  { %9001 = vmatmul.mubr.msk.bf16.vlgmr.msra.gmra.mrb[168].mxu1 %vm2166_vm7, %v6291_v8 }
0x6258   :  { %9005 = vmatpush3.bf16.msra.mxu1 %v12244_v59  ;;  %9012 = vmatprep.mubr.msk.bf16.mxu1 %vm9779_vm0, %v12735_v0 }
0x6259   :  { %9006 = vmatprep.subr.bf16.mxu1 %v12735_v0 }
0x625c   :  { %9007 = vmatpush3.bf16.msra.mxu1 %v12253_v15 }
0x625d   :  { %9008 = vmatprep.subr.bf16.mxu1 %v12735_v0 }
0x6260   :  { %9009 = vmatpush3.bf16.msra.mxu1 %v12260_v5 }
0x6261   :  { %9010 = vmatprep.subr.bf16.mxu1 %v12735_v0 }
0x6264   :  { %9011 = vmatpush3.bf16.msra.mxu1 %v12267_v63 }
0x6265   :  { %9040 = vmatprep.subr.bf16.mxu1 %v12735_v0 }
0x6267   :  { %9013 = vmatmul.mubr.msk.bf16.vlgmr.msra.gmra.mrb[168].mxu1 %vm2166_vm7, %v12744_v28 }
0x6268   :  { %9041 = vmatpush3.bf16.msra.mxu1 %v12276_v9  ;;  %9048 = vmatprep.mubr.msk.bf16.mxu1 %vm9779_vm0, %v12735_v0 }
0x6269   :  { %9042 = vmatprep.subr.bf16.mxu1 %v12735_v0 }
0x626c   :  { %9043 = vmatpush3.bf16.msra.mxu1 %v12285_v7 }
0x626d   :  { %9044 = vmatprep.subr.bf16.mxu1 %v12735_v0 }
0x6270   :  { %9045 = vmatpush3.bf16.msra.mxu1 %v12292_v54 }
0x6271   :  { %9046 = vmatprep.subr.bf16.mxu1 %v12735_v0 }
0x6274   :  { %9047 = vmatpush3.bf16.msra.mxu1 %v12745_v42 }
0x6275   :  { %9052 = vmatprep.subr.bf16.mxu1 %v12735_v0 }
0x633a   :  { %v6369_v58 = vpop.f32.mrb[168].mxu1 }
0x633b   :  { %v9227_v26 = vadd.f32 %v11900_v27, %v6369_v58  ;;  %v9014_v49 = vpop.f32.mrb[169].mxu1 }
0x633c   :  { %v6372_v31 = vpop.f32.mrb[170].mxu1 }
0x633d   :  { %v7897_v16 = vmul.f32 -1.442695, %v9227_v26  ;;  %v9015_v32 = vpop.f32.mrb[171].mxu1 }
0x633e   :  { %v12748_v32 = vld [vmem:[#allocation8_spill] sm:$0xff] }
0x633f   :  { %9705 = vpow2.f32 %v7897_v16 }
0x6349   :  { %v9706_v50 = vpop.eup %9705 }
0x634a   :  { %v6379_v24 = vadd.f32 1.0, %v9706_v50  ;;  %v6865_v50 = vpack.c.bf16 %v12748_v32, %v12748_v32 }
0x634c   :  { %9707 = vrcp.f32 %v6379_v24 }
0x6356   :  { %v9708_v25 = vpop.eup %9707 }
0x6357   :  { %v6382_v13 = vmul.f32 %v9708_v25, %v6286_v19 }
0x6359   :  { %v6383_v40 = vadd.f32 %v6382_v13, %v11269_v60 }
0x635b   :  { %v6384_v30 = vpack.c.bf16 %v6383_v40, %v6383_v40 }
0x635d   :  { %9025 = vmatmul.mubr.msk.bf16.vlgmr.msra.gmra.mrb[184].mxu0 %vm2166_vm7, %v6384_v30 }
0x635e   :  { %9029 = vmatpush3.bf16.msra.mxu0 %v12142_v41  ;;  %9036 = vmatprep.mubr.msk.bf16.mxu0 %vm9779_vm0, %v12735_v0 }
0x635f   :  { %9030 = vmatprep.subr.bf16.mxu0 %v12735_v0 }
0x6362   :  { %9031 = vmatpush3.bf16.msra.mxu0 %v12154_v46 }
0x6363   :  { %9032 = vmatprep.subr.bf16.mxu0 %v12735_v0 }
0x6366   :  { %9033 = vmatpush3.bf16.msra.mxu0 %v12161_v2 }
0x6367   :  { %9034 = vmatprep.subr.bf16.mxu0 %v12735_v0 }
0x636a   :  { %9035 = vmatpush3.bf16.msra.mxu0 %v12168_v37 }
0x636b   :  { %9064 = vmatprep.subr.bf16.mxu0 %v12735_v0 }
0x636d   :  { %9037 = vmatmul.mubr.msk.bf16.vlgmr.msra.gmra.mrb[188].mxu0 %vm2166_vm7, %v6556_v1 }
0x636e   :  { %9065 = vmatpush3.bf16.msra.mxu0 %v12178_v12  ;;  %9072 = vmatprep.mubr.msk.bf16.mxu0 %vm9779_vm0, %v12735_v0 }
0x636f   :  { %9066 = vmatprep.subr.bf16.mxu0 %v12735_v0 }
0x6372   :  { %9067 = vmatpush3.bf16.msra.mxu0 %v12187_v33 }
0x6373   :  { %9068 = vmatprep.subr.bf16.mxu0 %v12735_v0 }
0x6376   :  { %9069 = vmatpush3.bf16.msra.mxu0 %v12194_v11 }
0x6377   :  { %9070 = vmatprep.subr.bf16.mxu0 %v12735_v0 }
0x637a   :  { %9071 = vmatpush3.bf16.msra.mxu0 %v12201_v62 }
0x637b   :  { %9076 = vmatprep.subr.bf16.mxu0 %v12735_v0 }
0x6430   :  { %v6422_v10 = vpop.f32.mrb[184].mxu0 }
0x6431   :  { %v6423_v36 = vadd.f32 %v12384_v20, %v6422_v10  ;;  %v9026_v29 = vpop.f32.mrb[185].mxu0 }
0x6432   :  { %v6425_v51 = vpop.f32.mrb[186].mxu0 }
0x6433   :  { %7899 = vst.msk [vmem:[%s12695_s22 + $0x6] sm:$0x3] %vm5469_vm3, %v6423_v36  ;;  %v9027_v57 = vpop.f32.mrb[187].mxu0 }
0x6434   :  { %v12749_v57 = vld [vmem:[#allocation3_spill] sm:$0xff] }
0x6440   :  { %v6594_v6 = vpop.f32.mrb[188].mxu0 }
0x6441   :  { %v6595_v18 = vadd.f32 %v12233_v38, %v6594_v6  ;;  %v9038_v56 = vpop.f32.mrb[189].mxu0 }
0x6442   :  { %v6597_v35 = vpop.f32.mrb[190].mxu0 }
0x6443   :  { %v6600_v39 = vpack.c.bf16 %v6595_v18, %v6595_v18  ;;  %v9039_v53 = vpop.f32.mrb[191].mxu0 }
0x6445   :  { %9049 = vmatmul.mubr.msk.bf16.vlgmr.msra.gmra.mrb[172].mxu1 %vm2166_vm7, %v6600_v39 }
0x6446   :  { %9053 = vmatpush3.bf16.msra.mxu1 %v12244_v59  ;;  %9060 = vmatprep.mubr.msk.bf16.mxu1 %vm9779_vm0, %v12735_v0 }
0x6447   :  { %9054 = vmatprep.subr.bf16.mxu1 %v12735_v0 }
0x644a   :  { %9055 = vmatpush3.bf16.msra.mxu1 %v12253_v15 }
0x644b   :  { %9056 = vmatprep.subr.bf16.mxu1 %v12735_v0 }
0x644e   :  { %9057 = vmatpush3.bf16.msra.mxu1 %v12260_v5 }
0x644f   :  { %9058 = vmatprep.subr.bf16.mxu1 %v12735_v0 }
0x6452   :  { %9059 = vmatpush3.bf16.msra.mxu1 %v12267_v63 }
0x6453   :  { %9088 = vmatprep.subr.bf16.mxu1 %v12735_v0 }
0x6455   :  { %9061 = vmatmul.mubr.msk.bf16.vlgmr.msra.gmra.mrb[172].mxu1 %vm2166_vm7, %v12747_v55 }
0x6456   :  { %9089 = vmatpush3.bf16.msra.mxu1 %v12276_v9  ;;  %9096 = vmatprep.mubr.msk.bf16.mxu1 %vm9779_vm0, %v12735_v0 }
0x6457   :  { %9090 = vmatprep.subr.bf16.mxu1 %v12735_v0 }
0x645a   :  { %9091 = vmatpush3.bf16.msra.mxu1 %v12285_v7 }
0x645b   :  { %9092 = vmatprep.subr.bf16.mxu1 %v12735_v0 }
0x645e   :  { %9093 = vmatpush3.bf16.msra.mxu1 %v12292_v54 }
0x645f   :  { %9094 = vmatprep.subr.bf16.mxu1 %v12735_v0 }
0x6462   :  { %9095 = vmatpush3.bf16.msra.mxu1 %v12745_v42 }
0x6463   :  { %9100 = vmatprep.subr.bf16.mxu1 %v12735_v0 }
0x6528   :  { %v6678_v21 = vpop.f32.mrb[172].mxu1 }
0x6529   :  { %v9229_v19 = vadd.f32 %v11900_v27, %v6678_v21  ;;  %v9062_v52 = vpop.f32.mrb[173].mxu1 }
0x652a   :  { %v6681_v61 = vpop.f32.mrb[174].mxu1 }
0x652b   :  { %v7903_v8 = vmul.f32 -1.442695, %v9229_v19  ;;  %v9063_v22 = vpop.f32.mrb[175].mxu1 }
0x652c   :  { %v7174_v22 = vpack.c.bf16 %v12337_v47, %v12337_v47 }
0x652d   :  { %9709 = vpow2.f32 %v7903_v8 }
0x6537   :  { %v9710_v28 = vpop.eup %9709 }
0x6538   :  { %v6688_v58 = vadd.f32 1.0, %v9710_v28 }
0x653a   :  { %9711 = vrcp.f32 %v6688_v58 }
0x6544   :  { %v9712_v26 = vpop.eup %9711 }
0x6545   :  { %v6691_v49 = vmul.f32 %v9712_v26, %v6595_v18 }
0x6547   :  { %v6692_v31 = vadd.f32 %v6691_v49, %v11450_v14 }
0x6549   :  { %v6693_v16 = vpack.c.bf16 %v6692_v31, %v6692_v31 }
0x654b   :  { %9073 = vmatmul.mubr.msk.bf16.vlgmr.msra.gmra.mrb[192].mxu0 %vm2166_vm7, %v6693_v16 }
0x654c   :  { %9077 = vmatpush3.bf16.msra.mxu0 %v12142_v41  ;;  %9084 = vmatprep.mubr.msk.bf16.mxu0 %vm9779_vm0, %v12735_v0 }
0x654d   :  { %9078 = vmatprep.subr.bf16.mxu0 %v12735_v0 }
0x6550   :  { %9079 = vmatpush3.bf16.msra.mxu0 %v12154_v46 }
0x6551   :  { %9080 = vmatprep.subr.bf16.mxu0 %v12735_v0 }
0x6554   :  { %9081 = vmatpush3.bf16.msra.mxu0 %v12161_v2 }
0x6555   :  { %9082 = vmatprep.subr.bf16.mxu0 %v12735_v0 }
0x6558   :  { %9083 = vmatpush3.bf16.msra.mxu0 %v12168_v37 }
0x6559   :  { %9112 = vmatprep.subr.bf16.mxu0 %v12735_v0 }
0x655b   :  { %9085 = vmatmul.mubr.msk.bf16.vlgmr.msra.gmra.mrb[196].mxu0 %vm2166_vm7, %v6865_v50 }
0x655c   :  { %9113 = vmatpush3.bf16.msra.mxu0 %v12178_v12  ;;  %9120 = vmatprep.mubr.msk.bf16.mxu0 %vm9779_vm0, %v12735_v0 }
0x655d   :  { %9114 = vmatprep.subr.bf16.mxu0 %v12735_v0 }
0x6560   :  { %9115 = vmatpush3.bf16.msra.mxu0 %v12187_v33 }
0x6561   :  { %9116 = vmatprep.subr.bf16.mxu0 %v12735_v0 }
0x6564   :  { %9117 = vmatpush3.bf16.msra.mxu0 %v12194_v11 }
0x6565   :  { %9118 = vmatprep.subr.bf16.mxu0 %v12735_v0 }
0x6568   :  { %9119 = vmatpush3.bf16.msra.mxu0 %v12201_v62 }
0x6569   :  { %9124 = vmatprep.subr.bf16.mxu0 %v12735_v0 }
0x661e   :  { %v6731_v24 = vpop.f32.mrb[192].mxu0 }
0x661f   :  { %v6732_v25 = vadd.f32 %v12384_v20, %v6731_v24  ;;  %v9074_v13 = vpop.f32.mrb[193].mxu0 }
0x6620   :  { %v6734_v40 = vpop.f32.mrb[194].mxu0 }
0x6621   :  { %7905 = vst.msk [vmem:[%s12695_s22 + $0x8] sm:$0x3] %vm5469_vm3, %v6732_v25  ;;  %v9075_v30 = vpop.f32.mrb[195].mxu0 }
0x662e   :  { %v6903_v34 = vpop.f32.mrb[196].mxu0 }
0x662f   :  { %v6904_v1 = vadd.f32 %v12233_v38, %v6903_v34  ;;  %v9086_v10 = vpop.f32.mrb[197].mxu0 }
0x6630   :  { %v6906_v36 = vpop.f32.mrb[198].mxu0 }
0x6631   :  { %v6909_v29 = vpack.c.bf16 %v6904_v1, %v6904_v1  ;;  %v9087_v51 = vpop.f32.mrb[199].mxu0 }
0x6633   :  { %9097 = vmatmul.mubr.msk.bf16.vlgmr.msra.gmra.mrb[176].mxu1 %vm2166_vm7, %v6909_v29 }
0x6634   :  { %9101 = vmatpush3.bf16.msra.mxu1 %v12244_v59  ;;  %9108 = vmatprep.mubr.msk.bf16.mxu1 %vm9779_vm0, %v12735_v0 }
0x6635   :  { %9102 = vmatprep.subr.bf16.mxu1 %v12735_v0 }
0x6638   :  { %9103 = vmatpush3.bf16.msra.mxu1 %v12253_v15 }
0x6639   :  { %9104 = vmatprep.subr.bf16.mxu1 %v12735_v0 }
0x663c   :  { %9105 = vmatpush3.bf16.msra.mxu1 %v12260_v5 }
0x663d   :  { %9106 = vmatprep.subr.bf16.mxu1 %v12735_v0 }
0x6640   :  { %9107 = vmatpush3.bf16.msra.mxu1 %v12267_v63 }
0x6641   :  { %9136 = vmatprep.subr.bf16.mxu1 %v12735_v0 }
0x6643   :  { %9109 = vmatmul.mubr.msk.bf16.vlgmr.msra.gmra.mrb[176].mxu1 %vm2166_vm7, %v12749_v57 }
0x6644   :  { %9137 = vmatpush3.bf16.msra.mxu1 %v12276_v9  ;;  %9144 = vmatprep.mubr.msk.bf16.mxu1 %vm9779_vm0, %v12735_v0 }
0x6645   :  { %9138 = vmatprep.subr.bf16.mxu1 %v12735_v0 }
0x6648   :  { %9139 = vmatpush3.bf16.msra.mxu1 %v12285_v7 }
0x6649   :  { %9140 = vmatprep.subr.bf16.mxu1 %v12735_v0 }
0x664c   :  { %9141 = vmatpush3.bf16.msra.mxu1 %v12292_v54 }
0x664d   :  { %9142 = vmatprep.subr.bf16.mxu1 %v12735_v0 }
0x6650   :  { %9143 = vmatpush3.bf16.msra.mxu1 %v12745_v42 }
0x6651   :  { %9148 = vmatprep.subr.bf16.mxu1 %v12735_v0 }
0x6716   :  { %v6987_v6 = vpop.f32.mrb[176].mxu1 }
0x6717   :  { %v9231_v18 = vadd.f32 %v11900_v27, %v6987_v6  ;;  %v9110_v56 = vpop.f32.mrb[177].mxu1 }
0x6718   :  { %v6990_v35 = vpop.f32.mrb[178].mxu1 }
0x6719   :  { %v7909_v39 = vmul.f32 -1.442695, %v9231_v18  ;;  %v9111_v53 = vpop.f32.mrb[179].mxu1 }
0x671b   :  { %9713 = vpow2.f32 %v7909_v39 }
0x6725   :  { %v9714_v55 = vpop.eup %9713 }
0x6726   :  { %v6997_v21 = vadd.f32 1.0, %v9714_v55 }
0x6728   :  { %9715 = vrcp.f32 %v6997_v21 }
0x6732   :  { %v9716_v19 = vpop.eup %9715 }
0x6733   :  { %v7000_v52 = vmul.f32 %v9716_v19, %v6904_v1 }
0x6735   :  { %v7001_v61 = vadd.f32 %v7000_v52, %v11294_v48 }
0x6737   :  { %v7002_v8 = vpack.c.bf16 %v7001_v61, %v7001_v61 }
0x6739   :  { %9121 = vmatmul.mubr.msk.bf16.vlgmr.msra.gmra.mrb[200].mxu0 %vm2166_vm7, %v7002_v8 }
0x673a   :  { %9125 = vmatpush3.bf16.msra.mxu0 %v12142_v41  ;;  %9132 = vmatprep.mubr.msk.bf16.mxu0 %vm9779_vm0, %v12735_v0 }
0x673b   :  { %9126 = vmatprep.subr.bf16.mxu0 %v12735_v0 }
0x673e   :  { %9127 = vmatpush3.bf16.msra.mxu0 %v12154_v46 }
0x673f   :  { %9128 = vmatprep.subr.bf16.mxu0 %v12735_v0 }
0x6742   :  { %9129 = vmatpush3.bf16.msra.mxu0 %v12161_v2 }
0x6743   :  { %9130 = vmatprep.subr.bf16.mxu0 %v12735_v0 }
0x6746   :  { %9131 = vmatpush3.bf16.msra.mxu0 %v12168_v37 }
0x6747   :  { %9160 = vmatprep.subr.bf16.mxu0 %v12735_v0 }
0x6749   :  { %9133 = vmatmul.mubr.msk.bf16.vlgmr.msra.gmra.mrb[204].mxu0 %vm2166_vm7, %v7174_v22 }
0x674a   :  { %9161 = vmatpush3.bf16.msra.mxu0 %v12178_v12  ;;  %9168 = vmatprep.mubr.msk.bf16.mxu0 %vm9779_vm0, %v12735_v0 }
0x674b   :  { %9162 = vmatprep.subr.bf16.mxu0 %v12735_v0 }
0x674e   :  { %9163 = vmatpush3.bf16.msra.mxu0 %v12187_v33 }
0x674f   :  { %9164 = vmatprep.subr.bf16.mxu0 %v12735_v0 }
0x6752   :  { %9165 = vmatpush3.bf16.msra.mxu0 %v12194_v11 }
0x6753   :  { %9166 = vmatprep.subr.bf16.mxu0 %v12735_v0 }
0x6756   :  { %9167 = vmatpush3.bf16.msra.mxu0 %v12201_v62 }
0x6757   :  { %9172 = vmatprep.subr.bf16.mxu0 %v12735_v0 }
0x680c   :  { %v7040_v41 = vpop.f32.mrb[200].mxu0 }
0x680d   :  { %v7041_v46 = vadd.f32 %v12384_v20, %v7040_v41  ;;  %v9122_v2 = vpop.f32.mrb[201].mxu0 }
0x680e   :  { %v7043_v37 = vpop.f32.mrb[202].mxu0 }
0x680f   :  { %7911 = vst.msk [vmem:[%s12695_s22 + $0xa] sm:$0x3] %vm5469_vm3, %v7041_v46  ;;  %v9123_v12 = vpop.f32.mrb[203].mxu0 }
0x681c   :  { %v7212_v33 = vpop.f32.mrb[204].mxu0 }
0x681d   :  { %v12557_v11 = vadd.f32 %v12233_v38, %v7212_v33  ;;  %v9134_v47 = vpop.f32.mrb[205].mxu0  ;;  %v12750_v38 = vld [vmem:[#allocation6_spill] sm:$0xff] }
0x681e   :  { %v7215_v28 = vpop.f32.mrb[206].mxu0 }
0x681f   :  { %v7218_v62 = vpack.c.bf16 %v12557_v11, %v12557_v11  ;;  %v9135_v58 = vpop.f32.mrb[207].mxu0 }
0x6821   :  { %9145 = vmatmul.mubr.msk.bf16.vlgmr.msra.gmra.mrb[180].mxu1 %vm2166_vm7, %v7218_v62 }
0x6822   :  { %9149 = vmatpush3.bf16.msra.mxu1 %v12244_v59  ;;  %9156 = vmatprep.mubr.msk.bf16.mxu1 %vm9779_vm0, %v12735_v0  ;;  %v7372_v59 = vpop.xlane.xlu0 %7371 }
0x6823   :  { %9150 = vmatprep.subr.bf16.mxu1 %v12735_v0 }
0x6826   :  { %9151 = vmatpush3.bf16.msra.mxu1 %v12253_v15  ;;  %v7380_v15 = vpop.xlane.xlu0 %7379 }
0x6827   :  { %9152 = vmatprep.subr.bf16.mxu1 %v12735_v0 }
0x682a   :  { %9153 = vmatpush3.bf16.msra.mxu1 %v12260_v5  ;;  %v7396_v5 = vpop.xlane.xlu0 %7395 }
0x682b   :  { %9154 = vmatprep.subr.bf16.mxu1 %v12735_v0 }
0x682e   :  { %9155 = vmatpush3.bf16.msra.mxu1 %v12267_v63  ;;  %v7421_v63 = vmax.f32 %v12376_v3, %v7372_v59  ;;  %v7404_v26 = vpop.xlane.xlu0 %7403 }
0x682f   :  { %9184 = vmatprep.subr.bf16.mxu1 %v12735_v0 }
0x6831   :  { %9157 = vmatmul.mubr.msk.bf16.vlgmr.msra.gmra.mrb[180].mxu1 %vm2166_vm7, %v12750_v38 }
0x6832   :  { %9185 = vmatpush3.bf16.msra.mxu1 %v12276_v9  ;;  %9192 = vmatprep.mubr.msk.bf16.mxu1 %vm9779_vm0, %v12735_v0  ;;  %v7422_v9 = vmax.f32 %v7421_v63, %v7380_v15 }
0x6833   :  { %9186 = vmatprep.subr.bf16.mxu1 %v12735_v0 }
0x6834   :  { %v7423_v49 = vmax.f32 %v7422_v9, %v12378_v43 }
0x6836   :  { %9187 = vmatpush3.bf16.msra.mxu1 %v12285_v7  ;;  %v7412_v7 = vpop.xlane.xlu0 %7411  ;;  %v7424_v31 = vmax.f32 %v7423_v49, %v7396_v5 }
0x6837   :  { %9188 = vmatprep.subr.bf16.mxu1 %v12735_v0 }
0x6838   :  { %v7425_v16 = vmax.f32 %v7424_v31, %v7404_v26 }
0x683a   :  { %9189 = vmatpush3.bf16.msra.mxu1 %v12292_v54  ;;  %v7420_v32 = vpop.xlane.xlu0 %7419  ;;  %v7426_v54 = vmax.f32 %v7425_v16, %v7412_v7 }
0x683b   :  { %9190 = vmatprep.subr.bf16.mxu1 %v12735_v0 }
0x683c   :  { %v7427_v50 = vmax.f32 %v7426_v54, %v7420_v32 }
0x683e   :  { %9191 = vmatpush3.bf16.msra.mxu1 %v12745_v42  ;;  %v7428_v24 = vsub.f32 %v12376_v3, %v7427_v50  ;;  %v7431_v42 = vsub.f32 %v7372_v59, %v7427_v50  ;;  %v7434_v40 = vsub.f32 %v7380_v15, %v7427_v50  ;;  %v7437_v34 = vsub.f32 %v12378_v43, %v7427_v50 }
0x683f   :  { %9196 = vmatprep.subr.bf16.mxu1 %v12735_v0  ;;  %v7440_v10 = vsub.f32 %v7396_v5, %v7427_v50  ;;  %v7443_v57 = vsub.f32 %v7404_v26, %v7427_v50  ;;  %v7446_v18 = vsub.f32 %v7412_v7, %v7427_v50  ;;  %v7449_v53 = vsub.f32 %v7420_v32, %v7427_v50 }
0x6840   :  { %v7429_v25 = vmul.f32 1.442695, %v7428_v24  ;;  %v7432_v13 = vmul.f32 1.442695, %v7431_v42  ;;  %v7435_v30 = vmul.f32 1.442695, %v7434_v40 }
0x6841   :  { %v7438_v1 = vmul.f32 1.442695, %v7437_v34  ;;  %v7441_v51 = vmul.f32 1.442695, %v7440_v10  ;;  %v7444_v3 = vmul.f32 1.442695, %v7443_v57 }
0x6842   :  { %9717 = vpow2.f32 %v7429_v25  ;;  %v7447_v39 = vmul.f32 1.442695, %v7446_v18  ;;  %v7450_v43 = vmul.f32 1.442695, %v7449_v53  ;;  %v9769_v57 = vld [vmem:[%s12691_s20] sm:$0xff]   ;;  %v9772_v18 = vld [vmem:[%s12691_s20 + $0x18] sm:$0xff]  }
0x6843   :  { %9719 = vpow2.f32 %v7432_v13 }
0x6844   :  { %9721 = vpow2.f32 %v7435_v30 }
0x6845   :  { %9723 = vpow2.f32 %v7438_v1  ;;  %v9766_v1 = vld [vmem:[%s12687_s14 + $0x8] sm:$0xff]  }
0x6846   :  { %9725 = vpow2.f32 %v7441_v51 }
0x6847   :  { %9727 = vpow2.f32 %v7444_v3  ;;  %v9771_v3 = vld [vmem:[%s12691_s20 + $0x10] sm:$0xff]  }
0x6848   :  { %9729 = vpow2.f32 %v7447_v39 }
0x6849   :  { %9731 = vpow2.f32 %v7450_v43  ;;  %v9773_v43 = vld [vmem:[%s12690_s15] ss:$0 sm:$0xff] }
0x684c   :  { %v9718_v36 = vpop.eup %9717 }
0x684d   :  { %v9720_v29 = vpop.eup %9719 }
0x684e   :  { %v7452_v6 = vadd.f32 %v9720_v29, %v9718_v36  ;;  %v9722_v56 = vpop.eup %9721 }
0x684f   :  { %v9724_v55 = vpop.eup %9723 }
0x6850   :  { %v7453_v35 = vadd.f32 %v9722_v56, %v7452_v6  ;;  %v9726_v19 = vpop.eup %9725  ;;  %v9770_v6 = vld [vmem:[%s12691_s20 + $0x8] sm:$0xff]  }
0x6851   :  { %v9728_v61 = vpop.eup %9727 }
0x6852   :  { %v7454_v21 = vadd.f32 %v9724_v55, %v7453_v35  ;;  %v9730_v22 = vpop.eup %9729 }
0x6853   :  { %v9732_v46 = vpop.eup %9731 }
0x6854   :  { %v7455_v52 = vadd.f32 %v9726_v19, %v7454_v21 }
0x6856   :  { %v7456_v8 = vadd.f32 %v9728_v61, %v7455_v52 }
0x6858   :  { %v7457_v41 = vadd.f32 %v9730_v22, %v7456_v8 }
0x685a   :  { %v7458_v2 = vadd.f32 %v9732_v46, %v7457_v41  ;;  %v9774_v41 = vld [vmem:[%s12689_s18] sm:$0xff]  }
0x685c   :  { %9733 = vrcp.f32 %v7458_v2  ;;  %v9776_v2 = vld [vmem:[%s12689_s18 + $0x10] sm:$0xff]  }
0x6866   :  { %v9734_v58 = vpop.eup %9733 }
0x6867   :  { %v7460_v38 = vmul.f32 %v9734_v58, %v9718_v36  ;;  %v7462_v59 = vmul.f32 %v9734_v58, %v9720_v29  ;;  %v7465_v26 = vmul.f32 %v9734_v58, %v9722_v56  ;;  %v7468_v31 = vmul.f32 %v9734_v58, %v9724_v55  ;;  %v9767_v36 = vld [vmem:[%s12687_s14 + $0x10] sm:$0xff]  }
0x6868   :  { %v7471_v54 = vmul.f32 %v9734_v58, %v9726_v19  ;;  %v7474_v13 = vmul.f32 %v9734_v58, %v9728_v61  ;;  %v7477_v30 = vmul.f32 %v9734_v58, %v9730_v22 }
0x6869   :  { %v7461_v63 = vmul.f32 %v7460_v38, %v11371_v17  ;;  %v7463_v9 = vmul.f32 %v7462_v59, %v11244_v44  ;;  %v7466_v7 = vmul.f32 %v7465_v26, %v11390_v45  ;;  %v7469_v32 = vmul.f32 %v7468_v31, %v11269_v60  ;;  %v9765_v60 = vld [vmem:[%s12687_s14] sm:$0xff]  }
0x686a   :  { %v7472_v17 = vmul.f32 %v7471_v54, %v11450_v14  ;;  %v7475_v45 = vmul.f32 %v7474_v13, %v11294_v48  ;;  %v7480_v14 = vmul.f32 %v9734_v58, %v9732_v46  ;;  %v7478_v34 = vmul.f32 %v7477_v30, %v11472_v4  ;;  %v9775_v46 = vld [vmem:[%s12689_s18 + $0x8] sm:$0xff]  }
0x686b   :  { %v7464_v49 = vadd.f32 %v7463_v9, %v7461_v63 }
0x686c   :  { %v7481_v10 = vmul.f32 %v7480_v14, %v11634_v23 }
0x686d   :  { %v7467_v16 = vadd.f32 %v7466_v7, %v7464_v49 }
0x686f   :  { %v7470_v42 = vadd.f32 %v7469_v32, %v7467_v16 }
0x6871   :  { %v7473_v40 = vadd.f32 %v7472_v17, %v7470_v42 }
0x6904   :  { %v7296_v37 = vpop.f32.mrb[180].mxu1 }
0x6905   :  { %v9233_v12 = vadd.f32 %v11900_v27, %v7296_v37  ;;  %v9158_v33 = vpop.f32.mrb[181].mxu1  ;;  %v9777_v37 = vld [vmem:[%s12689_s18 + $0x18] sm:$0xff]  }
0x6906   :  { %v7299_v47 = vpop.f32.mrb[182].mxu1 }
0x6907   :  { %v7915_v28 = vmul.f32 -1.442695, %v9233_v12  ;;  %v9159_v62 = vpop.f32.mrb[183].mxu1  ;;  %v7571_v12 = vpack.c.bf16 %v11634_v23, %v11634_v23 }
0x6909   :  { %9735 = vpow2.f32 %v7915_v28 }
0x6913   :  { %v9736_v15 = vpop.eup %9735 }
0x6914   :  { %v7306_v5 = vadd.f32 1.0, %v9736_v15 }
0x6916   :  { %9737 = vrcp.f32 %v7306_v5 }
0x6920   :  { %v9738_v50 = vpop.eup %9737 }
0x6921   :  { %v7309_v24 = vmul.f32 %v9738_v50, %v12557_v11  ;;  %v7476_v11 = vadd.f32 %v7475_v45, %v7473_v40 }
0x6923   :  { %v7310_v25 = vadd.f32 %v7309_v24, %v11472_v4  ;;  %v7479_v48 = vadd.f32 %v7478_v34, %v7476_v11  ;;  %v9768_v4 = vld [vmem:[%s12687_s14 + $0x18] sm:$0xff]  }
0x6925   :  { %v7311_v44 = vpack.c.bf16 %v7310_v25, %v7310_v25  ;;  %v7482_v29 = vadd.f32 %v7481_v10, %v7479_v48 }
0x6927   :  { %9169 = vmatmul.mubr.msk.bf16.vlgmr.msra.gmra.mrb[208].mxu0 %vm2166_vm7, %v7311_v44  ;;  %v7483_v51 = vpack.c.bf16 %v7482_v29, %v7482_v29 }
0x6928   :  { %9173 = vmatpush3.bf16.msra.mxu0 %v9765_v60  ;;  %9180 = vmatprep.mubr.msk.bf16.mxu0 %vm9779_vm0, %v12735_v0 }
0x6929   :  { %9174 = vmatprep.subr.bf16.mxu0 %v12735_v0 }
0x692c   :  { %9175 = vmatpush3.bf16.msra.mxu0 %v9766_v1 }
0x692d   :  { %9176 = vmatprep.subr.bf16.mxu0 %v12735_v0 }
0x6930   :  { %9177 = vmatpush3.bf16.msra.mxu0 %v9767_v36 }
0x6931   :  { %9178 = vmatprep.subr.bf16.mxu0 %v12735_v0 }
0x6934   :  { %9179 = vmatpush3.bf16.msra.mxu0 %v9768_v4 }
0x6935   :  { %9208 = vmatprep.subr.bf16.mxu0 %v12735_v0 }
0x6937   :  { %9181 = vmatmul.mubr.msk.bf16.vlgmr.msra.gmra.mrb[212].mxu0 %vm2166_vm7, %v7483_v51 }
0x6938   :  { %9209 = vmatpush3.bf16.msra.mxu0 %v9769_v57  ;;  %9216 = vmatprep.mubr.msk.bf16.mxu0 %vm9779_vm0, %v12735_v0 }
0x6939   :  { %9210 = vmatprep.subr.bf16.mxu0 %v12735_v0 }
0x693c   :  { %9211 = vmatpush3.bf16.msra.mxu0 %v9770_v6 }
0x693d   :  { %9212 = vmatprep.subr.bf16.mxu0 %v12735_v0 }
0x6940   :  { %9213 = vmatpush3.bf16.msra.mxu0 %v9771_v3 }
0x6941   :  { %9214 = vmatprep.subr.bf16.mxu0 %v12735_v0 }
0x6944   :  { %9215 = vmatpush3.bf16.msra.mxu0 %v9772_v18 }
0x69fa   :  { %v7349_v56 = vpop.f32.mrb[208].mxu0 }
0x69fb   :  { %v7350_v35 = vadd.f32 %v12384_v20, %v7349_v56  ;;  %v9170_v39 = vpop.f32.mrb[209].mxu0 }
0x69fc   :  { %v7352_v53 = vpop.f32.mrb[210].mxu0 }
0x69fd   :  { %7917 = vst.msk [vmem:[%s12695_s22 + $0xc] sm:$0x3] %vm5469_vm3, %v7350_v35  ;;  %v9171_v55 = vpop.f32.mrb[211].mxu0 }
0x6a0a   :  { %v7521_v21 = vpop.f32.mrb[212].mxu0 }
0x6a0b   :  { %v7522_v19 = vadd.f32 %v9773_v43, %v7521_v21  ;;  %v9182_v52 = vpop.f32.mrb[213].mxu0 }
0x6a0c   :  { %v7524_v61 = vpop.f32.mrb[214].mxu0 }
0x6a0d   :  { %v7527_v8 = vpack.c.bf16 %v7522_v19, %v7522_v19  ;;  %v9183_v22 = vpop.f32.mrb[215].mxu0 }
0x6a0f   :  { %9193 = vmatmul.mubr.msk.bf16.vlgmr.msra.gmra.mrb[184].mxu1 %vm2166_vm7, %v7527_v8 }
0x6a10   :  { %9197 = vmatpush3.bf16.msra.mxu1 %v9774_v41  ;;  %9204 = vmatprep.mubr.msk.bf16.mxu1 %vm9779_vm0, %v12735_v0 }
0x6a11   :  { %9198 = vmatprep.subr.bf16.mxu1 %v12735_v0 }
0x6a14   :  { %9199 = vmatpush3.bf16.msra.mxu1 %v9775_v46 }
0x6a15   :  { %9200 = vmatprep.subr.bf16.mxu1 %v12735_v0 }
0x6a18   :  { %9201 = vmatpush3.bf16.msra.mxu1 %v9776_v2 }
0x6a19   :  { %9202 = vmatprep.subr.bf16.mxu1 %v12735_v0 }
0x6a1c   :  { %9203 = vmatpush3.bf16.msra.mxu1 %v9777_v37 }
0x6a1f   :  { %9205 = vmatmul.mubr.msk.bf16.vlgmr.msra.gmra.mrb[184].mxu1 %vm2166_vm7, %v7571_v12 }
0x6af2   :  { %v7609_v33 = vpop.f32.mrb[184].mxu1 }
0x6af3   :  { %v9235_v47 = vadd.f32 %v11900_v27, %v7609_v33  ;;  %v9206_v28 = vpop.f32.mrb[185].mxu1 }
0x6af4   :  { %v7612_v62 = vpop.f32.mrb[186].mxu1 }
0x6af5   :  { %v7921_v58 = vmul.f32 -1.442695, %v9235_v47  ;;  %v9207_v38 = vpop.f32.mrb[187].mxu1 }
0x6af7   :  { %9739 = vpow2.f32 %v7921_v58 }
0x6b01   :  { %v9740_v59 = vpop.eup %9739 }
0x6b02   :  { %v7619_v0 = vadd.f32 1.0, %v9740_v59 }
0x6b04   :  { %9741 = vrcp.f32 %v7619_v0 }
0x6b0e   :  { %v9742_v15 = vpop.eup %9741 }
0x6b0f   :  { %v7622_v5 = vmul.f32 %v9742_v15, %v7522_v19 }
0x6b11   :  { %v7623_v63 = vadd.f32 %v7622_v5, %v11634_v23 }
0x6b13   :  { %v7624_v9 = vpack.c.bf16 %v7623_v63, %v7623_v63 }
0x6b15   :  { %9217 = vmatmul.mubr.msk.bf16.vlgmr.msra.gmra.mrb[216].mxu0 %vm2166_vm7, %v7624_v9 }
0x6be8   :  { %v7662_v26 = vpop.f32.mrb[216].mxu0 }
0x6be9   :  { %v7663_v49 = vadd.f32 %v12384_v20, %v7662_v26  ;;  %v9218_v7 = vpop.f32.mrb[217].mxu0 }
0x6bea   :  { %v7665_v27 = vpop.f32.mrb[218].mxu0 }
0x6beb   :  { %7923 = vst.msk [vmem:[%s12695_s22 + $0xe] sm:$0x3] %vm5469_vm3, %v7663_v49  ;;  %v9219_v31 = vpop.f32.mrb[219].mxu0 }

</bundles_post_ra>
